<compile_context>
chip_gen: v7x
topology: tpu7x:2x2x1
jax: 0.10.0
libtpu: 0.0.40
codegen_flags: <defaults>
</compile_context>

<pallas_src>
import math
from functools import partial

import jax
import jax.numpy as jnp
from jax.experimental import pallas as pl
from jax.experimental.pallas import tpu as pltpu


_GELU_C = 0.7978845608028654    # sqrt(2/pi)
_LN_EPS = 1e-5                  # nn.LayerNorm default


def _vmem_limit_bytes():
    """<= 64 MiB and <= 3/4 of physical per-core VMEM (v7x has only 64 MiB/TC)."""
    try:
        cap = getattr(pltpu.get_tpu_info(), "vmem_capacity_bytes", None)
        if cap:
            return int(min(64 * 1024 * 1024, (3 * cap) // 4))
    except Exception:
        pass
    return 48 * 1024 * 1024


_VMEM_LIMIT = _vmem_limit_bytes()


# ------------------------------------------------------------------ helpers
def _pick_tile(dim, target, align):
    """Largest tile <= target that is a multiple of `align` and divides `dim`; else full dim."""
    if dim <= target:
        return dim
    t = (target // align) * align
    while t >= align:
        if dim % t == 0:
            return t
        t -= align
    return dim


def _layernorm_f32(x, gamma, beta, eps):
    xf = x.astype(jnp.float32)
    mean = jnp.mean(xf, axis=-1, keepdims=True)
    xc = xf - mean
    var = jnp.mean(xc * xc, axis=-1, keepdims=True)
    xn = xc * jax.lax.rsqrt(var + eps)
    return xn * gamma.astype(jnp.float32) + beta.astype(jnp.float32)


def _gelu_tanh(x):
    return 0.5 * x * (1.0 + jnp.tanh(_GELU_C * (x + 0.044715 * x * x * x)))


# ------------------------------------------------------------------ kernels
def _mm_kernel(*refs, has_bias, has_res):
    """K-tiled matmul with fp32 accumulator; optional bias + residual fused in the epilogue."""
    x_ref, w_ref = refs[0], refs[1]
    i = 2
    b_ref = r_ref = None
    if has_bias:
        b_ref = refs[i]; i += 1
    if has_res:
        r_ref = refs[i]; i += 1
    o_ref, acc_ref = refs[i], refs[i + 1]

    k = pl.program_id(2)

    @pl.when(k == 0)
    def _():
        acc_ref[...] = jnp.zeros_like(acc_ref)

    acc_ref[...] += jnp.dot(x_ref[...], w_ref[...], preferred_element_type=jnp.float32)

    @pl.when(k == pl.num_programs(2) - 1)
    def _():
        out = acc_ref[...]
        if has_bias:
            out = out + b_ref[...].astype(jnp.float32)
        if has_res:
            out = out + r_ref[...].astype(jnp.float32)
        o_ref[...] = out.astype(o_ref.dtype)


def pallas_matmul(x, w, bias=None, residual=None, *, tm=256, tn=256, tk=512):
    """y = x @ w (+ bias) (+ residual).  x: (..., K), w: (K, N)."""
    orig_shape = x.shape
    K = orig_shape[-1]
    N = w.shape[1]
    x2 = x.reshape(-1, K)
    M = x2.shape[0]
    tm = _pick_tile(M, tm, 8)
    tn = _pick_tile(N, tn, 128)
    tk = _pick_tile(K, tk, 128)
    grid = (M // tm, N // tn, K // tk)

    in_specs = [pl.BlockSpec((tm, tk), lambda i, j, k: (i, k)),
                pl.BlockSpec((tk, tn), lambda i, j, k: (k, j))]
    args = [x2, w]
    nbytes = x2.size * x2.dtype.itemsize + w.size * w.dtype.itemsize + M * N * x.dtype.itemsize
    if bias is not None:
        in_specs.append(pl.BlockSpec((1, tn), lambda i, j, k: (0, j)))
        args.append(bias.reshape(1, N))
        nbytes += N * bias.dtype.itemsize
    if residual is not None:
        in_specs.append(pl.BlockSpec((tm, tn), lambda i, j, k: (i, j)))
        args.append(residual.reshape(M, N))
        nbytes += M * N * residual.dtype.itemsize

    out = pl.pallas_call(
        partial(_mm_kernel, has_bias=bias is not None, has_res=residual is not None),
        grid=grid,
        in_specs=in_specs,
        out_specs=pl.BlockSpec((tm, tn), lambda i, j, k: (i, j)),
        out_shape=jax.ShapeDtypeStruct((M, N), x.dtype),
        scratch_shapes=[pltpu.VMEM((tm, tn), jnp.float32)],
        compiler_params=pltpu.CompilerParams(
            dimension_semantics=("parallel", "parallel", "arbitrary"),
            vmem_limit_bytes=_VMEM_LIMIT),
        cost_estimate=pl.CostEstimate(flops=int(2 * M * N * K), transcendentals=0,
                                      bytes_accessed=int(nbytes)),
    )(*args)
    return out.reshape(orig_shape[:-1] + (N,))


def _ln_matmul_kernel(x_ref, g_ref, b_ref, w_ref, o_ref, xn_ref, *, eps):
    """LayerNorm prologue hoisted to j==0 (reused for all N tiles) fused with a no-bias projection."""
    @pl.when(pl.program_id(1) == 0)
    def _():
        xn_ref[...] = _layernorm_f32(x_ref[...], g_ref[...], b_ref[...], eps).astype(xn_ref.dtype)

    o_ref[...] = jnp.dot(xn_ref[...], w_ref[...],
                         preferred_element_type=jnp.float32).astype(o_ref.dtype)


def pallas_ln_matmul(x, gamma, beta, w, *, tm=256, tn=256):
    orig_shape = x.shape
    K = orig_shape[-1]
    N = w.shape[1]
    x2 = x.reshape(-1, K)
    M = x2.shape[0]
    tm = _pick_tile(M, tm, 8)
    tn = _pick_tile(N, tn, 128)
    grid = (M // tm, N // tn)
    nbytes = (x2.size + w.size) * x2.dtype.itemsize + M * N * x.dtype.itemsize
    out = pl.pallas_call(
        partial(_ln_matmul_kernel, eps=_LN_EPS),
        grid=grid,
        in_specs=[pl.BlockSpec((tm, K), lambda i, j: (i, 0)),
                  pl.BlockSpec((1, K), lambda i, j: (0, 0)),
                  pl.BlockSpec((1, K), lambda i, j: (0, 0)),
                  pl.BlockSpec((K, tn), lambda i, j: (0, j))],
        out_specs=pl.BlockSpec((tm, tn), lambda i, j: (i, j)),
        out_shape=jax.ShapeDtypeStruct((M, N), x.dtype),
        scratch_shapes=[pltpu.VMEM((tm, K), x.dtype)],
        compiler_params=pltpu.CompilerParams(
            dimension_semantics=("parallel", "parallel"),
            vmem_limit_bytes=_VMEM_LIMIT),
        cost_estimate=pl.CostEstimate(flops=int(2 * M * N * K), transcendentals=int(M),
                                      bytes_accessed=int(nbytes)),
    )(x2, gamma.reshape(1, K), beta.reshape(1, K), w)
    return out.reshape(orig_shape[:-1] + (N,))


def _ln_geglu_kernel(x_ref, g_ref, b_ref, wh_ref, bh_ref, wg_ref, bg_ref, o_ref, xn_ref, *, eps):
    """LayerNorm (hoisted to j==0) -> GEGLU: value_proj * gelu(gate_proj) in one kernel."""
    @pl.when(pl.program_id(1) == 0)
    def _():
        xn_ref[...] = _layernorm_f32(x_ref[...], g_ref[...], b_ref[...], eps).astype(xn_ref.dtype)

    xn = xn_ref[...]
    h = jnp.dot(xn, wh_ref[...], preferred_element_type=jnp.float32) + bh_ref[...].astype(jnp.float32)
    g = jnp.dot(xn, wg_ref[...], preferred_element_type=jnp.float32) + bg_ref[...].astype(jnp.float32)
    o_ref[...] = (h * _gelu_tanh(g)).astype(o_ref.dtype)


def pallas_ln_geglu(x, gamma, beta, wh, bh, wg, bg, *, tm=256, tn=256):
    orig_shape = x.shape
    K = orig_shape[-1]
    N = wh.shape[1]
    x2 = x.reshape(-1, K)
    M = x2.shape[0]
    tm = _pick_tile(M, tm, 8)
    tn = _pick_tile(N, tn, 128)
    grid = (M // tm, N // tn)
    nbytes = (x2.size + wh.size + wg.size) * x2.dtype.itemsize + M * N * x.dtype.itemsize
    out = pl.pallas_call(
        partial(_ln_geglu_kernel, eps=_LN_EPS),
        grid=grid,
        in_specs=[pl.BlockSpec((tm, K), lambda i, j: (i, 0)),
                  pl.BlockSpec((1, K), lambda i, j: (0, 0)),
                  pl.BlockSpec((1, K), lambda i, j: (0, 0)),
                  pl.BlockSpec((K, tn), lambda i, j: (0, j)),
                  pl.BlockSpec((1, tn), lambda i, j: (0, j)),
                  pl.BlockSpec((K, tn), lambda i, j: (0, j)),
                  pl.BlockSpec((1, tn), lambda i, j: (0, j))],
        out_specs=pl.BlockSpec((tm, tn), lambda i, j: (i, j)),
        out_shape=jax.ShapeDtypeStruct((M, N), x.dtype),
        scratch_shapes=[pltpu.VMEM((tm, K), x.dtype)],
        compiler_params=pltpu.CompilerParams(
            dimension_semantics=("parallel", "parallel"),
            vmem_limit_bytes=_VMEM_LIMIT),
        cost_estimate=pl.CostEstimate(flops=int(4 * M * N * K), transcendentals=int(M * N + M),
                                      bytes_accessed=int(nbytes)),
    )(x2, gamma.reshape(1, K), beta.reshape(1, K), wh, bh.reshape(1, N), wg, bg.reshape(1, N))
    return out.reshape(orig_shape[:-1] + (N,))


def _attn_kernel(q_ref, k_ref, v_ref, o_ref):
    """Batched single-pass softmax attention: Bblk (b,h) problems per grid step.

    Softmax scale is already folded into Wq in the wrapper (zero runtime cost)."""
    s = jnp.einsum('bqd,bkd->bqk', q_ref[...], k_ref[...],
                   preferred_element_type=jnp.float32)
    m = jnp.max(s, axis=-1, keepdims=True)
    p = jnp.exp(s - m)
    l = jnp.sum(p, axis=-1, keepdims=True)
    acc = jnp.einsum('bqk,bkd->bqd', p.astype(v_ref.dtype), v_ref[...],
                     preferred_element_type=jnp.float32)
    o_ref[...] = (acc * pl.reciprocal(l, approx=False)).astype(o_ref.dtype)


def pallas_attention(q, k, v, *, bblk=256):
    """q: (B*H, Fq, hd); k, v: (B*H, Skv, hd) -> (B*H, Fq, hd).  Skv assumed small (temporal)."""
    BH, Fq, hd = q.shape
    Skv = k.shape[1]
    bb = _pick_tile(BH, bblk, 8)
    grid = (BH // bb,)
    q_spec = pl.BlockSpec((bb, Fq, hd), lambda i: (i, 0, 0))
    kv_spec = pl.BlockSpec((bb, Skv, hd), lambda i: (i, 0, 0))
    flops = 4 * BH * Fq * Skv * hd
    nbytes = (q.size + k.size + v.size + q.size) * q.dtype.itemsize
    return pl.pallas_call(
        _attn_kernel,
        grid=grid,
        in_specs=[q_spec, kv_spec, kv_spec],
        out_specs=q_spec,
        out_shape=jax.ShapeDtypeStruct(q.shape, q.dtype),
        compiler_params=pltpu.CompilerParams(
            dimension_semantics=("parallel",),
            vmem_limit_bytes=_VMEM_LIMIT),
        cost_estimate=pl.CostEstimate(flops=int(flops), transcendentals=int(BH * Fq * Skv),
                                      bytes_accessed=int(nbytes)),
    )(q, k, v)


# ------------------------------------------------------------------ forward
def temporal_basic_transformer_block(params, hidden_states, num_frames, encoder_hidden_states=None):
    """Forward pass of TemporalBasicTransformerBlock (cross-attention enabled if encoder given)."""
    BF, S, C = hidden_states.shape
    B = BF // num_frames
    H = params["num_heads"]
    hd = params["head_dim"]
    D = H * hd                    # time_mix_inner_dim
    is_res = (C == D)
    F = num_frames

    # (batch*frames, seq, C) -> (batch*seq, frames, C)
    x = hidden_states.reshape(B, F, S, C).transpose(0, 2, 1, 3).reshape(B * S, F, C)
    BS = B * S

    # ---- norm_in + ff_in (GEGLU) fused; second linear fuses bias + residual
    g = pallas_ln_geglu(x, params["norm_in_g"], params["norm_in_b"],
                        params["ffin_wh"], params["ffin_bh"],
                        params["ffin_wg"], params["ffin_bg"])
    x = pallas_matmul(g, params["ffin_w2"], bias=params["ffin_b2"],
                      residual=x if is_res else None)          # (BS, F, D)

    # ---- attn1: temporal self-attention; norm1 fused into the (Wq*scale | Wk | Wv) projection
    qkv = pallas_ln_matmul(x, params["norm1_g"], params["norm1_b"], params["attn1_wqkv"])
    qkv = qkv.reshape(BS, F, 3, H, hd)
    q = qkv[:, :, 0].transpose(0, 2, 1, 3).reshape(BS * H, F, hd)
    k = qkv[:, :, 1].transpose(0, 2, 1, 3).reshape(BS * H, F, hd)
    v = qkv[:, :, 2].transpose(0, 2, 1, 3).reshape(BS * H, F, hd)
    attn = pallas_attention(q, k, v)                           # (BS*H, F, hd)
    attn = attn.reshape(BS, H, F, hd).transpose(0, 2, 1, 3).reshape(BS, F, D)
    x = pallas_matmul(attn, params["attn1_wo"], bias=params["attn1_bo"], residual=x)

    # ---- attn2: cross attention against encoder_hidden_states (norm2 fused into q projection)
    if encoder_hidden_states is not None:
        S_enc = encoder_hidden_states.shape[1]
        q2 = pallas_ln_matmul(x, params["norm2_g"], params["norm2_b"], params["attn2_wq"])
        kv2 = pallas_matmul(encoder_hidden_states, params["attn2_wkv"])   # (BS, S_enc, 2D), no bias
        q2 = q2.reshape(BS, F, H, hd).transpose(0, 2, 1, 3).reshape(BS * H, F, hd)
        kv2 = kv2.reshape(BS, S_enc, 2, H, hd)
        k2 = kv2[:, :, 0].transpose(0, 2, 1, 3).reshape(BS * H, S_enc, hd)
        v2 = kv2[:, :, 1].transpose(0, 2, 1, 3).reshape(BS * H, S_enc, hd)
        attn2 = pallas_attention(q2, k2, v2)
        attn2 = attn2.reshape(BS, H, F, hd).transpose(0, 2, 1, 3).reshape(BS, F, D)
        x = pallas_matmul(attn2, params["attn2_wo"], bias=params["attn2_bo"], residual=x)

    # ---- norm3 + ff (GEGLU) fused; second linear fuses bias + residual
    g = pallas_ln_geglu(x, params["norm3_g"], params["norm3_b"],
                        params["ff_wh"], params["ff_bh"],
                        params["ff_wg"], params["ff_bg"])
    x = pallas_matmul(g, params["ff_w2"], bias=params["ff_b2"],
                      residual=x if is_res else None)

    # (batch*seq, frames, D) -> (batch*frames, seq, D)
    out = x.reshape(B, S, F, D).transpose(0, 2, 1, 3).reshape(B * F, S, D)
    return out


# ------------------------------------------------------------------ params
def init_params(key, dim, time_mix_inner_dim, num_heads, head_dim, cross_attention_dim,
                dtype=jnp.bfloat16):
    D = num_heads * head_dim
    assert D == time_mix_inner_dim
    ffin_inner = 4 * dim
    ff_inner = 4 * time_mix_inner_dim
    scale = 1.0 / math.sqrt(head_dim)

    keys = iter(jax.random.split(key, 40))

    def w(shape, s=0.02):
        return jax.random.normal(next(keys), shape, jnp.float32) * s

    p = {"num_heads": num_heads, "head_dim": head_dim}

    # LayerNorm affine params (fp32; LN statistics computed in fp32 in-kernel anyway)
    for name, d in [("norm_in", dim), ("norm1", D), ("norm2", D), ("norm3", D)]:
        p[name + "_g"] = jnp.ones((d,), jnp.float32) + w((d,), 0.05)
        p[name + "_b"] = w((d,), 0.05)

    # ff_in: GEGLU proj (dim -> ffin_inner value/gate) + Linear(ffin_inner -> D)
    p["ffin_wh"], p["ffin_bh"] = w((dim, ffin_inner)), w((ffin_inner,))
    p["ffin_wg"], p["ffin_bg"] = w((dim, ffin_inner)), w((ffin_inner,))
    p["ffin_w2"], p["ffin_b2"] = w((ffin_inner, D)), w((D,))

    # attn1: fused QKV (softmax scale folded into Wq), no qkv bias; out projection with bias
    wq, wk, wv = w((D, D)) * scale, w((D, D)), w((D, D))
    p["attn1_wqkv"] = jnp.concatenate([wq, wk, wv], axis=1)
    p["attn1_wo"], p["attn1_bo"] = w((D, D)), w((D,))

    # attn2: cross attention (q from hidden, k/v from encoder_hidden_states), no qkv bias
    p["attn2_wq"] = w((D, D)) * scale
    wk2, wv2 = w((cross_attention_dim, D)), w((cross_attention_dim, D))
    p["attn2_wkv"] = jnp.concatenate([wk2, wv2], axis=1)
    p["attn2_wo"], p["attn2_bo"] = w((D, D)), w((D,))

    # ff: GEGLU proj (D -> ff_inner value/gate) + Linear(ff_inner -> D)
    p["ff_wh"], p["ff_bh"] = w((D, ff_inner)), w((ff_inner,))
    p["ff_wg"], p["ff_bg"] = w((D, ff_inner)), w((ff_inner,))
    p["ff_w2"], p["ff_b2"] = w((ff_inner, D)), w((D,))

    # bf16 matmul operands; LayerNorm affine params stay fp32.
    for name in list(p.keys()):
        if isinstance(p[name], jax.Array) and not name.startswith("norm"):
            p[name] = p[name].astype(dtype)
    return p


# ------------------------------------------------------------------ main
if __name__ == "__main__":
    dim = 32
    time_mix_inner_dim = 32      # == dim -> is_res path (standard SVD config)
    num_heads = 2
    head_dim = 16
    cross_attention_dim = 64
    batch_size = 2
    num_frames = 8
    seq_length = 16
    S_enc = 8

    key = jax.random.PRNGKey(0)
    k_h, k_e, k_p = jax.random.split(key, 3)
    hidden_states = jax.random.normal(
        k_h, (batch_size * num_frames, seq_length, dim), jnp.float32).astype(jnp.bfloat16)
    encoder_hidden_states = jax.random.normal(
        k_e, (batch_size * seq_length, S_enc, cross_attention_dim), jnp.float32).astype(jnp.bfloat16)

    params = init_params(k_p, dim, time_mix_inner_dim, num_heads, head_dim,
                         cross_attention_dim, dtype=jnp.bfloat16)

    fwd = jax.jit(lambda h, e: temporal_basic_transformer_block(params, h, num_frames, e))
    out = fwd(hidden_states, encoder_hidden_states)
    jax.block_until_ready(out)

    assert out.shape == (batch_size * num_frames, seq_length, time_mix_inner_dim)
    assert bool(jnp.all(jnp.isfinite(out.astype(jnp.float32))))
    print("KERNEL_OK")
</pallas_src>

<mosaic_0001>
module attributes {stable_mosaic.version = 11 : i64} {
  func.func @_ln_matmul_kernel(%arg0: i32, %arg1: i32, %arg2: memref<256x32xbf16, #tpu.memory_space<vmem>>, %arg3: memref<1x32xf32, #tpu.memory_space<vmem>>, %arg4: memref<1x32xf32, #tpu.memory_space<vmem>>, %arg5: memref<32x96xbf16, #tpu.memory_space<vmem>>, %arg6: memref<256x96xbf16, #tpu.memory_space<vmem>>, %arg7: memref<256x32xbf16, #tpu.memory_space<vmem>>) attributes {dimension_semantics = [#tpu.dimension_semantics<parallel>, #tpu.dimension_semantics<parallel>], iteration_bounds = array<i64: 1, 1>, scalar_prefetch = 0 : i64, scratch_operands = 1 : i64, tpu.core_type = #tpu.core_type<tc>, window_params = [{transform_indices = @transform_0, window_bounds = array<i64: 256, 32>}, {pipeline_mode = #tpu.pipeline_mode<synchronous>, transform_indices = @transform_1, window_bounds = array<i64: 1, 32>}, {pipeline_mode = #tpu.pipeline_mode<synchronous>, transform_indices = @transform_2, window_bounds = array<i64: 1, 32>}, {transform_indices = @transform_3, window_bounds = array<i64: 32, 96>}, {transform_indices = @transform_4, window_bounds = array<i64: 256, 96>}]} {
    %c0_i32 = arith.constant 0 : i32
    %0 = arith.cmpi eq, %arg1, %c0_i32 : i32
    %1 = arith.extui %0 : i1 to i32
    %c0_i32_0 = arith.constant 0 : i32
    %2 = arith.cmpi ne, %1, %c0_i32_0 : i32
    scf.if %2 {
      %c0_6 = arith.constant 0 : index
      %c0_7 = arith.constant 0 : index
      %8 = vector.load %arg2[%c0_6, %c0_7] : memref<256x32xbf16, #tpu.memory_space<vmem>>, vector<256x32xbf16>
      %c0_8 = arith.constant 0 : index
      %c0_9 = arith.constant 0 : index
      %9 = vector.load %arg3[%c0_8, %c0_9] : memref<1x32xf32, #tpu.memory_space<vmem>>, vector<1x32xf32>
      %c0_10 = arith.constant 0 : index
      %c0_11 = arith.constant 0 : index
      %10 = vector.load %arg4[%c0_10, %c0_11] : memref<1x32xf32, #tpu.memory_space<vmem>>, vector<1x32xf32>
      %11 = arith.extf %8 : vector<256x32xbf16> to vector<256x32xf32>
      %cst_12 = arith.constant dense<0.000000e+00> : vector<256xf32>
      %12 = vector.multi_reduction <add>, %11, %cst_12 [1] : vector<256x32xf32> to vector<256xf32>
      %13 = vector.shape_cast %12 : vector<256xf32> to vector<256x1xf32>
      %cst_13 = arith.constant 3.200000e+01 : f32
      %14 = vector.broadcast %cst_13 : f32 to vector<256x1xf32>
      %15 = arith.divf %13, %14 : vector<256x1xf32>
      %16 = vector.broadcast %15 : vector<256x1xf32> to vector<256x32xf32>
      %17 = arith.subf %11, %16 : vector<256x32xf32>
      %18 = arith.mulf %17, %17 : vector<256x32xf32>
      %cst_14 = arith.constant dense<0.000000e+00> : vector<256xf32>
      %19 = vector.multi_reduction <add>, %18, %cst_14 [1] : vector<256x32xf32> to vector<256xf32>
      %20 = vector.shape_cast %19 : vector<256xf32> to vector<256x1xf32>
      %cst_15 = arith.constant 3.200000e+01 : f32
      %21 = vector.broadcast %cst_15 : f32 to vector<256x1xf32>
      %22 = arith.divf %20, %21 : vector<256x1xf32>
      %cst_16 = arith.constant 9.99999974E-6 : f32
      %23 = vector.broadcast %cst_16 : f32 to vector<256x1xf32>
      %24 = arith.addf %22, %23 : vector<256x1xf32>
      %25 = math.rsqrt %24 : vector<256x1xf32>
      %26 = vector.broadcast %25 : vector<256x1xf32> to vector<256x32xf32>
      %27 = arith.mulf %17, %26 : vector<256x32xf32>
      %28 = vector.broadcast %9 : vector<1x32xf32> to vector<256x32xf32>
      %29 = arith.mulf %27, %28 : vector<256x32xf32>
      %30 = vector.broadcast %10 : vector<1x32xf32> to vector<256x32xf32>
      %31 = arith.addf %29, %30 : vector<256x32xf32>
      %32 = arith.truncf %31 : vector<256x32xf32> to vector<256x32xbf16>
      %c0_17 = arith.constant 0 : index
      %c0_18 = arith.constant 0 : index
      %33 = vector.load %arg7[%c0_17, %c0_18] : memref<256x32xbf16, #tpu.memory_space<vmem>>, vector<256x32xbf16>
      tpu.vector_store %arg7[%c0_17, %c0_18], %32 {strides = array<i32>} : memref<256x32xbf16, #tpu.memory_space<vmem>>, vector<256x32xbf16>,
    } else {
    }
    %c0 = arith.constant 0 : index
    %c0_1 = arith.constant 0 : index
    %3 = vector.load %arg7[%c0, %c0_1] : memref<256x32xbf16, #tpu.memory_space<vmem>>, vector<256x32xbf16>
    %c0_2 = arith.constant 0 : index
    %c0_3 = arith.constant 0 : index
    %4 = vector.load %arg5[%c0_2, %c0_3] : memref<32x96xbf16, #tpu.memory_space<vmem>>, vector<32x96xbf16>
    %cst = arith.constant dense<0.000000e+00> : vector<256x96xf32>
    %5 = tpu.matmul %3, %4, %cst {dimension_numbers = #tpu.dot_dimension_numbers<[1], [0], [0], [1], [0, 0, 1, 1], [], []>} : vector<256x32xbf16>, vector<32x96xbf16>, vector<256x96xf32> -> vector<256x96xf32>
    %6 = arith.truncf %5 : vector<256x96xf32> to vector<256x96xbf16>
    %c0_4 = arith.constant 0 : index
    %c0_5 = arith.constant 0 : index
    %7 = vector.load %arg6[%c0_4, %c0_5] : memref<256x96xbf16, #tpu.memory_space<vmem>>, vector<256x96xbf16>
    tpu.vector_store %arg6[%c0_4, %c0_5], %6 {strides = array<i32>} : memref<256x96xbf16, #tpu.memory_space<vmem>>, vector<256x96xbf16>,
    return
  }
  func.func @transform_0(%arg0: i32, %arg1: i32) -> (i32, i32) {
    %c0_i32 = arith.constant 0 : i32
    %c0_i32_0 = arith.constant 0 : i32
    return %arg0, %c0_i32 : i32, i32
  }
  func.func @transform_1(%arg0: i32, %arg1: i32) -> (i32, i32) {
    %c0_i32 = arith.constant 0 : i32
    %c0_i32_0 = arith.constant 0 : i32
    %c0_i32_1 = arith.constant 0 : i32
    return %c0_i32, %c0_i32_0 : i32, i32
  }
  func.func @transform_2(%arg0: i32, %arg1: i32) -> (i32, i32) {
    %c0_i32 = arith.constant 0 : i32
    %c0_i32_0 = arith.constant 0 : i32
    %c0_i32_1 = arith.constant 0 : i32
    return %c0_i32, %c0_i32_0 : i32, i32
  }
  func.func @transform_3(%arg0: i32, %arg1: i32) -> (i32, i32) {
    %c0_i32 = arith.constant 0 : i32
    %c0_i32_0 = arith.constant 0 : i32
    return %c0_i32, %arg1 : i32, i32
  }
  func.func @transform_4(%arg0: i32, %arg1: i32) -> (i32, i32) {
    %c0_i32 = arith.constant 0 : i32
    return %arg0, %arg1 : i32, i32
  }
}

module attributes {stable_mosaic.version = 11 : i64} {
  func.func @_mm_kernel(%arg0: i32, %arg1: i32, %arg2: i32, %arg3: memref<256x128xbf16, #tpu.memory_space<vmem>>, %arg4: memref<128x32xbf16, #tpu.memory_space<vmem>>, %arg5: memref<1x32xbf16, #tpu.memory_space<vmem>>, %arg6: memref<256x32xbf16, #tpu.memory_space<vmem>>, %arg7: memref<256x32xbf16, #tpu.memory_space<vmem>>, %arg8: memref<256x32xf32, #tpu.memory_space<vmem>>) attributes {dimension_semantics = [#tpu.dimension_semantics<parallel>, #tpu.dimension_semantics<parallel>, #tpu.dimension_semantics<arbitrary>], iteration_bounds = array<i64: 1, 1, 1>, scalar_prefetch = 0 : i64, scratch_operands = 1 : i64, tpu.core_type = #tpu.core_type<tc>, window_params = [{transform_indices = @transform_0, window_bounds = array<i64: 256, 128>}, {transform_indices = @transform_1, window_bounds = array<i64: 128, 32>}, {transform_indices = @transform_2, window_bounds = array<i64: 1, 32>}, {transform_indices = @transform_3, window_bounds = array<i64: 256, 32>}, {transform_indices = @transform_4, window_bounds = array<i64: 256, 32>}]} {
    %c0_i32 = arith.constant 0 : i32
    %0 = arith.cmpi eq, %arg2, %c0_i32 : i32
    %1 = arith.extui %0 : i1 to i32
    %c0_i32_0 = arith.constant 0 : i32
    %2 = arith.cmpi ne, %1, %c0_i32_0 : i32
    scf.if %2 {
      %cst_10 = arith.constant 0.000000e+00 : f32
      %12 = vector.broadcast %cst_10 : f32 to vector<256x32xf32>
      %c0_11 = arith.constant 0 : index
      %c0_12 = arith.constant 0 : index
      %13 = vector.load %arg8[%c0_11, %c0_12] : memref<256x32xf32, #tpu.memory_space<vmem>>, vector<256x32xf32>
      tpu.vector_store %arg8[%c0_11, %c0_12], %12 {strides = array<i32>} : memref<256x32xf32, #tpu.memory_space<vmem>>, vector<256x32xf32>,
    } else {
    }
    %c0 = arith.constant 0 : index
    %c0_1 = arith.constant 0 : index
    %3 = vector.load %arg8[%c0, %c0_1] : memref<256x32xf32, #tpu.memory_space<vmem>>, vector<256x32xf32>
    %c0_2 = arith.constant 0 : index
    %c0_3 = arith.constant 0 : index
    %4 = vector.load %arg3[%c0_2, %c0_3] : memref<256x128xbf16, #tpu.memory_space<vmem>>, vector<256x128xbf16>
    %c0_4 = arith.constant 0 : index
    %c0_5 = arith.constant 0 : index
    %5 = vector.load %arg4[%c0_4, %c0_5] : memref<128x32xbf16, #tpu.memory_space<vmem>>, vector<128x32xbf16>
    %cst = arith.constant dense<0.000000e+00> : vector<256x32xf32>
    %6 = tpu.matmul %4, %5, %cst {dimension_numbers = #tpu.dot_dimension_numbers<[1], [0], [0], [1], [0, 0, 1, 1], [], []>} : vector<256x128xbf16>, vector<128x32xbf16>, vector<256x32xf32> -> vector<256x32xf32>
    %7 = arith.addf %3, %6 : vector<256x32xf32>
    %c0_6 = arith.constant 0 : index
    %c0_7 = arith.constant 0 : index
    %8 = vector.load %arg8[%c0_6, %c0_7] : memref<256x32xf32, #tpu.memory_space<vmem>>, vector<256x32xf32>
    tpu.vector_store %arg8[%c0_6, %c0_7], %7 {strides = array<i32>} : memref<256x32xf32, #tpu.memory_space<vmem>>, vector<256x32xf32>,
    %c0_i32_8 = arith.constant 0 : i32
    %9 = arith.cmpi eq, %arg2, %c0_i32_8 : i32
    %10 = arith.extui %9 : i1 to i32
    %c0_i32_9 = arith.constant 0 : i32
    %11 = arith.cmpi ne, %10, %c0_i32_9 : i32
    scf.if %11 {
      %c0_10 = arith.constant 0 : index
      %c0_11 = arith.constant 0 : index
      %12 = vector.load %arg8[%c0_10, %c0_11] : memref<256x32xf32, #tpu.memory_space<vmem>>, vector<256x32xf32>
      %c0_12 = arith.constant 0 : index
      %c0_13 = arith.constant 0 : index
      %13 = vector.load %arg5[%c0_12, %c0_13] : memref<1x32xbf16, #tpu.memory_space<vmem>>, vector<1x32xbf16>
      %14 = arith.extf %13 : vector<1x32xbf16> to vector<1x32xf32>
      %15 = vector.broadcast %14 : vector<1x32xf32> to vector<256x32xf32>
      %16 = arith.addf %12, %15 : vector<256x32xf32>
      %c0_14 = arith.constant 0 : index
      %c0_15 = arith.constant 0 : index
      %17 = vector.load %arg6[%c0_14, %c0_15] : memref<256x32xbf16, #tpu.memory_space<vmem>>, vector<256x32xbf16>
      %18 = arith.extf %17 : vector<256x32xbf16> to vector<256x32xf32>
      %19 = arith.addf %16, %18 : vector<256x32xf32>
      %20 = arith.truncf %19 : vector<256x32xf32> to vector<256x32xbf16>
      %c0_16 = arith.constant 0 : index
      %c0_17 = arith.constant 0 : index
      %21 = vector.load %arg7[%c0_16, %c0_17] : memref<256x32xbf16, #tpu.memory_space<vmem>>, vector<256x32xbf16>
      tpu.vector_store %arg7[%c0_16, %c0_17], %20 {strides = array<i32>} : memref<256x32xbf16, #tpu.memory_space<vmem>>, vector<256x32xbf16>,
    } else {
    }
    return
  }
  func.func @transform_0(%arg0: i32, %arg1: i32, %arg2: i32) -> (i32, i32) {
    %c0_i32 = arith.constant 0 : i32
    return %arg0, %arg2 : i32, i32
  }
  func.func @transform_1(%arg0: i32, %arg1: i32, %arg2: i32) -> (i32, i32) {
    %c0_i32 = arith.constant 0 : i32
    return %arg2, %arg1 : i32, i32
  }
  func.func @transform_2(%arg0: i32, %arg1: i32, %arg2: i32) -> (i32, i32) {
    %c0_i32 = arith.constant 0 : i32
    %c0_i32_0 = arith.constant 0 : i32
    return %c0_i32, %arg1 : i32, i32
  }
  func.func @transform_3(%arg0: i32, %arg1: i32, %arg2: i32) -> (i32, i32) {
    %c0_i32 = arith.constant 0 : i32
    return %arg0, %arg1 : i32, i32
  }
  func.func @transform_4(%arg0: i32, %arg1: i32, %arg2: i32) -> (i32, i32) {
    %c0_i32 = arith.constant 0 : i32
    return %arg0, %arg1 : i32, i32
  }
}

module attributes {stable_mosaic.version = 11 : i64} {
  func.func @_ln_geglu_kernel(%arg0: i32, %arg1: i32, %arg2: memref<256x32xbf16, #tpu.memory_space<vmem>>, %arg3: memref<1x32xf32, #tpu.memory_space<vmem>>, %arg4: memref<1x32xf32, #tpu.memory_space<vmem>>, %arg5: memref<32x128xbf16, #tpu.memory_space<vmem>>, %arg6: memref<1x128xbf16, #tpu.memory_space<vmem>>, %arg7: memref<32x128xbf16, #tpu.memory_space<vmem>>, %arg8: memref<1x128xbf16, #tpu.memory_space<vmem>>, %arg9: memref<256x128xbf16, #tpu.memory_space<vmem>>, %arg10: memref<256x32xbf16, #tpu.memory_space<vmem>>) attributes {dimension_semantics = [#tpu.dimension_semantics<parallel>, #tpu.dimension_semantics<parallel>], iteration_bounds = array<i64: 1, 1>, scalar_prefetch = 0 : i64, scratch_operands = 1 : i64, tpu.core_type = #tpu.core_type<tc>, window_params = [{transform_indices = @transform_0, window_bounds = array<i64: 256, 32>}, {pipeline_mode = #tpu.pipeline_mode<synchronous>, transform_indices = @transform_1, window_bounds = array<i64: 1, 32>}, {pipeline_mode = #tpu.pipeline_mode<synchronous>, transform_indices = @transform_2, window_bounds = array<i64: 1, 32>}, {transform_indices = @transform_3, window_bounds = array<i64: 32, 128>}, {transform_indices = @transform_4, window_bounds = array<i64: 1, 128>}, {transform_indices = @transform_5, window_bounds = array<i64: 32, 128>}, {transform_indices = @transform_6, window_bounds = array<i64: 1, 128>}, {transform_indices = @transform_7, window_bounds = array<i64: 256, 128>}]} {
    %c0_i32 = arith.constant 0 : i32
    %0 = arith.cmpi eq, %arg1, %c0_i32 : i32
    %1 = arith.extui %0 : i1 to i32
    %c0_i32_0 = arith.constant 0 : i32
    %2 = arith.cmpi ne, %1, %c0_i32_0 : i32
    scf.if %2 {
      %c0_17 = arith.constant 0 : index
      %c0_18 = arith.constant 0 : index
      %32 = vector.load %arg2[%c0_17, %c0_18] : memref<256x32xbf16, #tpu.memory_space<vmem>>, vector<256x32xbf16>
      %c0_19 = arith.constant 0 : index
      %c0_20 = arith.constant 0 : index
      %33 = vector.load %arg3[%c0_19, %c0_20] : memref<1x32xf32, #tpu.memory_space<vmem>>, vector<1x32xf32>
      %c0_21 = arith.constant 0 : index
      %c0_22 = arith.constant 0 : index
      %34 = vector.load %arg4[%c0_21, %c0_22] : memref<1x32xf32, #tpu.memory_space<vmem>>, vector<1x32xf32>
      %35 = arith.extf %32 : vector<256x32xbf16> to vector<256x32xf32>
      %cst_23 = arith.constant dense<0.000000e+00> : vector<256xf32>
      %36 = vector.multi_reduction <add>, %35, %cst_23 [1] : vector<256x32xf32> to vector<256xf32>
      %37 = vector.shape_cast %36 : vector<256xf32> to vector<256x1xf32>
      %cst_24 = arith.constant 3.200000e+01 : f32
      %38 = vector.broadcast %cst_24 : f32 to vector<256x1xf32>
      %39 = arith.divf %37, %38 : vector<256x1xf32>
      %40 = vector.broadcast %39 : vector<256x1xf32> to vector<256x32xf32>
      %41 = arith.subf %35, %40 : vector<256x32xf32>
      %42 = arith.mulf %41, %41 : vector<256x32xf32>
      %cst_25 = arith.constant dense<0.000000e+00> : vector<256xf32>
      %43 = vector.multi_reduction <add>, %42, %cst_25 [1] : vector<256x32xf32> to vector<256xf32>
      %44 = vector.shape_cast %43 : vector<256xf32> to vector<256x1xf32>
      %cst_26 = arith.constant 3.200000e+01 : f32
      %45 = vector.broadcast %cst_26 : f32 to vector<256x1xf32>
      %46 = arith.divf %44, %45 : vector<256x1xf32>
      %cst_27 = arith.constant 9.99999974E-6 : f32
      %47 = vector.broadcast %cst_27 : f32 to vector<256x1xf32>
      %48 = arith.addf %46, %47 : vector<256x1xf32>
      %49 = math.rsqrt %48 : vector<256x1xf32>
      %50 = vector.broadcast %49 : vector<256x1xf32> to vector<256x32xf32>
      %51 = arith.mulf %41, %50 : vector<256x32xf32>
      %52 = vector.broadcast %33 : vector<1x32xf32> to vector<256x32xf32>
      %53 = arith.mulf %51, %52 : vector<256x32xf32>
      %54 = vector.broadcast %34 : vector<1x32xf32> to vector<256x32xf32>
      %55 = arith.addf %53, %54 : vector<256x32xf32>
      %56 = arith.truncf %55 : vector<256x32xf32> to vector<256x32xbf16>
      %c0_28 = arith.constant 0 : index
      %c0_29 = arith.constant 0 : index
      %57 = vector.load %arg10[%c0_28, %c0_29] : memref<256x32xbf16, #tpu.memory_space<vmem>>, vector<256x32xbf16>
      tpu.vector_store %arg10[%c0_28, %c0_29], %56 {strides = array<i32>} : memref<256x32xbf16, #tpu.memory_space<vmem>>, vector<256x32xbf16>,
    } else {
    }
    %c0 = arith.constant 0 : index
    %c0_1 = arith.constant 0 : index
    %3 = vector.load %arg10[%c0, %c0_1] : memref<256x32xbf16, #tpu.memory_space<vmem>>, vector<256x32xbf16>
    %c0_2 = arith.constant 0 : index
    %c0_3 = arith.constant 0 : index
    %4 = vector.load %arg5[%c0_2, %c0_3] : memref<32x128xbf16, #tpu.memory_space<vmem>>, vector<32x128xbf16>
    %cst = arith.constant dense<0.000000e+00> : vector<256x128xf32>
    %5 = tpu.matmul %3, %4, %cst {dimension_numbers = #tpu.dot_dimension_numbers<[1], [0], [0], [1], [0, 0, 1, 1], [], []>} : vector<256x32xbf16>, vector<32x128xbf16>, vector<256x128xf32> -> vector<256x128xf32>
    %c0_4 = arith.constant 0 : index
    %c0_5 = arith.constant 0 : index
    %6 = vector.load %arg6[%c0_4, %c0_5] : memref<1x128xbf16, #tpu.memory_space<vmem>>, vector<1x128xbf16>
    %7 = arith.extf %6 : vector<1x128xbf16> to vector<1x128xf32>
    %8 = vector.broadcast %7 : vector<1x128xf32> to vector<256x128xf32>
    %9 = arith.addf %5, %8 : vector<256x128xf32>
    %c0_6 = arith.constant 0 : index
    %c0_7 = arith.constant 0 : index
    %10 = vector.load %arg7[%c0_6, %c0_7] : memref<32x128xbf16, #tpu.memory_space<vmem>>, vector<32x128xbf16>
    %cst_8 = arith.constant dense<0.000000e+00> : vector<256x128xf32>
    %11 = tpu.matmul %3, %10, %cst_8 {dimension_numbers = #tpu.dot_dimension_numbers<[1], [0], [0], [1], [0, 0, 1, 1], [], []>} : vector<256x32xbf16>, vector<32x128xbf16>, vector<256x128xf32> -> vector<256x128xf32>
    %c0_9 = arith.constant 0 : index
    %c0_10 = arith.constant 0 : index
    %12 = vector.load %arg8[%c0_9, %c0_10] : memref<1x128xbf16, #tpu.memory_space<vmem>>, vector<1x128xbf16>
    %13 = arith.extf %12 : vector<1x128xbf16> to vector<1x128xf32>
    %14 = vector.broadcast %13 : vector<1x128xf32> to vector<256x128xf32>
    %15 = arith.addf %11, %14 : vector<256x128xf32>
    %cst_11 = arith.constant 5.000000e-01 : f32
    %16 = vector.broadcast %cst_11 : f32 to vector<256x128xf32>
    %17 = arith.mulf %16, %15 : vector<256x128xf32>
    %cst_12 = arith.constant 4.471500e-02 : f32
    %18 = vector.broadcast %cst_12 : f32 to vector<256x128xf32>
    %19 = arith.mulf %18, %15 : vector<256x128xf32>
    %20 = arith.mulf %19, %15 : vector<256x128xf32>
    %21 = arith.mulf %20, %15 : vector<256x128xf32>
    %22 = arith.addf %15, %21 : vector<256x128xf32>
    %cst_13 = arith.constant 0.797884583 : f32
    %23 = vector.broadcast %cst_13 : f32 to vector<256x128xf32>
    %24 = arith.mulf %23, %22 : vector<256x128xf32>
    %25 = math.tanh %24 : vector<256x128xf32>
    %cst_14 = arith.constant 1.000000e+00 : f32
    %26 = vector.broadcast %cst_14 : f32 to vector<256x128xf32>
    %27 = arith.addf %26, %25 : vector<256x128xf32>
    %28 = arith.mulf %17, %27 : vector<256x128xf32>
    %29 = arith.mulf %9, %28 : vector<256x128xf32>
    %30 = arith.truncf %29 : vector<256x128xf32> to vector<256x128xbf16>
    %c0_15 = arith.constant 0 : index
    %c0_16 = arith.constant 0 : index
    %31 = vector.load %arg9[%c0_15, %c0_16] : memref<256x128xbf16, #tpu.memory_space<vmem>>, vector<256x128xbf16>
    tpu.vector_store %arg9[%c0_15, %c0_16], %30 {strides = array<i32>} : memref<256x128xbf16, #tpu.memory_space<vmem>>, vector<256x128xbf16>,
    return
  }
  func.func @transform_0(%arg0: i32, %arg1: i32) -> (i32, i32) {
    %c0_i32 = arith.constant 0 : i32
    %c0_i32_0 = arith.constant 0 : i32
    return %arg0, %c0_i32 : i32, i32
  }
  func.func @transform_1(%arg0: i32, %arg1: i32) -> (i32, i32) {
    %c0_i32 = arith.constant 0 : i32
    %c0_i32_0 = arith.constant 0 : i32
    %c0_i32_1 = arith.constant 0 : i32
    return %c0_i32, %c0_i32_0 : i32, i32
  }
  func.func @transform_2(%arg0: i32, %arg1: i32) -> (i32, i32) {
    %c0_i32 = arith.constant 0 : i32
    %c0_i32_0 = arith.constant 0 : i32
    %c0_i32_1 = arith.constant 0 : i32
    return %c0_i32, %c0_i32_0 : i32, i32
  }
  func.func @transform_3(%arg0: i32, %arg1: i32) -> (i32, i32) {
    %c0_i32 = arith.constant 0 : i32
    %c0_i32_0 = arith.constant 0 : i32
    return %c0_i32, %arg1 : i32, i32
  }
  func.func @transform_4(%arg0: i32, %arg1: i32) -> (i32, i32) {
    %c0_i32 = arith.constant 0 : i32
    %c0_i32_0 = arith.constant 0 : i32
    return %c0_i32, %arg1 : i32, i32
  }
  func.func @transform_5(%arg0: i32, %arg1: i32) -> (i32, i32) {
    %c0_i32 = arith.constant 0 : i32
    %c0_i32_0 = arith.constant 0 : i32
    return %c0_i32, %arg1 : i32, i32
  }
  func.func @transform_6(%arg0: i32, %arg1: i32) -> (i32, i32) {
    %c0_i32 = arith.constant 0 : i32
    %c0_i32_0 = arith.constant 0 : i32
    return %c0_i32, %arg1 : i32, i32
  }
  func.func @transform_7(%arg0: i32, %arg1: i32) -> (i32, i32) {
    %c0_i32 = arith.constant 0 : i32
    return %arg0, %arg1 : i32, i32
  }
}

module attributes {stable_mosaic.version = 11 : i64} {
  func.func @_attn_kernel(%arg0: i32, %arg1: memref<64x8x16xbf16, #tpu.memory_space<vmem>>, %arg2: memref<64x8x16xbf16, #tpu.memory_space<vmem>>, %arg3: memref<64x8x16xbf16, #tpu.memory_space<vmem>>, %arg4: memref<64x8x16xbf16, #tpu.memory_space<vmem>>) attributes {dimension_semantics = [#tpu.dimension_semantics<parallel>], iteration_bounds = array<i64: 1>, scalar_prefetch = 0 : i64, scratch_operands = 0 : i64, tpu.core_type = #tpu.core_type<tc>, window_params = [{transform_indices = @transform_0, window_bounds = array<i64: 64, 8, 16>}, {transform_indices = @transform_1, window_bounds = array<i64: 64, 8, 16>}, {transform_indices = @transform_2, window_bounds = array<i64: 64, 8, 16>}, {transform_indices = @transform_3, window_bounds = array<i64: 64, 8, 16>}]} {
    %c0 = arith.constant 0 : index
    %c0_0 = arith.constant 0 : index
    %c0_1 = arith.constant 0 : index
    %0 = vector.load %arg1[%c0, %c0_0, %c0_1] : memref<64x8x16xbf16, #tpu.memory_space<vmem>>, vector<64x8x16xbf16>
    %c0_2 = arith.constant 0 : index
    %c0_3 = arith.constant 0 : index
    %c0_4 = arith.constant 0 : index
    %1 = vector.load %arg2[%c0_2, %c0_3, %c0_4] : memref<64x8x16xbf16, #tpu.memory_space<vmem>>, vector<64x8x16xbf16>
    "tpu.trace_start"() <{level = 10 : i32, message = "bqd,bkd->bqk"}> : () -> ()
    %cst = arith.constant dense<0.000000e+00> : vector<64x8x8xf32>
    %2 = tpu.matmul %0, %1, %cst {dimension_numbers = #tpu.dot_dimension_numbers<[2], [2], [1], [1], [0, 0, 0, 1, 1, 1], [0], [0]>} : vector<64x8x16xbf16>, vector<64x8x16xbf16>, vector<64x8x8xf32> -> vector<64x8x8xf32>
    "tpu.trace_stop"() : () -> ()
    %cst_5 = arith.constant dense<0xFF800000> : vector<64x8xf32>
    %3 = vector.multi_reduction <maximumf>, %2, %cst_5 [2] : vector<64x8x8xf32> to vector<64x8xf32>
    %4 = vector.shape_cast %3 : vector<64x8xf32> to vector<64x8x1xf32>
    %5 = vector.broadcast %4 : vector<64x8x1xf32> to vector<64x8x8xf32>
    %6 = arith.subf %2, %5 : vector<64x8x8xf32>
    %7 = math.exp %6 : vector<64x8x8xf32>
    %cst_6 = arith.constant dense<0.000000e+00> : vector<64x8xf32>
    %8 = vector.multi_reduction <add>, %7, %cst_6 [2] : vector<64x8x8xf32> to vector<64x8xf32>
    %9 = vector.shape_cast %8 : vector<64x8xf32> to vector<64x8x1xf32>
    %10 = arith.truncf %7 : vector<64x8x8xf32> to vector<64x8x8xbf16>
    %c0_7 = arith.constant 0 : index
    %c0_8 = arith.constant 0 : index
    %c0_9 = arith.constant 0 : index
    %11 = vector.load %arg3[%c0_7, %c0_8, %c0_9] : memref<64x8x16xbf16, #tpu.memory_space<vmem>>, vector<64x8x16xbf16>
    "tpu.trace_start"() <{level = 10 : i32, message = "bqk,bkd->bqd"}> : () -> ()
    %cst_10 = arith.constant dense<0.000000e+00> : vector<64x8x16xf32>
    %12 = tpu.matmul %10, %11, %cst_10 {dimension_numbers = #tpu.dot_dimension_numbers<[2], [1], [1], [2], [0, 0, 0, 1, 1, 2], [0], [0]>} : vector<64x8x8xbf16>, vector<64x8x16xbf16>, vector<64x8x16xf32> -> vector<64x8x16xf32>
    "tpu.trace_stop"() : () -> ()
    %13 = tpu.reciprocal %9 : vector<64x8x1xf32> -> vector<64x8x1xf32>
    %14 = vector.broadcast %13 : vector<64x8x1xf32> to vector<64x8x16xf32>
    %15 = arith.mulf %12, %14 : vector<64x8x16xf32>
    %16 = arith.truncf %15 : vector<64x8x16xf32> to vector<64x8x16xbf16>
    %c0_11 = arith.constant 0 : index
    %c0_12 = arith.constant 0 : index
    %c0_13 = arith.constant 0 : index
    %17 = vector.load %arg4[%c0_11, %c0_12, %c0_13] : memref<64x8x16xbf16, #tpu.memory_space<vmem>>, vector<64x8x16xbf16>
    tpu.vector_store %arg4[%c0_11, %c0_12, %c0_13], %16 {strides = array<i32>} : memref<64x8x16xbf16, #tpu.memory_space<vmem>>, vector<64x8x16xbf16>,
    return
  }
  func.func @transform_0(%arg0: i32) -> (i32, i32, i32) {
    %c0_i32 = arith.constant 0 : i32
    %c0_i32_0 = arith.constant 0 : i32
    %c0_i32_1 = arith.constant 0 : i32
    return %arg0, %c0_i32, %c0_i32_0 : i32, i32, i32
  }
  func.func @transform_1(%arg0: i32) -> (i32, i32, i32) {
    %c0_i32 = arith.constant 0 : i32
    %c0_i32_0 = arith.constant 0 : i32
    %c0_i32_1 = arith.constant 0 : i32
    return %arg0, %c0_i32, %c0_i32_0 : i32, i32, i32
  }
  func.func @transform_2(%arg0: i32) -> (i32, i32, i32) {
    %c0_i32 = arith.constant 0 : i32
    %c0_i32_0 = arith.constant 0 : i32
    %c0_i32_1 = arith.constant 0 : i32
    return %arg0, %c0_i32, %c0_i32_0 : i32, i32, i32
  }
  func.func @transform_3(%arg0: i32) -> (i32, i32, i32) {
    %c0_i32 = arith.constant 0 : i32
    %c0_i32_0 = arith.constant 0 : i32
    %c0_i32_1 = arith.constant 0 : i32
    return %arg0, %c0_i32, %c0_i32_0 : i32, i32, i32
  }
}

module attributes {stable_mosaic.version = 11 : i64} {
  func.func @_mm_kernel(%arg0: i32, %arg1: i32, %arg2: i32, %arg3: memref<256x32xbf16, #tpu.memory_space<vmem>>, %arg4: memref<32x32xbf16, #tpu.memory_space<vmem>>, %arg5: memref<1x32xbf16, #tpu.memory_space<vmem>>, %arg6: memref<256x32xbf16, #tpu.memory_space<vmem>>, %arg7: memref<256x32xbf16, #tpu.memory_space<vmem>>, %arg8: memref<256x32xf32, #tpu.memory_space<vmem>>) attributes {dimension_semantics = [#tpu.dimension_semantics<parallel>, #tpu.dimension_semantics<parallel>, #tpu.dimension_semantics<arbitrary>], iteration_bounds = array<i64: 1, 1, 1>, scalar_prefetch = 0 : i64, scratch_operands = 1 : i64, tpu.core_type = #tpu.core_type<tc>, window_params = [{transform_indices = @transform_0, window_bounds = array<i64: 256, 32>}, {transform_indices = @transform_1, window_bounds = array<i64: 32, 32>}, {transform_indices = @transform_2, window_bounds = array<i64: 1, 32>}, {transform_indices = @transform_3, window_bounds = array<i64: 256, 32>}, {transform_indices = @transform_4, window_bounds = array<i64: 256, 32>}]} {
    %c0_i32 = arith.constant 0 : i32
    %0 = arith.cmpi eq, %arg2, %c0_i32 : i32
    %1 = arith.extui %0 : i1 to i32
    %c0_i32_0 = arith.constant 0 : i32
    %2 = arith.cmpi ne, %1, %c0_i32_0 : i32
    scf.if %2 {
      %cst_10 = arith.constant 0.000000e+00 : f32
      %12 = vector.broadcast %cst_10 : f32 to vector<256x32xf32>
      %c0_11 = arith.constant 0 : index
      %c0_12 = arith.constant 0 : index
      %13 = vector.load %arg8[%c0_11, %c0_12] : memref<256x32xf32, #tpu.memory_space<vmem>>, vector<256x32xf32>
      tpu.vector_store %arg8[%c0_11, %c0_12], %12 {strides = array<i32>} : memref<256x32xf32, #tpu.memory_space<vmem>>, vector<256x32xf32>,
    } else {
    }
    %c0 = arith.constant 0 : index
    %c0_1 = arith.constant 0 : index
    %3 = vector.load %arg8[%c0, %c0_1] : memref<256x32xf32, #tpu.memory_space<vmem>>, vector<256x32xf32>
    %c0_2 = arith.constant 0 : index
    %c0_3 = arith.constant 0 : index
    %4 = vector.load %arg3[%c0_2, %c0_3] : memref<256x32xbf16, #tpu.memory_space<vmem>>, vector<256x32xbf16>
    %c0_4 = arith.constant 0 : index
    %c0_5 = arith.constant 0 : index
    %5 = vector.load %arg4[%c0_4, %c0_5] : memref<32x32xbf16, #tpu.memory_space<vmem>>, vector<32x32xbf16>
    %cst = arith.constant dense<0.000000e+00> : vector<256x32xf32>
    %6 = tpu.matmul %4, %5, %cst {dimension_numbers = #tpu.dot_dimension_numbers<[1], [0], [0], [1], [0, 0, 1, 1], [], []>} : vector<256x32xbf16>, vector<32x32xbf16>, vector<256x32xf32> -> vector<256x32xf32>
    %7 = arith.addf %3, %6 : vector<256x32xf32>
    %c0_6 = arith.constant 0 : index
    %c0_7 = arith.constant 0 : index
    %8 = vector.load %arg8[%c0_6, %c0_7] : memref<256x32xf32, #tpu.memory_space<vmem>>, vector<256x32xf32>
    tpu.vector_store %arg8[%c0_6, %c0_7], %7 {strides = array<i32>} : memref<256x32xf32, #tpu.memory_space<vmem>>, vector<256x32xf32>,
    %c0_i32_8 = arith.constant 0 : i32
    %9 = arith.cmpi eq, %arg2, %c0_i32_8 : i32
    %10 = arith.extui %9 : i1 to i32
    %c0_i32_9 = arith.constant 0 : i32
    %11 = arith.cmpi ne, %10, %c0_i32_9 : i32
    scf.if %11 {
      %c0_10 = arith.constant 0 : index
      %c0_11 = arith.constant 0 : index
      %12 = vector.load %arg8[%c0_10, %c0_11] : memref<256x32xf32, #tpu.memory_space<vmem>>, vector<256x32xf32>
      %c0_12 = arith.constant 0 : index
      %c0_13 = arith.constant 0 : index
      %13 = vector.load %arg5[%c0_12, %c0_13] : memref<1x32xbf16, #tpu.memory_space<vmem>>, vector<1x32xbf16>
      %14 = arith.extf %13 : vector<1x32xbf16> to vector<1x32xf32>
      %15 = vector.broadcast %14 : vector<1x32xf32> to vector<256x32xf32>
      %16 = arith.addf %12, %15 : vector<256x32xf32>
      %c0_14 = arith.constant 0 : index
      %c0_15 = arith.constant 0 : index
      %17 = vector.load %arg6[%c0_14, %c0_15] : memref<256x32xbf16, #tpu.memory_space<vmem>>, vector<256x32xbf16>
      %18 = arith.extf %17 : vector<256x32xbf16> to vector<256x32xf32>
      %19 = arith.addf %16, %18 : vector<256x32xf32>
      %20 = arith.truncf %19 : vector<256x32xf32> to vector<256x32xbf16>
      %c0_16 = arith.constant 0 : index
      %c0_17 = arith.constant 0 : index
      %21 = vector.load %arg7[%c0_16, %c0_17] : memref<256x32xbf16, #tpu.memory_space<vmem>>, vector<256x32xbf16>
      tpu.vector_store %arg7[%c0_16, %c0_17], %20 {strides = array<i32>} : memref<256x32xbf16, #tpu.memory_space<vmem>>, vector<256x32xbf16>,
    } else {
    }
    return
  }
  func.func @transform_0(%arg0: i32, %arg1: i32, %arg2: i32) -> (i32, i32) {
    %c0_i32 = arith.constant 0 : i32
    return %arg0, %arg2 : i32, i32
  }
  func.func @transform_1(%arg0: i32, %arg1: i32, %arg2: i32) -> (i32, i32) {
    %c0_i32 = arith.constant 0 : i32
    return %arg2, %arg1 : i32, i32
  }
  func.func @transform_2(%arg0: i32, %arg1: i32, %arg2: i32) -> (i32, i32) {
    %c0_i32 = arith.constant 0 : i32
    %c0_i32_0 = arith.constant 0 : i32
    return %c0_i32, %arg1 : i32, i32
  }
  func.func @transform_3(%arg0: i32, %arg1: i32, %arg2: i32) -> (i32, i32) {
    %c0_i32 = arith.constant 0 : i32
    return %arg0, %arg1 : i32, i32
  }
  func.func @transform_4(%arg0: i32, %arg1: i32, %arg2: i32) -> (i32, i32) {
    %c0_i32 = arith.constant 0 : i32
    return %arg0, %arg1 : i32, i32
  }
}

module attributes {stable_mosaic.version = 11 : i64} {
  func.func @_ln_matmul_kernel(%arg0: i32, %arg1: i32, %arg2: memref<256x32xbf16, #tpu.memory_space<vmem>>, %arg3: memref<1x32xf32, #tpu.memory_space<vmem>>, %arg4: memref<1x32xf32, #tpu.memory_space<vmem>>, %arg5: memref<32x32xbf16, #tpu.memory_space<vmem>>, %arg6: memref<256x32xbf16, #tpu.memory_space<vmem>>, %arg7: memref<256x32xbf16, #tpu.memory_space<vmem>>) attributes {dimension_semantics = [#tpu.dimension_semantics<parallel>, #tpu.dimension_semantics<parallel>], iteration_bounds = array<i64: 1, 1>, scalar_prefetch = 0 : i64, scratch_operands = 1 : i64, tpu.core_type = #tpu.core_type<tc>, window_params = [{transform_indices = @transform_0, window_bounds = array<i64: 256, 32>}, {pipeline_mode = #tpu.pipeline_mode<synchronous>, transform_indices = @transform_1, window_bounds = array<i64: 1, 32>}, {pipeline_mode = #tpu.pipeline_mode<synchronous>, transform_indices = @transform_2, window_bounds = array<i64: 1, 32>}, {transform_indices = @transform_3, window_bounds = array<i64: 32, 32>}, {transform_indices = @transform_4, window_bounds = array<i64: 256, 32>}]} {
    %c0_i32 = arith.constant 0 : i32
    %0 = arith.cmpi eq, %arg1, %c0_i32 : i32
    %1 = arith.extui %0 : i1 to i32
    %c0_i32_0 = arith.constant 0 : i32
    %2 = arith.cmpi ne, %1, %c0_i32_0 : i32
    scf.if %2 {
      %c0_6 = arith.constant 0 : index
      %c0_7 = arith.constant 0 : index
      %8 = vector.load %arg2[%c0_6, %c0_7] : memref<256x32xbf16, #tpu.memory_space<vmem>>, vector<256x32xbf16>
      %c0_8 = arith.constant 0 : index
      %c0_9 = arith.constant 0 : index
      %9 = vector.load %arg3[%c0_8, %c0_9] : memref<1x32xf32, #tpu.memory_space<vmem>>, vector<1x32xf32>
      %c0_10 = arith.constant 0 : index
      %c0_11 = arith.constant 0 : index
      %10 = vector.load %arg4[%c0_10, %c0_11] : memref<1x32xf32, #tpu.memory_space<vmem>>, vector<1x32xf32>
      %11 = arith.extf %8 : vector<256x32xbf16> to vector<256x32xf32>
      %cst_12 = arith.constant dense<0.000000e+00> : vector<256xf32>
      %12 = vector.multi_reduction <add>, %11, %cst_12 [1] : vector<256x32xf32> to vector<256xf32>
      %13 = vector.shape_cast %12 : vector<256xf32> to vector<256x1xf32>
      %cst_13 = arith.constant 3.200000e+01 : f32
      %14 = vector.broadcast %cst_13 : f32 to vector<256x1xf32>
      %15 = arith.divf %13, %14 : vector<256x1xf32>
      %16 = vector.broadcast %15 : vector<256x1xf32> to vector<256x32xf32>
      %17 = arith.subf %11, %16 : vector<256x32xf32>
      %18 = arith.mulf %17, %17 : vector<256x32xf32>
      %cst_14 = arith.constant dense<0.000000e+00> : vector<256xf32>
      %19 = vector.multi_reduction <add>, %18, %cst_14 [1] : vector<256x32xf32> to vector<256xf32>
      %20 = vector.shape_cast %19 : vector<256xf32> to vector<256x1xf32>
      %cst_15 = arith.constant 3.200000e+01 : f32
      %21 = vector.broadcast %cst_15 : f32 to vector<256x1xf32>
      %22 = arith.divf %20, %21 : vector<256x1xf32>
      %cst_16 = arith.constant 9.99999974E-6 : f32
      %23 = vector.broadcast %cst_16 : f32 to vector<256x1xf32>
      %24 = arith.addf %22, %23 : vector<256x1xf32>
      %25 = math.rsqrt %24 : vector<256x1xf32>
      %26 = vector.broadcast %25 : vector<256x1xf32> to vector<256x32xf32>
      %27 = arith.mulf %17, %26 : vector<256x32xf32>
      %28 = vector.broadcast %9 : vector<1x32xf32> to vector<256x32xf32>
      %29 = arith.mulf %27, %28 : vector<256x32xf32>
      %30 = vector.broadcast %10 : vector<1x32xf32> to vector<256x32xf32>
      %31 = arith.addf %29, %30 : vector<256x32xf32>
      %32 = arith.truncf %31 : vector<256x32xf32> to vector<256x32xbf16>
      %c0_17 = arith.constant 0 : index
      %c0_18 = arith.constant 0 : index
      %33 = vector.load %arg7[%c0_17, %c0_18] : memref<256x32xbf16, #tpu.memory_space<vmem>>, vector<256x32xbf16>
      tpu.vector_store %arg7[%c0_17, %c0_18], %32 {strides = array<i32>} : memref<256x32xbf16, #tpu.memory_space<vmem>>, vector<256x32xbf16>,
    } else {
    }
    %c0 = arith.constant 0 : index
    %c0_1 = arith.constant 0 : index
    %3 = vector.load %arg7[%c0, %c0_1] : memref<256x32xbf16, #tpu.memory_space<vmem>>, vector<256x32xbf16>
    %c0_2 = arith.constant 0 : index
    %c0_3 = arith.constant 0 : index
    %4 = vector.load %arg5[%c0_2, %c0_3] : memref<32x32xbf16, #tpu.memory_space<vmem>>, vector<32x32xbf16>
    %cst = arith.constant dense<0.000000e+00> : vector<256x32xf32>
    %5 = tpu.matmul %3, %4, %cst {dimension_numbers = #tpu.dot_dimension_numbers<[1], [0], [0], [1], [0, 0, 1, 1], [], []>} : vector<256x32xbf16>, vector<32x32xbf16>, vector<256x32xf32> -> vector<256x32xf32>
    %6 = arith.truncf %5 : vector<256x32xf32> to vector<256x32xbf16>
    %c0_4 = arith.constant 0 : index
    %c0_5 = arith.constant 0 : index
    %7 = vector.load %arg6[%c0_4, %c0_5] : memref<256x32xbf16, #tpu.memory_space<vmem>>, vector<256x32xbf16>
    tpu.vector_store %arg6[%c0_4, %c0_5], %6 {strides = array<i32>} : memref<256x32xbf16, #tpu.memory_space<vmem>>, vector<256x32xbf16>,
    return
  }
  func.func @transform_0(%arg0: i32, %arg1: i32) -> (i32, i32) {
    %c0_i32 = arith.constant 0 : i32
    %c0_i32_0 = arith.constant 0 : i32
    return %arg0, %c0_i32 : i32, i32
  }
  func.func @transform_1(%arg0: i32, %arg1: i32) -> (i32, i32) {
    %c0_i32 = arith.constant 0 : i32
    %c0_i32_0 = arith.constant 0 : i32
    %c0_i32_1 = arith.constant 0 : i32
    return %c0_i32, %c0_i32_0 : i32, i32
  }
  func.func @transform_2(%arg0: i32, %arg1: i32) -> (i32, i32) {
    %c0_i32 = arith.constant 0 : i32
    %c0_i32_0 = arith.constant 0 : i32
    %c0_i32_1 = arith.constant 0 : i32
    return %c0_i32, %c0_i32_0 : i32, i32
  }
  func.func @transform_3(%arg0: i32, %arg1: i32) -> (i32, i32) {
    %c0_i32 = arith.constant 0 : i32
    %c0_i32_0 = arith.constant 0 : i32
    return %c0_i32, %arg1 : i32, i32
  }
  func.func @transform_4(%arg0: i32, %arg1: i32) -> (i32, i32) {
    %c0_i32 = arith.constant 0 : i32
    return %arg0, %arg1 : i32, i32
  }
}

module attributes {stable_mosaic.version = 11 : i64} {
  func.func @_mm_kernel(%arg0: i32, %arg1: i32, %arg2: i32, %arg3: memref<256x64xbf16, #tpu.memory_space<vmem>>, %arg4: memref<64x64xbf16, #tpu.memory_space<vmem>>, %arg5: memref<256x64xbf16, #tpu.memory_space<vmem>>, %arg6: memref<256x64xf32, #tpu.memory_space<vmem>>) attributes {dimension_semantics = [#tpu.dimension_semantics<parallel>, #tpu.dimension_semantics<parallel>, #tpu.dimension_semantics<arbitrary>], iteration_bounds = array<i64: 1, 1, 1>, scalar_prefetch = 0 : i64, scratch_operands = 1 : i64, tpu.core_type = #tpu.core_type<tc>, window_params = [{transform_indices = @transform_0, window_bounds = array<i64: 256, 64>}, {transform_indices = @transform_1, window_bounds = array<i64: 64, 64>}, {transform_indices = @transform_2, window_bounds = array<i64: 256, 64>}]} {
    %c0_i32 = arith.constant 0 : i32
    %0 = arith.cmpi eq, %arg2, %c0_i32 : i32
    %1 = arith.extui %0 : i1 to i32
    %c0_i32_0 = arith.constant 0 : i32
    %2 = arith.cmpi ne, %1, %c0_i32_0 : i32
    scf.if %2 {
      %cst_10 = arith.constant 0.000000e+00 : f32
      %12 = vector.broadcast %cst_10 : f32 to vector<256x64xf32>
      %c0_11 = arith.constant 0 : index
      %c0_12 = arith.constant 0 : index
      %13 = vector.load %arg6[%c0_11, %c0_12] : memref<256x64xf32, #tpu.memory_space<vmem>>, vector<256x64xf32>
      tpu.vector_store %arg6[%c0_11, %c0_12], %12 {strides = array<i32>} : memref<256x64xf32, #tpu.memory_space<vmem>>, vector<256x64xf32>,
    } else {
    }
    %c0 = arith.constant 0 : index
    %c0_1 = arith.constant 0 : index
    %3 = vector.load %arg6[%c0, %c0_1] : memref<256x64xf32, #tpu.memory_space<vmem>>, vector<256x64xf32>
    %c0_2 = arith.constant 0 : index
    %c0_3 = arith.constant 0 : index
    %4 = vector.load %arg3[%c0_2, %c0_3] : memref<256x64xbf16, #tpu.memory_space<vmem>>, vector<256x64xbf16>
    %c0_4 = arith.constant 0 : index
    %c0_5 = arith.constant 0 : index
    %5 = vector.load %arg4[%c0_4, %c0_5] : memref<64x64xbf16, #tpu.memory_space<vmem>>, vector<64x64xbf16>
    %cst = arith.constant dense<0.000000e+00> : vector<256x64xf32>
    %6 = tpu.matmul %4, %5, %cst {dimension_numbers = #tpu.dot_dimension_numbers<[1], [0], [0], [1], [0, 0, 1, 1], [], []>} : vector<256x64xbf16>, vector<64x64xbf16>, vector<256x64xf32> -> vector<256x64xf32>
    %7 = arith.addf %3, %6 : vector<256x64xf32>
    %c0_6 = arith.constant 0 : index
    %c0_7 = arith.constant 0 : index
    %8 = vector.load %arg6[%c0_6, %c0_7] : memref<256x64xf32, #tpu.memory_space<vmem>>, vector<256x64xf32>
    tpu.vector_store %arg6[%c0_6, %c0_7], %7 {strides = array<i32>} : memref<256x64xf32, #tpu.memory_space<vmem>>, vector<256x64xf32>,
    %c0_i32_8 = arith.constant 0 : i32
    %9 = arith.cmpi eq, %arg2, %c0_i32_8 : i32
    %10 = arith.extui %9 : i1 to i32
    %c0_i32_9 = arith.constant 0 : i32
    %11 = arith.cmpi ne, %10, %c0_i32_9 : i32
    scf.if %11 {
      %c0_10 = arith.constant 0 : index
      %c0_11 = arith.constant 0 : index
      %12 = vector.load %arg6[%c0_10, %c0_11] : memref<256x64xf32, #tpu.memory_space<vmem>>, vector<256x64xf32>
      %13 = arith.truncf %12 : vector<256x64xf32> to vector<256x64xbf16>
      %c0_12 = arith.constant 0 : index
      %c0_13 = arith.constant 0 : index
      %14 = vector.load %arg5[%c0_12, %c0_13] : memref<256x64xbf16, #tpu.memory_space<vmem>>, vector<256x64xbf16>
      tpu.vector_store %arg5[%c0_12, %c0_13], %13 {strides = array<i32>} : memref<256x64xbf16, #tpu.memory_space<vmem>>, vector<256x64xbf16>,
    } else {
    }
    return
  }
  func.func @transform_0(%arg0: i32, %arg1: i32, %arg2: i32) -> (i32, i32) {
    %c0_i32 = arith.constant 0 : i32
    return %arg0, %arg2 : i32, i32
  }
  func.func @transform_1(%arg0: i32, %arg1: i32, %arg2: i32) -> (i32, i32) {
    %c0_i32 = arith.constant 0 : i32
    return %arg2, %arg1 : i32, i32
  }
  func.func @transform_2(%arg0: i32, %arg1: i32, %arg2: i32) -> (i32, i32) {
    %c0_i32 = arith.constant 0 : i32
    return %arg0, %arg1 : i32, i32
  }
}

</mosaic_0001>

<bundles_post_ra>
// kernel: _lambda_.13
= control target key start
LH: loop header
LB: loop body
LE: loop exit
PB: predicated region body
PF: predicated region fallthrough
CT: control target
= control target key end

     0   :  { %vm88_vm0 = vcmask 261120   ;;  %vm984_vm1 = vcmask 781312   ;;  %s2037_s0 = inlined_call_operand.vmem [shape: bf16[256,32], index: 0, kind: input, shape index: {}]   ;;  %s2038_s3 = inlined_call_operand.vmem [shape: bf16[32,96], index: 3, kind: input, shape index: {}]   ;;  %s2039_s1 = inlined_call_operand.vmem [shape: f32[1,32], index: 1, kind: input, shape index: {}]   ;;  %s2040_s2 = inlined_call_operand.vmem [shape: f32[1,32], index: 2, kind: input, shape index: {}]   ;;  %s2041_s4 = inlined_call_operand.vmem [shape: bf16[256,96], index: 4, kind: output, shape index: {}]  }
   0x1   :  { %v1336_v0 = vld [vmem:[%s2037_s0] sm:$0xff]   ;;  %v1350_v6 = vld [vmem:[%s2037_s0 + $0x8] sm:$0xff]   ;;  %v1382_v18 = vld [vmem:[%s2037_s0 + $0x10] sm:$0xff]  }
   0x2   :  { %v1341_v1 = vld [vmem:[%s2037_s0 + $0x40] sm:$0xff]   ;;  %v1107_v2 = vunpack.c.l.bf16 %v1336_v0  ;;  %v1108_v4 = vunpack.c.h.bf16 %v1336_v0  ;;  %v1111_v11 = vunpack.c.l.bf16 %v1350_v6  ;;  %v1112_v12 = vunpack.c.h.bf16 %v1350_v6  ;;  %v1369_v13 = vld [vmem:[%s2037_s0 + $0x48] sm:$0xff]   ;;  %v1395_v23 = vld [vmem:[%s2037_s0 + $0x50] sm:$0xff]  }
   0x3   :  { %v1139_v3 = vunpack.c.l.bf16 %v1341_v1  ;;  %v1140_v5 = vunpack.c.h.bf16 %v1341_v1  ;;  %v1143_v16 = vunpack.c.l.bf16 %v1369_v13  ;;  %v1144_v17 = vunpack.c.h.bf16 %v1369_v13  ;;  %v1408_v28 = vld [vmem:[%s2037_s0 + $0x18] sm:$0xff]   ;;  %v1434_v38 = vld [vmem:[%s2037_s0 + $0x20] sm:$0xff]   ;;  %v1460_v48 = vld [vmem:[%s2037_s0 + $0x28] sm:$0xff]  }
   0x4   :  { %v89_v7 = vsel %vm88_vm0, %v1107_v2, 0.0  ;;  %v92_v9 = vsel %vm88_vm0, %v1108_v4, 0.0  ;;  %v95_v14 = vsel %vm88_vm0, %v1111_v11, 0.0  ;;  %v98_v15 = vsel %vm88_vm0, %v1112_v12, 0.0  ;;  %v1421_v33 = vld [vmem:[%s2037_s0 + $0x58] sm:$0xff]   ;;  %v1447_v43 = vld [vmem:[%s2037_s0 + $0x60] sm:$0xff]  }
   0x5   :  { %v137_v8 = vsel %vm88_vm0, %v1139_v3, 0.0  ;;  %90 = vadd.xlane.f32.xlu0 %v89_v7  ;;  %v140_v10 = vsel %vm88_vm0, %v1140_v5, 0.0  ;;  %v143_v19 = vsel %vm88_vm0, %v1143_v16, 0.0  ;;  %v146_v20 = vsel %vm88_vm0, %v1144_v17, 0.0  ;;  %v1473_v53 = vld [vmem:[%s2037_s0 + $0x68] sm:$0xff]   ;;  %v1486_v58 = vld [vmem:[%s2037_s0 + $0x30] sm:$0xff]  }
   0x6   :  { %138 = vadd.xlane.f32.xlu1 %v137_v8  ;;  %v1115_v21 = vunpack.c.l.bf16 %v1382_v18  ;;  %v1116_v22 = vunpack.c.h.bf16 %v1382_v18  ;;  %v1147_v26 = vunpack.c.l.bf16 %v1395_v23  ;;  %v1148_v27 = vunpack.c.h.bf16 %v1395_v23  ;;  %v1499_v63 = vld [vmem:[%s2037_s0 + $0x70] sm:$0xff]  }
   0x7   :  { %v1119_v31 = vunpack.c.l.bf16 %v1408_v28  ;;  %v1120_v32 = vunpack.c.h.bf16 %v1408_v28  ;;  %v1151_v36 = vunpack.c.l.bf16 %v1421_v33  ;;  %v1152_v37 = vunpack.c.h.bf16 %v1421_v33 }
   0x8   :  { %v101_v24 = vsel %vm88_vm0, %v1115_v21, 0.0  ;;  %v104_v25 = vsel %vm88_vm0, %v1116_v22, 0.0  ;;  %v149_v29 = vsel %vm88_vm0, %v1147_v26, 0.0  ;;  %v152_v30 = vsel %vm88_vm0, %v1148_v27, 0.0 }
   0x9   :  { %93 = vadd.xlane.f32.xlu0 %v92_v9  ;;  %v107_v34 = vsel %vm88_vm0, %v1119_v31, 0.0  ;;  %v110_v35 = vsel %vm88_vm0, %v1120_v32, 0.0  ;;  %v155_v39 = vsel %vm88_vm0, %v1151_v36, 0.0  ;;  %v158_v40 = vsel %vm88_vm0, %v1152_v37, 0.0 }
   0xa   :  { %141 = vadd.xlane.f32.xlu1 %v140_v10  ;;  %v1123_v41 = vunpack.c.l.bf16 %v1434_v38  ;;  %v1124_v42 = vunpack.c.h.bf16 %v1434_v38  ;;  %v1155_v46 = vunpack.c.l.bf16 %v1447_v43  ;;  %v1156_v47 = vunpack.c.h.bf16 %v1447_v43 }
   0xb   :  { %v1127_v51 = vunpack.c.l.bf16 %v1460_v48  ;;  %v1128_v52 = vunpack.c.h.bf16 %v1460_v48  ;;  %v1159_v56 = vunpack.c.l.bf16 %v1473_v53  ;;  %v1160_v57 = vunpack.c.h.bf16 %v1473_v53 }
   0xc   :  { %v113_v44 = vsel %vm88_vm0, %v1123_v41, 0.0  ;;  %v116_v45 = vsel %vm88_vm0, %v1124_v42, 0.0  ;;  %v161_v49 = vsel %vm88_vm0, %v1155_v46, 0.0  ;;  %v164_v50 = vsel %vm88_vm0, %v1156_v47, 0.0 }
   0xd   :  { %96 = vadd.xlane.f32.xlu0 %v95_v14  ;;  %v119_v54 = vsel %vm88_vm0, %v1127_v51, 0.0  ;;  %v122_v55 = vsel %vm88_vm0, %v1128_v52, 0.0  ;;  %v167_v59 = vsel %vm88_vm0, %v1159_v56, 0.0  ;;  %v170_v60 = vsel %vm88_vm0, %v1160_v57, 0.0  ;;  %v1512_v14 = vld [vmem:[%s2037_s0 + $0x38] sm:$0xff]  }
   0xe   :  { %99 = vadd.xlane.f32.xlu1 %v98_v15  ;;  %v1131_v61 = vunpack.c.l.bf16 %v1486_v58  ;;  %v1132_v62 = vunpack.c.h.bf16 %v1486_v58  ;;  %v1163_v9 = vunpack.c.l.bf16 %v1499_v63  ;;  %v1164_v10 = vunpack.c.h.bf16 %v1499_v63 }
  0x10   :  { %v125_v7 = vsel %vm88_vm0, %v1131_v61, 0.0  ;;  %v128_v8 = vsel %vm88_vm0, %v1132_v62, 0.0  ;;  %v173_v15 = vsel %vm88_vm0, %v1163_v9, 0.0 }
  0x11   :  { %144 = vadd.xlane.f32.xlu0 %v143_v19  ;;  %v176_v19 = vsel %vm88_vm0, %v1164_v10, 0.0 }
  0x12   :  { %147 = vadd.xlane.f32.xlu1 %v146_v20  ;;  %v1135_v20 = vunpack.c.l.bf16 %v1512_v14 }
  0x15   :  { %102 = vadd.xlane.f32.xlu0 %v101_v24  ;;  %v1136_v24 = vunpack.c.h.bf16 %v1512_v14 }
  0x16   :  { %105 = vadd.xlane.f32.xlu1 %v104_v25  ;;  %v1525_v25 = vld [vmem:[%s2037_s0 + $0x78] sm:$0xff]  }
  0x19   :  { %150 = vadd.xlane.f32.xlu0 %v149_v29  ;;  %v131_v29 = vsel %vm88_vm0, %v1135_v20, 0.0 }
  0x1a   :  { %153 = vadd.xlane.f32.xlu1 %v152_v30  ;;  %v134_v30 = vsel %vm88_vm0, %v1136_v24, 0.0 }
  0x1d   :  { %108 = vadd.xlane.f32.xlu0 %v107_v34  ;;  %v1167_v34 = vunpack.c.l.bf16 %v1525_v25 }
  0x1e   :  { %111 = vadd.xlane.f32.xlu1 %v110_v35  ;;  %v1168_v35 = vunpack.c.h.bf16 %v1525_v25 }
  0x21   :  { %156 = vadd.xlane.f32.xlu0 %v155_v39  ;;  %v179_v39 = vsel %vm88_vm0, %v1167_v34, 0.0 }
  0x22   :  { %159 = vadd.xlane.f32.xlu1 %v158_v40  ;;  %v182_v40 = vsel %vm88_vm0, %v1168_v35, 0.0 }
  0x25   :  { %114 = vadd.xlane.f32.xlu0 %v113_v44 }
  0x26   :  { %117 = vadd.xlane.f32.xlu1 %v116_v45 }
  0x29   :  { %162 = vadd.xlane.f32.xlu0 %v161_v49 }
  0x2a   :  { %165 = vadd.xlane.f32.xlu1 %v164_v50 }
  0x2d   :  { %120 = vadd.xlane.f32.xlu0 %v119_v54 }
  0x2e   :  { %123 = vadd.xlane.f32.xlu1 %v122_v55 }
  0x31   :  { %168 = vadd.xlane.f32.xlu0 %v167_v59 }
  0x32   :  { %171 = vadd.xlane.f32.xlu1 %v170_v60 }
  0x35   :  { %126 = vadd.xlane.f32.xlu0 %v125_v7 }
  0x36   :  { %129 = vadd.xlane.f32.xlu1 %v128_v8 }
  0x39   :  { %174 = vadd.xlane.f32.xlu0 %v173_v15 }
  0x3a   :  { %177 = vadd.xlane.f32.xlu1 %v176_v19 }
  0x3d   :  { %132 = vadd.xlane.f32.xlu0 %v131_v29 }
  0x3e   :  { %135 = vadd.xlane.f32.xlu1 %v134_v30 }
  0x41   :  { %180 = vadd.xlane.f32.xlu0 %v179_v39 }
  0x42   :  { %183 = vadd.xlane.f32.xlu1 %v182_v40 }
  0x92   :  { %v91_v44 = vpop.xlane.xlu0 %90 }
  0x93   :  { %v139_v45 = vpop.xlane.xlu1 %138  ;;  %v186_v49 = vmul.f32 0.03125, %v91_v44 }
  0x94   :  { %v202_v50 = vmul.f32 0.03125, %v139_v45 }
  0x95   :  { %v1543_v54 = vsub.f32 %v1107_v2, %v186_v49 }
  0x96   :  { %v1547_v55 = vsub.f32 %v1139_v3, %v202_v50  ;;  %v94_v59 = vpop.xlane.xlu0 %93 }
  0x97   :  { %v142_v60 = vpop.xlane.xlu1 %141  ;;  %v187_v7 = vmul.f32 0.03125, %v94_v59  ;;  %v250_v15 = vmul.f32 %v1543_v54, %v1543_v54 }
  0x98   :  { %v203_v8 = vmul.f32 0.03125, %v142_v60  ;;  %v266_v19 = vmul.f32 %v1547_v55, %v1547_v55 }
  0x99   :  { %v1555_v29 = vsub.f32 %v1108_v4, %v187_v7  ;;  %v282_v3 = vsel %vm88_vm0, %v250_v15, 0.0 }
  0x9a   :  { %v1559_v2 = vsub.f32 %v1140_v5, %v203_v8  ;;  %283 = vadd.xlane.f32.xlu0 %v282_v3  ;;  %v97_v30 = vpop.xlane.xlu0 %96  ;;  %v330_v40 = vsel %vm88_vm0, %v266_v19, 0.0 }
  0x9b   :  { %v100_v39 = vpop.xlane.xlu1 %99  ;;  %v188_v44 = vmul.f32 0.03125, %v97_v30  ;;  %v251_v49 = vmul.f32 %v1555_v29, %v1555_v29 }
  0x9c   :  { %v189_v45 = vmul.f32 0.03125, %v100_v39  ;;  %v267_v0 = vmul.f32 %v1559_v2, %v1559_v2 }
  0x9d   :  { %v1569_v1 = vsub.f32 %v1111_v11, %v188_v44  ;;  %v285_v5 = vsel %vm88_vm0, %v251_v49, 0.0 }
  0x9e   :  { %v1573_v4 = vsub.f32 %v1112_v12, %v189_v45  ;;  %331 = vadd.xlane.f32.xlu0 %v330_v40  ;;  %286 = vadd.xlane.f32.xlu1 %v285_v5  ;;  %v145_v50 = vpop.xlane.xlu0 %144  ;;  %v333_v60 = vsel %vm88_vm0, %v267_v0, 0.0 }
  0x9f   :  { %v148_v59 = vpop.xlane.xlu1 %147  ;;  %v204_v7 = vmul.f32 0.03125, %v145_v50  ;;  %v252_v15 = vmul.f32 %v1569_v1, %v1569_v1 }
  0xa0   :  { %v205_v8 = vmul.f32 0.03125, %v148_v59  ;;  %v253_v11 = vmul.f32 %v1573_v4, %v1573_v4 }
  0xa1   :  { %v1583_v6 = vsub.f32 %v1143_v16, %v204_v7  ;;  %v288_v19 = vsel %vm88_vm0, %v252_v15, 0.0 }
  0xa2   :  { %v1587_v12 = vsub.f32 %v1144_v17, %v205_v8  ;;  %334 = vadd.xlane.f32.xlu1 %v333_v60  ;;  %289 = vadd.xlane.f32.xlu0 %v288_v19  ;;  %v103_v3 = vpop.xlane.xlu0 %102  ;;  %v291_v39 = vsel %vm88_vm0, %v253_v11, 0.0 }
  0xa3   :  { %v106_v30 = vpop.xlane.xlu1 %105  ;;  %v190_v40 = vmul.f32 0.03125, %v103_v3  ;;  %v268_v45 = vmul.f32 %v1583_v6, %v1583_v6 }
  0xa4   :  { %v191_v44 = vmul.f32 0.03125, %v106_v30  ;;  %v269_v16 = vmul.f32 %v1587_v12, %v1587_v12 }
  0xa5   :  { %v1597_v13 = vsub.f32 %v1115_v21, %v190_v40  ;;  %v336_v49 = vsel %vm88_vm0, %v268_v45, 0.0 }
  0xa6   :  { %v1601_v17 = vsub.f32 %v1116_v22, %v191_v44  ;;  %292 = vadd.xlane.f32.xlu1 %v291_v39  ;;  %337 = vadd.xlane.f32.xlu0 %v336_v49  ;;  %v151_v0 = vpop.xlane.xlu0 %150  ;;  %v339_v50 = vsel %vm88_vm0, %v269_v16, 0.0 }
  0xa7   :  { %v154_v5 = vpop.xlane.xlu1 %153  ;;  %v206_v59 = vmul.f32 0.03125, %v151_v0  ;;  %v254_v7 = vmul.f32 %v1597_v13, %v1597_v13 }
  0xa8   :  { %v207_v60 = vmul.f32 0.03125, %v154_v5  ;;  %v255_v21 = vmul.f32 %v1601_v17, %v1601_v17 }
  0xa9   :  { %v1611_v18 = vsub.f32 %v1147_v26, %v206_v59  ;;  %v294_v8 = vsel %vm88_vm0, %v254_v7, 0.0 }
  0xaa   :  { %v1615_v22 = vsub.f32 %v1148_v27, %v207_v60  ;;  %340 = vadd.xlane.f32.xlu1 %v339_v50  ;;  %295 = vadd.xlane.f32.xlu0 %v294_v8  ;;  %v109_v15 = vpop.xlane.xlu0 %108  ;;  %v297_v19 = vsel %vm88_vm0, %v255_v21, 0.0 }
  0xab   :  { %v112_v11 = vpop.xlane.xlu1 %111  ;;  %v192_v3 = vmul.f32 0.03125, %v109_v15  ;;  %v270_v39 = vmul.f32 %v1611_v18, %v1611_v18 }
  0xac   :  { %v193_v30 = vmul.f32 0.03125, %v112_v11  ;;  %v271_v26 = vmul.f32 %v1615_v22, %v1615_v22 }
  0xad   :  { %v1625_v23 = vsub.f32 %v1119_v31, %v192_v3  ;;  %v342_v40 = vsel %vm88_vm0, %v270_v39, 0.0 }
  0xae   :  { %v1629_v27 = vsub.f32 %v1120_v32, %v193_v30  ;;  %298 = vadd.xlane.f32.xlu1 %v297_v19  ;;  %343 = vadd.xlane.f32.xlu0 %v342_v40  ;;  %v157_v44 = vpop.xlane.xlu0 %156  ;;  %v345_v16 = vsel %vm88_vm0, %v271_v26, 0.0 }
  0xaf   :  { %v160_v45 = vpop.xlane.xlu1 %159  ;;  %v208_v49 = vmul.f32 0.03125, %v157_v44  ;;  %v256_v5 = vmul.f32 %v1625_v23, %v1625_v23 }
  0xb0   :  { %v209_v0 = vmul.f32 0.03125, %v160_v45  ;;  %v257_v31 = vmul.f32 %v1629_v27, %v1629_v27 }
  0xb1   :  { %v1639_v28 = vsub.f32 %v1151_v36, %v208_v49  ;;  %v300_v50 = vsel %vm88_vm0, %v256_v5, 0.0 }
  0xb2   :  { %v1643_v32 = vsub.f32 %v1152_v37, %v209_v0  ;;  %346 = vadd.xlane.f32.xlu1 %v345_v16  ;;  %301 = vadd.xlane.f32.xlu0 %v300_v50  ;;  %v115_v59 = vpop.xlane.xlu0 %114  ;;  %v303_v7 = vsel %vm88_vm0, %v257_v31, 0.0 }
  0xb3   :  { %v118_v60 = vpop.xlane.xlu1 %117  ;;  %v194_v21 = vmul.f32 0.03125, %v115_v59  ;;  %v272_v15 = vmul.f32 %v1639_v28, %v1639_v28 }
  0xb4   :  { %v195_v8 = vmul.f32 0.03125, %v118_v60  ;;  %v273_v36 = vmul.f32 %v1643_v32, %v1643_v32 }
  0xb5   :  { %v1653_v33 = vsub.f32 %v1123_v41, %v194_v21  ;;  %v348_v11 = vsel %vm88_vm0, %v272_v15, 0.0 }
  0xb6   :  { %v1657_v37 = vsub.f32 %v1124_v42, %v195_v8  ;;  %304 = vadd.xlane.f32.xlu1 %v303_v7  ;;  %349 = vadd.xlane.f32.xlu0 %v348_v11  ;;  %v163_v19 = vpop.xlane.xlu0 %162  ;;  %v351_v30 = vsel %vm88_vm0, %v273_v36, 0.0 }
  0xb7   :  { %v166_v3 = vpop.xlane.xlu1 %165  ;;  %v210_v39 = vmul.f32 0.03125, %v163_v19  ;;  %v258_v40 = vmul.f32 %v1653_v33, %v1653_v33 }
  0xb8   :  { %v211_v26 = vmul.f32 0.03125, %v166_v3  ;;  %v259_v41 = vmul.f32 %v1657_v37, %v1657_v37 }
  0xb9   :  { %v1667_v38 = vsub.f32 %v1155_v46, %v210_v39  ;;  %v306_v44 = vsel %vm88_vm0, %v258_v40, 0.0 }
  0xba   :  { %v1671_v42 = vsub.f32 %v1156_v47, %v211_v26  ;;  %352 = vadd.xlane.f32.xlu1 %v351_v30  ;;  %307 = vadd.xlane.f32.xlu0 %v306_v44  ;;  %v121_v45 = vpop.xlane.xlu0 %120  ;;  %v309_v49 = vsel %vm88_vm0, %v259_v41, 0.0 }
  0xbb   :  { %v124_v16 = vpop.xlane.xlu1 %123  ;;  %v196_v0 = vmul.f32 0.03125, %v121_v45  ;;  %v274_v31 = vmul.f32 %v1667_v38, %v1667_v38 }
  0xbc   :  { %v197_v5 = vmul.f32 0.03125, %v124_v16  ;;  %v275_v46 = vmul.f32 %v1671_v42, %v1671_v42 }
  0xbd   :  { %v1681_v43 = vsub.f32 %v1127_v51, %v196_v0  ;;  %v354_v50 = vsel %vm88_vm0, %v274_v31, 0.0 }
  0xbe   :  { %v1685_v47 = vsub.f32 %v1128_v52, %v197_v5  ;;  %310 = vadd.xlane.f32.xlu1 %v309_v49  ;;  %355 = vadd.xlane.f32.xlu0 %v354_v50  ;;  %v169_v59 = vpop.xlane.xlu0 %168  ;;  %v357_v7 = vsel %vm88_vm0, %v275_v46, 0.0 }
  0xbf   :  { %v172_v60 = vpop.xlane.xlu1 %171  ;;  %v212_v21 = vmul.f32 0.03125, %v169_v59  ;;  %v260_v15 = vmul.f32 %v1681_v43, %v1681_v43  ;;  %v1242_v59 = vld [vmem:[%s2038_s3] sm:$0xff]  }
  0xc0   :  { %v213_v8 = vmul.f32 0.03125, %v172_v60  ;;  %v261_v51 = vmul.f32 %v1685_v47, %v1685_v47  ;;  %1202 = vmatprep.subr.bf16.mxu0 %v1242_v59  ;;  %1238 = vmatprep.subr.bf16.mxu1 %v1242_v59 }
  0xc1   :  { %v1695_v48 = vsub.f32 %v1159_v56, %v212_v21  ;;  %v312_v36 = vsel %vm88_vm0, %v260_v15, 0.0  ;;  %1203 = vmatpush3.bf16.msra.mxu0 %v1242_v59  ;;  %1240 = vmatpush3.bf16.msra.mxu1 %v1242_v59 }
  0xc2   :  { %v1699_v52 = vsub.f32 %v1160_v57, %v213_v8  ;;  %358 = vadd.xlane.f32.xlu1 %v357_v7  ;;  %313 = vadd.xlane.f32.xlu0 %v312_v36  ;;  %v127_v11 = vpop.xlane.xlu0 %126  ;;  %v315_v3 = vsel %vm88_vm0, %v261_v51, 0.0 }
  0xc3   :  { %v130_v19 = vpop.xlane.xlu1 %129  ;;  %v198_v30 = vmul.f32 0.03125, %v127_v11  ;;  %v276_v26 = vmul.f32 %v1695_v48, %v1695_v48  ;;  %v1243_v11 = vld [vmem:[%s2038_s3 + $0x8] sm:$0xff]  }
  0xc4   :  { %v199_v39 = vmul.f32 0.03125, %v130_v19  ;;  %v277_v56 = vmul.f32 %v1699_v52, %v1699_v52  ;;  %1204 = vmatprep.subr.bf16.mxu0 %v1243_v11  ;;  %1239 = vmatprep.subr.bf16.mxu1 %v1243_v11 }
  0xc5   :  { %v1709_v53 = vsub.f32 %v1131_v61, %v198_v30  ;;  %v360_v40 = vsel %vm88_vm0, %v276_v26, 0.0  ;;  %1205 = vmatpush3.bf16.msra.mxu0 %v1243_v11  ;;  %1241 = vmatpush3.bf16.msra.mxu1 %v1243_v11 }
  0xc6   :  { %v1713_v57 = vsub.f32 %v1132_v62, %v199_v39  ;;  %316 = vadd.xlane.f32.xlu1 %v315_v3  ;;  %361 = vadd.xlane.f32.xlu0 %v360_v40  ;;  %v175_v41 = vpop.xlane.xlu0 %174  ;;  %v363_v45 = vsel %vm88_vm0, %v277_v56, 0.0 }
  0xc7   :  { %v178_v44 = vpop.xlane.xlu1 %177  ;;  %v214_v16 = vmul.f32 0.03125, %v175_v41  ;;  %v262_v0 = vmul.f32 %v1709_v53, %v1709_v53 }
  0xc8   :  { %v215_v49 = vmul.f32 0.03125, %v178_v44  ;;  %v263_v61 = vmul.f32 %v1713_v57, %v1713_v57 }
  0xc9   :  { %v1723_v58 = vsub.f32 %v1163_v9, %v214_v16  ;;  %v318_v5 = vsel %vm88_vm0, %v262_v0, 0.0 }
  0xca   :  { %v1727_v62 = vsub.f32 %v1164_v10, %v215_v49  ;;  %364 = vadd.xlane.f32.xlu1 %v363_v45  ;;  %319 = vadd.xlane.f32.xlu0 %v318_v5  ;;  %v133_v31 = vpop.xlane.xlu0 %132  ;;  %v321_v50 = vsel %vm88_vm0, %v263_v61, 0.0 }
  0xcb   :  { %v136_v46 = vpop.xlane.xlu1 %135  ;;  %v200_v60 = vmul.f32 0.03125, %v133_v31  ;;  %v278_v9 = vmul.f32 %v1723_v58, %v1723_v58 }
  0xcc   :  { %v201_v7 = vmul.f32 0.03125, %v136_v46  ;;  %v279_v63 = vmul.f32 %v1727_v62, %v1727_v62 }
  0xcd   :  { %v1740_v10 = vsub.f32 %v1135_v20, %v200_v60  ;;  %v366_v8 = vsel %vm88_vm0, %v278_v9, 0.0 }
  0xce   :  { %v1744_v21 = vsub.f32 %v1136_v24, %v201_v7  ;;  %322 = vadd.xlane.f32.xlu1 %v321_v50  ;;  %367 = vadd.xlane.f32.xlu0 %v366_v8  ;;  %v181_v15 = vpop.xlane.xlu0 %180  ;;  %v369_v36 = vsel %vm88_vm0, %v279_v63, 0.0 }
  0xcf   :  { %v184_v51 = vpop.xlane.xlu1 %183  ;;  %v216_v20 = vmul.f32 0.03125, %v181_v15  ;;  %v264_v14 = vmul.f32 %v1740_v10, %v1740_v10 }
  0xd0   :  { %v217_v19 = vmul.f32 0.03125, %v184_v51  ;;  %v265_v24 = vmul.f32 %v1744_v21, %v1744_v21 }
  0xd1   :  { %v1757_v3 = vsub.f32 %v1167_v34, %v216_v20  ;;  %v324_v39 = vsel %vm88_vm0, %v264_v14, 0.0 }
  0xd2   :  { %v1761_v30 = vsub.f32 %v1168_v35, %v217_v19  ;;  %370 = vadd.xlane.f32.xlu1 %v369_v36  ;;  %325 = vadd.xlane.f32.xlu0 %v324_v39  ;;  %v327_v26 = vsel %vm88_vm0, %v265_v24, 0.0  ;;  %v1775_v24 = vld [vmem:[%s2039_s1] ss:$0 sm:$0xff] }
  0xd3   :  { %v280_v56 = vmul.f32 %v1757_v3, %v1757_v3 }
  0xd4   :  { %v281_v40 = vmul.f32 %v1761_v30, %v1761_v30 }
  0xd5   :  { %v372_v34 = vsel %vm88_vm0, %v280_v56, 0.0 }
  0xd6   :  { %328 = vadd.xlane.f32.xlu1 %v327_v26  ;;  %373 = vadd.xlane.f32.xlu0 %v372_v34  ;;  %v375_v25 = vsel %vm88_vm0, %v281_v40, 0.0 }
  0xda   :  { %376 = vadd.xlane.f32.xlu1 %v375_v25 }
 0x127   :  { %v284_v35 = vpop.xlane.xlu0 %283 }
 0x128   :  { %v378_v41 = vmul.f32 0.03125, %v284_v35 }
 0x12a   :  { %v410_v44 = vadd.f32 1e-05, %v378_v41 }
 0x12b   :  { %v287_v45 = vpop.xlane.xlu1 %286  ;;  %v332_v16 = vpop.xlane.xlu0 %331 }
 0x12c   :  { %1244 = vrsqrt.f32 %v410_v44  ;;  %v379_v49 = vmul.f32 0.03125, %v287_v45  ;;  %v394_v0 = vmul.f32 0.03125, %v332_v16  ;;  %v1782_v45 = vld [vmem:[%s2040_s2] ss:$0 sm:$0xff] }
 0x12e   :  { %v411_v61 = vadd.f32 1e-05, %v379_v49  ;;  %v426_v5 = vadd.f32 1e-05, %v394_v0 }
 0x12f   :  { %v335_v31 = vpop.xlane.xlu1 %334  ;;  %v290_v46 = vpop.xlane.xlu0 %289 }
 0x130   :  { %1246 = vrsqrt.f32 %v411_v61  ;;  %v395_v50 = vmul.f32 0.03125, %v335_v31  ;;  %v380_v59 = vmul.f32 0.03125, %v290_v46 }
 0x131   :  { %1248 = vrsqrt.f32 %v426_v5 }
 0x132   :  { %v427_v60 = vadd.f32 1e-05, %v395_v50  ;;  %v412_v7 = vadd.f32 1e-05, %v380_v59 }
 0x133   :  { %v293_v9 = vpop.xlane.xlu1 %292  ;;  %v338_v63 = vpop.xlane.xlu0 %337 }
 0x134   :  { %1250 = vrsqrt.f32 %v427_v60  ;;  %v381_v8 = vmul.f32 0.03125, %v293_v9  ;;  %v396_v15 = vmul.f32 0.03125, %v338_v63 }
 0x135   :  { %1252 = vrsqrt.f32 %v412_v7 }
 0x136   :  { %v1245_v51 = vpop.eup %1244  ;;  %v413_v36 = vadd.f32 1e-05, %v381_v8  ;;  %v428_v11 = vadd.f32 1e-05, %v396_v15 }
 0x137   :  { %v474_v20 = vmul.f32 %v1245_v51, %v1543_v54  ;;  %v341_v19 = vpop.xlane.xlu1 %340  ;;  %v296_v14 = vpop.xlane.xlu0 %295 }
 0x138   :  { %1254 = vrsqrt.f32 %v413_v36  ;;  %v397_v39 = vmul.f32 0.03125, %v341_v19  ;;  %v382_v26 = vmul.f32 0.03125, %v296_v14 }
 0x139   :  { %1256 = vrsqrt.f32 %v428_v11  ;;  %v512_v35 = vmul.f32 %v1775_v24, %v474_v20 }
 0x13a   :  { %v1247_v56 = vpop.eup %1246  ;;  %v429_v40 = vadd.f32 1e-05, %v397_v39  ;;  %v414_v34 = vadd.f32 1e-05, %v382_v26 }
 0x13b   :  { %v1249_v25 = vpop.eup %1248  ;;  %v475_v41 = vmul.f32 %v1247_v56, %v1555_v29  ;;  %v299_v54 = vpop.xlane.xlu1 %298  ;;  %v550_v29 = vadd.f32 %v1782_v45, %v512_v35 }
 0x13c   :  { %v344_v44 = vpop.xlane.xlu0 %343  ;;  %v490_v16 = vmul.f32 %v1249_v25, %v1547_v55  ;;  %1258 = vrsqrt.f32 %v429_v40  ;;  %v383_v49 = vmul.f32 0.03125, %v299_v54 }
 0x13d   :  { %v398_v0 = vmul.f32 0.03125, %v344_v44  ;;  %v513_v61 = vmul.f32 %v1775_v24, %v475_v41  ;;  %1260 = vrsqrt.f32 %v414_v34 }
 0x13e   :  { %v1251_v5 = vpop.eup %1250  ;;  %v415_v31 = vadd.f32 1e-05, %v383_v49  ;;  %v528_v60 = vmul.f32 %v1775_v24, %v490_v16 }
 0x13f   :  { %v430_v46 = vadd.f32 1e-05, %v398_v0  ;;  %v1253_v50 = vpop.eup %1252  ;;  %v551_v59 = vadd.f32 %v1782_v45, %v513_v61  ;;  %v491_v7 = vmul.f32 %v1251_v5, %v1559_v2  ;;  %v347_v9 = vpop.xlane.xlu1 %346 }
 0x140   :  { %v302_v55 = vpop.xlane.xlu0 %301  ;;  %v476_v63 = vmul.f32 %v1253_v50, %v1569_v1  ;;  %1262 = vrsqrt.f32 %v415_v31  ;;  %v399_v8 = vmul.f32 0.03125, %v347_v9  ;;  %v566_v2 = vadd.f32 %v1782_v45, %v528_v60 }
 0x141   :  { %v582_v15 = vpack.c.bf16 %v551_v59, %v550_v29  ;;  %v529_v51 = vmul.f32 %v1775_v24, %v491_v7  ;;  %1264 = vrsqrt.f32 %v430_v46  ;;  %v384_v36 = vmul.f32 0.03125, %v302_v55 }
 0x142   :  { %v1255_v11 = vpop.eup %1254  ;;  %v514_v20 = vmul.f32 %v1775_v24, %v476_v63  ;;  %v431_v19 = vadd.f32 1e-05, %v399_v8 }
 0x143   :  { %v1257_v14 = vpop.eup %1256  ;;  %598 = vst.msk [vmem:[#allocation2] sm:$0xff] %vm88_vm0, %v582_v15  ;;  %v567_v39 = vadd.f32 %v1782_v45, %v529_v51  ;;  %v477_v1 = vmul.f32 %v1255_v11, %v1573_v4  ;;  %v416_v26 = vadd.f32 1e-05, %v384_v36  ;;  %v305_v56 = vpop.xlane.xlu1 %304 }
 0x144   :  { %v350_v40 = vpop.xlane.xlu0 %349  ;;  %v492_v34 = vmul.f32 %v1257_v14, %v1583_v6  ;;  %1266 = vrsqrt.f32 %v431_v19  ;;  %v385_v25 = vmul.f32 0.03125, %v305_v56  ;;  %v552_v16 = vadd.f32 %v1782_v45, %v514_v20 }
 0x145   :  { %v590_v35 = vpack.c.bf16 %v567_v39, %v566_v2  ;;  %v515_v41 = vmul.f32 %v1775_v24, %v477_v1  ;;  %1268 = vrsqrt.f32 %v416_v26  ;;  %v400_v54 = vmul.f32 0.03125, %v350_v40 }
 0x146   :  { %v1259_v44 = vpop.eup %1258  ;;  %v417_v49 = vadd.f32 1e-05, %v385_v25  ;;  %v530_v61 = vmul.f32 %v1775_v24, %v492_v34 }
 0x147   :  { %v1261_v0 = vpop.eup %1260  ;;  %606 = vst.msk [vmem:[#allocation2 + $0x40] sm:$0xff] %vm88_vm0, %v590_v35  ;;  %v553_v4 = vadd.f32 %v1782_v45, %v515_v41  ;;  %v493_v6 = vmul.f32 %v1259_v44, %v1587_v12  ;;  %v432_v5 = vadd.f32 1e-05, %v400_v54  ;;  %v353_v31 = vpop.xlane.xlu1 %352 }
 0x148   :  { %v308_v46 = vpop.xlane.xlu0 %307  ;;  %v478_v50 = vmul.f32 %v1261_v0, %v1597_v13  ;;  %1270 = vrsqrt.f32 %v417_v49  ;;  %v401_v29 = vmul.f32 0.03125, %v353_v31  ;;  %v568_v12 = vadd.f32 %v1782_v45, %v530_v61 }
 0x149   :  { %v583_v59 = vpack.c.bf16 %v553_v4, %v552_v16  ;;  %v531_v60 = vmul.f32 %v1775_v24, %v493_v6  ;;  %1272 = vrsqrt.f32 %v432_v5  ;;  %v386_v7 = vmul.f32 0.03125, %v308_v46 }
 0x14a   :  { %v1263_v9 = vpop.eup %1262  ;;  %v516_v55 = vmul.f32 %v1775_v24, %v478_v50  ;;  %v433_v63 = vadd.f32 1e-05, %v401_v29  ;;  %v614_v8 = vld [vmem:[#allocation2] sm:$0xff] }
 0x14b   :  { %v1265_v15 = vpop.eup %1264  ;;  %599 = vst.msk [vmem:[#allocation2 + $0x8] sm:$0xff] %vm88_vm0, %v583_v59  ;;  %v569_v51 = vadd.f32 %v1782_v45, %v531_v60  ;;  %v479_v13 = vmul.f32 %v1263_v9, %v1601_v17  ;;  %v418_v36 = vadd.f32 1e-05, %v386_v7  ;;  %v311_v11 = vpop.xlane.xlu1 %310  ;;  %1206 = vmatprep.mubr.msk.bf16.mxu0 %vm88_vm0, %v614_v8 }
 0x14c   :  { %v356_v20 = vpop.xlane.xlu0 %355  ;;  %v494_v19 = vmul.f32 %v1265_v15, %v1611_v18  ;;  %1274 = vrsqrt.f32 %v433_v63  ;;  %v387_v14 = vmul.f32 0.03125, %v311_v11  ;;  %v554_v56 = vadd.f32 %v1782_v45, %v516_v55 }
 0x14d   :  { %v591_v2 = vpack.c.bf16 %v569_v51, %v568_v12  ;;  %v517_v39 = vmul.f32 %v1775_v24, %v479_v13  ;;  %1276 = vrsqrt.f32 %v418_v36  ;;  %v402_v1 = vmul.f32 0.03125, %v356_v20 }
 0x14e   :  { %v1267_v26 = vpop.eup %1266  ;;  %v419_v40 = vadd.f32 1e-05, %v387_v14  ;;  %v622_v34 = vld [vmem:[#allocation2 + $0x40] sm:$0xff]  ;;  %v532_v35 = vmul.f32 %v1775_v24, %v494_v19 }
 0x14f   :  { %v1269_v17 = vpop.eup %1268  ;;  %607 = vst.msk [vmem:[#allocation2 + $0x48] sm:$0xff] %vm88_vm0, %v591_v2  ;;  %v555_v25 = vadd.f32 %v1782_v45, %v517_v39  ;;  %v495_v18 = vmul.f32 %v1267_v26, %v1615_v22  ;;  %v434_v41 = vadd.f32 1e-05, %v402_v1  ;;  %v359_v54 = vpop.xlane.xlu1 %358  ;;  %1222 = vmatprep.mubr.msk.bf16.mxu1 %vm88_vm0, %v622_v34 }
 0x150   :  { %v314_v44 = vpop.xlane.xlu0 %313  ;;  %v480_v16 = vmul.f32 %v1269_v17, %v1625_v23  ;;  %1278 = vrsqrt.f32 %v419_v40  ;;  %v403_v49 = vmul.f32 0.03125, %v359_v54  ;;  %v570_v50 = vadd.f32 %v1782_v45, %v532_v35 }
 0x151   :  { %v584_v0 = vpack.c.bf16 %v555_v25, %v554_v56  ;;  %v533_v4 = vmul.f32 %v1775_v24, %v495_v18  ;;  %1280 = vrsqrt.f32 %v434_v41  ;;  %v388_v61 = vmul.f32 0.03125, %v314_v44 }
 0x152   :  { %v1271_v6 = vpop.eup %1270  ;;  %v518_v5 = vmul.f32 %v1775_v24, %v480_v16  ;;  %v435_v31 = vadd.f32 1e-05, %v403_v49  ;;  %v615_v46 = vld [vmem:[#allocation2 + $0x8] sm:$0xff] }
 0x153   :  { %v1273_v22 = vpop.eup %1272  ;;  %600 = vst.msk [vmem:[#allocation2 + $0x10] sm:$0xff] %vm88_vm0, %v584_v0  ;;  %v571_v29 = vadd.f32 %v1782_v45, %v533_v4  ;;  %v481_v23 = vmul.f32 %v1271_v6, %v1629_v27  ;;  %v420_v59 = vadd.f32 1e-05, %v388_v61  ;;  %v317_v60 = vpop.xlane.xlu1 %316  ;;  %1207 = vmatmul.mubr.msk.bf16.vlgmr.msra.gmra.mrb[0].mxu0 %vm88_vm0, %v615_v46 }
 0x154   :  { %v362_v7 = vpop.xlane.xlu0 %361  ;;  %v496_v9 = vmul.f32 %v1273_v22, %v1639_v28  ;;  %1282 = vrsqrt.f32 %v435_v31  ;;  %v389_v55 = vmul.f32 0.03125, %v317_v60  ;;  %v556_v51 = vadd.f32 %v1782_v45, %v518_v5 }
 0x155   :  { %v592_v63 = vpack.c.bf16 %v571_v29, %v570_v50  ;;  %v519_v8 = vmul.f32 %v1775_v24, %v481_v23  ;;  %1284 = vrsqrt.f32 %v420_v59  ;;  %v404_v15 = vmul.f32 0.03125, %v362_v7 }
 0x156   :  { %v1275_v12 = vpop.eup %1274  ;;  %v421_v13 = vadd.f32 1e-05, %v389_v55  ;;  %v623_v36 = vld [vmem:[#allocation2 + $0x48] sm:$0xff]  ;;  %v534_v20 = vmul.f32 %v1775_v24, %v496_v9 }
 0x157   :  { %v1277_v27 = vpop.eup %1276  ;;  %608 = vst.msk [vmem:[#allocation2 + $0x50] sm:$0xff] %vm88_vm0, %v592_v63  ;;  %v557_v11 = vadd.f32 %v1782_v45, %v519_v8  ;;  %v497_v28 = vmul.f32 %v1275_v12, %v1643_v32  ;;  %v436_v19 = vadd.f32 1e-05, %v404_v15  ;;  %v365_v14 = vpop.xlane.xlu1 %364  ;;  %1223 = vmatmul.mubr.msk.bf16.vlgmr.msra.gmra.mrb[0].mxu1 %vm88_vm0, %v623_v36 }
 0x158   :  { %v320_v2 = vpop.xlane.xlu0 %319  ;;  %v482_v39 = vmul.f32 %v1277_v27, %v1653_v33  ;;  %1286 = vrsqrt.f32 %v421_v13  ;;  %v405_v1 = vmul.f32 0.03125, %v365_v14  ;;  %v572_v18 = vadd.f32 %v1782_v45, %v534_v20 }
 0x159   :  { %v585_v26 = vpack.c.bf16 %v557_v11, %v556_v51  ;;  %v535_v56 = vmul.f32 %v1775_v24, %v497_v28  ;;  %1288 = vrsqrt.f32 %v436_v19  ;;  %v390_v40 = vmul.f32 0.03125, %v320_v2 }
 0x15a   :  { %v1279_v34 = vpop.eup %1278  ;;  %v520_v17 = vmul.f32 %v1775_v24, %v482_v39  ;;  %v437_v25 = vadd.f32 1e-05, %v405_v1  ;;  %v616_v35 = vld [vmem:[#allocation2 + $0x10] sm:$0xff] }
 0x15b   :  { %v1281_v32 = vpop.eup %1280  ;;  %601 = vst.msk [vmem:[#allocation2 + $0x18] sm:$0xff] %vm88_vm0, %v585_v26  ;;  %v573_v41 = vadd.f32 %v1782_v45, %v535_v56  ;;  %v483_v33 = vmul.f32 %v1279_v34, %v1657_v37  ;;  %v422_v54 = vadd.f32 1e-05, %v390_v40  ;;  %v323_v44 = vpop.xlane.xlu1 %322  ;;  %1210 = vmatprep.mubr.msk.bf16.mxu0 %vm88_vm0, %v616_v35 }
 0x15c   :  { %v368_v16 = vpop.xlane.xlu0 %367  ;;  %v498_v49 = vmul.f32 %v1281_v32, %v1667_v38  ;;  %1290 = vrsqrt.f32 %v437_v25  ;;  %v391_v0 = vmul.f32 0.03125, %v323_v44  ;;  %v558_v31 = vadd.f32 %v1782_v45, %v520_v17 }
 0x15d   :  { %v593_v4 = vpack.c.bf16 %v573_v41, %v572_v18  ;;  %v521_v61 = vmul.f32 %v1775_v24, %v483_v33  ;;  %1292 = vrsqrt.f32 %v422_v54  ;;  %v406_v6 = vmul.f32 0.03125, %v368_v16 }
 0x15e   :  { %v1283_v5 = vpop.eup %1282  ;;  %v423_v46 = vadd.f32 1e-05, %v391_v0  ;;  %v624_v22 = vld [vmem:[#allocation2 + $0x50] sm:$0xff]  ;;  %v536_v29 = vmul.f32 %v1775_v24, %v498_v49 }
 0x15f   :  { %v1285_v37 = vpop.eup %1284  ;;  %609 = vst.msk [vmem:[#allocation2 + $0x58] sm:$0xff] %vm88_vm0, %v593_v4  ;;  %v559_v50 = vadd.f32 %v1782_v45, %v521_v61  ;;  %v499_v38 = vmul.f32 %v1283_v5, %v1671_v42  ;;  %v438_v23 = vadd.f32 1e-05, %v406_v6  ;;  %v371_v59 = vpop.xlane.xlu1 %370  ;;  %1226 = vmatprep.mubr.msk.bf16.mxu1 %vm88_vm0, %v624_v22 }
 0x160   :  { %v326_v60 = vpop.xlane.xlu0 %325  ;;  %v484_v7 = vmul.f32 %v1285_v37, %v1681_v43  ;;  %1294 = vrsqrt.f32 %v423_v46  ;;  %v407_v9 = vmul.f32 0.03125, %v371_v59  ;;  %v574_v36 = vadd.f32 %v1782_v45, %v536_v29 }
 0x161   :  { %v586_v55 = vpack.c.bf16 %v559_v50, %v558_v31  ;;  %v537_v63 = vmul.f32 %v1775_v24, %v499_v38  ;;  %1296 = vrsqrt.f32 %v438_v23  ;;  %v392_v8 = vmul.f32 0.03125, %v326_v60 }
 0x162   :  { %v1287_v15 = vpop.eup %1286  ;;  %v522_v12 = vmul.f32 %v1775_v24, %v484_v7  ;;  %v439_v51 = vadd.f32 1e-05, %v407_v9  ;;  %v617_v13 = vld [vmem:[#allocation2 + $0x18] sm:$0xff] }
 0x163   :  { %v1289_v42 = vpop.eup %1288  ;;  %602 = vst.msk [vmem:[#allocation2 + $0x20] sm:$0xff] %vm88_vm0, %v586_v55  ;;  %v575_v27 = vadd.f32 %v1782_v45, %v537_v63  ;;  %v485_v43 = vmul.f32 %v1287_v15, %v1685_v47  ;;  %v424_v11 = vadd.f32 1e-05, %v392_v8  ;;  %v329_v20 = vpop.xlane.xlu1 %328  ;;  %1211 = vmatmul.mubr.msk.bf16.gmra.mrb[4].mxu0 %vm88_vm0, %v617_v13 }
 0x164   :  { %v374_v28 = vpop.xlane.xlu0 %373  ;;  %v500_v19 = vmul.f32 %v1289_v42, %v1695_v48  ;;  %1298 = vrsqrt.f32 %v439_v51  ;;  %v393_v14 = vmul.f32 0.03125, %v329_v20  ;;  %v560_v56 = vadd.f32 %v1782_v45, %v522_v12 }
 0x165   :  { %v594_v2 = vpack.c.bf16 %v575_v27, %v574_v36  ;;  %v523_v39 = vmul.f32 %v1775_v24, %v485_v43  ;;  %1300 = vrsqrt.f32 %v424_v11  ;;  %v408_v1 = vmul.f32 0.03125, %v374_v28 }
 0x166   :  { %v1291_v26 = vpop.eup %1290  ;;  %v425_v40 = vadd.f32 1e-05, %v393_v14  ;;  %v625_v34 = vld [vmem:[#allocation2 + $0x58] sm:$0xff]  ;;  %v538_v25 = vmul.f32 %v1775_v24, %v500_v19 }
 0x167   :  { %v1293_v47 = vpop.eup %1292  ;;  %610 = vst.msk [vmem:[#allocation2 + $0x60] sm:$0xff] %vm88_vm0, %v594_v2  ;;  %v561_v17 = vadd.f32 %v1782_v45, %v523_v39  ;;  %v501_v48 = vmul.f32 %v1291_v26, %v1699_v52  ;;  %v440_v35 = vadd.f32 1e-05, %v408_v1  ;;  %v377_v32 = vpop.xlane.xlu1 %376  ;;  %1227 = vmatmul.mubr.msk.bf16.gmra.mrb[4].mxu1 %vm88_vm0, %v625_v34 }
 0x168   :  { %v486_v18 = vmul.f32 %v1293_v47, %v1709_v53  ;;  %1302 = vrsqrt.f32 %v425_v40  ;;  %v409_v41 = vmul.f32 0.03125, %v377_v32  ;;  %v576_v52 = vadd.f32 %v1782_v45, %v538_v25 }
 0x169   :  { %v587_v33 = vpack.c.bf16 %v561_v17, %v560_v56  ;;  %v539_v54 = vmul.f32 %v1775_v24, %v501_v48  ;;  %1304 = vrsqrt.f32 %v440_v35 }
 0x16a   :  { %v1295_v44 = vpop.eup %1294  ;;  %v441_v16 = vadd.f32 1e-05, %v409_v41  ;;  %v618_v49 = vld [vmem:[#allocation2 + $0x20] sm:$0xff]  ;;  %v524_v61 = vmul.f32 %v1775_v24, %v486_v18 }
 0x16b   :  { %v1297_v0 = vpop.eup %1296  ;;  %603 = vst.msk [vmem:[#allocation2 + $0x28] sm:$0xff] %vm88_vm0, %v587_v33  ;;  %v577_v4 = vadd.f32 %v1782_v45, %v539_v54  ;;  %v487_v53 = vmul.f32 %v1295_v44, %v1713_v57  ;;  %1214 = vmatprep.mubr.msk.bf16.mxu0 %vm88_vm0, %v618_v49 }
 0x16c   :  { %v502_v6 = vmul.f32 %v1297_v0, %v1723_v58  ;;  %1306 = vrsqrt.f32 %v441_v16  ;;  %v562_v50 = vadd.f32 %v1782_v45, %v524_v61 }
 0x16d   :  { %v595_v5 = vpack.c.bf16 %v577_v4, %v576_v52  ;;  %v525_v31 = vmul.f32 %v1775_v24, %v487_v53 }
 0x16e   :  { %v1299_v46 = vpop.eup %1298  ;;  %v626_v22 = vld [vmem:[#allocation2 + $0x60] sm:$0xff]  ;;  %v540_v38 = vmul.f32 %v1775_v24, %v502_v6 }
 0x16f   :  { %v1301_v37 = vpop.eup %1300  ;;  %611 = vst.msk [vmem:[#allocation2 + $0x68] sm:$0xff] %vm88_vm0, %v595_v5  ;;  %v563_v29 = vadd.f32 %v1782_v45, %v525_v31  ;;  %v503_v57 = vmul.f32 %v1299_v46, %v1727_v62  ;;  %1230 = vmatprep.mubr.msk.bf16.mxu1 %vm88_vm0, %v626_v22 }
 0x170   :  { %v488_v58 = vmul.f32 %v1301_v37, %v1740_v10  ;;  %v578_v55 = vadd.f32 %v1782_v45, %v540_v38 }
 0x171   :  { %v588_v23 = vpack.c.bf16 %v563_v29, %v562_v50  ;;  %v541_v59 = vmul.f32 %v1775_v24, %v503_v57 }
 0x172   :  { %v1303_v60 = vpop.eup %1302  ;;  %v619_v7 = vld [vmem:[#allocation2 + $0x28] sm:$0xff]  ;;  %v526_v8 = vmul.f32 %v1775_v24, %v488_v58 }
 0x173   :  { %v1305_v9 = vpop.eup %1304  ;;  %604 = vst.msk [vmem:[#allocation2 + $0x30] sm:$0xff] %vm88_vm0, %v588_v23  ;;  %v579_v63 = vadd.f32 %v1782_v45, %v541_v59  ;;  %v489_v62 = vmul.f32 %v1303_v60, %v1744_v21  ;;  %1215 = vmatmul.mubr.msk.bf16.gmra.mrb[8].mxu0 %vm88_vm0, %v619_v7 }
 0x174   :  { %v504_v10 = vmul.f32 %v1305_v9, %v1757_v3  ;;  %v564_v42 = vadd.f32 %v1782_v45, %v526_v8 }
 0x175   :  { %v596_v15 = vpack.c.bf16 %v579_v63, %v578_v55  ;;  %v527_v12 = vmul.f32 %v1775_v24, %v489_v62 }
 0x176   :  { %v1307_v51 = vpop.eup %1306  ;;  %v627_v13 = vld [vmem:[#allocation2 + $0x68] sm:$0xff]  ;;  %v542_v27 = vmul.f32 %v1775_v24, %v504_v10 }
 0x177   :  { %612 = vst.msk [vmem:[#allocation2 + $0x70] sm:$0xff] %vm88_vm0, %v596_v15  ;;  %v565_v36 = vadd.f32 %v1782_v45, %v527_v12  ;;  %v505_v43 = vmul.f32 %v1307_v51, %v1761_v30  ;;  %1231 = vmatmul.mubr.msk.bf16.gmra.mrb[8].mxu1 %vm88_vm0, %v627_v13 }
 0x178   :  { %v580_v20 = vadd.f32 %v1782_v45, %v542_v27 }
 0x179   :  { %v589_v21 = vpack.c.bf16 %v565_v36, %v564_v42  ;;  %v543_v3 = vmul.f32 %v1775_v24, %v505_v43 }
 0x17a   :  { %v620_v11 = vld [vmem:[#allocation2 + $0x30] sm:$0xff] }
 0x17b   :  { %605 = vst.msk [vmem:[#allocation2 + $0x38] sm:$0xff] %vm88_vm0, %v589_v21  ;;  %v581_v28 = vadd.f32 %v1782_v45, %v543_v3  ;;  %1218 = vmatprep.mubr.msk.bf16.mxu0 %vm88_vm0, %v620_v11 }
 0x17d   :  { %v597_v19 = vpack.c.bf16 %v581_v28, %v580_v20 }
 0x17e   :  { %v628_v14 = vld [vmem:[#allocation2 + $0x70] sm:$0xff] }
 0x17f   :  { %613 = vst.msk [vmem:[#allocation2 + $0x78] sm:$0xff] %vm88_vm0, %v597_v19  ;;  %1234 = vmatprep.mubr.msk.bf16.mxu1 %vm88_vm0, %v628_v14 }
 0x182   :  { %v621_v30 = vld [vmem:[#allocation2 + $0x38] sm:$0xff] }
 0x183   :  { %1219 = vmatmul.mubr.msk.bf16.gmra.mrb[12].mxu0 %vm88_vm0, %v621_v30 }
 0x186   :  { %v629_v2 = vld [vmem:[#allocation2 + $0x78] sm:$0xff] }
 0x187   :  { %1235 = vmatmul.mubr.msk.bf16.gmra.mrb[12].mxu1 %vm88_vm0, %v629_v2 }
 0x226   :  { %v1208_v24 = vpop.f32.mrb[0].mxu0 }
 0x227   :  { %v1075_v39 = vpack.c.bf16 %v1208_v24, %v1208_v24  ;;  %v729_v1 = vpop.f32.mrb[1].mxu0 }
 0x228   :  { %v1073_v26 = vpack.c.bf16 %v729_v1, %v729_v1  ;;  %v1209_v45 = vpop.f32.mrb[2].mxu0 }
 0x229   :  { %987 = vst.msk [vmem:[%s2041_s4 + $0x8] sm:$0xf] %vm984_vm1, %v1075_v39  ;;  %v1076_v56 = vpack.c.bf16 %v1209_v45, %v1209_v45  ;;  %v732_v40 = vpop.f32.mrb[3].mxu0 }
 0x22a   :  { %985 = vst.msk [vmem:[%s2041_s4] sm:$0xf] %vm984_vm1, %v1073_v26  ;;  %v1074_v34 = vpack.c.bf16 %v732_v40, %v732_v40  ;;  %v1224_v47 = vpop.f32.mrb[0].mxu1 }
 0x22b   :  { %988 = vst.msk [vmem:[%s2041_s4 + $0xc] sm:$0xf] %vm984_vm1, %v1076_v56  ;;  %v1091_v17 = vpack.c.bf16 %v1224_v47, %v1224_v47  ;;  %v793_v25 = vpop.f32.mrb[1].mxu1 }
 0x22c   :  { %986 = vst.msk [vmem:[%s2041_s4 + $0x4] sm:$0xf] %vm984_vm1, %v1074_v34  ;;  %v1089_v48 = vpack.c.bf16 %v793_v25, %v793_v25  ;;  %v1225_v35 = vpop.f32.mrb[2].mxu1 }
 0x22d   :  { %1003 = vst.msk [vmem:[%s2041_s4 + $0x48] sm:$0xf] %vm984_vm1, %v1091_v17  ;;  %v1092_v32 = vpack.c.bf16 %v1225_v35, %v1225_v35  ;;  %v796_v18 = vpop.f32.mrb[3].mxu1 }
 0x22e   :  { %1001 = vst.msk [vmem:[%s2041_s4 + $0x40] sm:$0xf] %vm984_vm1, %v1089_v48  ;;  %v1090_v41 = vpack.c.bf16 %v796_v18, %v796_v18 }
 0x22f   :  { %1004 = vst.msk [vmem:[%s2041_s4 + $0x4c] sm:$0xf] %vm984_vm1, %v1092_v32 }
 0x230   :  { %1002 = vst.msk [vmem:[%s2041_s4 + $0x44] sm:$0xf] %vm984_vm1, %v1090_v41 }
 0x236   :  { %v1212_v33 = vpop.f32.mrb[4].mxu0 }
 0x237   :  { %v1079_v54 = vpack.c.bf16 %v1212_v33, %v1212_v33  ;;  %v745_v44 = vpop.f32.mrb[5].mxu0 }
 0x238   :  { %v1077_v16 = vpack.c.bf16 %v745_v44, %v745_v44  ;;  %v1213_v49 = vpop.f32.mrb[6].mxu0 }
 0x239   :  { %991 = vst.msk [vmem:[%s2041_s4 + $0x18] sm:$0xf] %vm984_vm1, %v1079_v54  ;;  %v1080_v0 = vpack.c.bf16 %v1213_v49, %v1213_v49  ;;  %v748_v52 = vpop.f32.mrb[7].mxu0 }
 0x23a   :  { %989 = vst.msk [vmem:[%s2041_s4 + $0x10] sm:$0xf] %vm984_vm1, %v1077_v16  ;;  %v1078_v4 = vpack.c.bf16 %v748_v52, %v748_v52  ;;  %v1228_v61 = vpop.f32.mrb[4].mxu1 }
 0x23b   :  { %992 = vst.msk [vmem:[%s2041_s4 + $0x1c] sm:$0xf] %vm984_vm1, %v1080_v0  ;;  %v1095_v53 = vpack.c.bf16 %v1228_v61, %v1228_v61  ;;  %v809_v6 = vpop.f32.mrb[5].mxu1 }
 0x23c   :  { %990 = vst.msk [vmem:[%s2041_s4 + $0x14] sm:$0xf] %vm984_vm1, %v1078_v4  ;;  %v1093_v5 = vpack.c.bf16 %v809_v6, %v809_v6  ;;  %v1229_v31 = vpop.f32.mrb[6].mxu1 }
 0x23d   :  { %1007 = vst.msk [vmem:[%s2041_s4 + $0x58] sm:$0xf] %vm984_vm1, %v1095_v53  ;;  %v1096_v46 = vpack.c.bf16 %v1229_v31, %v1229_v31  ;;  %v812_v22 = vpop.f32.mrb[7].mxu1 }
 0x23e   :  { %1005 = vst.msk [vmem:[%s2041_s4 + $0x50] sm:$0xf] %vm984_vm1, %v1093_v5  ;;  %v1094_v37 = vpack.c.bf16 %v812_v22, %v812_v22 }
 0x23f   :  { %1008 = vst.msk [vmem:[%s2041_s4 + $0x5c] sm:$0xf] %vm984_vm1, %v1096_v46 }
 0x240   :  { %1006 = vst.msk [vmem:[%s2041_s4 + $0x54] sm:$0xf] %vm984_vm1, %v1094_v37 }
 0x246   :  { %v1216_v50 = vpop.f32.mrb[8].mxu0 }
 0x247   :  { %v1083_v29 = vpack.c.bf16 %v1216_v50, %v1216_v50  ;;  %v761_v38 = vpop.f32.mrb[9].mxu0 }
 0x248   :  { %v1081_v57 = vpack.c.bf16 %v761_v38, %v761_v38  ;;  %v1217_v58 = vpop.f32.mrb[10].mxu0 }
 0x249   :  { %995 = vst.msk [vmem:[%s2041_s4 + $0x28] sm:$0xf] %vm984_vm1, %v1083_v29  ;;  %v1084_v23 = vpack.c.bf16 %v1217_v58, %v1217_v58  ;;  %v764_v59 = vpop.f32.mrb[11].mxu0 }
 0x24a   :  { %993 = vst.msk [vmem:[%s2041_s4 + $0x20] sm:$0xf] %vm984_vm1, %v1081_v57  ;;  %v1082_v60 = vpack.c.bf16 %v764_v59, %v764_v59  ;;  %v1232_v7 = vpop.f32.mrb[8].mxu1 }
 0x24b   :  { %996 = vst.msk [vmem:[%s2041_s4 + $0x2c] sm:$0xf] %vm984_vm1, %v1084_v23  ;;  %v1099_v9 = vpack.c.bf16 %v1232_v7, %v1232_v7  ;;  %v825_v55 = vpop.f32.mrb[9].mxu1 }
 0x24c   :  { %994 = vst.msk [vmem:[%s2041_s4 + $0x24] sm:$0xf] %vm984_vm1, %v1082_v60  ;;  %v1097_v63 = vpack.c.bf16 %v825_v55, %v825_v55  ;;  %v1233_v8 = vpop.f32.mrb[10].mxu1 }
 0x24d   :  { %1011 = vst.msk [vmem:[%s2041_s4 + $0x68] sm:$0xf] %vm984_vm1, %v1099_v9  ;;  %v1100_v62 = vpack.c.bf16 %v1233_v8, %v1233_v8  ;;  %v828_v10 = vpop.f32.mrb[11].mxu1 }
 0x24e   :  { %1009 = vst.msk [vmem:[%s2041_s4 + $0x60] sm:$0xf] %vm984_vm1, %v1097_v63  ;;  %v1098_v15 = vpack.c.bf16 %v828_v10, %v828_v10 }
 0x24f   :  { %1012 = vst.msk [vmem:[%s2041_s4 + $0x6c] sm:$0xf] %vm984_vm1, %v1100_v62 }
 0x250   :  { %1010 = vst.msk [vmem:[%s2041_s4 + $0x64] sm:$0xf] %vm984_vm1, %v1098_v15 }
 0x256   :  { %v1220_v12 = vpop.f32.mrb[12].mxu0 }
 0x257   :  { %v1087_v51 = vpack.c.bf16 %v1220_v12, %v1220_v12  ;;  %v777_v13 = vpop.f32.mrb[13].mxu0 }
 0x258   :  { %v1085_v42 = vpack.c.bf16 %v777_v13, %v777_v13  ;;  %v1221_v36 = vpop.f32.mrb[14].mxu0 }
 0x259   :  { %999 = vst.msk [vmem:[%s2041_s4 + $0x38] sm:$0xf] %vm984_vm1, %v1087_v51  ;;  %v1088_v27 = vpack.c.bf16 %v1221_v36, %v1221_v36  ;;  %v780_v43 = vpop.f32.mrb[15].mxu0 }
 0x25a   :  { %997 = vst.msk [vmem:[%s2041_s4 + $0x30] sm:$0xf] %vm984_vm1, %v1085_v42  ;;  %v1086_v21 = vpack.c.bf16 %v780_v43, %v780_v43  ;;  %v1236_v3 = vpop.f32.mrb[12].mxu1 }
 0x25b   :  { %1000 = vst.msk [vmem:[%s2041_s4 + $0x3c] sm:$0xf] %vm984_vm1, %v1088_v27  ;;  %v1103_v11 = vpack.c.bf16 %v1236_v3, %v1236_v3  ;;  %v841_v20 = vpop.f32.mrb[13].mxu1 }
 0x25c   :  { %998 = vst.msk [vmem:[%s2041_s4 + $0x34] sm:$0xf] %vm984_vm1, %v1086_v21  ;;  %v1101_v28 = vpack.c.bf16 %v841_v20, %v841_v20  ;;  %v1237_v19 = vpop.f32.mrb[14].mxu1 }
 0x25d   :  { %1015 = vst.msk [vmem:[%s2041_s4 + $0x78] sm:$0xf] %vm984_vm1, %v1103_v11  ;;  %v1104_v14 = vpack.c.bf16 %v1237_v19, %v1237_v19  ;;  %v844_v30 = vpop.f32.mrb[15].mxu1 }
 0x25e   :  { %1013 = vst.msk [vmem:[%s2041_s4 + $0x70] sm:$0xf] %vm984_vm1, %v1101_v28  ;;  %v1102_v2 = vpack.c.bf16 %v844_v30, %v844_v30 }
 0x25f   :  { %1016 = vst.msk [vmem:[%s2041_s4 + $0x7c] sm:$0xf] %vm984_vm1, %v1104_v14 }
 0x260   :  { %1014 = vst.msk [vmem:[%s2041_s4 + $0x74] sm:$0xf] %vm984_vm1, %v1102_v2 }

// kernel: _lambda_.12
= control target key start
LH: loop header
LB: loop body
LE: loop exit
PB: predicated region body
PF: predicated region fallthrough
CT: control target
= control target key end

     0   :  { %vm22_vm0 = vcmask 261120   ;;  %v1119_v1 = vmov 0.0   ;;  %v542_v25 = vlaneseq  ;;  %vm802_vm1 = vcmask 257024   ;;  %s1590_s1 = inlined_call_operand.vmem [shape: bf16[128,32], index: 1, kind: input, shape index: {}]   ;;  %s1591_s0 = inlined_call_operand.vmem [shape: bf16[256,128], index: 0, kind: input, shape index: {}]   ;;  %s1592_s2 = inlined_call_operand.vmem [shape: bf16[1,32], index: 2, kind: input, shape index: {}]   ;;  %s1593_s3 = inlined_call_operand.vmem [shape: bf16[256,32], index: 3, kind: input, shape index: {}]   ;;  %s1594_s4 = inlined_call_operand.vmem [shape: bf16[256,32], index: 4, kind: output, shape index: {}]  }
   0x1   :  { %v1095_v0 = vld [vmem:[%s1590_s1] sm:$0xff]   ;;  %25 = vst.msk [vmem:[#allocation2 + $0x10] sm:$0xff] %vm22_vm0, %v1119_v1  ;;  %23 = vst.msk [vmem:[#allocation2] sm:$0xff] %vm22_vm0, %v1119_v1  ;;  %v1096_v2 = vld [vmem:[%s1590_s1 + $0x8] sm:$0xff]  }
   0x2   :  { %24 = vst.msk [vmem:[#allocation2 + $0x8] sm:$0xff] %vm22_vm0, %v1119_v1  ;;  %26 = vst.msk [vmem:[#allocation2 + $0x18] sm:$0xff] %vm22_vm0, %v1119_v1  ;;  %1030 = vmatprep.subr.bf16.mxu0 %v1095_v0  ;;  %1078 = vmatprep.subr.bf16.mxu1 %v1095_v0  ;;  %v1097_v3 = vld [vmem:[%s1590_s1 + $0x10] sm:$0xff]   ;;  %v1098_v4 = vld [vmem:[%s1590_s1 + $0x18] sm:$0xff]   ;;  %v543_v26 = vshrl.u32 %v542_v25, 7 }
   0x3   :  { %27 = vst.msk [vmem:[#allocation2 + $0x20] sm:$0xff] %vm22_vm0, %v1119_v1  ;;  %28 = vst.msk [vmem:[#allocation2 + $0x28] sm:$0xff] %vm22_vm0, %v1119_v1  ;;  %1031 = vmatpush3.bf16.msra.mxu0 %v1095_v0  ;;  %1086 = vmatpush3.bf16.msra.mxu1 %v1095_v0  ;;  %v1103_v5 = vld [vmem:[%s1591_s0] sm:$0xff]   ;;  %v1100_v8 = vld [vmem:[%s1590_s1 + $0x28] sm:$0xff]  }
   0x4   :  { %29 = vst.msk [vmem:[#allocation2 + $0x30] sm:$0xff] %vm22_vm0, %v1119_v1  ;;  %30 = vst.msk [vmem:[#allocation2 + $0x38] sm:$0xff] %vm22_vm0, %v1119_v1  ;;  %1032 = vmatprep.subr.bf16.mxu0 %v1096_v2  ;;  %1079 = vmatprep.subr.bf16.mxu1 %v1096_v2  ;;  %v1104_v6 = vld [vmem:[%s1591_s0 + $0x40] sm:$0xff]   ;;  %v1101_v9 = vld [vmem:[%s1590_s1 + $0x30] sm:$0xff]   ;;  %v544_v30 = vsub.s32 0, %v543_v26 }
   0x5   :  { %31 = vst.msk [vmem:[#allocation2 + $0x40] sm:$0xff] %vm22_vm0, %v1119_v1  ;;  %32 = vst.msk [vmem:[#allocation2 + $0x48] sm:$0xff] %vm22_vm0, %v1119_v1  ;;  %1046 = vmatprep.mubr.bf16.mxu0 %v1103_v5  ;;  %v1099_v7 = vld [vmem:[%s1590_s1 + $0x20] sm:$0xff]   ;;  %1062 = vmatprep.mubr.bf16.mxu1 %v1104_v6  ;;  %v1102_v10 = vld [vmem:[%s1590_s1 + $0x38] sm:$0xff]  }
   0x6   :  { %33 = vst.msk [vmem:[#allocation2 + $0x50] sm:$0xff] %vm22_vm0, %v1119_v1  ;;  %34 = vst.msk [vmem:[#allocation2 + $0x58] sm:$0xff] %vm22_vm0, %v1119_v1  ;;  %v1105_v11 = vld [vmem:[%s1591_s0 + $0x8] sm:$0xff]   ;;  %v1107_v13 = vld [vmem:[%s1591_s0 + $0x10] sm:$0xff]  }
   0x7   :  { %35 = vst.msk [vmem:[#allocation2 + $0x60] sm:$0xff] %vm22_vm0, %v1119_v1  ;;  %36 = vst.msk [vmem:[#allocation2 + $0x68] sm:$0xff] %vm22_vm0, %v1119_v1  ;;  %1033 = vmatpush3.bf16.msra.mxu0 %v1096_v2  ;;  %1087 = vmatpush3.bf16.msra.mxu1 %v1096_v2  ;;  %v1106_v12 = vld [vmem:[%s1591_s0 + $0x48] sm:$0xff]   ;;  %v1108_v14 = vld [vmem:[%s1591_s0 + $0x50] sm:$0xff]  }
   0x8   :  { %37 = vst.msk [vmem:[#allocation2 + $0x70] sm:$0xff] %vm22_vm0, %v1119_v1  ;;  %38 = vst.msk [vmem:[#allocation2 + $0x78] sm:$0xff] %vm22_vm0, %v1119_v1  ;;  %1034 = vmatprep.subr.bf16.mxu0 %v1097_v3  ;;  %1080 = vmatprep.subr.bf16.mxu1 %v1097_v3  ;;  %v1109_v15 = vld [vmem:[%s1591_s0 + $0x18] sm:$0xff]   ;;  %v1111_v17 = vld [vmem:[%s1591_s0 + $0x20] sm:$0xff]  }
   0x9   :  { %39 = vst.msk [vmem:[#allocation2 + $0x80] sm:$0xff] %vm22_vm0, %v1119_v1  ;;  %40 = vst.msk [vmem:[#allocation2 + $0x88] sm:$0xff] %vm22_vm0, %v1119_v1  ;;  %v1110_v16 = vld [vmem:[%s1591_s0 + $0x58] sm:$0xff]   ;;  %v1112_v18 = vld [vmem:[%s1591_s0 + $0x60] sm:$0xff]  }
   0xa   :  { %41 = vst.msk [vmem:[#allocation2 + $0x90] sm:$0xff] %vm22_vm0, %v1119_v1  ;;  %42 = vst.msk [vmem:[#allocation2 + $0x98] sm:$0xff] %vm22_vm0, %v1119_v1  ;;  %v1113_v19 = vld [vmem:[%s1591_s0 + $0x28] sm:$0xff]   ;;  %v1115_v21 = vld [vmem:[%s1591_s0 + $0x30] sm:$0xff]  }
   0xb   :  { %43 = vst.msk [vmem:[#allocation2 + $0xa0] sm:$0xff] %vm22_vm0, %v1119_v1  ;;  %44 = vst.msk [vmem:[#allocation2 + $0xa8] sm:$0xff] %vm22_vm0, %v1119_v1  ;;  %1035 = vmatpush3.bf16.msra.mxu0 %v1097_v3  ;;  %1088 = vmatpush3.bf16.msra.mxu1 %v1097_v3  ;;  %v1114_v20 = vld [vmem:[%s1591_s0 + $0x68] sm:$0xff]   ;;  %v1116_v22 = vld [vmem:[%s1591_s0 + $0x70] sm:$0xff]  }
   0xc   :  { %45 = vst.msk [vmem:[#allocation2 + $0xb0] sm:$0xff] %vm22_vm0, %v1119_v1  ;;  %46 = vst.msk [vmem:[#allocation2 + $0xb8] sm:$0xff] %vm22_vm0, %v1119_v1  ;;  %1036 = vmatprep.subr.bf16.mxu0 %v1098_v4  ;;  %1081 = vmatprep.subr.bf16.mxu1 %v1098_v4  ;;  %v1117_v23 = vld [vmem:[%s1591_s0 + $0x38] sm:$0xff]   ;;  %v540_v27 = vld [vmem:[%s1592_s2] sm:$0x1] }
   0xd   :  { %47 = vst.msk [vmem:[#allocation2 + $0xc0] sm:$0xff] %vm22_vm0, %v1119_v1  ;;  %48 = vst.msk [vmem:[#allocation2 + $0xc8] sm:$0xff] %vm22_vm0, %v1119_v1  ;;  %v1118_v24 = vld [vmem:[%s1591_s0 + $0x78] sm:$0xff]   ;;  %v57_v28 = vld [vmem:[#allocation2 + $0x10] sm:$0xff]  ;;  %v541_v29 = vunpack.c.l.bf16 %v540_v27 }
   0xe   :  { %49 = vst.msk [vmem:[#allocation2 + $0xd0] sm:$0xff] %vm22_vm0, %v1119_v1  ;;  %50 = vst.msk [vmem:[#allocation2 + $0xd8] sm:$0xff] %vm22_vm0, %v1119_v1  ;;  %v55_v32 = vld [vmem:[#allocation2] sm:$0xff]  ;;  %v58_v34 = vld [vmem:[#allocation2 + $0x18] sm:$0xff] }
   0xf   :  { %51 = vst.msk [vmem:[#allocation2 + $0xe0] sm:$0xff] %vm22_vm0, %v1119_v1  ;;  %52 = vst.msk [vmem:[#allocation2 + $0xe8] sm:$0xff] %vm22_vm0, %v1119_v1  ;;  %1037 = vmatpush3.bf16.msra.mxu0 %v1098_v4  ;;  %1089 = vmatpush3.bf16.msra.mxu1 %v1098_v4  ;;  %v1255_v37 = vld [vmem:[%s1593_s3 + $0x8] sm:$0xff]   ;;  %v1265_v44 = vld [vmem:[%s1593_s3] sm:$0xff]   ;;  %v1272_v48 = vrot.slane %v541_v29, %v544_v30 }
  0x10   :  { %53 = vst.msk [vmem:[#allocation2 + $0xf0] sm:$0xff] %vm22_vm0, %v1119_v1  ;;  %54 = vst.msk [vmem:[#allocation2 + $0xf8] sm:$0xff] %vm22_vm0, %v1119_v1  ;;  %1038 = vmatprep.subr.bf16.mxu0 %v1099_v7  ;;  %1082 = vmatprep.subr.bf16.mxu1 %v1099_v7  ;;  %v71_v33 = vld [vmem:[#allocation2 + $0x80] sm:$0xff]  ;;  %v1260_v39 = vld [vmem:[%s1593_s3 + $0x48] sm:$0xff]   ;;  %v933_v54 = vunpack.c.l.bf16 %v1255_v37  ;;  %v929_v63 = vunpack.c.l.bf16 %v1265_v44  ;;  %v934_v4 = vunpack.c.h.bf16 %v1255_v37  ;;  %v930_v6 = vunpack.c.h.bf16 %v1265_v44 }
  0x11   :  { %v73_v31 = vld [vmem:[#allocation2 + $0x90] sm:$0xff]  ;;  %v74_v35 = vld [vmem:[#allocation2 + $0x98] sm:$0xff]  ;;  %v56_v40 = vld [vmem:[#allocation2 + $0x8] sm:$0xff]  ;;  %v965_v55 = vunpack.c.l.bf16 %v1260_v39  ;;  %v966_v5 = vunpack.c.h.bf16 %v1260_v39 }
  0x12   :  { %v1270_v46 = vld [vmem:[%s1593_s3 + $0x40] sm:$0xff]   ;;  %v72_v47 = vld [vmem:[#allocation2 + $0x88] sm:$0xff]  ;;  %v1277_v53 = vld [vmem:[%s1593_s3 + $0x18] sm:$0xff]  }
  0x13   :  { %1039 = vmatpush3.bf16.msra.mxu0 %v1099_v7  ;;  %1090 = vmatpush3.bf16.msra.mxu1 %v1099_v7  ;;  %v1286_v60 = vld [vmem:[%s1593_s3 + $0x58] sm:$0xff]   ;;  %v1291_v61 = vld [vmem:[%s1593_s3 + $0x10] sm:$0xff]   ;;  %v961_v0 = vunpack.c.l.bf16 %v1270_v46  ;;  %v1305_v3 = vld [vmem:[%s1593_s3 + $0x28] sm:$0xff]   ;;  %v962_v7 = vunpack.c.h.bf16 %v1270_v46 }
  0x14   :  { %1040 = vmatprep.subr.bf16.mxu0 %v1100_v8  ;;  %1083 = vmatprep.subr.bf16.mxu1 %v1100_v8  ;;  %v1296_v62 = vld [vmem:[%s1593_s3 + $0x50] sm:$0xff]   ;;  %v62_v25 = vld [vmem:[#allocation2 + $0x38] sm:$0xff]  ;;  %v949_v27 = vunpack.c.l.bf16 %v1305_v3 }
  0x15   :  { %v78_v26 = vld [vmem:[#allocation2 + $0xb8] sm:$0xff] }
  0x17   :  { %1041 = vmatpush3.bf16.msra.mxu0 %v1100_v8  ;;  %1091 = vmatpush3.bf16.msra.mxu1 %v1100_v8  ;;  %v1316_v8 = vld [vmem:[%s1593_s3 + $0x68] sm:$0xff]  }
  0x18   :  { %1042 = vmatprep.subr.bf16.mxu0 %v1101_v9  ;;  %1084 = vmatprep.subr.bf16.mxu1 %v1101_v9 }
  0x1b   :  { %1043 = vmatpush3.bf16.msra.mxu0 %v1101_v9  ;;  %1092 = vmatpush3.bf16.msra.mxu1 %v1101_v9  ;;  %v1321_v9 = vld [vmem:[%s1593_s3 + $0x20] sm:$0xff]  }
  0x1c   :  { %1044 = vmatprep.subr.bf16.mxu0 %v1102_v10  ;;  %1085 = vmatprep.subr.bf16.mxu1 %v1102_v10  ;;  %v945_v29 = vunpack.c.l.bf16 %v1321_v9 }
  0x1f   :  { %1045 = vmatpush3.bf16.msra.mxu0 %v1102_v10  ;;  %1093 = vmatpush3.bf16.msra.mxu1 %v1102_v10  ;;  %v1326_v10 = vld [vmem:[%s1593_s3 + $0x60] sm:$0xff]  }
  0x20   :  { %v977_v30 = vunpack.c.l.bf16 %v1326_v10 }
  0x22   :  { %1047 = vmatmul.mubr.bf16.vlgmr.msra.gmra.mrb[0].mxu0 %v1105_v11  ;;  %1063 = vmatmul.mubr.bf16.vlgmr.msra.gmra.mrb[0].mxu1 %v1106_v12  ;;  %v61_v11 = vld [vmem:[#allocation2 + $0x30] sm:$0xff]  ;;  %v941_v12 = vunpack.c.l.bf16 %v1277_v53 }
  0x23   :  { %1050 = vmatprep.mubr.bf16.mxu0 %v1107_v13  ;;  %1066 = vmatprep.mubr.bf16.mxu1 %v1108_v14  ;;  %v77_v13 = vld [vmem:[#allocation2 + $0xb0] sm:$0xff]  ;;  %v973_v14 = vunpack.c.l.bf16 %v1286_v60 }
  0x2a   :  { %1051 = vmatmul.mubr.bf16.gmra.mrb[4].mxu0 %v1109_v15  ;;  %1067 = vmatmul.mubr.bf16.gmra.mrb[4].mxu1 %v1110_v16  ;;  %v937_v15 = vunpack.c.l.bf16 %v1291_v61  ;;  %v969_v16 = vunpack.c.l.bf16 %v1296_v62 }
  0x2b   :  { %1054 = vmatprep.mubr.bf16.mxu0 %v1111_v17  ;;  %1070 = vmatprep.mubr.bf16.mxu1 %v1112_v18  ;;  %v59_v17 = vld [vmem:[#allocation2 + $0x20] sm:$0xff] }
  0x2c   :  { %v75_v18 = vld [vmem:[#allocation2 + $0xa0] sm:$0xff] }
  0x32   :  { %1055 = vmatmul.mubr.bf16.gmra.mrb[8].mxu0 %v1113_v19  ;;  %1071 = vmatmul.mubr.bf16.gmra.mrb[8].mxu1 %v1114_v20  ;;  %v942_v19 = vunpack.c.h.bf16 %v1277_v53  ;;  %v974_v20 = vunpack.c.h.bf16 %v1286_v60 }
  0x33   :  { %1058 = vmatprep.mubr.bf16.mxu0 %v1115_v21  ;;  %1074 = vmatprep.mubr.bf16.mxu1 %v1116_v22  ;;  %v938_v21 = vunpack.c.h.bf16 %v1291_v61  ;;  %v970_v22 = vunpack.c.h.bf16 %v1296_v62 }
  0x3a   :  { %1059 = vmatmul.mubr.bf16.gmra.mrb[12].mxu0 %v1117_v23  ;;  %1075 = vmatmul.mubr.bf16.gmra.mrb[12].mxu1 %v1118_v24 }
  0xf5   :  { %v1048_v36 = vpop.f32.mrb[0].mxu0  ;;  %v1064_v38 = vpop.f32.mrb[0].mxu1 }
  0xf6   :  { %v442_v41 = vadd.f32 %v1048_v36, %v57_v28  ;;  %v458_v42 = vadd.f32 %v1064_v38, %v73_v31  ;;  %v313_v43 = vpop.f32.mrb[1].mxu0  ;;  %v377_v45 = vpop.f32.mrb[1].mxu1  ;;  %v981_v28 = vunpack.c.l.bf16 %v1316_v8  ;;  %v76_v36 = vld [vmem:[#allocation2 + $0xa8] sm:$0xff]  ;;  %v950_v38 = vunpack.c.h.bf16 %v1305_v3 }
  0xf7   :  { %v440_v49 = vadd.f32 %v313_v43, %v55_v32  ;;  %v456_v50 = vadd.f32 %v377_v45, %v71_v33  ;;  %v1049_v51 = vpop.f32.mrb[2].mxu0  ;;  %v1065_v52 = vpop.f32.mrb[2].mxu1 }
  0xf8   :  { %475 = vst.msk [vmem:[#allocation2 + $0x10] sm:$0xff] %vm22_vm0, %v442_v41  ;;  %491 = vst.msk [vmem:[#allocation2 + $0x90] sm:$0xff] %vm22_vm0, %v458_v42  ;;  %v443_v56 = vadd.f32 %v1049_v51, %v58_v34  ;;  %v459_v57 = vadd.f32 %v1065_v52, %v74_v35  ;;  %v316_v58 = vpop.f32.mrb[3].mxu0  ;;  %v380_v59 = vpop.f32.mrb[3].mxu1  ;;  %v60_v35 = vld [vmem:[#allocation2 + $0x28] sm:$0xff]  ;;  %v978_v51 = vunpack.c.h.bf16 %v1326_v10 }
  0xf9   :  { %473 = vst.msk [vmem:[#allocation2] sm:$0xff] %vm22_vm0, %v440_v49  ;;  %489 = vst.msk [vmem:[#allocation2 + $0x80] sm:$0xff] %vm22_vm0, %v456_v50  ;;  %v441_v1 = vadd.f32 %v316_v58, %v56_v40  ;;  %v457_v2 = vadd.f32 %v380_v59, %v72_v47  ;;  %v982_v40 = vunpack.c.h.bf16 %v1316_v8  ;;  %v946_v50 = vunpack.c.h.bf16 %v1321_v9 }
  0xfa   :  { %476 = vst.msk [vmem:[#allocation2 + $0x18] sm:$0xff] %vm22_vm0, %v443_v56  ;;  %492 = vst.msk [vmem:[#allocation2 + $0x98] sm:$0xff] %vm22_vm0, %v459_v57 }
  0xfb   :  { %474 = vst.msk [vmem:[#allocation2 + $0x8] sm:$0xff] %vm22_vm0, %v441_v1  ;;  %490 = vst.msk [vmem:[#allocation2 + $0x88] sm:$0xff] %vm22_vm0, %v457_v2 }
  0xfd   :  { %v1052_v23 = vpop.f32.mrb[4].mxu0  ;;  %v1068_v24 = vpop.f32.mrb[4].mxu1 }
  0xfe   :  { %v446_v31 = vadd.f32 %v1052_v23, %v61_v11  ;;  %v462_v32 = vadd.f32 %v1068_v24, %v77_v13  ;;  %v329_v33 = vpop.f32.mrb[5].mxu0  ;;  %v393_v34 = vpop.f32.mrb[5].mxu1 }
  0xff   :  { %v510_v41 = vld [vmem:[#allocation2 + $0x10] sm:$0xff]  ;;  %v444_v43 = vadd.f32 %v329_v33, %v59_v17  ;;  %v460_v45 = vadd.f32 %v393_v34, %v75_v18  ;;  %v1053_v47 = vpop.f32.mrb[6].mxu0  ;;  %v1069_v49 = vpop.f32.mrb[6].mxu1 }
 0x100   :  { %v526_v42 = vld [vmem:[#allocation2 + $0x90] sm:$0xff]  ;;  %v548_v52 = vadd.f32 %v1272_v48, %v510_v41  ;;  %v508_v57 = vld [vmem:[#allocation2] sm:$0xff]  ;;  %479 = vst.msk [vmem:[#allocation2 + $0x30] sm:$0xff] %vm22_vm0, %v446_v31  ;;  %495 = vst.msk [vmem:[#allocation2 + $0xb0] sm:$0xff] %vm22_vm0, %v462_v32  ;;  %v447_v59 = vadd.f32 %v1053_v47, %v62_v25  ;;  %v463_v1 = vadd.f32 %v1069_v49, %v78_v26  ;;  %v332_v2 = vpop.f32.mrb[7].mxu0  ;;  %v396_v11 = vpop.f32.mrb[7].mxu1 }
 0x101   :  { %v564_v56 = vadd.f32 %v1272_v48, %v526_v42  ;;  %v524_v58 = vld [vmem:[#allocation2 + $0x80] sm:$0xff]  ;;  %v546_v13 = vadd.f32 %v1272_v48, %v508_v57  ;;  %v511_v18 = vld [vmem:[#allocation2 + $0x18] sm:$0xff]  ;;  %477 = vst.msk [vmem:[#allocation2 + $0x20] sm:$0xff] %vm22_vm0, %v444_v43  ;;  %493 = vst.msk [vmem:[#allocation2 + $0xa0] sm:$0xff] %vm22_vm0, %v460_v45  ;;  %v445_v24 = vadd.f32 %v332_v2, %v60_v35 }
 0x102   :  { %v562_v17 = vadd.f32 %v1272_v48, %v524_v58  ;;  %v527_v23 = vld [vmem:[#allocation2 + $0x98] sm:$0xff]  ;;  %v461_v33 = vadd.f32 %v396_v11, %v76_v36  ;;  %v644_v31 = vadd.f32 %v933_v54, %v548_v52  ;;  %v549_v26 = vadd.f32 %v1272_v48, %v511_v18  ;;  %v509_v34 = vld [vmem:[#allocation2 + $0x8] sm:$0xff]  ;;  %480 = vst.msk [vmem:[#allocation2 + $0x38] sm:$0xff] %vm22_vm0, %v447_v59  ;;  %v65_v42 = vld [vmem:[#allocation2 + $0x50] sm:$0xff] }
 0x103   :  { %v660_v25 = vadd.f32 %v965_v55, %v564_v56  ;;  %v565_v32 = vadd.f32 %v1272_v48, %v527_v23  ;;  %v525_v41 = vld [vmem:[#allocation2 + $0x88] sm:$0xff]  ;;  %496 = vst.msk [vmem:[#allocation2 + $0xb8] sm:$0xff] %vm22_vm0, %v463_v1  ;;  %v642_v35 = vadd.f32 %v929_v63, %v546_v13  ;;  %v547_v54 = vadd.f32 %v1272_v48, %v509_v34  ;;  %v81_v43 = vld [vmem:[#allocation2 + $0xd0] sm:$0xff]  ;;  %v63_v52 = vld [vmem:[#allocation2 + $0x40] sm:$0xff] }
 0x104   :  { %v658_v36 = vadd.f32 %v961_v0, %v562_v17  ;;  %v563_v55 = vadd.f32 %v1272_v48, %v525_v41  ;;  %478 = vst.msk [vmem:[#allocation2 + $0x28] sm:$0xff] %vm22_vm0, %v445_v24  ;;  %494 = vst.msk [vmem:[#allocation2 + $0xa8] sm:$0xff] %vm22_vm0, %v461_v33  ;;  %v897_v45 = vpack.c.bf16 %v644_v31, %v644_v31  ;;  %v79_v0 = vld [vmem:[#allocation2 + $0xc0] sm:$0xff]  ;;  %v66_v11 = vld [vmem:[#allocation2 + $0x58] sm:$0xff] }
 0x105   :  { %v913_v47 = vpack.c.bf16 %v660_v25, %v660_v25  ;;  %v645_v49 = vadd.f32 %v934_v4, %v549_v26  ;;  %v661_v63 = vadd.f32 %v966_v5, %v565_v32  ;;  %v895_v56 = vpack.c.bf16 %v642_v35, %v642_v35  ;;  %v1056_v1 = vpop.f32.mrb[8].mxu0  ;;  %v1072_v2 = vpop.f32.mrb[8].mxu1  ;;  %v82_v13 = vld [vmem:[#allocation2 + $0xd8] sm:$0xff] }
 0x106   :  { %v911_v57 = vpack.c.bf16 %v658_v36, %v658_v36  ;;  %v643_v58 = vadd.f32 %v930_v6, %v547_v54  ;;  %v659_v59 = vadd.f32 %v962_v7, %v563_v55  ;;  %805 = vst.msk [vmem:[%s1594_s4 + $0x8] sm:$0xf] %vm802_vm1, %v897_v45  ;;  %v450_v44 = vadd.f32 %v1056_v1, %v65_v42  ;;  %v345_v46 = vpop.f32.mrb[9].mxu0  ;;  %v409_v5 = vpop.f32.mrb[9].mxu1  ;;  %v64_v6 = vld [vmem:[#allocation2 + $0x48] sm:$0xff] }
 0x107   :  { %821 = vst.msk [vmem:[%s1594_s4 + $0x48] sm:$0xf] %vm802_vm1, %v913_v47  ;;  %v898_v37 = vpack.c.bf16 %v645_v49, %v645_v49  ;;  %v914_v39 = vpack.c.bf16 %v661_v63, %v661_v63  ;;  %v466_v4 = vadd.f32 %v1072_v2, %v81_v43  ;;  %v80_v7 = vld [vmem:[#allocation2 + $0xc8] sm:$0xff]  ;;  %803 = vst.msk [vmem:[%s1594_s4] sm:$0xf] %vm802_vm1, %v895_v56  ;;  %v514_v23 = vld [vmem:[#allocation2 + $0x30] sm:$0xff] }
 0x108   :  { %819 = vst.msk [vmem:[%s1594_s4 + $0x40] sm:$0xf] %vm802_vm1, %v911_v57  ;;  %v896_v17 = vpack.c.bf16 %v643_v58, %v643_v58  ;;  %v912_v18 = vpack.c.bf16 %v659_v59, %v659_v59  ;;  %v530_v24 = vld [vmem:[#allocation2 + $0xb0] sm:$0xff]  ;;  %v448_v33 = vadd.f32 %v345_v46, %v63_v52  ;;  %v464_v31 = vadd.f32 %v409_v5, %v79_v0  ;;  %v1057_v25 = vpop.f32.mrb[10].mxu0  ;;  %v1073_v26 = vpop.f32.mrb[10].mxu1  ;;  %v512_v41 = vld [vmem:[#allocation2 + $0x20] sm:$0xff] }
 0x109   :  { %806 = vst.msk [vmem:[%s1594_s4 + $0xc] sm:$0xf] %vm802_vm1, %v898_v37  ;;  %822 = vst.msk [vmem:[%s1594_s4 + $0x4c] sm:$0xf] %vm802_vm1, %v914_v39  ;;  %v552_v32 = vadd.f32 %v1272_v48, %v514_v23  ;;  %v568_v34 = vadd.f32 %v1272_v48, %v530_v24  ;;  %v528_v35 = vld [vmem:[#allocation2 + $0xa0] sm:$0xff]  ;;  %v451_v36 = vadd.f32 %v1057_v25, %v66_v11  ;;  %v348_v55 = vpop.f32.mrb[11].mxu0 }
 0x10a   :  { %483 = vst.msk [vmem:[#allocation2 + $0x50] sm:$0xff] %vm22_vm0, %v450_v44  ;;  %499 = vst.msk [vmem:[#allocation2 + $0xd0] sm:$0xff] %vm22_vm0, %v466_v4  ;;  %v467_v54 = vadd.f32 %v1073_v26, %v82_v13  ;;  %v412_v42 = vpop.f32.mrb[11].mxu1  ;;  %v550_v43 = vadd.f32 %v1272_v48, %v512_v41  ;;  %v566_v45 = vadd.f32 %v1272_v48, %v528_v35  ;;  %v515_v47 = vld [vmem:[#allocation2 + $0x38] sm:$0xff]  ;;  %v69_v13 = vld [vmem:[#allocation2 + $0x70] sm:$0xff] }
 0x10b   :  { %804 = vst.msk [vmem:[%s1594_s4 + $0x4] sm:$0xf] %vm802_vm1, %v896_v17  ;;  %820 = vst.msk [vmem:[%s1594_s4 + $0x44] sm:$0xf] %vm802_vm1, %v912_v18  ;;  %v531_v49 = vld [vmem:[#allocation2 + $0xb8] sm:$0xff]  ;;  %v449_v63 = vadd.f32 %v348_v55, %v64_v6  ;;  %v465_v52 = vadd.f32 %v412_v42, %v80_v7  ;;  %v648_v0 = vadd.f32 %v941_v12, %v552_v32  ;;  %v513_v59 = vld [vmem:[#allocation2 + $0x28] sm:$0xff] }
 0x10c   :  { %481 = vst.msk [vmem:[#allocation2 + $0x40] sm:$0xff] %vm22_vm0, %v448_v33  ;;  %497 = vst.msk [vmem:[#allocation2 + $0xc0] sm:$0xff] %vm22_vm0, %v464_v31  ;;  %v664_v56 = vadd.f32 %v973_v14, %v568_v34  ;;  %v553_v57 = vadd.f32 %v1272_v48, %v515_v47  ;;  %v569_v58 = vadd.f32 %v1272_v48, %v531_v49  ;;  %v529_v1 = vld [vmem:[#allocation2 + $0xa8] sm:$0xff]  ;;  %v85_v37 = vld [vmem:[#allocation2 + $0xf0] sm:$0xff] }
 0x10d   :  { %484 = vst.msk [vmem:[#allocation2 + $0x58] sm:$0xff] %vm22_vm0, %v451_v36  ;;  %500 = vst.msk [vmem:[#allocation2 + $0xd8] sm:$0xff] %vm22_vm0, %v467_v54  ;;  %v646_v2 = vadd.f32 %v937_v15, %v550_v43  ;;  %v662_v11 = vadd.f32 %v969_v16, %v566_v45  ;;  %v551_v12 = vadd.f32 %v1272_v48, %v513_v59  ;;  %v67_v46 = vld [vmem:[#allocation2 + $0x60] sm:$0xff]  ;;  %v1060_v18 = vpop.f32.mrb[12].mxu0  ;;  %v1076_v23 = vpop.f32.mrb[12].mxu1  ;;  %v70_v24 = vld [vmem:[#allocation2 + $0x78] sm:$0xff] }
 0x10e   :  { %v567_v14 = vadd.f32 %v1272_v48, %v529_v1  ;;  %482 = vst.msk [vmem:[#allocation2 + $0x48] sm:$0xff] %vm22_vm0, %v449_v63  ;;  %498 = vst.msk [vmem:[#allocation2 + $0xc8] sm:$0xff] %vm22_vm0, %v465_v52  ;;  %v901_v39 = vpack.c.bf16 %v648_v0, %v648_v0  ;;  %v917_v44 = vpack.c.bf16 %v664_v56, %v664_v56  ;;  %v83_v16 = vld [vmem:[#allocation2 + $0xe0] sm:$0xff]  ;;  %v86_v33 = vld [vmem:[#allocation2 + $0xf8] sm:$0xff]  ;;  %v361_v62 = vpop.f32.mrb[13].mxu0 }
 0x10f   :  { %v649_v4 = vadd.f32 %v942_v19, %v553_v57  ;;  %v665_v15 = vadd.f32 %v974_v20, %v569_v58  ;;  %v899_v5 = vpack.c.bf16 %v646_v2, %v646_v2  ;;  %v915_v6 = vpack.c.bf16 %v662_v11, %v662_v11  ;;  %v425_v20 = vpop.f32.mrb[13].mxu1  ;;  %v1061_v35 = vpop.f32.mrb[14].mxu0 }
 0x110   :  { %v647_v7 = vadd.f32 %v938_v21, %v551_v12  ;;  %v663_v17 = vadd.f32 %v970_v22, %v567_v14  ;;  %809 = vst.msk [vmem:[%s1594_s4 + $0x18] sm:$0xf] %vm802_vm1, %v901_v39  ;;  %825 = vst.msk [vmem:[%s1594_s4 + $0x58] sm:$0xf] %vm802_vm1, %v917_v44  ;;  %v454_v61 = vadd.f32 %v1060_v18, %v69_v13  ;;  %v68_v21 = vld [vmem:[#allocation2 + $0x68] sm:$0xff]  ;;  %v1077_v36 = vpop.f32.mrb[14].mxu1 }
 0x111   :  { %v902_v53 = vpack.c.bf16 %v649_v4, %v649_v4  ;;  %v918_v60 = vpack.c.bf16 %v665_v15, %v665_v15  ;;  %v470_v19 = vadd.f32 %v1076_v23, %v85_v37  ;;  %v84_v22 = vld [vmem:[#allocation2 + $0xe8] sm:$0xff]  ;;  %807 = vst.msk [vmem:[%s1594_s4 + $0x10] sm:$0xf] %vm802_vm1, %v899_v5  ;;  %823 = vst.msk [vmem:[%s1594_s4 + $0x50] sm:$0xf] %vm802_vm1, %v915_v6  ;;  %v518_v26 = vld [vmem:[#allocation2 + $0x50] sm:$0xff] }
 0x112   :  { %v900_v31 = vpack.c.bf16 %v647_v7, %v647_v7  ;;  %v916_v25 = vpack.c.bf16 %v663_v17, %v663_v17  ;;  %v534_v32 = vld [vmem:[#allocation2 + $0xd0] sm:$0xff]  ;;  %v452_v34 = vadd.f32 %v361_v62, %v67_v46  ;;  %v468_v41 = vadd.f32 %v425_v20, %v83_v16  ;;  %487 = vst.msk [vmem:[#allocation2 + $0x70] sm:$0xff] %vm22_vm0, %v454_v61  ;;  %v364_v49 = vpop.f32.mrb[15].mxu0  ;;  %v428_v63 = vpop.f32.mrb[15].mxu1  ;;  %v997_v44 = vld [vmem:[%s1593_s3 + $0x38] sm:$0xff]  }
 0x113   :  { %810 = vst.msk [vmem:[%s1594_s4 + $0x1c] sm:$0xf] %vm802_vm1, %v902_v53  ;;  %826 = vst.msk [vmem:[%s1594_s4 + $0x5c] sm:$0xf] %vm802_vm1, %v918_v60  ;;  %v556_v54 = vadd.f32 %v1272_v48, %v518_v26  ;;  %v572_v55 = vadd.f32 %v1272_v48, %v534_v32  ;;  %v516_v42 = vld [vmem:[#allocation2 + $0x40] sm:$0xff]  ;;  %v455_v45 = vadd.f32 %v1061_v35, %v70_v24  ;;  %v1005_v4 = vld [vmem:[%s1593_s3 + $0x78] sm:$0xff]  }
 0x114   :  { %v532_v43 = vld [vmem:[#allocation2 + $0xc0] sm:$0xff]  ;;  %503 = vst.msk [vmem:[#allocation2 + $0xf0] sm:$0xff] %vm22_vm0, %v470_v19  ;;  %v471_v47 = vadd.f32 %v1077_v36, %v86_v33  ;;  %v554_v52 = vadd.f32 %v1272_v48, %v516_v42  ;;  %v519_v56 = vld [vmem:[#allocation2 + $0x58] sm:$0xff]  ;;  %485 = vst.msk [vmem:[#allocation2 + $0x60] sm:$0xff] %vm22_vm0, %v452_v34  ;;  %v453_v58 = vadd.f32 %v364_v49, %v68_v21  ;;  %v989_v18 = vunpack.c.l.bf16 %v1005_v4 }
 0x115   :  { %808 = vst.msk [vmem:[%s1594_s4 + $0x14] sm:$0xf] %vm802_vm1, %v900_v31  ;;  %824 = vst.msk [vmem:[%s1594_s4 + $0x54] sm:$0xf] %vm802_vm1, %v916_v25  ;;  %v570_v0 = vadd.f32 %v1272_v48, %v532_v43  ;;  %v535_v57 = vld [vmem:[#allocation2 + $0xd8] sm:$0xff]  ;;  %v469_v59 = vadd.f32 %v428_v63, %v84_v22  ;;  %v652_v1 = vadd.f32 %v949_v27, %v556_v54  ;;  %v517_v14 = vld [vmem:[#allocation2 + $0x48] sm:$0xff]  ;;  %v958_v19 = vunpack.c.h.bf16 %v997_v44 }
 0x116   :  { %501 = vst.msk [vmem:[#allocation2 + $0xe0] sm:$0xff] %vm22_vm0, %v468_v41  ;;  %v668_v2 = vadd.f32 %v981_v28, %v572_v55  ;;  %v557_v11 = vadd.f32 %v1272_v48, %v519_v56  ;;  %v573_v12 = vadd.f32 %v1272_v48, %v535_v57  ;;  %v533_v13 = vld [vmem:[#allocation2 + $0xc8] sm:$0xff]  ;;  %488 = vst.msk [vmem:[#allocation2 + $0x78] sm:$0xff] %vm22_vm0, %v455_v45  ;;  %v996_v16 = vld [vmem:[%s1593_s3 + $0x30] sm:$0xff]   ;;  %v990_v62 = vunpack.c.h.bf16 %v1005_v4 }
 0x117   :  { %504 = vst.msk [vmem:[#allocation2 + $0xf8] sm:$0xff] %vm22_vm0, %v471_v47  ;;  %v650_v37 = vadd.f32 %v945_v29, %v554_v52  ;;  %v666_v39 = vadd.f32 %v977_v30, %v570_v0  ;;  %v555_v27 = vadd.f32 %v1272_v48, %v517_v14  ;;  %v571_v28 = vadd.f32 %v1272_v48, %v533_v13  ;;  %v1004_v5 = vld [vmem:[%s1593_s3 + $0x70] sm:$0xff]  }
 0x118   :  { %486 = vst.msk [vmem:[#allocation2 + $0x68] sm:$0xff] %vm22_vm0, %v453_v58  ;;  %502 = vst.msk [vmem:[#allocation2 + $0xe8] sm:$0xff] %vm22_vm0, %v469_v59  ;;  %v905_v29 = vpack.c.bf16 %v652_v1, %v652_v1  ;;  %v921_v15 = vpack.c.bf16 %v668_v2, %v668_v2  ;;  %v653_v30 = vadd.f32 %v950_v38, %v557_v11  ;;  %v953_v23 = vunpack.c.l.bf16 %v996_v16 }
 0x119   :  { %v669_v46 = vadd.f32 %v982_v40, %v573_v12  ;;  %v903_v6 = vpack.c.bf16 %v650_v37, %v650_v37  ;;  %v919_v7 = vpack.c.bf16 %v666_v39, %v666_v39  ;;  %v651_v17 = vadd.f32 %v946_v50, %v555_v27  ;;  %v522_v50 = vld [vmem:[#allocation2 + $0x70] sm:$0xff] }
 0x11a   :  { %v667_v3 = vadd.f32 %v978_v51, %v571_v28  ;;  %813 = vst.msk [vmem:[%s1594_s4 + $0x28] sm:$0xf] %vm802_vm1, %v905_v29  ;;  %829 = vst.msk [vmem:[%s1594_s4 + $0x68] sm:$0xf] %vm802_vm1, %v921_v15  ;;  %v906_v8 = vpack.c.bf16 %v653_v30, %v653_v30  ;;  %v957_v40 = vunpack.c.l.bf16 %v997_v44  ;;  %v985_v24 = vunpack.c.l.bf16 %v1004_v5 }
 0x11b   :  { %v922_v38 = vpack.c.bf16 %v669_v46, %v669_v46  ;;  %811 = vst.msk [vmem:[%s1594_s4 + $0x20] sm:$0xf] %vm802_vm1, %v903_v6  ;;  %827 = vst.msk [vmem:[%s1594_s4 + $0x60] sm:$0xf] %vm802_vm1, %v919_v7  ;;  %v904_v9 = vpack.c.bf16 %v651_v17, %v651_v17  ;;  %v538_v51 = vld [vmem:[#allocation2 + $0xf0] sm:$0xff]  ;;  %v560_v33 = vadd.f32 %v1272_v48, %v522_v50  ;;  %v520_v60 = vld [vmem:[#allocation2 + $0x60] sm:$0xff]  ;;  %v954_v25 = vunpack.c.h.bf16 %v996_v16 }
 0x11c   :  { %v920_v10 = vpack.c.bf16 %v667_v3, %v667_v3  ;;  %814 = vst.msk [vmem:[%s1594_s4 + $0x2c] sm:$0xf] %vm802_vm1, %v906_v8  ;;  %v576_v53 = vadd.f32 %v1272_v48, %v538_v51  ;;  %v558_v20 = vadd.f32 %v1272_v48, %v520_v60  ;;  %v986_v26 = vunpack.c.h.bf16 %v1004_v5 }
 0x11d   :  { %830 = vst.msk [vmem:[%s1594_s4 + $0x6c] sm:$0xf] %vm802_vm1, %v922_v38  ;;  %v536_v61 = vld [vmem:[#allocation2 + $0xe0] sm:$0xff]  ;;  %812 = vst.msk [vmem:[%s1594_s4 + $0x24] sm:$0xf] %vm802_vm1, %v904_v9  ;;  %v523_v22 = vld [vmem:[#allocation2 + $0x78] sm:$0xff]  ;;  %v656_v32 = vadd.f32 %v957_v40, %v560_v33 }
 0x11e   :  { %828 = vst.msk [vmem:[%s1594_s4 + $0x64] sm:$0xf] %vm802_vm1, %v920_v10  ;;  %v574_v21 = vadd.f32 %v1272_v48, %v536_v61  ;;  %v539_v31 = vld [vmem:[#allocation2 + $0xf8] sm:$0xff]  ;;  %v672_v34 = vadd.f32 %v989_v18, %v576_v53  ;;  %v561_v41 = vadd.f32 %v1272_v48, %v523_v22  ;;  %v654_v55 = vadd.f32 %v953_v23, %v558_v20 }
 0x11f   :  { %v577_v35 = vadd.f32 %v1272_v48, %v539_v31  ;;  %v521_v36 = vld [vmem:[#allocation2 + $0x68] sm:$0xff]  ;;  %v909_v47 = vpack.c.bf16 %v656_v32, %v656_v32 }
 0x120   :  { %v537_v54 = vld [vmem:[#allocation2 + $0xe8] sm:$0xff]  ;;  %v670_v42 = vadd.f32 %v985_v24, %v574_v21  ;;  %v559_v43 = vadd.f32 %v1272_v48, %v521_v36  ;;  %v925_v49 = vpack.c.bf16 %v672_v34, %v672_v34  ;;  %v657_v63 = vadd.f32 %v958_v19, %v561_v41 }
 0x121   :  { %v575_v45 = vadd.f32 %v1272_v48, %v537_v54  ;;  %v673_v52 = vadd.f32 %v990_v62, %v577_v35  ;;  %v907_v0 = vpack.c.bf16 %v654_v55, %v654_v55  ;;  %817 = vst.msk [vmem:[%s1594_s4 + $0x38] sm:$0xf] %vm802_vm1, %v909_v47 }
 0x122   :  { %v923_v56 = vpack.c.bf16 %v670_v42, %v670_v42  ;;  %v655_v57 = vadd.f32 %v954_v25, %v559_v43  ;;  %833 = vst.msk [vmem:[%s1594_s4 + $0x78] sm:$0xf] %vm802_vm1, %v925_v49  ;;  %v910_v59 = vpack.c.bf16 %v657_v63, %v657_v63 }
 0x123   :  { %v671_v58 = vadd.f32 %v986_v26, %v575_v45  ;;  %v926_v48 = vpack.c.bf16 %v673_v52, %v673_v52  ;;  %815 = vst.msk [vmem:[%s1594_s4 + $0x30] sm:$0xf] %vm802_vm1, %v907_v0 }
 0x124   :  { %831 = vst.msk [vmem:[%s1594_s4 + $0x70] sm:$0xf] %vm802_vm1, %v923_v56  ;;  %v908_v1 = vpack.c.bf16 %v655_v57, %v655_v57  ;;  %818 = vst.msk [vmem:[%s1594_s4 + $0x3c] sm:$0xf] %vm802_vm1, %v910_v59 }
 0x125   :  { %v924_v2 = vpack.c.bf16 %v671_v58, %v671_v58  ;;  %834 = vst.msk [vmem:[%s1594_s4 + $0x7c] sm:$0xf] %vm802_vm1, %v926_v48 }
 0x126   :  { %816 = vst.msk [vmem:[%s1594_s4 + $0x34] sm:$0xf] %vm802_vm1, %v908_v1 }
 0x127   :  { %832 = vst.msk [vmem:[%s1594_s4 + $0x74] sm:$0xf] %vm802_vm1, %v924_v2 }

// kernel: _lambda_.11
= control target key start
LH: loop header
LB: loop body
LE: loop exit
PB: predicated region body
PF: predicated region fallthrough
CT: control target
= control target key end

     0   :  { %vm97_vm0 = vcmask 261120   ;;  %s3180_s0 = inlined_call_operand.vmem [shape: bf16[256,32], index: 0, kind: input, shape index: {}]   ;;  %s3181_s3 = inlined_call_operand.vmem [shape: bf16[32,128], index: 3, kind: input, shape index: {}]   ;;  %s3182_s5 = inlined_call_operand.vmem [shape: bf16[32,128], index: 5, kind: input, shape index: {}]   ;;  %s3183_s1 = inlined_call_operand.vmem [shape: f32[1,32], index: 1, kind: input, shape index: {}]   ;;  %s3184_s2 = inlined_call_operand.vmem [shape: f32[1,32], index: 2, kind: input, shape index: {}]   ;;  %s3185_s6 = inlined_call_operand.vmem [shape: bf16[1,128], index: 6, kind: input, shape index: {}]   ;;  %s3186_s4 = inlined_call_operand.vmem [shape: bf16[1,128], index: 4, kind: input, shape index: {}]   ;;  %s3187_s7 = inlined_call_operand.vmem [shape: bf16[256,128], index: 7, kind: output, shape index: {}]  }
   0x1   :  { %v2097_v0 = vld [vmem:[%s3180_s0] sm:$0xff]   ;;  %v2102_v1 = vld [vmem:[%s3180_s0 + $0x8] sm:$0xff]   ;;  %v2111_v6 = vld [vmem:[%s3180_s0 + $0x10] sm:$0xff]  }
   0x2   :  { %v1642_v2 = vunpack.c.l.bf16 %v2097_v0  ;;  %v1646_v3 = vunpack.c.l.bf16 %v2102_v1  ;;  %v1643_v4 = vunpack.c.h.bf16 %v2097_v0  ;;  %v1647_v5 = vunpack.c.h.bf16 %v2102_v1  ;;  %v2130_v13 = vld [vmem:[%s3180_s0 + $0x18] sm:$0xff]   ;;  %v2143_v18 = vld [vmem:[%s3180_s0 + $0x20] sm:$0xff]   ;;  %v2156_v23 = vld [vmem:[%s3180_s0 + $0x28] sm:$0xff]  }
   0x3   :  { %v1650_v11 = vunpack.c.l.bf16 %v2111_v6  ;;  %v1651_v12 = vunpack.c.h.bf16 %v2111_v6  ;;  %v1654_v16 = vunpack.c.l.bf16 %v2130_v13  ;;  %v1655_v17 = vunpack.c.h.bf16 %v2130_v13  ;;  %v2169_v28 = vld [vmem:[%s3180_s0 + $0x30] sm:$0xff]   ;;  %v2182_v33 = vld [vmem:[%s3180_s0 + $0x38] sm:$0xff]   ;;  %v2195_v38 = vld [vmem:[%s3180_s0 + $0x40] sm:$0xff]  }
   0x4   :  { %v98_v7 = vsel %vm97_vm0, %v1642_v2, 0.0  ;;  %v104_v8 = vsel %vm97_vm0, %v1646_v3, 0.0  ;;  %v101_v9 = vsel %vm97_vm0, %v1643_v4, 0.0  ;;  %v107_v10 = vsel %vm97_vm0, %v1647_v5, 0.0  ;;  %v2208_v43 = vld [vmem:[%s3180_s0 + $0x48] sm:$0xff]   ;;  %v2221_v48 = vld [vmem:[%s3180_s0 + $0x50] sm:$0xff]  }
   0x5   :  { %99 = vadd.xlane.f32.xlu0 %v98_v7  ;;  %105 = vadd.xlane.f32.xlu1 %v104_v8  ;;  %v110_v14 = vsel %vm97_vm0, %v1650_v11, 0.0  ;;  %v113_v15 = vsel %vm97_vm0, %v1651_v12, 0.0  ;;  %v116_v19 = vsel %vm97_vm0, %v1654_v16, 0.0  ;;  %v119_v20 = vsel %vm97_vm0, %v1655_v17, 0.0  ;;  %v2234_v53 = vld [vmem:[%s3180_s0 + $0x58] sm:$0xff]   ;;  %v2247_v58 = vld [vmem:[%s3180_s0 + $0x60] sm:$0xff]  }
   0x6   :  { %v1658_v21 = vunpack.c.l.bf16 %v2143_v18  ;;  %v1659_v22 = vunpack.c.h.bf16 %v2143_v18  ;;  %v1662_v26 = vunpack.c.l.bf16 %v2156_v23  ;;  %v1663_v27 = vunpack.c.h.bf16 %v2156_v23  ;;  %v2260_v63 = vld [vmem:[%s3180_s0 + $0x68] sm:$0xff]  }
   0x7   :  { %v1666_v31 = vunpack.c.l.bf16 %v2169_v28  ;;  %v1667_v32 = vunpack.c.h.bf16 %v2169_v28  ;;  %v1670_v36 = vunpack.c.l.bf16 %v2182_v33  ;;  %v1671_v37 = vunpack.c.h.bf16 %v2182_v33 }
   0x8   :  { %v122_v24 = vsel %vm97_vm0, %v1658_v21, 0.0  ;;  %v125_v25 = vsel %vm97_vm0, %v1659_v22, 0.0  ;;  %v128_v29 = vsel %vm97_vm0, %v1662_v26, 0.0  ;;  %v131_v30 = vsel %vm97_vm0, %v1663_v27, 0.0 }
   0x9   :  { %102 = vadd.xlane.f32.xlu0 %v101_v9  ;;  %108 = vadd.xlane.f32.xlu1 %v107_v10  ;;  %v134_v34 = vsel %vm97_vm0, %v1666_v31, 0.0  ;;  %v137_v35 = vsel %vm97_vm0, %v1667_v32, 0.0  ;;  %v140_v39 = vsel %vm97_vm0, %v1670_v36, 0.0  ;;  %v143_v40 = vsel %vm97_vm0, %v1671_v37, 0.0 }
   0xa   :  { %v1674_v41 = vunpack.c.l.bf16 %v2195_v38  ;;  %v1675_v42 = vunpack.c.h.bf16 %v2195_v38  ;;  %v1678_v46 = vunpack.c.l.bf16 %v2208_v43  ;;  %v1679_v47 = vunpack.c.h.bf16 %v2208_v43 }
   0xb   :  { %v1682_v51 = vunpack.c.l.bf16 %v2221_v48  ;;  %v1683_v52 = vunpack.c.h.bf16 %v2221_v48  ;;  %v1686_v56 = vunpack.c.l.bf16 %v2234_v53  ;;  %v1687_v57 = vunpack.c.h.bf16 %v2234_v53 }
   0xc   :  { %v146_v44 = vsel %vm97_vm0, %v1674_v41, 0.0  ;;  %v149_v45 = vsel %vm97_vm0, %v1675_v42, 0.0  ;;  %v152_v49 = vsel %vm97_vm0, %v1678_v46, 0.0  ;;  %v155_v50 = vsel %vm97_vm0, %v1679_v47, 0.0 }
   0xd   :  { %111 = vadd.xlane.f32.xlu0 %v110_v14  ;;  %114 = vadd.xlane.f32.xlu1 %v113_v15  ;;  %v158_v54 = vsel %vm97_vm0, %v1682_v51, 0.0  ;;  %v161_v55 = vsel %vm97_vm0, %v1683_v52, 0.0  ;;  %v164_v59 = vsel %vm97_vm0, %v1686_v56, 0.0  ;;  %v167_v60 = vsel %vm97_vm0, %v1687_v57, 0.0  ;;  %v2273_v14 = vld [vmem:[%s3180_s0 + $0x70] sm:$0xff]  }
   0xe   :  { %v1690_v61 = vunpack.c.l.bf16 %v2247_v58  ;;  %v1691_v62 = vunpack.c.h.bf16 %v2247_v58  ;;  %v1694_v9 = vunpack.c.l.bf16 %v2260_v63  ;;  %v1695_v10 = vunpack.c.h.bf16 %v2260_v63 }
  0x10   :  { %v170_v7 = vsel %vm97_vm0, %v1690_v61, 0.0  ;;  %v173_v8 = vsel %vm97_vm0, %v1691_v62, 0.0  ;;  %v176_v15 = vsel %vm97_vm0, %v1694_v9, 0.0 }
  0x11   :  { %117 = vadd.xlane.f32.xlu0 %v116_v19  ;;  %120 = vadd.xlane.f32.xlu1 %v119_v20  ;;  %v179_v19 = vsel %vm97_vm0, %v1695_v10, 0.0  ;;  %v1698_v20 = vunpack.c.l.bf16 %v2273_v14 }
  0x15   :  { %123 = vadd.xlane.f32.xlu0 %v122_v24  ;;  %126 = vadd.xlane.f32.xlu1 %v125_v25  ;;  %v1699_v24 = vunpack.c.h.bf16 %v2273_v14  ;;  %v2286_v25 = vld [vmem:[%s3180_s0 + $0x78] sm:$0xff]  }
  0x19   :  { %129 = vadd.xlane.f32.xlu0 %v128_v29  ;;  %132 = vadd.xlane.f32.xlu1 %v131_v30  ;;  %v182_v29 = vsel %vm97_vm0, %v1698_v20, 0.0  ;;  %v185_v30 = vsel %vm97_vm0, %v1699_v24, 0.0 }
  0x1d   :  { %135 = vadd.xlane.f32.xlu0 %v134_v34  ;;  %138 = vadd.xlane.f32.xlu1 %v137_v35  ;;  %v1702_v34 = vunpack.c.l.bf16 %v2286_v25  ;;  %v1703_v35 = vunpack.c.h.bf16 %v2286_v25 }
  0x21   :  { %141 = vadd.xlane.f32.xlu0 %v140_v39  ;;  %144 = vadd.xlane.f32.xlu1 %v143_v40  ;;  %v188_v39 = vsel %vm97_vm0, %v1702_v34, 0.0  ;;  %v191_v40 = vsel %vm97_vm0, %v1703_v35, 0.0 }
  0x25   :  { %147 = vadd.xlane.f32.xlu0 %v146_v44  ;;  %150 = vadd.xlane.f32.xlu1 %v149_v45 }
  0x29   :  { %153 = vadd.xlane.f32.xlu0 %v152_v49  ;;  %156 = vadd.xlane.f32.xlu1 %v155_v50 }
  0x2d   :  { %159 = vadd.xlane.f32.xlu0 %v158_v54  ;;  %162 = vadd.xlane.f32.xlu1 %v161_v55 }
  0x31   :  { %165 = vadd.xlane.f32.xlu0 %v164_v59  ;;  %168 = vadd.xlane.f32.xlu1 %v167_v60 }
  0x35   :  { %171 = vadd.xlane.f32.xlu0 %v170_v7  ;;  %174 = vadd.xlane.f32.xlu1 %v173_v8 }
  0x39   :  { %177 = vadd.xlane.f32.xlu0 %v176_v15  ;;  %180 = vadd.xlane.f32.xlu1 %v179_v19 }
  0x3d   :  { %183 = vadd.xlane.f32.xlu0 %v182_v29  ;;  %186 = vadd.xlane.f32.xlu1 %v185_v30 }
  0x41   :  { %189 = vadd.xlane.f32.xlu0 %v188_v39  ;;  %192 = vadd.xlane.f32.xlu1 %v191_v40 }
  0x92   :  { %v100_v44 = vpop.xlane.xlu0 %99  ;;  %v106_v45 = vpop.xlane.xlu1 %105 }
  0x93   :  { %v195_v49 = vmul.f32 0.03125, %v100_v44  ;;  %v197_v50 = vmul.f32 0.03125, %v106_v45 }
  0x95   :  { %v2304_v54 = vsub.f32 %v1642_v2, %v195_v49  ;;  %v2308_v55 = vsub.f32 %v1646_v3, %v197_v50 }
  0x96   :  { %v103_v59 = vpop.xlane.xlu0 %102  ;;  %v109_v60 = vpop.xlane.xlu1 %108 }
  0x97   :  { %v196_v7 = vmul.f32 0.03125, %v103_v59  ;;  %v198_v8 = vmul.f32 0.03125, %v109_v60  ;;  %v259_v15 = vmul.f32 %v2304_v54, %v2304_v54  ;;  %v261_v19 = vmul.f32 %v2308_v55, %v2308_v55 }
  0x99   :  { %v2316_v29 = vsub.f32 %v1643_v4, %v196_v7  ;;  %v2320_v2 = vsub.f32 %v1647_v5, %v198_v8  ;;  %v291_v3 = vsel %vm97_vm0, %v259_v15, 0.0  ;;  %v297_v40 = vsel %vm97_vm0, %v261_v19, 0.0 }
  0x9a   :  { %292 = vadd.xlane.f32.xlu0 %v291_v3  ;;  %v112_v30 = vpop.xlane.xlu0 %111  ;;  %v115_v39 = vpop.xlane.xlu1 %114 }
  0x9b   :  { %v199_v44 = vmul.f32 0.03125, %v112_v30  ;;  %v200_v45 = vmul.f32 0.03125, %v115_v39  ;;  %v260_v49 = vmul.f32 %v2316_v29, %v2316_v29  ;;  %v262_v0 = vmul.f32 %v2320_v2, %v2320_v2 }
  0x9d   :  { %v2330_v1 = vsub.f32 %v1650_v11, %v199_v44  ;;  %v2334_v4 = vsub.f32 %v1651_v12, %v200_v45  ;;  %v294_v5 = vsel %vm97_vm0, %v260_v49, 0.0  ;;  %v300_v60 = vsel %vm97_vm0, %v262_v0, 0.0 }
  0x9e   :  { %298 = vadd.xlane.f32.xlu0 %v297_v40  ;;  %295 = vadd.xlane.f32.xlu1 %v294_v5  ;;  %v118_v50 = vpop.xlane.xlu0 %117  ;;  %v121_v59 = vpop.xlane.xlu1 %120 }
  0x9f   :  { %v201_v7 = vmul.f32 0.03125, %v118_v50  ;;  %v202_v8 = vmul.f32 0.03125, %v121_v59  ;;  %v263_v15 = vmul.f32 %v2330_v1, %v2330_v1  ;;  %v264_v11 = vmul.f32 %v2334_v4, %v2334_v4 }
  0xa1   :  { %v2344_v6 = vsub.f32 %v1654_v16, %v201_v7  ;;  %v2348_v12 = vsub.f32 %v1655_v17, %v202_v8  ;;  %v303_v19 = vsel %vm97_vm0, %v263_v15, 0.0  ;;  %v306_v39 = vsel %vm97_vm0, %v264_v11, 0.0 }
  0xa2   :  { %301 = vadd.xlane.f32.xlu1 %v300_v60  ;;  %304 = vadd.xlane.f32.xlu0 %v303_v19  ;;  %v124_v3 = vpop.xlane.xlu0 %123  ;;  %v127_v30 = vpop.xlane.xlu1 %126 }
  0xa3   :  { %v203_v40 = vmul.f32 0.03125, %v124_v3  ;;  %v204_v44 = vmul.f32 0.03125, %v127_v30  ;;  %v265_v45 = vmul.f32 %v2344_v6, %v2344_v6  ;;  %v266_v16 = vmul.f32 %v2348_v12, %v2348_v12 }
  0xa5   :  { %v2358_v13 = vsub.f32 %v1658_v21, %v203_v40  ;;  %v2362_v17 = vsub.f32 %v1659_v22, %v204_v44  ;;  %v309_v49 = vsel %vm97_vm0, %v265_v45, 0.0  ;;  %v312_v50 = vsel %vm97_vm0, %v266_v16, 0.0 }
  0xa6   :  { %307 = vadd.xlane.f32.xlu1 %v306_v39  ;;  %310 = vadd.xlane.f32.xlu0 %v309_v49  ;;  %v130_v0 = vpop.xlane.xlu0 %129  ;;  %v133_v5 = vpop.xlane.xlu1 %132 }
  0xa7   :  { %v205_v59 = vmul.f32 0.03125, %v130_v0  ;;  %v206_v60 = vmul.f32 0.03125, %v133_v5  ;;  %v267_v7 = vmul.f32 %v2358_v13, %v2358_v13  ;;  %v268_v21 = vmul.f32 %v2362_v17, %v2362_v17 }
  0xa9   :  { %v2372_v18 = vsub.f32 %v1662_v26, %v205_v59  ;;  %v2376_v22 = vsub.f32 %v1663_v27, %v206_v60  ;;  %v315_v8 = vsel %vm97_vm0, %v267_v7, 0.0  ;;  %v318_v19 = vsel %vm97_vm0, %v268_v21, 0.0 }
  0xaa   :  { %313 = vadd.xlane.f32.xlu1 %v312_v50  ;;  %316 = vadd.xlane.f32.xlu0 %v315_v8  ;;  %v136_v15 = vpop.xlane.xlu0 %135  ;;  %v139_v11 = vpop.xlane.xlu1 %138 }
  0xab   :  { %v207_v3 = vmul.f32 0.03125, %v136_v15  ;;  %v208_v30 = vmul.f32 0.03125, %v139_v11  ;;  %v269_v39 = vmul.f32 %v2372_v18, %v2372_v18  ;;  %v270_v26 = vmul.f32 %v2376_v22, %v2376_v22 }
  0xad   :  { %v2386_v23 = vsub.f32 %v1666_v31, %v207_v3  ;;  %v2390_v27 = vsub.f32 %v1667_v32, %v208_v30  ;;  %v321_v40 = vsel %vm97_vm0, %v269_v39, 0.0  ;;  %v324_v16 = vsel %vm97_vm0, %v270_v26, 0.0 }
  0xae   :  { %319 = vadd.xlane.f32.xlu1 %v318_v19  ;;  %322 = vadd.xlane.f32.xlu0 %v321_v40  ;;  %v142_v44 = vpop.xlane.xlu0 %141  ;;  %v145_v45 = vpop.xlane.xlu1 %144 }
  0xaf   :  { %v209_v49 = vmul.f32 0.03125, %v142_v44  ;;  %v210_v0 = vmul.f32 0.03125, %v145_v45  ;;  %v271_v5 = vmul.f32 %v2386_v23, %v2386_v23  ;;  %v272_v31 = vmul.f32 %v2390_v27, %v2390_v27 }
  0xb1   :  { %v2400_v28 = vsub.f32 %v1670_v36, %v209_v49  ;;  %v2404_v32 = vsub.f32 %v1671_v37, %v210_v0  ;;  %v327_v50 = vsel %vm97_vm0, %v271_v5, 0.0  ;;  %v330_v7 = vsel %vm97_vm0, %v272_v31, 0.0 }
  0xb2   :  { %325 = vadd.xlane.f32.xlu1 %v324_v16  ;;  %328 = vadd.xlane.f32.xlu0 %v327_v50  ;;  %v148_v59 = vpop.xlane.xlu0 %147  ;;  %v151_v60 = vpop.xlane.xlu1 %150 }
  0xb3   :  { %v211_v21 = vmul.f32 0.03125, %v148_v59  ;;  %v212_v8 = vmul.f32 0.03125, %v151_v60  ;;  %v273_v15 = vmul.f32 %v2400_v28, %v2400_v28  ;;  %v274_v36 = vmul.f32 %v2404_v32, %v2404_v32 }
  0xb5   :  { %v2414_v33 = vsub.f32 %v1674_v41, %v211_v21  ;;  %v2418_v37 = vsub.f32 %v1675_v42, %v212_v8  ;;  %v333_v11 = vsel %vm97_vm0, %v273_v15, 0.0  ;;  %v336_v30 = vsel %vm97_vm0, %v274_v36, 0.0 }
  0xb6   :  { %331 = vadd.xlane.f32.xlu1 %v330_v7  ;;  %334 = vadd.xlane.f32.xlu0 %v333_v11  ;;  %v154_v19 = vpop.xlane.xlu0 %153  ;;  %v157_v3 = vpop.xlane.xlu1 %156 }
  0xb7   :  { %v213_v39 = vmul.f32 0.03125, %v154_v19  ;;  %v214_v26 = vmul.f32 0.03125, %v157_v3  ;;  %v275_v40 = vmul.f32 %v2414_v33, %v2414_v33  ;;  %v276_v41 = vmul.f32 %v2418_v37, %v2418_v37 }
  0xb9   :  { %v2428_v38 = vsub.f32 %v1678_v46, %v213_v39  ;;  %v2432_v42 = vsub.f32 %v1679_v47, %v214_v26  ;;  %v339_v44 = vsel %vm97_vm0, %v275_v40, 0.0  ;;  %v342_v49 = vsel %vm97_vm0, %v276_v41, 0.0 }
  0xba   :  { %337 = vadd.xlane.f32.xlu1 %v336_v30  ;;  %340 = vadd.xlane.f32.xlu0 %v339_v44  ;;  %v160_v45 = vpop.xlane.xlu0 %159  ;;  %v163_v16 = vpop.xlane.xlu1 %162 }
  0xbb   :  { %v215_v0 = vmul.f32 0.03125, %v160_v45  ;;  %v216_v5 = vmul.f32 0.03125, %v163_v16  ;;  %v277_v31 = vmul.f32 %v2428_v38, %v2428_v38  ;;  %v278_v46 = vmul.f32 %v2432_v42, %v2432_v42  ;;  %v1922_v16 = vld [vmem:[%s3181_s3] sm:$0xff]  }
  0xbc   :  { %1850 = vmatprep.subr.bf16.mxu0 %v1922_v16 }
  0xbd   :  { %v2442_v43 = vsub.f32 %v1682_v51, %v215_v0  ;;  %v2446_v47 = vsub.f32 %v1683_v52, %v216_v5  ;;  %v345_v50 = vsel %vm97_vm0, %v277_v31, 0.0  ;;  %v348_v7 = vsel %vm97_vm0, %v278_v46, 0.0  ;;  %1851 = vmatpush3.bf16.msra.mxu0 %v1922_v16 }
  0xbe   :  { %343 = vadd.xlane.f32.xlu1 %v342_v49  ;;  %346 = vadd.xlane.f32.xlu0 %v345_v50  ;;  %v166_v59 = vpop.xlane.xlu0 %165  ;;  %v169_v60 = vpop.xlane.xlu1 %168 }
  0xbf   :  { %v217_v21 = vmul.f32 0.03125, %v166_v59  ;;  %v218_v8 = vmul.f32 0.03125, %v169_v60  ;;  %v279_v15 = vmul.f32 %v2442_v43, %v2442_v43  ;;  %v280_v51 = vmul.f32 %v2446_v47, %v2446_v47 }
  0xc1   :  { %v2456_v48 = vsub.f32 %v1686_v56, %v217_v21  ;;  %v2460_v52 = vsub.f32 %v1687_v57, %v218_v8  ;;  %v351_v36 = vsel %vm97_vm0, %v279_v15, 0.0  ;;  %v354_v3 = vsel %vm97_vm0, %v280_v51, 0.0 }
  0xc2   :  { %349 = vadd.xlane.f32.xlu1 %v348_v7  ;;  %352 = vadd.xlane.f32.xlu0 %v351_v36  ;;  %v172_v11 = vpop.xlane.xlu0 %171  ;;  %v175_v19 = vpop.xlane.xlu1 %174  ;;  %v1924_v7 = vld [vmem:[%s3181_s3 + $0x8] sm:$0xff]  }
  0xc3   :  { %v219_v30 = vmul.f32 0.03125, %v172_v11  ;;  %v220_v39 = vmul.f32 0.03125, %v175_v19  ;;  %v281_v26 = vmul.f32 %v2456_v48, %v2456_v48  ;;  %v282_v56 = vmul.f32 %v2460_v52, %v2460_v52  ;;  %1852 = vmatprep.subr.bf16.mxu0 %v1924_v7 }
  0xc4   :  { %1853 = vmatpush3.bf16.msra.mxu0 %v1924_v7 }
  0xc5   :  { %v2470_v53 = vsub.f32 %v1690_v61, %v219_v30  ;;  %v2474_v57 = vsub.f32 %v1691_v62, %v220_v39  ;;  %v357_v40 = vsel %vm97_vm0, %v281_v26, 0.0  ;;  %v360_v45 = vsel %vm97_vm0, %v282_v56, 0.0  ;;  %v1923_v62 = vld [vmem:[%s3182_s5] sm:$0xff]  }
  0xc6   :  { %355 = vadd.xlane.f32.xlu1 %v354_v3  ;;  %358 = vadd.xlane.f32.xlu0 %v357_v40  ;;  %v178_v41 = vpop.xlane.xlu0 %177  ;;  %v181_v44 = vpop.xlane.xlu1 %180 }
  0xc7   :  { %v221_v49 = vmul.f32 0.03125, %v178_v41  ;;  %v222_v0 = vmul.f32 0.03125, %v181_v44  ;;  %v283_v61 = vmul.f32 %v2470_v53, %v2470_v53  ;;  %v284_v58 = vmul.f32 %v2474_v57, %v2474_v57  ;;  %1886 = vmatprep.subr.bf16.mxu1 %v1923_v62 }
  0xc8   :  { %1887 = vmatpush3.bf16.msra.mxu1 %v1923_v62 }
  0xc9   :  { %v2490_v5 = vsub.f32 %v1694_v9, %v221_v49  ;;  %v2494_v31 = vsub.f32 %v1695_v10, %v222_v0  ;;  %v363_v46 = vsel %vm97_vm0, %v283_v61, 0.0  ;;  %v366_v60 = vsel %vm97_vm0, %v284_v58, 0.0  ;;  %v1925_v9 = vld [vmem:[%s3182_s5 + $0x8] sm:$0xff]  }
  0xca   :  { %361 = vadd.xlane.f32.xlu1 %v360_v45  ;;  %364 = vadd.xlane.f32.xlu0 %v363_v46  ;;  %v184_v50 = vpop.xlane.xlu0 %183  ;;  %v187_v59 = vpop.xlane.xlu1 %186 }
  0xcb   :  { %v223_v63 = vmul.f32 0.03125, %v184_v50  ;;  %v224_v10 = vmul.f32 0.03125, %v187_v59  ;;  %v285_v21 = vmul.f32 %v2490_v5, %v2490_v5  ;;  %v286_v8 = vmul.f32 %v2494_v31, %v2494_v31  ;;  %1888 = vmatprep.subr.bf16.mxu1 %v1925_v9 }
  0xcc   :  { %1889 = vmatpush3.bf16.msra.mxu1 %v1925_v9 }
  0xcd   :  { %v2510_v15 = vsub.f32 %v1698_v20, %v223_v63  ;;  %v2514_v51 = vsub.f32 %v1699_v24, %v224_v10  ;;  %v369_v36 = vsel %vm97_vm0, %v285_v21, 0.0  ;;  %v372_v3 = vsel %vm97_vm0, %v286_v8, 0.0 }
  0xce   :  { %367 = vadd.xlane.f32.xlu1 %v366_v60  ;;  %370 = vadd.xlane.f32.xlu0 %v369_v36  ;;  %v190_v11 = vpop.xlane.xlu0 %189  ;;  %v193_v19 = vpop.xlane.xlu1 %192 }
  0xcf   :  { %v225_v30 = vmul.f32 0.03125, %v190_v11  ;;  %v226_v39 = vmul.f32 0.03125, %v193_v19  ;;  %v287_v20 = vmul.f32 %v2510_v15, %v2510_v15  ;;  %v288_v14 = vmul.f32 %v2514_v51, %v2514_v51 }
  0xd1   :  { %v2524_v24 = vsub.f32 %v1702_v34, %v225_v30  ;;  %v2528_v26 = vsub.f32 %v1703_v35, %v226_v39  ;;  %v375_v56 = vsel %vm97_vm0, %v287_v20, 0.0  ;;  %v378_v40 = vsel %vm97_vm0, %v288_v14, 0.0  ;;  %v2542_v14 = vld [vmem:[%s3183_s1] ss:$0 sm:$0xff] }
  0xd2   :  { %373 = vadd.xlane.f32.xlu1 %v372_v3  ;;  %376 = vadd.xlane.f32.xlu0 %v375_v56 }
  0xd3   :  { %v289_v41 = vmul.f32 %v2524_v24, %v2524_v24  ;;  %v290_v44 = vmul.f32 %v2528_v26, %v2528_v26 }
  0xd5   :  { %v381_v45 = vsel %vm97_vm0, %v289_v41, 0.0  ;;  %v384_v25 = vsel %vm97_vm0, %v290_v44, 0.0 }
  0xd6   :  { %379 = vadd.xlane.f32.xlu1 %v378_v40  ;;  %382 = vadd.xlane.f32.xlu0 %v381_v45 }
  0xda   :  { %385 = vadd.xlane.f32.xlu1 %v384_v25 }
 0x127   :  { %v293_v34 = vpop.xlane.xlu0 %292 }
 0x128   :  { %v387_v35 = vmul.f32 0.03125, %v293_v34 }
 0x12a   :  { %v419_v16 = vadd.f32 1e-05, %v387_v35 }
 0x12b   :  { %v296_v49 = vpop.xlane.xlu1 %295  ;;  %v299_v0 = vpop.xlane.xlu0 %298 }
 0x12c   :  { %1926 = vrsqrt.f32 %v419_v16  ;;  %v388_v61 = vmul.f32 0.03125, %v296_v49  ;;  %v389_v58 = vmul.f32 0.03125, %v299_v0  ;;  %v2549_v49 = vld [vmem:[%s3184_s2] ss:$0 sm:$0xff] }
 0x12e   :  { %v420_v62 = vadd.f32 1e-05, %v388_v61  ;;  %v421_v46 = vadd.f32 1e-05, %v389_v58 }
 0x12f   :  { %v302_v50 = vpop.xlane.xlu1 %301  ;;  %v305_v59 = vpop.xlane.xlu0 %304 }
 0x130   :  { %1928 = vrsqrt.f32 %v420_v62  ;;  %v390_v60 = vmul.f32 0.03125, %v302_v50  ;;  %v391_v7 = vmul.f32 0.03125, %v305_v59 }
 0x131   :  { %1930 = vrsqrt.f32 %v421_v46 }
 0x132   :  { %v422_v9 = vadd.f32 1e-05, %v390_v60  ;;  %v423_v63 = vadd.f32 1e-05, %v391_v7 }
 0x133   :  { %v308_v10 = vpop.xlane.xlu1 %307  ;;  %v311_v21 = vpop.xlane.xlu0 %310 }
 0x134   :  { %1932 = vrsqrt.f32 %v422_v9  ;;  %v392_v8 = vmul.f32 0.03125, %v308_v10  ;;  %v393_v36 = vmul.f32 0.03125, %v311_v21 }
 0x135   :  { %1934 = vrsqrt.f32 %v423_v63 }
 0x136   :  { %v1927_v11 = vpop.eup %1926  ;;  %v424_v19 = vadd.f32 1e-05, %v392_v8  ;;  %v425_v3 = vadd.f32 1e-05, %v393_v36 }
 0x137   :  { %v483_v30 = vmul.f32 %v1927_v11, %v2304_v54  ;;  %v314_v39 = vpop.xlane.xlu1 %313  ;;  %v317_v20 = vpop.xlane.xlu0 %316 }
 0x138   :  { %1936 = vrsqrt.f32 %v424_v19  ;;  %v394_v56 = vmul.f32 0.03125, %v314_v39  ;;  %v395_v40 = vmul.f32 0.03125, %v317_v20 }
 0x139   :  { %1938 = vrsqrt.f32 %v425_v3  ;;  %v521_v34 = vmul.f32 %v2542_v14, %v483_v30 }
 0x13a   :  { %v1929_v41 = vpop.eup %1928  ;;  %v426_v44 = vadd.f32 1e-05, %v394_v56  ;;  %v427_v45 = vadd.f32 1e-05, %v395_v40 }
 0x13b   :  { %v1931_v25 = vpop.eup %1930  ;;  %v484_v35 = vmul.f32 %v1929_v41, %v2316_v29  ;;  %v320_v54 = vpop.xlane.xlu1 %319  ;;  %v559_v29 = vadd.f32 %v2549_v49, %v521_v34 }
 0x13c   :  { %v323_v16 = vpop.xlane.xlu0 %322  ;;  %v485_v0 = vmul.f32 %v1931_v25, %v2308_v55  ;;  %1940 = vrsqrt.f32 %v426_v44  ;;  %v396_v61 = vmul.f32 0.03125, %v320_v54 }
 0x13d   :  { %v397_v58 = vmul.f32 0.03125, %v323_v16  ;;  %v522_v62 = vmul.f32 %v2542_v14, %v484_v35  ;;  %1942 = vrsqrt.f32 %v427_v45 }
 0x13e   :  { %v1933_v46 = vpop.eup %1932  ;;  %v428_v50 = vadd.f32 1e-05, %v396_v61  ;;  %v523_v9 = vmul.f32 %v2542_v14, %v485_v0 }
 0x13f   :  { %v429_v59 = vadd.f32 1e-05, %v397_v58  ;;  %v1935_v60 = vpop.eup %1934  ;;  %v560_v7 = vadd.f32 %v2549_v49, %v522_v62  ;;  %v486_v63 = vmul.f32 %v1933_v46, %v2320_v2  ;;  %v326_v10 = vpop.xlane.xlu1 %325 }
 0x140   :  { %v329_v55 = vpop.xlane.xlu0 %328  ;;  %v487_v21 = vmul.f32 %v1935_v60, %v2330_v1  ;;  %1944 = vrsqrt.f32 %v428_v50  ;;  %v398_v8 = vmul.f32 0.03125, %v326_v10  ;;  %v561_v2 = vadd.f32 %v2549_v49, %v523_v9 }
 0x141   :  { %v591_v36 = vpack.c.bf16 %v560_v7, %v559_v29  ;;  %v524_v11 = vmul.f32 %v2542_v14, %v486_v63  ;;  %1946 = vrsqrt.f32 %v429_v59  ;;  %v399_v19 = vmul.f32 0.03125, %v329_v55 }
 0x142   :  { %v1937_v3 = vpop.eup %1936  ;;  %v525_v30 = vmul.f32 %v2542_v14, %v487_v21  ;;  %v430_v39 = vadd.f32 1e-05, %v398_v8 }
 0x143   :  { %v1939_v20 = vpop.eup %1938  ;;  %607 = vst.msk [vmem:[#allocation2] sm:$0xff] %vm97_vm0, %v591_v36  ;;  %v562_v56 = vadd.f32 %v2549_v49, %v524_v11  ;;  %v488_v1 = vmul.f32 %v1937_v3, %v2334_v4  ;;  %v431_v40 = vadd.f32 1e-05, %v399_v19  ;;  %v332_v41 = vpop.xlane.xlu1 %331 }
 0x144   :  { %v335_v44 = vpop.xlane.xlu0 %334  ;;  %v489_v45 = vmul.f32 %v1939_v20, %v2344_v6  ;;  %1948 = vrsqrt.f32 %v430_v39  ;;  %v400_v25 = vmul.f32 0.03125, %v332_v41  ;;  %v563_v0 = vadd.f32 %v2549_v49, %v525_v30 }
 0x145   :  { %v592_v34 = vpack.c.bf16 %v562_v56, %v561_v2  ;;  %v526_v35 = vmul.f32 %v2542_v14, %v488_v1  ;;  %1950 = vrsqrt.f32 %v431_v40  ;;  %v401_v54 = vmul.f32 0.03125, %v335_v44 }
 0x146   :  { %v1941_v16 = vpop.eup %1940  ;;  %v432_v61 = vadd.f32 1e-05, %v400_v25  ;;  %v527_v62 = vmul.f32 %v2542_v14, %v489_v45 }
 0x147   :  { %v1943_v58 = vpop.eup %1942  ;;  %608 = vst.msk [vmem:[#allocation2 + $0x8] sm:$0xff] %vm97_vm0, %v592_v34  ;;  %v564_v4 = vadd.f32 %v2549_v49, %v526_v35  ;;  %v490_v6 = vmul.f32 %v1941_v16, %v2348_v12  ;;  %v433_v46 = vadd.f32 1e-05, %v401_v54  ;;  %v338_v50 = vpop.xlane.xlu1 %337 }
 0x148   :  { %v341_v59 = vpop.xlane.xlu0 %340  ;;  %v491_v60 = vmul.f32 %v1943_v58, %v2358_v13  ;;  %1952 = vrsqrt.f32 %v432_v61  ;;  %v402_v29 = vmul.f32 0.03125, %v338_v50  ;;  %v565_v12 = vadd.f32 %v2549_v49, %v527_v62 }
 0x149   :  { %v593_v7 = vpack.c.bf16 %v564_v4, %v563_v0  ;;  %v528_v9 = vmul.f32 %v2542_v14, %v490_v6  ;;  %1954 = vrsqrt.f32 %v433_v46  ;;  %v403_v63 = vmul.f32 0.03125, %v341_v59 }
 0x14a   :  { %v1945_v10 = vpop.eup %1944  ;;  %v529_v55 = vmul.f32 %v2542_v14, %v491_v60  ;;  %v434_v21 = vadd.f32 1e-05, %v402_v29  ;;  %v623_v8 = vld [vmem:[#allocation2] sm:$0xff] }
 0x14b   :  { %v1947_v36 = vpop.eup %1946  ;;  %609 = vst.msk [vmem:[#allocation2 + $0x10] sm:$0xff] %vm97_vm0, %v593_v7  ;;  %v566_v11 = vadd.f32 %v2549_v49, %v528_v9  ;;  %v492_v13 = vmul.f32 %v1945_v10, %v2362_v17  ;;  %v435_v19 = vadd.f32 1e-05, %v403_v63  ;;  %v344_v3 = vpop.xlane.xlu1 %343  ;;  %1854 = vmatprep.mubr.msk.bf16.mxu0 %vm97_vm0, %v623_v8  ;;  %1890 = vmatprep.mubr.msk.bf16.mxu1 %vm97_vm0, %v623_v8 }
 0x14c   :  { %v347_v30 = vpop.xlane.xlu0 %346  ;;  %v493_v39 = vmul.f32 %v1947_v36, %v2372_v18  ;;  %1956 = vrsqrt.f32 %v434_v21  ;;  %v404_v20 = vmul.f32 0.03125, %v344_v3  ;;  %v567_v41 = vadd.f32 %v2549_v49, %v529_v55 }
 0x14d   :  { %v594_v2 = vpack.c.bf16 %v566_v11, %v565_v12  ;;  %v530_v56 = vmul.f32 %v2542_v14, %v492_v13  ;;  %1958 = vrsqrt.f32 %v435_v19  ;;  %v405_v1 = vmul.f32 0.03125, %v347_v30 }
 0x14e   :  { %v1949_v40 = vpop.eup %1948  ;;  %v436_v17 = vadd.f32 1e-05, %v404_v20  ;;  %v624_v44 = vld [vmem:[#allocation2 + $0x8] sm:$0xff]  ;;  %v531_v34 = vmul.f32 %v2542_v14, %v493_v39 }
 0x14f   :  { %v1951_v45 = vpop.eup %1950  ;;  %610 = vst.msk [vmem:[#allocation2 + $0x18] sm:$0xff] %vm97_vm0, %v594_v2  ;;  %v568_v25 = vadd.f32 %v2549_v49, %v530_v56  ;;  %v494_v18 = vmul.f32 %v1949_v40, %v2376_v22  ;;  %v437_v35 = vadd.f32 1e-05, %v405_v1  ;;  %v350_v54 = vpop.xlane.xlu1 %349  ;;  %1855 = vmatmul.mubr.msk.bf16.vlgmr.msra.gmra.mrb[0].mxu0 %vm97_vm0, %v624_v44  ;;  %1891 = vmatmul.mubr.msk.bf16.vlgmr.msra.gmra.mrb[0].mxu1 %vm97_vm0, %v624_v44 }
 0x150   :  { %v353_v16 = vpop.xlane.xlu0 %352  ;;  %v495_v0 = vmul.f32 %v1951_v45, %v2386_v23  ;;  %1960 = vrsqrt.f32 %v436_v17  ;;  %v406_v61 = vmul.f32 0.03125, %v350_v54  ;;  %v569_v60 = vadd.f32 %v2549_v49, %v531_v34 }
 0x151   :  { %v595_v58 = vpack.c.bf16 %v568_v25, %v567_v41  ;;  %v532_v4 = vmul.f32 %v2542_v14, %v494_v18  ;;  %1962 = vrsqrt.f32 %v437_v35  ;;  %v407_v62 = vmul.f32 0.03125, %v353_v16 }
 0x152   :  { %v1953_v6 = vpop.eup %1952  ;;  %v533_v46 = vmul.f32 %v2542_v14, %v495_v0  ;;  %v438_v22 = vadd.f32 1e-05, %v406_v61  ;;  %v625_v50 = vld [vmem:[#allocation2 + $0x10] sm:$0xff] }
 0x153   :  { %v1955_v59 = vpop.eup %1954  ;;  %611 = vst.msk [vmem:[#allocation2 + $0x20] sm:$0xff] %vm97_vm0, %v595_v58  ;;  %v570_v29 = vadd.f32 %v2549_v49, %v532_v4  ;;  %v496_v23 = vmul.f32 %v1953_v6, %v2390_v27  ;;  %v439_v7 = vadd.f32 1e-05, %v407_v62  ;;  %v356_v9 = vpop.xlane.xlu1 %355  ;;  %1858 = vmatprep.mubr.msk.bf16.mxu0 %vm97_vm0, %v625_v50  ;;  %1894 = vmatprep.mubr.msk.bf16.mxu1 %vm97_vm0, %v625_v50 }
 0x154   :  { %v359_v63 = vpop.xlane.xlu0 %358  ;;  %v497_v10 = vmul.f32 %v1955_v59, %v2400_v28  ;;  %1964 = vrsqrt.f32 %v438_v22  ;;  %v408_v55 = vmul.f32 0.03125, %v356_v9  ;;  %v571_v11 = vadd.f32 %v2549_v49, %v533_v46 }
 0x155   :  { %v596_v21 = vpack.c.bf16 %v570_v29, %v569_v60  ;;  %v534_v8 = vmul.f32 %v2542_v14, %v496_v23  ;;  %1966 = vrsqrt.f32 %v439_v7  ;;  %v409_v36 = vmul.f32 0.03125, %v359_v63 }
 0x156   :  { %v1957_v12 = vpop.eup %1956  ;;  %v440_v27 = vadd.f32 1e-05, %v408_v55  ;;  %v626_v13 = vld [vmem:[#allocation2 + $0x18] sm:$0xff]  ;;  %v535_v30 = vmul.f32 %v2542_v14, %v497_v10 }
 0x157   :  { %v1959_v19 = vpop.eup %1958  ;;  %612 = vst.msk [vmem:[#allocation2 + $0x28] sm:$0xff] %vm97_vm0, %v596_v21  ;;  %v572_v3 = vadd.f32 %v2549_v49, %v534_v8  ;;  %v498_v28 = vmul.f32 %v1957_v12, %v2404_v32  ;;  %v441_v39 = vadd.f32 1e-05, %v409_v36  ;;  %v362_v20 = vpop.xlane.xlu1 %361  ;;  %1859 = vmatmul.mubr.msk.bf16.gmra.mrb[4].mxu0 %vm97_vm0, %v626_v13  ;;  %1895 = vmatmul.mubr.msk.bf16.gmra.mrb[4].mxu1 %vm97_vm0, %v626_v13 }
 0x158   :  { %v365_v2 = vpop.xlane.xlu0 %364  ;;  %v499_v56 = vmul.f32 %v1959_v19, %v2414_v33  ;;  %1968 = vrsqrt.f32 %v440_v27  ;;  %v410_v1 = vmul.f32 0.03125, %v362_v20  ;;  %v573_v18 = vadd.f32 %v2549_v49, %v535_v30 }
 0x159   :  { %v597_v40 = vpack.c.bf16 %v572_v3, %v571_v11  ;;  %v536_v41 = vmul.f32 %v2542_v14, %v498_v28  ;;  %1970 = vrsqrt.f32 %v441_v39  ;;  %v411_v17 = vmul.f32 0.03125, %v365_v2 }
 0x15a   :  { %v1961_v44 = vpop.eup %1960  ;;  %v537_v45 = vmul.f32 %v2542_v14, %v499_v56  ;;  %v442_v32 = vadd.f32 1e-05, %v410_v1  ;;  %v627_v25 = vld [vmem:[#allocation2 + $0x20] sm:$0xff] }
 0x15b   :  { %v1963_v34 = vpop.eup %1962  ;;  %613 = vst.msk [vmem:[#allocation2 + $0x30] sm:$0xff] %vm97_vm0, %v597_v40  ;;  %v574_v35 = vadd.f32 %v2549_v49, %v536_v41  ;;  %v500_v33 = vmul.f32 %v1961_v44, %v2418_v37  ;;  %v443_v54 = vadd.f32 1e-05, %v411_v17  ;;  %v368_v16 = vpop.xlane.xlu1 %367  ;;  %1862 = vmatprep.mubr.msk.bf16.mxu0 %vm97_vm0, %v627_v25  ;;  %1898 = vmatprep.mubr.msk.bf16.mxu1 %vm97_vm0, %v627_v25 }
 0x15c   :  { %v371_v0 = vpop.xlane.xlu0 %370  ;;  %v501_v61 = vmul.f32 %v1963_v34, %v2428_v38  ;;  %1972 = vrsqrt.f32 %v442_v32  ;;  %v412_v58 = vmul.f32 0.03125, %v368_v16  ;;  %v575_v22 = vadd.f32 %v2549_v49, %v537_v45 }
 0x15d   :  { %v598_v4 = vpack.c.bf16 %v574_v35, %v573_v18  ;;  %v538_v62 = vmul.f32 %v2542_v14, %v500_v33  ;;  %1974 = vrsqrt.f32 %v443_v54  ;;  %v413_v6 = vmul.f32 0.03125, %v371_v0 }
 0x15e   :  { %v1965_v46 = vpop.eup %1964  ;;  %v444_v37 = vadd.f32 1e-05, %v412_v58  ;;  %v628_v50 = vld [vmem:[#allocation2 + $0x28] sm:$0xff]  ;;  %v539_v29 = vmul.f32 %v2542_v14, %v501_v61 }
 0x15f   :  { %v1967_v59 = vpop.eup %1966  ;;  %614 = vst.msk [vmem:[#allocation2 + $0x38] sm:$0xff] %vm97_vm0, %v598_v4  ;;  %v576_v60 = vadd.f32 %v2549_v49, %v538_v62  ;;  %v502_v38 = vmul.f32 %v1965_v46, %v2432_v42  ;;  %v445_v23 = vadd.f32 1e-05, %v413_v6  ;;  %v374_v7 = vpop.xlane.xlu1 %373  ;;  %1863 = vmatmul.mubr.msk.bf16.gmra.mrb[8].mxu0 %vm97_vm0, %v628_v50  ;;  %1899 = vmatmul.mubr.msk.bf16.gmra.mrb[8].mxu1 %vm97_vm0, %v628_v50 }
 0x160   :  { %v377_v9 = vpop.xlane.xlu0 %376  ;;  %v503_v63 = vmul.f32 %v1967_v59, %v2442_v43  ;;  %1976 = vrsqrt.f32 %v444_v37  ;;  %v414_v10 = vmul.f32 0.03125, %v374_v7  ;;  %v577_v13 = vadd.f32 %v2549_v49, %v539_v29 }
 0x161   :  { %v599_v55 = vpack.c.bf16 %v576_v60, %v575_v22  ;;  %v540_v21 = vmul.f32 %v2542_v14, %v502_v38  ;;  %1978 = vrsqrt.f32 %v445_v23  ;;  %v415_v8 = vmul.f32 0.03125, %v377_v9 }
 0x162   :  { %v1969_v36 = vpop.eup %1968  ;;  %v541_v12 = vmul.f32 %v2542_v14, %v503_v63  ;;  %v446_v42 = vadd.f32 1e-05, %v414_v10  ;;  %v629_v11 = vld [vmem:[#allocation2 + $0x30] sm:$0xff] }
 0x163   :  { %v1971_v27 = vpop.eup %1970  ;;  %615 = vst.msk [vmem:[#allocation2 + $0x40] sm:$0xff] %vm97_vm0, %v599_v55  ;;  %v578_v19 = vadd.f32 %v2549_v49, %v540_v21  ;;  %v504_v43 = vmul.f32 %v1969_v36, %v2446_v47  ;;  %v447_v3 = vadd.f32 1e-05, %v415_v8  ;;  %v380_v30 = vpop.xlane.xlu1 %379  ;;  %1866 = vmatprep.mubr.msk.bf16.mxu0 %vm97_vm0, %v629_v11  ;;  %1902 = vmatprep.mubr.msk.bf16.mxu1 %vm97_vm0, %v629_v11 }
 0x164   :  { %v383_v28 = vpop.xlane.xlu0 %382  ;;  %v505_v39 = vmul.f32 %v1971_v27, %v2456_v48  ;;  %1980 = vrsqrt.f32 %v446_v42  ;;  %v416_v20 = vmul.f32 0.03125, %v380_v30  ;;  %v579_v41 = vadd.f32 %v2549_v49, %v541_v12 }
 0x165   :  { %v600_v2 = vpack.c.bf16 %v578_v19, %v577_v13  ;;  %v542_v56 = vmul.f32 %v2542_v14, %v504_v43  ;;  %1982 = vrsqrt.f32 %v447_v3  ;;  %v417_v1 = vmul.f32 0.03125, %v383_v28 }
 0x166   :  { %v1973_v40 = vpop.eup %1972  ;;  %v448_v47 = vadd.f32 1e-05, %v416_v20  ;;  %v630_v17 = vld [vmem:[#allocation2 + $0x38] sm:$0xff]  ;;  %v543_v32 = vmul.f32 %v2542_v14, %v505_v39 }
 0x167   :  { %v1975_v44 = vpop.eup %1974  ;;  %616 = vst.msk [vmem:[#allocation2 + $0x48] sm:$0xff] %vm97_vm0, %v600_v2  ;;  %v580_v45 = vadd.f32 %v2549_v49, %v542_v56  ;;  %v506_v48 = vmul.f32 %v1973_v40, %v2460_v52  ;;  %v449_v25 = vadd.f32 1e-05, %v417_v1  ;;  %v386_v34 = vpop.xlane.xlu1 %385  ;;  %1867 = vmatmul.mubr.msk.bf16.gmra.mrb[12].mxu0 %vm97_vm0, %v630_v17  ;;  %1903 = vmatmul.mubr.msk.bf16.gmra.mrb[12].mxu1 %vm97_vm0, %v630_v17  ;;  %v875_v56 = vld [vmem:[%s3185_s6] sm:$0x1] }
 0x168   :  { %v507_v18 = vmul.f32 %v1975_v44, %v2470_v53  ;;  %1984 = vrsqrt.f32 %v448_v47  ;;  %v418_v35 = vmul.f32 0.03125, %v386_v34  ;;  %v581_v4 = vadd.f32 %v2549_v49, %v543_v32 }
 0x169   :  { %v601_v33 = vpack.c.bf16 %v580_v45, %v579_v41  ;;  %v544_v54 = vmul.f32 %v2542_v14, %v506_v48  ;;  %1986 = vrsqrt.f32 %v449_v25  ;;  %v876_v40 = vunpack.c.l.bf16 %v875_v56  ;;  %v643_v48 = vld [vmem:[%s3186_s4] sm:$0x1] }
 0x16a   :  { %v1977_v16 = vpop.eup %1976  ;;  %v545_v0 = vmul.f32 %v2542_v14, %v507_v18  ;;  %v450_v61 = vadd.f32 1e-05, %v418_v35  ;;  %v631_v58 = vld [vmem:[#allocation2 + $0x40] sm:$0xff] }
 0x16b   :  { %v1979_v52 = vpop.eup %1978  ;;  %617 = vst.msk [vmem:[#allocation2 + $0x50] sm:$0xff] %vm97_vm0, %v601_v33  ;;  %v582_v62 = vadd.f32 %v2549_v49, %v544_v54  ;;  %v508_v53 = vmul.f32 %v1977_v16, %v2474_v57  ;;  %1870 = vmatprep.mubr.msk.bf16.mxu0 %vm97_vm0, %v631_v58  ;;  %1906 = vmatprep.mubr.msk.bf16.mxu1 %vm97_vm0, %v631_v58  ;;  %v644_v58 = vunpack.c.l.bf16 %v643_v48 }
 0x16c   :  { %v509_v6 = vmul.f32 %v1979_v52, %v2490_v5  ;;  %1988 = vrsqrt.f32 %v450_v61  ;;  %v583_v50 = vadd.f32 %v2549_v49, %v545_v0 }
 0x16d   :  { %v602_v46 = vpack.c.bf16 %v582_v62, %v581_v4  ;;  %v546_v22 = vmul.f32 %v2542_v14, %v508_v53 }
 0x16e   :  { %v1981_v37 = vpop.eup %1980  ;;  %v632_v59 = vld [vmem:[#allocation2 + $0x48] sm:$0xff]  ;;  %v547_v57 = vmul.f32 %v2542_v14, %v509_v6 }
 0x16f   :  { %v1983_v60 = vpop.eup %1982  ;;  %618 = vst.msk [vmem:[#allocation2 + $0x58] sm:$0xff] %vm97_vm0, %v602_v46  ;;  %v584_v29 = vadd.f32 %v2549_v49, %v546_v22  ;;  %v510_v38 = vmul.f32 %v1981_v37, %v2494_v31  ;;  %1871 = vmatmul.mubr.msk.bf16.gmra.mrb[16].mxu0 %vm97_vm0, %v632_v59  ;;  %1907 = vmatmul.mubr.msk.bf16.gmra.mrb[16].mxu1 %vm97_vm0, %v632_v59 }
 0x170   :  { %v511_v5 = vmul.f32 %v1983_v60, %v2510_v15  ;;  %v585_v21 = vadd.f32 %v2549_v49, %v547_v57 }
 0x171   :  { %v603_v23 = vpack.c.bf16 %v584_v29, %v583_v50  ;;  %v548_v7 = vmul.f32 %v2542_v14, %v510_v38 }
 0x172   :  { %v1985_v9 = vpop.eup %1984  ;;  %v549_v63 = vmul.f32 %v2542_v14, %v511_v5  ;;  %v633_v10 = vld [vmem:[#allocation2 + $0x50] sm:$0xff] }
 0x173   :  { %v1987_v55 = vpop.eup %1986  ;;  %619 = vst.msk [vmem:[#allocation2 + $0x60] sm:$0xff] %vm97_vm0, %v603_v23  ;;  %v586_v31 = vadd.f32 %v2549_v49, %v548_v7  ;;  %v512_v8 = vmul.f32 %v1985_v9, %v2514_v51  ;;  %1874 = vmatprep.mubr.msk.bf16.mxu0 %vm97_vm0, %v633_v10  ;;  %1910 = vmatprep.mubr.msk.bf16.mxu1 %vm97_vm0, %v633_v10 }
 0x174   :  { %v513_v15 = vmul.f32 %v1987_v55, %v2524_v24  ;;  %v587_v11 = vadd.f32 %v2549_v49, %v549_v63 }
 0x175   :  { %v604_v36 = vpack.c.bf16 %v586_v31, %v585_v21  ;;  %v550_v12 = vmul.f32 %v2542_v14, %v512_v8 }
 0x176   :  { %v1989_v42 = vpop.eup %1988  ;;  %v634_v27 = vld [vmem:[#allocation2 + $0x58] sm:$0xff]  ;;  %v551_v19 = vmul.f32 %v2542_v14, %v513_v15 }
 0x177   :  { %620 = vst.msk [vmem:[#allocation2 + $0x68] sm:$0xff] %vm97_vm0, %v604_v36  ;;  %v588_v13 = vadd.f32 %v2549_v49, %v550_v12  ;;  %v514_v51 = vmul.f32 %v1989_v42, %v2528_v26  ;;  %1875 = vmatmul.mubr.msk.bf16.gmra.mrb[20].mxu0 %vm97_vm0, %v634_v27  ;;  %1911 = vmatmul.mubr.msk.bf16.gmra.mrb[20].mxu1 %vm97_vm0, %v634_v27 }
 0x178   :  { %v589_v30 = vadd.f32 %v2549_v49, %v551_v19 }
 0x179   :  { %v605_v24 = vpack.c.bf16 %v588_v13, %v587_v11  ;;  %v552_v43 = vmul.f32 %v2542_v14, %v514_v51 }
 0x17a   :  { %v635_v3 = vld [vmem:[#allocation2 + $0x60] sm:$0xff] }
 0x17b   :  { %621 = vst.msk [vmem:[#allocation2 + $0x70] sm:$0xff] %vm97_vm0, %v605_v24  ;;  %v590_v28 = vadd.f32 %v2549_v49, %v552_v43  ;;  %1878 = vmatprep.mubr.msk.bf16.mxu0 %vm97_vm0, %v635_v3  ;;  %1914 = vmatprep.mubr.msk.bf16.mxu1 %vm97_vm0, %v635_v3  ;;  %v645_v49 = vlaneseq }
 0x17d   :  { %v606_v39 = vpack.c.bf16 %v590_v28, %v589_v30  ;;  %v646_v2 = vshrl.u32 %v645_v49, 7 }
 0x17e   :  { %v636_v26 = vld [vmem:[#allocation2 + $0x68] sm:$0xff] }
 0x17f   :  { %622 = vst.msk [vmem:[#allocation2 + $0x78] sm:$0xff] %vm97_vm0, %v606_v39  ;;  %1879 = vmatmul.mubr.msk.bf16.gmra.mrb[24].mxu0 %vm97_vm0, %v636_v26  ;;  %1915 = vmatmul.mubr.msk.bf16.gmra.mrb[24].mxu1 %vm97_vm0, %v636_v26  ;;  %v647_v1 = vsub.s32 0, %v646_v2 }
 0x181   :  { %v2695_v41 = vrot.slane %v876_v40, %v647_v1  ;;  %v2712_v60 = vrot.slane %v644_v58, %v647_v1 }
 0x182   :  { %v637_v14 = vld [vmem:[#allocation2 + $0x70] sm:$0xff] }
 0x183   :  { %1882 = vmatprep.mubr.msk.bf16.mxu0 %vm97_vm0, %v637_v14  ;;  %1918 = vmatprep.mubr.msk.bf16.mxu1 %vm97_vm0, %v637_v14 }
 0x186   :  { %v638_v20 = vld [vmem:[#allocation2 + $0x78] sm:$0xff] }
 0x187   :  { %1883 = vmatmul.mubr.msk.bf16.gmra.mrb[28].mxu0 %vm97_vm0, %v638_v20  ;;  %1919 = vmatmul.mubr.msk.bf16.gmra.mrb[28].mxu1 %vm97_vm0, %v638_v20 }
 0x222   :  { %v1856_v47 = vpop.f32.mrb[0].mxu0  ;;  %v1892_v17 = vpop.f32.mrb[0].mxu1 }
 0x223   :  { %v936_v44 = vadd.f32 %v1892_v17, %v2695_v41  ;;  %v744_v45 = vpop.f32.mrb[1].mxu0  ;;  %v927_v32 = vpop.f32.mrb[1].mxu1  ;;  %v2733_v27 = vadd.f32 %v1856_v47, %v2712_v60 }
 0x224   :  { %v928_v25 = vadd.f32 %v927_v32, %v2695_v41  ;;  %v1857_v34 = vpop.f32.mrb[2].mxu0  ;;  %v1893_v18 = vpop.f32.mrb[2].mxu1  ;;  %v2741_v3 = vadd.f32 %v744_v45, %v2712_v60 }
 0x225   :  { %v1088_v35 = vmul.f32 0.044715, %v936_v44  ;;  %v2703_v33 = vadd.f32 %v1893_v18, %v2695_v41  ;;  %v747_v54 = vpop.f32.mrb[3].mxu0  ;;  %v930_v16 = vpop.f32.mrb[3].mxu1  ;;  %v1056_v39 = vmul.f32 0.5, %v936_v44  ;;  %v2752_v56 = vadd.f32 %v1857_v34, %v2712_v60 }
 0x226   :  { %v1086_v0 = vmul.f32 0.044715, %v928_v25  ;;  %v2706_v61 = vadd.f32 %v930_v16, %v2695_v41  ;;  %v1054_v2 = vmul.f32 0.5, %v928_v25 }
 0x227   :  { %v1120_v52 = vmul.f32 %v1088_v35, %v936_v44  ;;  %v1089_v4 = vmul.f32 0.044715, %v2703_v33  ;;  %v1057_v18 = vmul.f32 0.5, %v2703_v33 }
 0x228   :  { %v1118_v62 = vmul.f32 %v1086_v0, %v928_v25  ;;  %v1087_v53 = vmul.f32 0.044715, %v2706_v61 }
 0x229   :  { %v1152_v6 = vmul.f32 %v1120_v52, %v936_v44  ;;  %v1121_v46 = vmul.f32 %v1089_v4, %v2703_v33  ;;  %v1055_v52 = vmul.f32 0.5, %v2706_v61 }
 0x22a   :  { %v1150_v22 = vmul.f32 %v1118_v62, %v928_v25  ;;  %v1119_v37 = vmul.f32 %v1087_v53, %v2706_v61  ;;  %v1860_v50 = vpop.f32.mrb[4].mxu0  ;;  %v1896_v59 = vpop.f32.mrb[4].mxu1 }
 0x22b   :  { %v1184_v29 = vadd.f32 %v1152_v6, %v936_v44  ;;  %v1153_v57 = vmul.f32 %v1121_v46, %v2703_v33  ;;  %v2716_v38 = vadd.f32 %v1896_v59, %v2695_v41  ;;  %v2718_v5 = vpop.f32.mrb[5].mxu0  ;;  %v943_v23 = vpop.f32.mrb[5].mxu1  ;;  %v2759_v44 = vadd.f32 %v747_v54, %v2712_v60 }
 0x22c   :  { %v1182_v7 = vadd.f32 %v1150_v22, %v928_v25  ;;  %v1151_v9 = vmul.f32 %v1119_v37, %v2706_v61  ;;  %v2722_v63 = vadd.f32 %v943_v23, %v2695_v41  ;;  %v2724_v10 = vpop.f32.mrb[6].mxu0  ;;  %v1897_v55 = vpop.f32.mrb[6].mxu1  ;;  %v2779_v6 = vadd.f32 %v1860_v50, %v2712_v60 }
 0x22d   :  { %v1216_v21 = vmul.f32 0.7978846, %v1184_v29  ;;  %v1185_v31 = vadd.f32 %v1153_v57, %v2703_v33  ;;  %v1092_v8 = vmul.f32 0.044715, %v2716_v38  ;;  %v2728_v15 = vpop.f32.mrb[7].mxu0  ;;  %v946_v11 = vpop.f32.mrb[7].mxu1  ;;  %v2738_v43 = vadd.f32 %v1897_v55, %v2695_v41 }
 0x22e   :  { %v1214_v36 = vmul.f32 0.7978846, %v1182_v7  ;;  %v1183_v12 = vadd.f32 %v1151_v9, %v2706_v61  ;;  %v1090_v42 = vmul.f32 0.044715, %v2722_v63  ;;  %v2745_v28 = vadd.f32 %v946_v11, %v2695_v41 }
 0x22f   :  { %1990 = vtanh.f32 %v1216_v21  ;;  %v1217_v13 = vmul.f32 0.7978846, %v1185_v31  ;;  %v1124_v19 = vmul.f32 %v1092_v8, %v2716_v38  ;;  %v1093_v14 = vmul.f32 0.044715, %v2738_v43 }
 0x230   :  { %1992 = vtanh.f32 %v1214_v36  ;;  %v1215_v51 = vmul.f32 0.7978846, %v1183_v12  ;;  %v1122_v24 = vmul.f32 %v1090_v42, %v2722_v63  ;;  %v1091_v40 = vmul.f32 0.044715, %v2745_v28 }
 0x231   :  { %1994 = vtanh.f32 %v1217_v13  ;;  %v1156_v30 = vmul.f32 %v1124_v19, %v2716_v38  ;;  %v1125_v32 = vmul.f32 %v1093_v14, %v2738_v43  ;;  %v2789_v29 = vmul.f32 0.5, %v2716_v38 }
 0x232   :  { %1996 = vtanh.f32 %v1215_v51  ;;  %v1154_v26 = vmul.f32 %v1122_v24, %v2722_v63  ;;  %v2749_v20 = vpop.f32.mrb[8].mxu0  ;;  %v1900_v49 = vpop.f32.mrb[8].mxu1  ;;  %v1123_v16 = vmul.f32 %v1091_v40, %v2745_v28  ;;  %v2793_v50 = vadd.f32 %v2718_v5, %v2712_v60 }
 0x233   :  { %v1188_v1 = vadd.f32 %v1156_v30, %v2716_v38  ;;  %v2756_v47 = vpop.f32.mrb[9].mxu0  ;;  %v959_v17 = vpop.f32.mrb[9].mxu1  ;;  %v2764_v48 = vadd.f32 %v1900_v49, %v2695_v41  ;;  %v1157_v62 = vmul.f32 %v1125_v32, %v2738_v43 }
 0x234   :  { %v1186_v45 = vadd.f32 %v1154_v26, %v2722_v63  ;;  %v2766_v25 = vpop.f32.mrb[10].mxu0  ;;  %v1901_v34 = vpop.f32.mrb[10].mxu1  ;;  %v2771_v0 = vadd.f32 %v959_v17, %v2695_v41  ;;  %v1155_v33 = vmul.f32 %v1123_v16, %v2745_v28 }
 0x235   :  { %v1220_v35 = vmul.f32 0.7978846, %v1188_v1  ;;  %v2773_v54 = vpop.f32.mrb[11].mxu0  ;;  %v962_v58 = vpop.f32.mrb[11].mxu1  ;;  %v1096_v53 = vmul.f32 0.044715, %v2764_v48  ;;  %v1189_v22 = vadd.f32 %v1157_v62, %v2738_v43  ;;  %v2786_v61 = vadd.f32 %v1901_v34, %v2695_v41 }
 0x236   :  { %v1218_v4 = vmul.f32 0.7978846, %v1186_v45  ;;  %v1094_v46 = vmul.f32 0.044715, %v2771_v0  ;;  %v1187_v57 = vadd.f32 %v1155_v33, %v2745_v28  ;;  %v2799_v31 = vadd.f32 %v962_v58, %v2695_v41 }
 0x237   :  { %1998 = vtanh.f32 %v1220_v35  ;;  %v1128_v37 = vmul.f32 %v1096_v53, %v2764_v48  ;;  %v1221_v55 = vmul.f32 0.7978846, %v1189_v22  ;;  %v1097_v11 = vmul.f32 0.044715, %v2786_v61 }
 0x238   :  { %2000 = vtanh.f32 %v1218_v4  ;;  %v1126_v23 = vmul.f32 %v1094_v46, %v2771_v0  ;;  %v1219_v42 = vmul.f32 0.7978846, %v1187_v57  ;;  %v1095_v46 = vmul.f32 0.044715, %v2799_v31 }
 0x239   :  { %v1991_v59 = vpop.eup %1990  ;;  %v1160_v21 = vmul.f32 %v1128_v37, %v2764_v48  ;;  %2002 = vtanh.f32 %v1221_v55  ;;  %v772_v22 = vadd.f32 %v2724_v10, %v2712_v60  ;;  %v764_v10 = vadd.f32 %v2728_v15, %v2712_v60 }
 0x23a   :  { %v1993_v7 = vpop.eup %1992  ;;  %v1280_v9 = vadd.f32 1.0, %v1991_v59  ;;  %v2801_v8 = vpop.f32.mrb[12].mxu0  ;;  %v1158_v5 = vmul.f32 %v1126_v23, %v2771_v0  ;;  %2004 = vtanh.f32 %v1219_v42  ;;  %v1127_v59 = vmul.f32 %v1095_v46, %v2799_v31 }
 0x23b   :  { %v1904_v38 = vpop.f32.mrb[12].mxu1  ;;  %v1995_v36 = vpop.eup %1994  ;;  %v1278_v12 = vadd.f32 1.0, %v1993_v7  ;;  %v1192_v30 = vadd.f32 %v1160_v21, %v2764_v48 }
 0x23c   :  { %v2805_v13 = vpop.f32.mrb[13].mxu0  ;;  %v1997_v19 = vpop.eup %1996  ;;  %v1312_v51 = vmul.f32 %v1280_v9, %v1056_v39  ;;  %v1281_v24 = vadd.f32 1.0, %v1995_v36  ;;  %v1190_v40 = vadd.f32 %v1158_v5, %v2771_v0  ;;  %v1129_v39 = vmul.f32 %v1097_v11, %v2786_v61 }
 0x23d   :  { %v975_v26 = vpop.f32.mrb[13].mxu1  ;;  %v2808_v14 = vpop.f32.mrb[14].mxu0  ;;  %v1310_v49 = vmul.f32 %v1278_v12, %v1054_v2  ;;  %v1279_v1 = vadd.f32 1.0, %v1997_v19  ;;  %v1224_v35 = vmul.f32 0.7978846, %v1192_v30  ;;  %v1058_v2 = vmul.f32 0.5, %v2722_v63 }
 0x23e   :  { %v1905_v17 = vpop.f32.mrb[14].mxu1  ;;  %v2811_v45 = vpop.f32.mrb[15].mxu0  ;;  %v1344_v32 = vmul.f32 %v1312_v51, %v2733_v27  ;;  %v1313_v34 = vmul.f32 %v1281_v24, %v1057_v18  ;;  %v1222_v62 = vmul.f32 0.7978846, %v1190_v40  ;;  %v1161_v33 = vmul.f32 %v1129_v39, %v2786_v61 }
 0x23f   :  { %v2815_v16 = vpop.f32.mrb[15].mxu1  ;;  %v1342_v58 = vmul.f32 %v1310_v49, %v2741_v3  ;;  %v1311_v4 = vmul.f32 %v1279_v1, %v1055_v52  ;;  %2006 = vtanh.f32 %v1224_v35  ;;  %v2826_v3 = vadd.f32 %v1904_v38, %v2695_v41 }
 0x240   :  { %v1345_v53 = vmul.f32 %v1313_v34, %v2752_v56  ;;  %2008 = vtanh.f32 %v1222_v62  ;;  %v1193_v56 = vadd.f32 %v1161_v33, %v2786_v61  ;;  %v1061_v36 = vmul.f32 0.5, %v2738_v43 }
 0x241   :  { %v1999_v27 = vpop.eup %1998  ;;  %v1343_v18 = vmul.f32 %v1311_v4, %v2759_v44  ;;  %v1100_v9 = vmul.f32 0.044715, %v2826_v3  ;;  %v1159_v42 = vmul.f32 %v1127_v59, %v2799_v31  ;;  %v1059_v19 = vmul.f32 0.5, %v2745_v28 }
 0x242   :  { %v2001_v52 = vpop.eup %2000  ;;  %v1712_v63 = vpack.c.bf16 %v1345_v53, %v1344_v32  ;;  %v1284_v37 = vadd.f32 1.0, %v1999_v27  ;;  %v2830_v57 = vpop.f32.mrb[16].mxu0  ;;  %v1225_v12 = vmul.f32 0.7978846, %v1193_v56  ;;  %v2866_v40 = vadd.f32 %v1905_v17, %v2695_v41 }
 0x243   :  { %v2832_v23 = vpop.f32.mrb[16].mxu1  ;;  %v1707_v7 = vpack.c.bf16 %v1343_v18, %v1342_v58  ;;  %v1282_v44 = vadd.f32 1.0, %v2001_v52  ;;  %v2837_v55 = vpop.f32.mrb[17].mxu0  ;;  %v1132_v51 = vmul.f32 %v1100_v9, %v2826_v3  ;;  %v1191_v1 = vadd.f32 %v1159_v42, %v2799_v31 }
 0x244   :  { %v2839_v21 = vpop.f32.mrb[17].mxu1  ;;  %1799 = vst [vmem:[%s3187_s7 + $0x8] sm:$0xff] %v1712_v63   ;;  %v1316_v38 = vmul.f32 %v1284_v37, %v2789_v29  ;;  %v2847_v5 = vpop.f32.mrb[18].mxu0  ;;  %v2857_v29 = vadd.f32 %v975_v26, %v2695_v41  ;;  %2010 = vtanh.f32 %v1225_v12  ;;  %v785_v26 = vadd.f32 %v2749_v20, %v2712_v60 }
 0x245   :  { %v2849_v15 = vpop.f32.mrb[18].mxu1  ;;  %1708 = vst [vmem:[%s3187_s7] sm:$0xff] %v1707_v7   ;;  %v1314_v11 = vmul.f32 %v1282_v44, %v1058_v2  ;;  %v2859_v43 = vpop.f32.mrb[19].mxu0  ;;  %v1164_v35 = vmul.f32 %v1132_v51, %v2826_v3  ;;  %v777_v58 = vadd.f32 %v2756_v47, %v2712_v60  ;;  %v1064_v17 = vmul.f32 0.5, %v2764_v48 }
 0x246   :  { %v2861_v24 = vpop.f32.mrb[19].mxu1  ;;  %v2003_v30 = vpop.eup %2002  ;;  %v1348_v49 = vmul.f32 %v1316_v38, %v2779_v6  ;;  %v1223_v6 = vmul.f32 0.7978846, %v1191_v1  ;;  %v1098_v4 = vmul.f32 0.044715, %v2857_v29  ;;  %v2881_v46 = vadd.f32 %v2815_v16, %v2695_v41 }
 0x247   :  { %v2005_v32 = vpop.eup %2004  ;;  %v1346_v28 = vmul.f32 %v1314_v11, %v2793_v50  ;;  %v1285_v34 = vadd.f32 1.0, %v2003_v30  ;;  %v1196_v62 = vadd.f32 %v1164_v35, %v2826_v3  ;;  %v1101_v50 = vmul.f32 0.044715, %v2866_v40 }
 0x248   :  { %v1283_v39 = vadd.f32 1.0, %v2005_v32  ;;  %2012 = vtanh.f32 %v1223_v6  ;;  %v1130_v20 = vmul.f32 %v1098_v4, %v2857_v29  ;;  %v1062_v44 = vmul.f32 0.5, %v2771_v0 }
 0x249   :  { %v1317_v2 = vmul.f32 %v1285_v34, %v1061_v36  ;;  %v2007_v53 = vpop.eup %2006  ;;  %v1228_v63 = vmul.f32 0.7978846, %v1196_v62  ;;  %v1133_v37 = vmul.f32 %v1101_v50, %v2866_v40  ;;  %v1099_v30 = vmul.f32 0.044715, %v2881_v46 }
 0x24a   :  { %v1315_v33 = vmul.f32 %v1283_v39, %v1059_v19  ;;  %v2883_v47 = vpop.f32.mrb[20].mxu0  ;;  %v2885_v27 = vpop.f32.mrb[20].mxu1  ;;  %v1288_v48 = vadd.f32 1.0, %v2007_v53  ;;  %v1162_v16 = vmul.f32 %v1130_v20, %v2857_v29  ;;  %v2911_v32 = vadd.f32 %v2832_v23, %v2695_v41 }
 0x24b   :  { %v2009_v18 = vpop.eup %2008  ;;  %v1349_v52 = vmul.f32 %v1317_v2, %v772_v22  ;;  %v2888_v56 = vpop.f32.mrb[21].mxu0  ;;  %2014 = vtanh.f32 %v1228_v63  ;;  %v1165_v42 = vmul.f32 %v1133_v37, %v2866_v40  ;;  %v1131_v39 = vmul.f32 %v1099_v30, %v2881_v46 }
 0x24c   :  { %v2890_v59 = vpop.f32.mrb[21].mxu1  ;;  %v1347_v7 = vmul.f32 %v1315_v33, %v764_v10  ;;  %v1286_v9 = vadd.f32 1.0, %v2009_v18  ;;  %v2894_v38 = vpop.f32.mrb[22].mxu0  ;;  %v1320_v22 = vmul.f32 %v1288_v48, %v1064_v17  ;;  %v1194_v0 = vadd.f32 %v1162_v16, %v2857_v29 }
 0x24d   :  { %v2896_v36 = vpop.f32.mrb[22].mxu1  ;;  %v1722_v12 = vpack.c.bf16 %v1349_v52, %v1348_v49  ;;  %v2899_v11 = vpop.f32.mrb[23].mxu0  ;;  %v1197_v49 = vadd.f32 %v1165_v42, %v2866_v40  ;;  %v1065_v6 = vmul.f32 0.5, %v2786_v61  ;;  %v1104_v2 = vmul.f32 0.044715, %v2911_v32 }
 0x24e   :  { %v2901_v19 = vpop.f32.mrb[23].mxu1  ;;  %v1717_v51 = vpack.c.bf16 %v1347_v7, %v1346_v28  ;;  %v1318_v10 = vmul.f32 %v1286_v9, %v1062_v44  ;;  %v1352_v1 = vmul.f32 %v1320_v22, %v785_v26  ;;  %v2011_v34 = vpop.eup %2010  ;;  %v1226_v35 = vmul.f32 0.7978846, %v1194_v0 }
 0x24f   :  { %1801 = vst [vmem:[%s3187_s7 + $0x18] sm:$0xff] %v1722_v12   ;;  %v1289_v4 = vadd.f32 1.0, %v2011_v34  ;;  %v1229_v26 = vmul.f32 0.7978846, %v1197_v49  ;;  %v788_v23 = vadd.f32 %v2766_v25, %v2712_v60  ;;  %v1163_v17 = vmul.f32 %v1131_v39, %v2881_v46 }
 0x250   :  { %1800 = vst [vmem:[%s3187_s7 + $0x10] sm:$0xff] %v1717_v51   ;;  %v2916_v28 = vmul.f32 %v1318_v10, %v777_v58  ;;  %2016 = vtanh.f32 %v1226_v35  ;;  %v2926_v62 = vadd.f32 %v2839_v21, %v2695_v41  ;;  %v1136_v61 = vmul.f32 %v1104_v2, %v2911_v32 }
 0x251   :  { %v1321_v53 = vmul.f32 %v1289_v4, %v1065_v6  ;;  %2018 = vtanh.f32 %v1229_v26  ;;  %v2935_v33 = vadd.f32 %v2849_v15, %v2695_v41  ;;  %v780_v21 = vadd.f32 %v2773_v54, %v2712_v60 }
 0x252   :  { %v2928_v58 = vpop.f32.mrb[24].mxu0  ;;  %v2930_v50 = vpop.f32.mrb[24].mxu1  ;;  %v1063_v52 = vmul.f32 0.5, %v2799_v31  ;;  %v1195_v48 = vadd.f32 %v1163_v17, %v2881_v46  ;;  %v1102_v63 = vmul.f32 0.044715, %v2926_v62  ;;  %v801_v9 = vadd.f32 %v2801_v8, %v2712_v60 }
 0x253   :  { %v2937_v25 = vpop.f32.mrb[25].mxu0  ;;  %v2939_v20 = vpop.f32.mrb[25].mxu1  ;;  %v1353_v15 = vmul.f32 %v1321_v53, %v788_v23  ;;  %v1168_v16 = vmul.f32 %v1136_v61, %v2911_v32  ;;  %v1105_v42 = vmul.f32 0.044715, %v2935_v33  ;;  %v2961_v51 = vadd.f32 %v2861_v24, %v2695_v41 }
 0x254   :  { %v2013_v18 = vpop.eup %2012  ;;  %v2946_v37 = vpop.f32.mrb[26].mxu0  ;;  %v1227_v31 = vmul.f32 0.7978846, %v1195_v48  ;;  %v1134_v22 = vmul.f32 %v1102_v63, %v2926_v62  ;;  %v1068_v8 = vmul.f32 0.5, %v2826_v3  ;;  %v793_v24 = vadd.f32 %v2805_v13, %v2712_v60 }
 0x255   :  { %v2948_v7 = vpop.f32.mrb[26].mxu1  ;;  %v1287_v44 = vadd.f32 1.0, %v2013_v18  ;;  %v2953_v12 = vpop.f32.mrb[27].mxu0  ;;  %v1732_v0 = vpack.c.bf16 %v1353_v15, %v1352_v1  ;;  %v1200_v49 = vadd.f32 %v1168_v16, %v2911_v32  ;;  %v1137_v39 = vmul.f32 %v1105_v42, %v2935_v33 }
 0x256   :  { %v2955_v54 = vpop.f32.mrb[27].mxu1  ;;  %v2015_v10 = vpop.eup %2014  ;;  %2020 = vtanh.f32 %v1227_v31  ;;  %v1166_v35 = vmul.f32 %v1134_v22, %v2926_v62  ;;  %v1103_v4 = vmul.f32 0.044715, %v2961_v51  ;;  %v2977_v23 = vadd.f32 %v2885_v27, %v2695_v41 }
 0x257   :  { %v1319_v30 = vmul.f32 %v1287_v44, %v1063_v52  ;;  %v1292_v34 = vadd.f32 1.0, %v2015_v10  ;;  %1803 = vst [vmem:[%s3187_s7 + $0x28] sm:$0xff] %v1732_v0   ;;  %v1232_v1 = vmul.f32 0.7978846, %v1200_v49  ;;  %v1169_v2 = vmul.f32 %v1137_v39, %v2935_v33 }
 0x258   :  { %v1198_v26 = vadd.f32 %v1166_v35, %v2926_v62  ;;  %v804_v13 = vadd.f32 %v2808_v14, %v2712_v60  ;;  %v1135_v18 = vmul.f32 %v1103_v4, %v2961_v51  ;;  %v1066_v27 = vmul.f32 0.5, %v2857_v29 }
 0x259   :  { %v1351_v6 = vmul.f32 %v1319_v30, %v780_v21  ;;  %v1324_v3 = vmul.f32 %v1292_v34, %v1068_v8  ;;  %2022 = vtanh.f32 %v1232_v1  ;;  %v1201_v44 = vadd.f32 %v1169_v2, %v2935_v33 }
 0x25a   :  { %v2979_v17 = vpop.f32.mrb[28].mxu0  ;;  %v2981_v53 = vpop.f32.mrb[28].mxu1  ;;  %v1230_v15 = vmul.f32 0.7978846, %v1198_v26  ;;  %v1167_v22 = vmul.f32 %v1135_v18, %v2961_v51  ;;  %v1108_v42 = vmul.f32 0.044715, %v2977_v23  ;;  %v3004_v29 = vadd.f32 %v2890_v59, %v2695_v41 }
 0x25b   :  { %v1727_v61 = vpack.c.bf16 %v1351_v6, %v2916_v28  ;;  %v2987_v21 = vpop.f32.mrb[29].mxu0  ;;  %v2989_v52 = vpop.f32.mrb[29].mxu1  ;;  %v1356_v63 = vmul.f32 %v1324_v3, %v801_v9  ;;  %v1069_v0 = vmul.f32 0.5, %v2866_v40  ;;  %v1233_v8 = vmul.f32 0.7978846, %v1201_v44 }
 0x25c   :  { %v2017_v48 = vpop.eup %2016  ;;  %v2993_v16 = vpop.f32.mrb[30].mxu0  ;;  %2024 = vtanh.f32 %v1230_v15  ;;  %v796_v34 = vadd.f32 %v2811_v45, %v2712_v60  ;;  %v1199_v35 = vadd.f32 %v1167_v22, %v2961_v51  ;;  %v1140_v39 = vmul.f32 %v1108_v42, %v2977_v23 }
 0x25d   :  { %v2995_v28 = vpop.f32.mrb[30].mxu1  ;;  %v2019_v31 = vpop.eup %2018  ;;  %1802 = vst [vmem:[%s3187_s7 + $0x20] sm:$0xff] %v1727_v61   ;;  %v1290_v14 = vadd.f32 1.0, %v2017_v48  ;;  %2026 = vtanh.f32 %v1233_v8  ;;  %v1106_v59 = vmul.f32 0.044715, %v3004_v29  ;;  %v3018_v1 = vadd.f32 %v2896_v36, %v2695_v41 }
 0x25e   :  { %v3006_v9 = vpop.f32.mrb[31].mxu0  ;;  %v3008_v10 = vpop.f32.mrb[31].mxu1  ;;  %v1293_v30 = vadd.f32 1.0, %v2019_v31  ;;  %v1067_v4 = vmul.f32 0.5, %v2881_v46  ;;  %v1231_v3 = vmul.f32 0.7978846, %v1199_v35  ;;  %v1172_v26 = vmul.f32 %v1140_v39, %v2977_v23 }
 0x25f   :  { %v1322_v49 = vmul.f32 %v1290_v14, %v1066_v27  ;;  %v817_v61 = vadd.f32 %v2830_v57, %v2712_v60  ;;  %v1138_v18 = vmul.f32 %v1106_v59, %v3004_v29  ;;  %v1109_v48 = vmul.f32 0.044715, %v3018_v1 }
 0x260   :  { %v1325_v6 = vmul.f32 %v1293_v30, %v1069_v0  ;;  %v2021_v2 = vpop.eup %2020  ;;  %2028 = vtanh.f32 %v1231_v3  ;;  %v1204_v36 = vadd.f32 %v1172_v26, %v2977_v23  ;;  %v809_v15 = vadd.f32 %v2837_v55, %v2712_v60 }
 0x261   :  { %v1354_v40 = vmul.f32 %v1322_v49, %v793_v24  ;;  %v1291_v27 = vadd.f32 1.0, %v2021_v2  ;;  %v3029_v24 = vadd.f32 %v2901_v19, %v2695_v41  ;;  %v1141_v57 = vmul.f32 %v1109_v48, %v3018_v1 }
 0x262   :  { %v1357_v45 = vmul.f32 %v1325_v6, %v804_v13  ;;  %v1170_v13 = vmul.f32 %v1138_v18, %v3004_v29  ;;  %v1072_v14 = vmul.f32 0.5, %v2911_v32  ;;  %v1236_v22 = vmul.f32 0.7978846, %v1204_v36 }
 0x263   :  { %v2023_v44 = vpop.eup %2022  ;;  %v1323_v31 = vmul.f32 %v1291_v27, %v1067_v4  ;;  %v1107_v42 = vmul.f32 0.044715, %v3029_v24  ;;  %v1173_v55 = vmul.f32 %v1141_v57, %v3018_v1  ;;  %v3044_v0 = vadd.f32 %v2930_v50, %v2695_v41 }
 0x264   :  { %v1742_v46 = vpack.c.bf16 %v1357_v45, %v1356_v63  ;;  %v1296_v19 = vadd.f32 1.0, %v2023_v44  ;;  %v1202_v63 = vadd.f32 %v1170_v13, %v3004_v29  ;;  %v1070_v8 = vmul.f32 0.5, %v2926_v62 }
 0x265   :  { %v1355_v30 = vmul.f32 %v1323_v31, %v796_v34  ;;  %2030 = vtanh.f32 %v1236_v22  ;;  %v1139_v32 = vmul.f32 %v1107_v42, %v3029_v24  ;;  %v1073_v39 = vmul.f32 0.5, %v2935_v33 }
 0x266   :  { %1805 = vst [vmem:[%s3187_s7 + $0x38] sm:$0xff] %v1742_v46   ;;  %v2025_v49 = vpop.eup %2024  ;;  %v1328_v35 = vmul.f32 %v1296_v19, %v1072_v14  ;;  %v1234_v6 = vmul.f32 0.7978846, %v1202_v63  ;;  %v1205_v59 = vadd.f32 %v1173_v55, %v3018_v1  ;;  %v1112_v50 = vmul.f32 0.044715, %v3044_v0 }
 0x267   :  { %v1737_v4 = vpack.c.bf16 %v1355_v30, %v1354_v40  ;;  %v1294_v3 = vadd.f32 1.0, %v2025_v49  ;;  %v1171_v26 = vmul.f32 %v1139_v32, %v3029_v24  ;;  %v2027_v2 = vpop.eup %2026  ;;  %v3054_v45 = vadd.f32 %v2939_v20, %v2695_v41 }
 0x268   :  { %v1360_v34 = vmul.f32 %v1328_v35, %v817_v61  ;;  %2032 = vtanh.f32 %v1234_v6  ;;  %v1237_v62 = vmul.f32 0.7978846, %v1205_v59  ;;  %v1297_v18 = vadd.f32 1.0, %v2027_v2 }
 0x269   :  { %1804 = vst [vmem:[%s3187_s7 + $0x30] sm:$0xff] %v1737_v4   ;;  %v1326_v33 = vmul.f32 %v1294_v3, %v1070_v8  ;;  %v1203_v40 = vadd.f32 %v1171_v26, %v3029_v24  ;;  %v1144_v48 = vmul.f32 %v1112_v50, %v3044_v0  ;;  %v820_v27 = vadd.f32 %v2847_v5, %v2712_v60 }
 0x26a   :  { %v812_v61 = vadd.f32 %v2859_v43, %v2712_v60  ;;  %2034 = vtanh.f32 %v1237_v62  ;;  %v1110_v20 = vmul.f32 0.044715, %v3054_v45  ;;  %v2029_v36 = vpop.eup %2028  ;;  %v1329_v13 = vmul.f32 %v1297_v18, %v1073_v39 }
 0x26b   :  { %v1358_v46 = vmul.f32 %v1326_v33, %v809_v15  ;;  %v1235_v57 = vmul.f32 0.7978846, %v1203_v40  ;;  %v1176_v44 = vmul.f32 %v1144_v48, %v3044_v0  ;;  %v1071_v31 = vmul.f32 0.5, %v2961_v51 }
 0x26c   :  { %v1295_v14 = vadd.f32 1.0, %v2029_v36  ;;  %v1142_v22 = vmul.f32 %v1110_v20, %v3054_v45  ;;  %v3071_v5 = vadd.f32 %v2948_v7, %v2695_v41  ;;  %v1361_v42 = vmul.f32 %v1329_v13, %v820_v27 }
 0x26d   :  { %2036 = vtanh.f32 %v1235_v57  ;;  %v1208_v43 = vadd.f32 %v1176_v44, %v3044_v0  ;;  %v3076_v15 = vadd.f32 %v2955_v54, %v2695_v41  ;;  %v833_v63 = vadd.f32 %v2883_v47, %v2712_v60 }
 0x26e   :  { %v1327_v19 = vmul.f32 %v1295_v14, %v1071_v31  ;;  %v1174_v51 = vmul.f32 %v1142_v22, %v3054_v45  ;;  %v1113_v55 = vmul.f32 0.044715, %v3071_v5  ;;  %v1752_v8 = vpack.c.bf16 %v1361_v42, %v1360_v34 }
 0x26f   :  { %v2031_v30 = vpop.eup %2030  ;;  %v1076_v7 = vmul.f32 0.5, %v2977_v23  ;;  %v1240_v32 = vmul.f32 0.7978846, %v1208_v43  ;;  %v1111_v49 = vmul.f32 0.044715, %v3076_v15  ;;  %v825_v47 = vadd.f32 %v2888_v56, %v2712_v60 }
 0x270   :  { %v1359_v35 = vmul.f32 %v1327_v19, %v812_v61  ;;  %v1300_v39 = vadd.f32 1.0, %v2031_v30  ;;  %v1206_v54 = vadd.f32 %v1174_v51, %v3054_v45  ;;  %v1145_v6 = vmul.f32 %v1113_v55, %v3071_v5  ;;  %1807 = vst [vmem:[%s3187_s7 + $0x48] sm:$0xff] %v1752_v8  }
 0x271   :  { %2038 = vtanh.f32 %v1240_v32  ;;  %v1143_v59 = vmul.f32 %v1111_v49, %v3076_v15  ;;  %v3094_v23 = vadd.f32 %v2981_v53, %v2695_v41  ;;  %v1074_v34 = vmul.f32 0.5, %v3004_v29 }
 0x272   :  { %v2033_v4 = vpop.eup %2032  ;;  %v1747_v3 = vpack.c.bf16 %v1359_v35, %v1358_v46  ;;  %v1332_v26 = vmul.f32 %v1300_v39, %v1076_v7  ;;  %v1238_v50 = vmul.f32 0.7978846, %v1206_v54  ;;  %v1177_v2 = vmul.f32 %v1145_v6, %v3071_v5 }
 0x273   :  { %v1298_v62 = vadd.f32 1.0, %v2033_v4  ;;  %v1175_v33 = vmul.f32 %v1143_v59, %v3076_v15  ;;  %v1116_v56 = vmul.f32 0.044715, %v3094_v23  ;;  %v1077_v40 = vmul.f32 0.5, %v3018_v1 }
 0x274   :  { %v2035_v18 = vpop.eup %2034  ;;  %1806 = vst [vmem:[%s3187_s7 + $0x40] sm:$0xff] %v1747_v3   ;;  %v1364_v53 = vmul.f32 %v1332_v26, %v833_v63  ;;  %2040 = vtanh.f32 %v1238_v50  ;;  %v1209_v48 = vadd.f32 %v1177_v2, %v3071_v5  ;;  %v836_v36 = vadd.f32 %v2894_v38, %v2712_v60 }
 0x275   :  { %v1330_v27 = vmul.f32 %v1298_v62, %v1074_v34  ;;  %v1301_v61 = vadd.f32 1.0, %v2035_v18  ;;  %v1207_v29 = vadd.f32 %v1175_v33, %v3076_v15  ;;  %v1148_v20 = vmul.f32 %v1116_v56, %v3094_v23 }
 0x276   :  { %v1241_v46 = vmul.f32 0.7978846, %v1209_v48  ;;  %v3111_v13 = vadd.f32 %v2989_v52, %v2695_v41  ;;  %v3115_v1 = vadd.f32 %v2995_v28, %v2695_v41  ;;  %v1075_v42 = vmul.f32 0.5, %v3029_v24 }
 0x277   :  { %v2037_v57 = vpop.eup %2036  ;;  %v1362_v44 = vmul.f32 %v1330_v27, %v825_v47  ;;  %v1333_v31 = vmul.f32 %v1301_v61, %v1077_v40  ;;  %v1239_v14 = vmul.f32 0.7978846, %v1207_v29  ;;  %v1180_v22 = vmul.f32 %v1148_v20, %v3094_v23 }
 0x278   :  { %v1299_v43 = vadd.f32 1.0, %v2037_v57  ;;  %2042 = vtanh.f32 %v1241_v46  ;;  %v1114_v38 = vmul.f32 0.044715, %v3111_v13  ;;  %v828_v28 = vadd.f32 %v2899_v11, %v2712_v60 }
 0x279   :  { %v1365_v19 = vmul.f32 %v1333_v31, %v836_v36  ;;  %2044 = vtanh.f32 %v1239_v14  ;;  %v1212_v52 = vadd.f32 %v1180_v22, %v3094_v23  ;;  %v1117_v55 = vmul.f32 0.044715, %v3115_v1 }
 0x27a   :  { %v1331_v63 = vmul.f32 %v1299_v43, %v1075_v42  ;;  %v1146_v51 = vmul.f32 %v1114_v38, %v3111_v13  ;;  %v1080_v24 = vmul.f32 0.5, %v3044_v0  ;;  %v3128_v32 = vadd.f32 %v3008_v10, %v2695_v41 }
 0x27b   :  { %v2039_v30 = vpop.eup %2038  ;;  %v1762_v8 = vpack.c.bf16 %v1365_v19, %v1364_v53  ;;  %v1244_v7 = vmul.f32 0.7978846, %v1212_v52  ;;  %v1149_v11 = vmul.f32 %v1117_v55, %v3115_v1  ;;  %v849_v54 = vadd.f32 %v2928_v58, %v2712_v60 }
 0x27c   :  { %v1363_v49 = vmul.f32 %v1331_v63, %v828_v28  ;;  %v1304_v35 = vadd.f32 1.0, %v2039_v30  ;;  %v1178_v39 = vmul.f32 %v1146_v51, %v3111_v13  ;;  %v1115_v0 = vmul.f32 0.044715, %v3128_v32 }
 0x27d   :  { %1809 = vst [vmem:[%s3187_s7 + $0x58] sm:$0xff] %v1762_v8   ;;  %2046 = vtanh.f32 %v1244_v7  ;;  %v1181_v59 = vmul.f32 %v1149_v11, %v3115_v1  ;;  %v1078_v4 = vmul.f32 0.5, %v3054_v45  ;;  %v841_v34 = vadd.f32 %v2937_v25, %v2712_v60 }
 0x27e   :  { %v2041_v6 = vpop.eup %2040  ;;  %v1757_v47 = vpack.c.bf16 %v1363_v49, %v1362_v44  ;;  %v1336_v41 = vmul.f32 %v1304_v35, %v1080_v24  ;;  %v1210_v10 = vadd.f32 %v1178_v39, %v3111_v13  ;;  %v1147_v26 = vmul.f32 %v1115_v0, %v3128_v32 }
 0x27f   :  { %v1302_v3 = vadd.f32 1.0, %v2041_v6  ;;  %v1213_v2 = vadd.f32 %v1181_v59, %v3115_v1  ;;  %v1081_v40 = vmul.f32 0.5, %v3071_v5  ;;  %v1079_v61 = vmul.f32 0.5, %v3076_v15 }
 0x280   :  { %1808 = vst [vmem:[%s3187_s7 + $0x50] sm:$0xff] %v1757_v47   ;;  %v1368_v58 = vmul.f32 %v1336_v41, %v849_v54  ;;  %v1242_v50 = vmul.f32 0.7978846, %v1210_v10  ;;  %v1179_v33 = vmul.f32 %v1147_v26, %v3128_v32  ;;  %v852_v25 = vadd.f32 %v2946_v37, %v2712_v60 }
 0x281   :  { %v1334_v62 = vmul.f32 %v1302_v3, %v1078_v4  ;;  %v1245_v45 = vmul.f32 0.7978846, %v1213_v2  ;;  %v844_v46 = vadd.f32 %v2953_v12, %v2712_v60  ;;  %v1084_v14 = vmul.f32 0.5, %v3094_v23 }
 0x282   :  { %v2043_v56 = vpop.eup %2042  ;;  %2048 = vtanh.f32 %v1242_v50  ;;  %v1211_v27 = vadd.f32 %v1179_v33, %v3128_v32  ;;  %v865_v43 = vadd.f32 %v2979_v17, %v2712_v60  ;;  %v1082_v19 = vmul.f32 0.5, %v3111_v13 }
 0x283   :  { %v2045_v18 = vpop.eup %2044  ;;  %v1366_v53 = vmul.f32 %v1334_v62, %v841_v34  ;;  %v1305_v48 = vadd.f32 1.0, %v2043_v56  ;;  %2050 = vtanh.f32 %v1245_v45  ;;  %v857_v28 = vadd.f32 %v2987_v21, %v2712_v60 }
 0x284   :  { %v1303_v29 = vadd.f32 1.0, %v2045_v18  ;;  %v1243_v36 = vmul.f32 0.7978846, %v1211_v27  ;;  %v1085_v17 = vmul.f32 0.5, %v3115_v1  ;;  %v868_v8 = vadd.f32 %v2993_v16, %v2712_v60 }
 0x285   :  { %v1337_v20 = vmul.f32 %v1305_v48, %v1081_v40  ;;  %v1083_v7 = vmul.f32 0.5, %v3128_v32  ;;  %v860_v13 = vadd.f32 %v3006_v9, %v2712_v60 }
 0x286   :  { %v1335_v57 = vmul.f32 %v1303_v29, %v1079_v61  ;;  %2052 = vtanh.f32 %v1243_v36 }
 0x287   :  { %v2047_v44 = vpop.eup %2046  ;;  %v1369_v31 = vmul.f32 %v1337_v20, %v852_v25 }
 0x288   :  { %v1367_v5 = vmul.f32 %v1335_v57, %v844_v46  ;;  %v1308_v22 = vadd.f32 1.0, %v2047_v44 }
 0x289   :  { %v1772_v42 = vpack.c.bf16 %v1369_v31, %v1368_v58 }
 0x28a   :  { %v1767_v15 = vpack.c.bf16 %v1367_v5, %v1366_v53  ;;  %v1340_v38 = vmul.f32 %v1308_v22, %v1084_v14 }
 0x28b   :  { %1811 = vst [vmem:[%s3187_s7 + $0x68] sm:$0xff] %v1772_v42  }
 0x28c   :  { %v2049_v37 = vpop.eup %2048  ;;  %1810 = vst [vmem:[%s3187_s7 + $0x60] sm:$0xff] %v1767_v15   ;;  %v1372_v12 = vmul.f32 %v1340_v38, %v865_v43 }
 0x28d   :  { %v1306_v23 = vadd.f32 1.0, %v2049_v37  ;;  %v2051_v52 = vpop.eup %2050 }
 0x28e   :  { %v1309_v51 = vadd.f32 1.0, %v2051_v52 }
 0x28f   :  { %v1338_v63 = vmul.f32 %v1306_v23, %v1082_v19 }
 0x290   :  { %v2053_v55 = vpop.eup %2052  ;;  %v1341_v24 = vmul.f32 %v1309_v51, %v1085_v17 }
 0x291   :  { %v1370_v30 = vmul.f32 %v1338_v63, %v857_v28  ;;  %v1307_v49 = vadd.f32 1.0, %v2053_v55 }
 0x292   :  { %v1373_v35 = vmul.f32 %v1341_v24, %v868_v8 }
 0x293   :  { %v1339_v39 = vmul.f32 %v1307_v49, %v1083_v7 }
 0x294   :  { %v1782_v11 = vpack.c.bf16 %v1373_v35, %v1372_v12 }
 0x295   :  { %v1371_v21 = vmul.f32 %v1339_v39, %v860_v13 }
 0x296   :  { %1813 = vst [vmem:[%s3187_s7 + $0x78] sm:$0xff] %v1782_v11  }
 0x297   :  { %v1777_v1 = vpack.c.bf16 %v1371_v21, %v1370_v30 }
 0x299   :  { %1812 = vst [vmem:[%s3187_s7 + $0x70] sm:$0xff] %v1777_v1  }

// kernel: _lambda_.15
= control target key start
LH: loop header
LB: loop body
LE: loop exit
PB: predicated region body
PF: predicated region fallthrough
CT: control target
= control target key end

     0   :  { %vm22_vm0 = vcmask 261120   ;;  %v1077_v1 = vmov 0.0   ;;  %v526_v19 = vlaneseq  ;;  %vm786_vm1 = vcmask 257024   ;;  %s1546_s1 = inlined_call_operand.vmem [shape: bf16[32,32], index: 1, kind: input, shape index: {}]   ;;  %s1547_s0 = inlined_call_operand.vmem [shape: bf16[256,32], index: 0, kind: input, shape index: {}]   ;;  %s1548_s2 = inlined_call_operand.vmem [shape: bf16[1,32], index: 2, kind: input, shape index: {}]   ;;  %s1549_s3 = inlined_call_operand.vmem [shape: bf16[256,32], index: 3, kind: input, shape index: {}]   ;;  %s1550_s4 = inlined_call_operand.vmem [shape: bf16[256,32], index: 4, kind: output, shape index: {}]  }
   0x1   :  { %v1059_v0 = vld [vmem:[%s1546_s1] sm:$0xff]   ;;  %25 = vst.msk [vmem:[#allocation2 + $0x10] sm:$0xff] %vm22_vm0, %v1077_v1  ;;  %23 = vst.msk [vmem:[#allocation2] sm:$0xff] %vm22_vm0, %v1077_v1  ;;  %v1060_v2 = vld [vmem:[%s1546_s1 + $0x8] sm:$0xff]  }
   0x2   :  { %24 = vst.msk [vmem:[#allocation2 + $0x8] sm:$0xff] %vm22_vm0, %v1077_v1  ;;  %26 = vst.msk [vmem:[#allocation2 + $0x18] sm:$0xff] %vm22_vm0, %v1077_v1  ;;  %1018 = vmatprep.subr.bf16.mxu0 %v1059_v0  ;;  %1054 = vmatprep.subr.bf16.mxu1 %v1059_v0  ;;  %v1061_v3 = vld [vmem:[%s1547_s0] sm:$0xff]   ;;  %v1063_v5 = vld [vmem:[%s1547_s0 + $0x8] sm:$0xff]   ;;  %v527_v20 = vshrl.u32 %v526_v19, 7 }
   0x3   :  { %27 = vst.msk [vmem:[#allocation2 + $0x20] sm:$0xff] %vm22_vm0, %v1077_v1  ;;  %28 = vst.msk [vmem:[#allocation2 + $0x28] sm:$0xff] %vm22_vm0, %v1077_v1  ;;  %1019 = vmatpush3.bf16.msra.mxu0 %v1059_v0  ;;  %1056 = vmatpush3.bf16.msra.mxu1 %v1059_v0  ;;  %v1062_v4 = vld [vmem:[%s1547_s0 + $0x40] sm:$0xff]   ;;  %v1064_v6 = vld [vmem:[%s1547_s0 + $0x48] sm:$0xff]  }
   0x4   :  { %29 = vst.msk [vmem:[#allocation2 + $0x30] sm:$0xff] %vm22_vm0, %v1077_v1  ;;  %30 = vst.msk [vmem:[#allocation2 + $0x38] sm:$0xff] %vm22_vm0, %v1077_v1  ;;  %1020 = vmatprep.subr.bf16.mxu0 %v1060_v2  ;;  %1055 = vmatprep.subr.bf16.mxu1 %v1060_v2  ;;  %v1065_v7 = vld [vmem:[%s1547_s0 + $0x10] sm:$0xff]   ;;  %v1067_v9 = vld [vmem:[%s1547_s0 + $0x18] sm:$0xff]   ;;  %v528_v24 = vsub.s32 0, %v527_v20 }
   0x5   :  { %31 = vst.msk [vmem:[#allocation2 + $0x40] sm:$0xff] %vm22_vm0, %v1077_v1  ;;  %32 = vst.msk [vmem:[#allocation2 + $0x48] sm:$0xff] %vm22_vm0, %v1077_v1  ;;  %1022 = vmatprep.mubr.msk.bf16.mxu0 %vm22_vm0, %v1061_v3  ;;  %1038 = vmatprep.mubr.msk.bf16.mxu1 %vm22_vm0, %v1062_v4  ;;  %v1066_v8 = vld [vmem:[%s1547_s0 + $0x50] sm:$0xff]   ;;  %v1068_v10 = vld [vmem:[%s1547_s0 + $0x58] sm:$0xff]  }
   0x6   :  { %33 = vst.msk [vmem:[#allocation2 + $0x50] sm:$0xff] %vm22_vm0, %v1077_v1  ;;  %34 = vst.msk [vmem:[#allocation2 + $0x58] sm:$0xff] %vm22_vm0, %v1077_v1  ;;  %v1069_v11 = vld [vmem:[%s1547_s0 + $0x20] sm:$0xff]   ;;  %v1071_v13 = vld [vmem:[%s1547_s0 + $0x28] sm:$0xff]  }
   0x7   :  { %35 = vst.msk [vmem:[#allocation2 + $0x60] sm:$0xff] %vm22_vm0, %v1077_v1  ;;  %36 = vst.msk [vmem:[#allocation2 + $0x68] sm:$0xff] %vm22_vm0, %v1077_v1  ;;  %1021 = vmatpush3.bf16.msra.mxu0 %v1060_v2  ;;  %1057 = vmatpush3.bf16.msra.mxu1 %v1060_v2  ;;  %v1070_v12 = vld [vmem:[%s1547_s0 + $0x60] sm:$0xff]   ;;  %v1072_v14 = vld [vmem:[%s1547_s0 + $0x68] sm:$0xff]  }
   0x8   :  { %37 = vst.msk [vmem:[#allocation2 + $0x70] sm:$0xff] %vm22_vm0, %v1077_v1  ;;  %38 = vst.msk [vmem:[#allocation2 + $0x78] sm:$0xff] %vm22_vm0, %v1077_v1  ;;  %v1073_v15 = vld [vmem:[%s1547_s0 + $0x30] sm:$0xff]   ;;  %v1075_v17 = vld [vmem:[%s1547_s0 + $0x38] sm:$0xff]  }
   0x9   :  { %39 = vst.msk [vmem:[#allocation2 + $0x80] sm:$0xff] %vm22_vm0, %v1077_v1  ;;  %40 = vst.msk [vmem:[#allocation2 + $0x88] sm:$0xff] %vm22_vm0, %v1077_v1  ;;  %v1074_v16 = vld [vmem:[%s1547_s0 + $0x70] sm:$0xff]   ;;  %v1076_v18 = vld [vmem:[%s1547_s0 + $0x78] sm:$0xff]  }
   0xa   :  { %41 = vst.msk [vmem:[#allocation2 + $0x90] sm:$0xff] %vm22_vm0, %v1077_v1  ;;  %42 = vst.msk [vmem:[#allocation2 + $0x98] sm:$0xff] %vm22_vm0, %v1077_v1  ;;  %1023 = vmatmul.mubr.msk.bf16.vlgmr.msra.gmra.mrb[0].mxu0 %vm22_vm0, %v1063_v5  ;;  %1039 = vmatmul.mubr.msk.bf16.vlgmr.msra.gmra.mrb[0].mxu1 %vm22_vm0, %v1064_v6  ;;  %v524_v21 = vld [vmem:[%s1548_s2] sm:$0x1]  ;;  %v57_v22 = vld [vmem:[#allocation2 + $0x10] sm:$0xff] }
   0xb   :  { %43 = vst.msk [vmem:[#allocation2 + $0xa0] sm:$0xff] %vm22_vm0, %v1077_v1  ;;  %44 = vst.msk [vmem:[#allocation2 + $0xa8] sm:$0xff] %vm22_vm0, %v1077_v1  ;;  %1026 = vmatprep.mubr.msk.bf16.mxu0 %vm22_vm0, %v1065_v7  ;;  %1042 = vmatprep.mubr.msk.bf16.mxu1 %vm22_vm0, %v1066_v8  ;;  %v525_v23 = vunpack.c.l.bf16 %v524_v21  ;;  %v55_v26 = vld [vmem:[#allocation2] sm:$0xff]  ;;  %v58_v28 = vld [vmem:[#allocation2 + $0x18] sm:$0xff] }
   0xc   :  { %45 = vst.msk [vmem:[#allocation2 + $0xb0] sm:$0xff] %vm22_vm0, %v1077_v1  ;;  %46 = vst.msk [vmem:[#allocation2 + $0xb8] sm:$0xff] %vm22_vm0, %v1077_v1  ;;  %v1211_v31 = vld [vmem:[%s1549_s3 + $0x8] sm:$0xff]   ;;  %v1221_v38 = vld [vmem:[%s1549_s3] sm:$0xff]  }
   0xd   :  { %47 = vst.msk [vmem:[#allocation2 + $0xc0] sm:$0xff] %vm22_vm0, %v1077_v1  ;;  %48 = vst.msk [vmem:[#allocation2 + $0xc8] sm:$0xff] %vm22_vm0, %v1077_v1  ;;  %v1216_v33 = vld [vmem:[%s1549_s3 + $0x48] sm:$0xff]   ;;  %v1226_v40 = vld [vmem:[%s1549_s3 + $0x40] sm:$0xff]   ;;  %v1228_v42 = vrot.slane %v525_v23, %v528_v24  ;;  %v927_v48 = vunpack.c.l.bf16 %v1211_v31  ;;  %v923_v57 = vunpack.c.l.bf16 %v1221_v38  ;;  %v928_v62 = vunpack.c.h.bf16 %v1211_v31 }
   0xe   :  { %49 = vst.msk [vmem:[#allocation2 + $0xd0] sm:$0xff] %vm22_vm0, %v1077_v1  ;;  %50 = vst.msk [vmem:[#allocation2 + $0xd8] sm:$0xff] %vm22_vm0, %v1077_v1  ;;  %v56_v34 = vld [vmem:[#allocation2 + $0x8] sm:$0xff]  ;;  %v1233_v47 = vld [vmem:[%s1549_s3 + $0x18] sm:$0xff]   ;;  %v959_v49 = vunpack.c.l.bf16 %v1216_v33  ;;  %v955_v58 = vunpack.c.l.bf16 %v1226_v40  ;;  %v960_v63 = vunpack.c.h.bf16 %v1216_v33  ;;  %v924_v0 = vunpack.c.h.bf16 %v1221_v38 }
   0xf   :  { %51 = vst.msk [vmem:[#allocation2 + $0xe0] sm:$0xff] %vm22_vm0, %v1077_v1  ;;  %52 = vst.msk [vmem:[#allocation2 + $0xe8] sm:$0xff] %vm22_vm0, %v1077_v1  ;;  %v1242_v54 = vld [vmem:[%s1549_s3 + $0x58] sm:$0xff]   ;;  %v1247_v55 = vld [vmem:[%s1549_s3 + $0x10] sm:$0xff]   ;;  %v935_v6 = vunpack.c.l.bf16 %v1233_v47 }
  0x10   :  { %53 = vst.msk [vmem:[#allocation2 + $0xf0] sm:$0xff] %vm22_vm0, %v1077_v1  ;;  %54 = vst.msk [vmem:[#allocation2 + $0xf8] sm:$0xff] %vm22_vm0, %v1077_v1  ;;  %v71_v27 = vld [vmem:[#allocation2 + $0x80] sm:$0xff]  ;;  %v72_v41 = vld [vmem:[#allocation2 + $0x88] sm:$0xff]  ;;  %v956_v1 = vunpack.c.h.bf16 %v1226_v40  ;;  %v967_v8 = vunpack.c.l.bf16 %v1242_v54 }
  0x11   :  { %v73_v25 = vld [vmem:[#allocation2 + $0x90] sm:$0xff]  ;;  %v74_v29 = vld [vmem:[#allocation2 + $0x98] sm:$0xff]  ;;  %v1261_v61 = vld [vmem:[%s1549_s3 + $0x28] sm:$0xff]  }
  0x12   :  { %1027 = vmatmul.mubr.msk.bf16.gmra.mrb[4].mxu0 %vm22_vm0, %v1067_v9  ;;  %1043 = vmatmul.mubr.msk.bf16.gmra.mrb[4].mxu1 %vm22_vm0, %v1068_v10  ;;  %v1252_v56 = vld [vmem:[%s1549_s3 + $0x50] sm:$0xff]   ;;  %v1272_v2 = vld [vmem:[%s1549_s3 + $0x68] sm:$0xff]   ;;  %v1277_v3 = vld [vmem:[%s1549_s3 + $0x20] sm:$0xff]   ;;  %v931_v9 = vunpack.c.l.bf16 %v1247_v55  ;;  %v943_v21 = vunpack.c.l.bf16 %v1261_v61 }
  0x13   :  { %1030 = vmatprep.mubr.msk.bf16.mxu0 %vm22_vm0, %v1069_v11  ;;  %1046 = vmatprep.mubr.msk.bf16.mxu1 %vm22_vm0, %v1070_v12  ;;  %v1282_v4 = vld [vmem:[%s1549_s3 + $0x60] sm:$0xff]   ;;  %v61_v5 = vld [vmem:[#allocation2 + $0x30] sm:$0xff]  ;;  %v963_v10 = vunpack.c.l.bf16 %v1252_v56  ;;  %v62_v19 = vld [vmem:[#allocation2 + $0x38] sm:$0xff]  ;;  %v939_v23 = vunpack.c.l.bf16 %v1277_v3 }
  0x14   :  { %v77_v7 = vld [vmem:[#allocation2 + $0xb0] sm:$0xff]  ;;  %v59_v11 = vld [vmem:[#allocation2 + $0x20] sm:$0xff]  ;;  %v78_v20 = vld [vmem:[#allocation2 + $0xb8] sm:$0xff]  ;;  %v971_v24 = vunpack.c.l.bf16 %v1282_v4 }
  0x15   :  { %v75_v12 = vld [vmem:[#allocation2 + $0xa0] sm:$0xff] }
  0x1a   :  { %1031 = vmatmul.mubr.msk.bf16.gmra.mrb[8].mxu0 %vm22_vm0, %v1071_v13  ;;  %1047 = vmatmul.mubr.msk.bf16.gmra.mrb[8].mxu1 %vm22_vm0, %v1072_v14  ;;  %v936_v13 = vunpack.c.h.bf16 %v1233_v47  ;;  %v968_v14 = vunpack.c.h.bf16 %v1242_v54 }
  0x1b   :  { %1034 = vmatprep.mubr.msk.bf16.mxu0 %vm22_vm0, %v1073_v15  ;;  %1050 = vmatprep.mubr.msk.bf16.mxu1 %vm22_vm0, %v1074_v16  ;;  %v932_v15 = vunpack.c.h.bf16 %v1247_v55  ;;  %v964_v16 = vunpack.c.h.bf16 %v1252_v56 }
  0x22   :  { %1035 = vmatmul.mubr.msk.bf16.gmra.mrb[12].mxu0 %vm22_vm0, %v1075_v17  ;;  %1051 = vmatmul.mubr.msk.bf16.gmra.mrb[12].mxu1 %vm22_vm0, %v1076_v18 }
  0xdd   :  { %v1024_v30 = vpop.f32.mrb[0].mxu0  ;;  %v1040_v32 = vpop.f32.mrb[0].mxu1 }
  0xde   :  { %v427_v35 = vadd.f32 %v1024_v30, %v57_v22  ;;  %v443_v36 = vadd.f32 %v1040_v32, %v73_v25  ;;  %v298_v37 = vpop.f32.mrb[1].mxu0  ;;  %v362_v39 = vpop.f32.mrb[1].mxu1  ;;  %v975_v22 = vunpack.c.l.bf16 %v1272_v2  ;;  %v76_v30 = vld [vmem:[#allocation2 + $0xa8] sm:$0xff]  ;;  %v944_v32 = vunpack.c.h.bf16 %v1261_v61 }
  0xdf   :  { %v425_v43 = vadd.f32 %v298_v37, %v55_v26  ;;  %v441_v44 = vadd.f32 %v362_v39, %v71_v27  ;;  %v1025_v45 = vpop.f32.mrb[2].mxu0  ;;  %v1041_v46 = vpop.f32.mrb[2].mxu1 }
  0xe0   :  { %459 = vst.msk [vmem:[#allocation2 + $0x10] sm:$0xff] %vm22_vm0, %v427_v35  ;;  %475 = vst.msk [vmem:[#allocation2 + $0x90] sm:$0xff] %vm22_vm0, %v443_v36  ;;  %v428_v50 = vadd.f32 %v1025_v45, %v58_v28  ;;  %v444_v51 = vadd.f32 %v1041_v46, %v74_v29  ;;  %v301_v52 = vpop.f32.mrb[3].mxu0  ;;  %v365_v53 = vpop.f32.mrb[3].mxu1  ;;  %v60_v29 = vld [vmem:[#allocation2 + $0x28] sm:$0xff]  ;;  %v972_v45 = vunpack.c.h.bf16 %v1282_v4 }
  0xe1   :  { %457 = vst.msk [vmem:[#allocation2] sm:$0xff] %vm22_vm0, %v425_v43  ;;  %473 = vst.msk [vmem:[#allocation2 + $0x80] sm:$0xff] %vm22_vm0, %v441_v44  ;;  %v426_v59 = vadd.f32 %v301_v52, %v56_v34  ;;  %v442_v60 = vadd.f32 %v365_v53, %v72_v41  ;;  %v976_v34 = vunpack.c.h.bf16 %v1272_v2  ;;  %v940_v44 = vunpack.c.h.bf16 %v1277_v3 }
  0xe2   :  { %460 = vst.msk [vmem:[#allocation2 + $0x18] sm:$0xff] %vm22_vm0, %v428_v50  ;;  %476 = vst.msk [vmem:[#allocation2 + $0x98] sm:$0xff] %vm22_vm0, %v444_v51 }
  0xe3   :  { %458 = vst.msk [vmem:[#allocation2 + $0x8] sm:$0xff] %vm22_vm0, %v426_v59  ;;  %474 = vst.msk [vmem:[#allocation2 + $0x88] sm:$0xff] %vm22_vm0, %v442_v60 }
  0xe5   :  { %v1028_v17 = vpop.f32.mrb[4].mxu0  ;;  %v1044_v18 = vpop.f32.mrb[4].mxu1 }
  0xe6   :  { %v431_v25 = vadd.f32 %v1028_v17, %v61_v5  ;;  %v447_v26 = vadd.f32 %v1044_v18, %v77_v7  ;;  %v314_v27 = vpop.f32.mrb[5].mxu0  ;;  %v378_v28 = vpop.f32.mrb[5].mxu1 }
  0xe7   :  { %v494_v35 = vld [vmem:[#allocation2 + $0x10] sm:$0xff]  ;;  %v429_v37 = vadd.f32 %v314_v27, %v59_v11  ;;  %v445_v39 = vadd.f32 %v378_v28, %v75_v12  ;;  %v1029_v41 = vpop.f32.mrb[6].mxu0  ;;  %v1045_v43 = vpop.f32.mrb[6].mxu1 }
  0xe8   :  { %v510_v36 = vld [vmem:[#allocation2 + $0x90] sm:$0xff]  ;;  %v532_v46 = vadd.f32 %v1228_v42, %v494_v35  ;;  %v492_v51 = vld [vmem:[#allocation2] sm:$0xff]  ;;  %463 = vst.msk [vmem:[#allocation2 + $0x30] sm:$0xff] %vm22_vm0, %v431_v25  ;;  %479 = vst.msk [vmem:[#allocation2 + $0xb0] sm:$0xff] %vm22_vm0, %v447_v26  ;;  %v432_v53 = vadd.f32 %v1029_v41, %v62_v19  ;;  %v448_v59 = vadd.f32 %v1045_v43, %v78_v20  ;;  %v317_v60 = vpop.f32.mrb[7].mxu0  ;;  %v381_v5 = vpop.f32.mrb[7].mxu1 }
  0xe9   :  { %v548_v50 = vadd.f32 %v1228_v42, %v510_v36  ;;  %v508_v52 = vld [vmem:[#allocation2 + $0x80] sm:$0xff]  ;;  %v530_v7 = vadd.f32 %v1228_v42, %v492_v51  ;;  %v495_v12 = vld [vmem:[#allocation2 + $0x18] sm:$0xff]  ;;  %461 = vst.msk [vmem:[#allocation2 + $0x20] sm:$0xff] %vm22_vm0, %v429_v37  ;;  %477 = vst.msk [vmem:[#allocation2 + $0xa0] sm:$0xff] %vm22_vm0, %v445_v39  ;;  %v430_v18 = vadd.f32 %v317_v60, %v60_v29 }
  0xea   :  { %v546_v11 = vadd.f32 %v1228_v42, %v508_v52  ;;  %v511_v17 = vld [vmem:[#allocation2 + $0x98] sm:$0xff]  ;;  %v446_v27 = vadd.f32 %v381_v5, %v76_v30  ;;  %v628_v25 = vadd.f32 %v927_v48, %v532_v46  ;;  %v533_v20 = vadd.f32 %v1228_v42, %v495_v12  ;;  %v493_v28 = vld [vmem:[#allocation2 + $0x8] sm:$0xff]  ;;  %464 = vst.msk [vmem:[#allocation2 + $0x38] sm:$0xff] %vm22_vm0, %v432_v53  ;;  %v65_v36 = vld [vmem:[#allocation2 + $0x50] sm:$0xff] }
  0xeb   :  { %v644_v19 = vadd.f32 %v959_v49, %v548_v50  ;;  %v549_v26 = vadd.f32 %v1228_v42, %v511_v17  ;;  %v509_v35 = vld [vmem:[#allocation2 + $0x88] sm:$0xff]  ;;  %480 = vst.msk [vmem:[#allocation2 + $0xb8] sm:$0xff] %vm22_vm0, %v448_v59  ;;  %v626_v29 = vadd.f32 %v923_v57, %v530_v7  ;;  %v531_v48 = vadd.f32 %v1228_v42, %v493_v28  ;;  %v81_v37 = vld [vmem:[#allocation2 + $0xd0] sm:$0xff]  ;;  %v63_v46 = vld [vmem:[#allocation2 + $0x40] sm:$0xff] }
  0xec   :  { %v642_v30 = vadd.f32 %v955_v58, %v546_v11  ;;  %v547_v49 = vadd.f32 %v1228_v42, %v509_v35  ;;  %462 = vst.msk [vmem:[#allocation2 + $0x28] sm:$0xff] %vm22_vm0, %v430_v18  ;;  %478 = vst.msk [vmem:[#allocation2 + $0xa8] sm:$0xff] %vm22_vm0, %v446_v27  ;;  %v891_v39 = vpack.c.bf16 %v628_v25, %v628_v25  ;;  %v79_v58 = vld [vmem:[#allocation2 + $0xc0] sm:$0xff]  ;;  %v66_v5 = vld [vmem:[#allocation2 + $0x58] sm:$0xff] }
  0xed   :  { %v907_v41 = vpack.c.bf16 %v644_v19, %v644_v19  ;;  %v629_v43 = vadd.f32 %v928_v62, %v533_v20  ;;  %v645_v57 = vadd.f32 %v960_v63, %v549_v26  ;;  %v889_v50 = vpack.c.bf16 %v626_v29, %v626_v29  ;;  %v1032_v59 = vpop.f32.mrb[8].mxu0  ;;  %v1048_v60 = vpop.f32.mrb[8].mxu1  ;;  %v82_v7 = vld [vmem:[#allocation2 + $0xd8] sm:$0xff] }
  0xee   :  { %v905_v51 = vpack.c.bf16 %v642_v30, %v642_v30  ;;  %v627_v52 = vadd.f32 %v924_v0, %v531_v48  ;;  %v643_v53 = vadd.f32 %v956_v1, %v547_v49  ;;  %789 = vst.msk [vmem:[%s1550_s4 + $0x8] sm:$0xf] %vm786_vm1, %v891_v39  ;;  %v435_v38 = vadd.f32 %v1032_v59, %v65_v36  ;;  %v330_v40 = vpop.f32.mrb[9].mxu0  ;;  %v394_v63 = vpop.f32.mrb[9].mxu1  ;;  %v64_v0 = vld [vmem:[#allocation2 + $0x48] sm:$0xff] }
  0xef   :  { %805 = vst.msk [vmem:[%s1550_s4 + $0x48] sm:$0xf] %vm786_vm1, %v907_v41  ;;  %v892_v31 = vpack.c.bf16 %v629_v43, %v629_v43  ;;  %v908_v33 = vpack.c.bf16 %v645_v57, %v645_v57  ;;  %v451_v62 = vadd.f32 %v1048_v60, %v81_v37  ;;  %v80_v1 = vld [vmem:[#allocation2 + $0xc8] sm:$0xff]  ;;  %787 = vst.msk [vmem:[%s1550_s4] sm:$0xf] %vm786_vm1, %v889_v50  ;;  %v498_v17 = vld [vmem:[#allocation2 + $0x30] sm:$0xff] }
  0xf0   :  { %803 = vst.msk [vmem:[%s1550_s4 + $0x40] sm:$0xf] %vm786_vm1, %v905_v51  ;;  %v890_v11 = vpack.c.bf16 %v627_v52, %v627_v52  ;;  %v906_v12 = vpack.c.bf16 %v643_v53, %v643_v53  ;;  %v514_v18 = vld [vmem:[#allocation2 + $0xb0] sm:$0xff]  ;;  %v433_v27 = vadd.f32 %v330_v40, %v63_v46  ;;  %v449_v25 = vadd.f32 %v394_v63, %v79_v58  ;;  %v1033_v19 = vpop.f32.mrb[10].mxu0  ;;  %v1049_v20 = vpop.f32.mrb[10].mxu1  ;;  %v496_v35 = vld [vmem:[#allocation2 + $0x20] sm:$0xff] }
  0xf1   :  { %790 = vst.msk [vmem:[%s1550_s4 + $0xc] sm:$0xf] %vm786_vm1, %v892_v31  ;;  %806 = vst.msk [vmem:[%s1550_s4 + $0x4c] sm:$0xf] %vm786_vm1, %v908_v33  ;;  %v536_v26 = vadd.f32 %v1228_v42, %v498_v17  ;;  %v552_v28 = vadd.f32 %v1228_v42, %v514_v18  ;;  %v512_v29 = vld [vmem:[#allocation2 + $0xa0] sm:$0xff]  ;;  %v436_v30 = vadd.f32 %v1033_v19, %v66_v5  ;;  %v333_v49 = vpop.f32.mrb[11].mxu0 }
  0xf2   :  { %467 = vst.msk [vmem:[#allocation2 + $0x50] sm:$0xff] %vm22_vm0, %v435_v38  ;;  %483 = vst.msk [vmem:[#allocation2 + $0xd0] sm:$0xff] %vm22_vm0, %v451_v62  ;;  %v452_v48 = vadd.f32 %v1049_v20, %v82_v7  ;;  %v397_v36 = vpop.f32.mrb[11].mxu1  ;;  %v534_v37 = vadd.f32 %v1228_v42, %v496_v35  ;;  %v550_v39 = vadd.f32 %v1228_v42, %v512_v29  ;;  %v499_v41 = vld [vmem:[#allocation2 + $0x38] sm:$0xff]  ;;  %v69_v7 = vld [vmem:[#allocation2 + $0x70] sm:$0xff] }
  0xf3   :  { %788 = vst.msk [vmem:[%s1550_s4 + $0x4] sm:$0xf] %vm786_vm1, %v890_v11  ;;  %804 = vst.msk [vmem:[%s1550_s4 + $0x44] sm:$0xf] %vm786_vm1, %v906_v12  ;;  %v515_v43 = vld [vmem:[#allocation2 + $0xb8] sm:$0xff]  ;;  %v434_v57 = vadd.f32 %v333_v49, %v64_v0  ;;  %v450_v46 = vadd.f32 %v397_v36, %v80_v1  ;;  %v632_v58 = vadd.f32 %v935_v6, %v536_v26  ;;  %v497_v53 = vld [vmem:[#allocation2 + $0x28] sm:$0xff] }
  0xf4   :  { %465 = vst.msk [vmem:[#allocation2 + $0x40] sm:$0xff] %vm22_vm0, %v433_v27  ;;  %481 = vst.msk [vmem:[#allocation2 + $0xc0] sm:$0xff] %vm22_vm0, %v449_v25  ;;  %v648_v50 = vadd.f32 %v967_v8, %v552_v28  ;;  %v537_v51 = vadd.f32 %v1228_v42, %v499_v41  ;;  %v553_v52 = vadd.f32 %v1228_v42, %v515_v43  ;;  %v513_v59 = vld [vmem:[#allocation2 + $0xa8] sm:$0xff]  ;;  %v85_v31 = vld [vmem:[#allocation2 + $0xf0] sm:$0xff] }
  0xf5   :  { %468 = vst.msk [vmem:[#allocation2 + $0x58] sm:$0xff] %vm22_vm0, %v436_v30  ;;  %484 = vst.msk [vmem:[#allocation2 + $0xd8] sm:$0xff] %vm22_vm0, %v452_v48  ;;  %v630_v60 = vadd.f32 %v931_v9, %v534_v37  ;;  %v646_v5 = vadd.f32 %v963_v10, %v550_v39  ;;  %v535_v6 = vadd.f32 %v1228_v42, %v497_v53  ;;  %v67_v40 = vld [vmem:[#allocation2 + $0x60] sm:$0xff]  ;;  %v1036_v12 = vpop.f32.mrb[12].mxu0  ;;  %v1052_v17 = vpop.f32.mrb[12].mxu1  ;;  %v70_v18 = vld [vmem:[#allocation2 + $0x78] sm:$0xff] }
  0xf6   :  { %v551_v8 = vadd.f32 %v1228_v42, %v513_v59  ;;  %466 = vst.msk [vmem:[#allocation2 + $0x48] sm:$0xff] %vm22_vm0, %v434_v57  ;;  %482 = vst.msk [vmem:[#allocation2 + $0xc8] sm:$0xff] %vm22_vm0, %v450_v46  ;;  %v895_v33 = vpack.c.bf16 %v632_v58, %v632_v58  ;;  %v911_v38 = vpack.c.bf16 %v648_v50, %v648_v50  ;;  %v83_v10 = vld [vmem:[#allocation2 + $0xe0] sm:$0xff]  ;;  %v86_v27 = vld [vmem:[#allocation2 + $0xf8] sm:$0xff]  ;;  %v346_v56 = vpop.f32.mrb[13].mxu0 }
  0xf7   :  { %v633_v62 = vadd.f32 %v936_v13, %v537_v51  ;;  %v649_v9 = vadd.f32 %v968_v14, %v553_v52  ;;  %v893_v63 = vpack.c.bf16 %v630_v60, %v630_v60  ;;  %v909_v0 = vpack.c.bf16 %v646_v5, %v646_v5  ;;  %v410_v14 = vpop.f32.mrb[13].mxu1  ;;  %v1037_v29 = vpop.f32.mrb[14].mxu0 }
  0xf8   :  { %v631_v1 = vadd.f32 %v932_v15, %v535_v6  ;;  %v647_v11 = vadd.f32 %v964_v16, %v551_v8  ;;  %793 = vst.msk [vmem:[%s1550_s4 + $0x18] sm:$0xf] %vm786_vm1, %v895_v33  ;;  %809 = vst.msk [vmem:[%s1550_s4 + $0x58] sm:$0xf] %vm786_vm1, %v911_v38  ;;  %v439_v55 = vadd.f32 %v1036_v12, %v69_v7  ;;  %v68_v15 = vld [vmem:[#allocation2 + $0x68] sm:$0xff]  ;;  %v1053_v30 = vpop.f32.mrb[14].mxu1 }
  0xf9   :  { %v896_v47 = vpack.c.bf16 %v633_v62, %v633_v62  ;;  %v912_v54 = vpack.c.bf16 %v649_v9, %v649_v9  ;;  %v455_v13 = vadd.f32 %v1052_v17, %v85_v31  ;;  %v84_v16 = vld [vmem:[#allocation2 + $0xe8] sm:$0xff]  ;;  %791 = vst.msk [vmem:[%s1550_s4 + $0x10] sm:$0xf] %vm786_vm1, %v893_v63  ;;  %807 = vst.msk [vmem:[%s1550_s4 + $0x50] sm:$0xf] %vm786_vm1, %v909_v0  ;;  %v502_v20 = vld [vmem:[#allocation2 + $0x50] sm:$0xff] }
  0xfa   :  { %v894_v25 = vpack.c.bf16 %v631_v1, %v631_v1  ;;  %v910_v19 = vpack.c.bf16 %v647_v11, %v647_v11  ;;  %v518_v26 = vld [vmem:[#allocation2 + $0xd0] sm:$0xff]  ;;  %v437_v28 = vadd.f32 %v346_v56, %v67_v40  ;;  %v453_v35 = vadd.f32 %v410_v14, %v83_v10  ;;  %471 = vst.msk [vmem:[#allocation2 + $0x70] sm:$0xff] %vm22_vm0, %v439_v55  ;;  %v349_v43 = vpop.f32.mrb[15].mxu0  ;;  %v413_v57 = vpop.f32.mrb[15].mxu1  ;;  %v991_v38 = vld [vmem:[%s1549_s3 + $0x38] sm:$0xff]  }
  0xfb   :  { %794 = vst.msk [vmem:[%s1550_s4 + $0x1c] sm:$0xf] %vm786_vm1, %v896_v47  ;;  %810 = vst.msk [vmem:[%s1550_s4 + $0x5c] sm:$0xf] %vm786_vm1, %v912_v54  ;;  %v540_v48 = vadd.f32 %v1228_v42, %v502_v20  ;;  %v556_v49 = vadd.f32 %v1228_v42, %v518_v26  ;;  %v500_v36 = vld [vmem:[#allocation2 + $0x40] sm:$0xff]  ;;  %v440_v39 = vadd.f32 %v1037_v29, %v70_v18  ;;  %v999_v62 = vld [vmem:[%s1549_s3 + $0x78] sm:$0xff]  }
  0xfc   :  { %v516_v37 = vld [vmem:[#allocation2 + $0xc0] sm:$0xff]  ;;  %487 = vst.msk [vmem:[#allocation2 + $0xf0] sm:$0xff] %vm22_vm0, %v455_v13  ;;  %v456_v41 = vadd.f32 %v1053_v30, %v86_v27  ;;  %v538_v46 = vadd.f32 %v1228_v42, %v500_v36  ;;  %v503_v50 = vld [vmem:[#allocation2 + $0x58] sm:$0xff]  ;;  %469 = vst.msk [vmem:[#allocation2 + $0x60] sm:$0xff] %vm22_vm0, %v437_v28  ;;  %v438_v52 = vadd.f32 %v349_v43, %v68_v15  ;;  %v983_v12 = vunpack.c.l.bf16 %v999_v62 }
  0xfd   :  { %792 = vst.msk [vmem:[%s1550_s4 + $0x14] sm:$0xf] %vm786_vm1, %v894_v25  ;;  %808 = vst.msk [vmem:[%s1550_s4 + $0x54] sm:$0xf] %vm786_vm1, %v910_v19  ;;  %v554_v58 = vadd.f32 %v1228_v42, %v516_v37  ;;  %v519_v51 = vld [vmem:[#allocation2 + $0xd8] sm:$0xff]  ;;  %v454_v53 = vadd.f32 %v413_v57, %v84_v16  ;;  %v636_v59 = vadd.f32 %v943_v21, %v540_v48  ;;  %v501_v8 = vld [vmem:[#allocation2 + $0x48] sm:$0xff]  ;;  %v952_v13 = vunpack.c.h.bf16 %v991_v38 }
  0xfe   :  { %485 = vst.msk [vmem:[#allocation2 + $0xe0] sm:$0xff] %vm22_vm0, %v453_v35  ;;  %v652_v60 = vadd.f32 %v975_v22, %v556_v49  ;;  %v541_v5 = vadd.f32 %v1228_v42, %v503_v50  ;;  %v557_v6 = vadd.f32 %v1228_v42, %v519_v51  ;;  %v517_v7 = vld [vmem:[#allocation2 + $0xc8] sm:$0xff]  ;;  %472 = vst.msk [vmem:[#allocation2 + $0x78] sm:$0xff] %vm22_vm0, %v440_v39  ;;  %v990_v10 = vld [vmem:[%s1549_s3 + $0x30] sm:$0xff]   ;;  %v984_v56 = vunpack.c.h.bf16 %v999_v62 }
  0xff   :  { %488 = vst.msk [vmem:[#allocation2 + $0xf8] sm:$0xff] %vm22_vm0, %v456_v41  ;;  %v634_v31 = vadd.f32 %v939_v23, %v538_v46  ;;  %v650_v33 = vadd.f32 %v971_v24, %v554_v58  ;;  %v539_v21 = vadd.f32 %v1228_v42, %v501_v8  ;;  %v555_v22 = vadd.f32 %v1228_v42, %v517_v7  ;;  %v998_v63 = vld [vmem:[%s1549_s3 + $0x70] sm:$0xff]  }
 0x100   :  { %470 = vst.msk [vmem:[#allocation2 + $0x68] sm:$0xff] %vm22_vm0, %v438_v52  ;;  %486 = vst.msk [vmem:[#allocation2 + $0xe8] sm:$0xff] %vm22_vm0, %v454_v53  ;;  %v899_v23 = vpack.c.bf16 %v636_v59, %v636_v59  ;;  %v915_v9 = vpack.c.bf16 %v652_v60, %v652_v60  ;;  %v637_v24 = vadd.f32 %v944_v32, %v541_v5  ;;  %v947_v17 = vunpack.c.l.bf16 %v990_v10 }
 0x101   :  { %v653_v40 = vadd.f32 %v976_v34, %v557_v6  ;;  %v897_v0 = vpack.c.bf16 %v634_v31, %v634_v31  ;;  %v913_v1 = vpack.c.bf16 %v650_v33, %v650_v33  ;;  %v635_v11 = vadd.f32 %v940_v44, %v539_v21  ;;  %v506_v44 = vld [vmem:[#allocation2 + $0x70] sm:$0xff] }
 0x102   :  { %v651_v61 = vadd.f32 %v972_v45, %v555_v22  ;;  %797 = vst.msk [vmem:[%s1550_s4 + $0x28] sm:$0xf] %vm786_vm1, %v899_v23  ;;  %813 = vst.msk [vmem:[%s1550_s4 + $0x68] sm:$0xf] %vm786_vm1, %v915_v9  ;;  %v900_v2 = vpack.c.bf16 %v637_v24, %v637_v24  ;;  %v951_v34 = vunpack.c.l.bf16 %v991_v38  ;;  %v979_v18 = vunpack.c.l.bf16 %v998_v63 }
 0x103   :  { %v916_v32 = vpack.c.bf16 %v653_v40, %v653_v40  ;;  %795 = vst.msk [vmem:[%s1550_s4 + $0x20] sm:$0xf] %vm786_vm1, %v897_v0  ;;  %811 = vst.msk [vmem:[%s1550_s4 + $0x60] sm:$0xf] %vm786_vm1, %v913_v1  ;;  %v898_v3 = vpack.c.bf16 %v635_v11, %v635_v11  ;;  %v522_v45 = vld [vmem:[#allocation2 + $0xf0] sm:$0xff]  ;;  %v544_v27 = vadd.f32 %v1228_v42, %v506_v44  ;;  %v504_v54 = vld [vmem:[#allocation2 + $0x60] sm:$0xff]  ;;  %v948_v19 = vunpack.c.h.bf16 %v990_v10 }
 0x104   :  { %v914_v4 = vpack.c.bf16 %v651_v61, %v651_v61  ;;  %798 = vst.msk [vmem:[%s1550_s4 + $0x2c] sm:$0xf] %vm786_vm1, %v900_v2  ;;  %v560_v47 = vadd.f32 %v1228_v42, %v522_v45  ;;  %v542_v14 = vadd.f32 %v1228_v42, %v504_v54  ;;  %v980_v20 = vunpack.c.h.bf16 %v998_v63 }
 0x105   :  { %814 = vst.msk [vmem:[%s1550_s4 + $0x6c] sm:$0xf] %vm786_vm1, %v916_v32  ;;  %v520_v55 = vld [vmem:[#allocation2 + $0xe0] sm:$0xff]  ;;  %796 = vst.msk [vmem:[%s1550_s4 + $0x24] sm:$0xf] %vm786_vm1, %v898_v3  ;;  %v507_v16 = vld [vmem:[#allocation2 + $0x78] sm:$0xff]  ;;  %v640_v26 = vadd.f32 %v951_v34, %v544_v27 }
 0x106   :  { %812 = vst.msk [vmem:[%s1550_s4 + $0x64] sm:$0xf] %vm786_vm1, %v914_v4  ;;  %v558_v15 = vadd.f32 %v1228_v42, %v520_v55  ;;  %v523_v25 = vld [vmem:[#allocation2 + $0xf8] sm:$0xff]  ;;  %v656_v28 = vadd.f32 %v983_v12, %v560_v47  ;;  %v545_v35 = vadd.f32 %v1228_v42, %v507_v16  ;;  %v638_v49 = vadd.f32 %v947_v17, %v542_v14 }
 0x107   :  { %v561_v29 = vadd.f32 %v1228_v42, %v523_v25  ;;  %v505_v30 = vld [vmem:[#allocation2 + $0x68] sm:$0xff]  ;;  %v903_v41 = vpack.c.bf16 %v640_v26, %v640_v26 }
 0x108   :  { %v521_v48 = vld [vmem:[#allocation2 + $0xe8] sm:$0xff]  ;;  %v654_v36 = vadd.f32 %v979_v18, %v558_v15  ;;  %v543_v37 = vadd.f32 %v1228_v42, %v505_v30  ;;  %v919_v43 = vpack.c.bf16 %v656_v28, %v656_v28  ;;  %v641_v57 = vadd.f32 %v952_v13, %v545_v35 }
 0x109   :  { %v559_v39 = vadd.f32 %v1228_v42, %v521_v48  ;;  %v657_v46 = vadd.f32 %v984_v56, %v561_v29  ;;  %v901_v58 = vpack.c.bf16 %v638_v49, %v638_v49  ;;  %801 = vst.msk [vmem:[%s1550_s4 + $0x38] sm:$0xf] %vm786_vm1, %v903_v41 }
 0x10a   :  { %v917_v50 = vpack.c.bf16 %v654_v36, %v654_v36  ;;  %v639_v51 = vadd.f32 %v948_v19, %v543_v37  ;;  %817 = vst.msk [vmem:[%s1550_s4 + $0x78] sm:$0xf] %vm786_vm1, %v919_v43  ;;  %v904_v53 = vpack.c.bf16 %v641_v57, %v641_v57 }
 0x10b   :  { %v655_v52 = vadd.f32 %v980_v20, %v559_v39  ;;  %v920_v42 = vpack.c.bf16 %v657_v46, %v657_v46  ;;  %799 = vst.msk [vmem:[%s1550_s4 + $0x30] sm:$0xf] %vm786_vm1, %v901_v58 }
 0x10c   :  { %815 = vst.msk [vmem:[%s1550_s4 + $0x70] sm:$0xf] %vm786_vm1, %v917_v50  ;;  %v902_v59 = vpack.c.bf16 %v639_v51, %v639_v51  ;;  %802 = vst.msk [vmem:[%s1550_s4 + $0x3c] sm:$0xf] %vm786_vm1, %v904_v53 }
 0x10d   :  { %v918_v60 = vpack.c.bf16 %v655_v52, %v655_v52  ;;  %818 = vst.msk [vmem:[%s1550_s4 + $0x7c] sm:$0xf] %vm786_vm1, %v920_v42 }
 0x10e   :  { %800 = vst.msk [vmem:[%s1550_s4 + $0x34] sm:$0xf] %vm786_vm1, %v902_v59 }
 0x10f   :  { %816 = vst.msk [vmem:[%s1550_s4 + $0x74] sm:$0xf] %vm786_vm1, %v918_v60 }

// kernel: _lambda_.16
= control target key start
LH: loop header
LB: loop body
LE: loop exit
PB: predicated region body
PF: predicated region fallthrough
CT: control target
= control target key end

     0   :  { %vm88_vm0 = vcmask 261120   ;;  %vm984_vm1 = vcmask 257024   ;;  %s2037_s0 = inlined_call_operand.vmem [shape: bf16[256,32], index: 0, kind: input, shape index: {}]   ;;  %s2038_s3 = inlined_call_operand.vmem [shape: bf16[32,32], index: 3, kind: input, shape index: {}]   ;;  %s2039_s1 = inlined_call_operand.vmem [shape: f32[1,32], index: 1, kind: input, shape index: {}]   ;;  %s2040_s2 = inlined_call_operand.vmem [shape: f32[1,32], index: 2, kind: input, shape index: {}]   ;;  %s2041_s4 = inlined_call_operand.vmem [shape: bf16[256,32], index: 4, kind: output, shape index: {}]  }
   0x1   :  { %v1336_v0 = vld [vmem:[%s2037_s0] sm:$0xff]   ;;  %v1350_v6 = vld [vmem:[%s2037_s0 + $0x8] sm:$0xff]   ;;  %v1382_v18 = vld [vmem:[%s2037_s0 + $0x10] sm:$0xff]  }
   0x2   :  { %v1341_v1 = vld [vmem:[%s2037_s0 + $0x40] sm:$0xff]   ;;  %v1107_v2 = vunpack.c.l.bf16 %v1336_v0  ;;  %v1108_v4 = vunpack.c.h.bf16 %v1336_v0  ;;  %v1111_v11 = vunpack.c.l.bf16 %v1350_v6  ;;  %v1112_v12 = vunpack.c.h.bf16 %v1350_v6  ;;  %v1369_v13 = vld [vmem:[%s2037_s0 + $0x48] sm:$0xff]   ;;  %v1395_v23 = vld [vmem:[%s2037_s0 + $0x50] sm:$0xff]  }
   0x3   :  { %v1139_v3 = vunpack.c.l.bf16 %v1341_v1  ;;  %v1140_v5 = vunpack.c.h.bf16 %v1341_v1  ;;  %v1143_v16 = vunpack.c.l.bf16 %v1369_v13  ;;  %v1144_v17 = vunpack.c.h.bf16 %v1369_v13  ;;  %v1408_v28 = vld [vmem:[%s2037_s0 + $0x18] sm:$0xff]   ;;  %v1434_v38 = vld [vmem:[%s2037_s0 + $0x20] sm:$0xff]   ;;  %v1460_v48 = vld [vmem:[%s2037_s0 + $0x28] sm:$0xff]  }
   0x4   :  { %v89_v7 = vsel %vm88_vm0, %v1107_v2, 0.0  ;;  %v92_v9 = vsel %vm88_vm0, %v1108_v4, 0.0  ;;  %v95_v14 = vsel %vm88_vm0, %v1111_v11, 0.0  ;;  %v98_v15 = vsel %vm88_vm0, %v1112_v12, 0.0  ;;  %v1421_v33 = vld [vmem:[%s2037_s0 + $0x58] sm:$0xff]   ;;  %v1447_v43 = vld [vmem:[%s2037_s0 + $0x60] sm:$0xff]  }
   0x5   :  { %v137_v8 = vsel %vm88_vm0, %v1139_v3, 0.0  ;;  %90 = vadd.xlane.f32.xlu0 %v89_v7  ;;  %v140_v10 = vsel %vm88_vm0, %v1140_v5, 0.0  ;;  %v143_v19 = vsel %vm88_vm0, %v1143_v16, 0.0  ;;  %v146_v20 = vsel %vm88_vm0, %v1144_v17, 0.0  ;;  %v1473_v53 = vld [vmem:[%s2037_s0 + $0x68] sm:$0xff]   ;;  %v1486_v58 = vld [vmem:[%s2037_s0 + $0x30] sm:$0xff]  }
   0x6   :  { %138 = vadd.xlane.f32.xlu1 %v137_v8  ;;  %v1115_v21 = vunpack.c.l.bf16 %v1382_v18  ;;  %v1116_v22 = vunpack.c.h.bf16 %v1382_v18  ;;  %v1147_v26 = vunpack.c.l.bf16 %v1395_v23  ;;  %v1148_v27 = vunpack.c.h.bf16 %v1395_v23  ;;  %v1499_v63 = vld [vmem:[%s2037_s0 + $0x70] sm:$0xff]  }
   0x7   :  { %v1119_v31 = vunpack.c.l.bf16 %v1408_v28  ;;  %v1120_v32 = vunpack.c.h.bf16 %v1408_v28  ;;  %v1151_v36 = vunpack.c.l.bf16 %v1421_v33  ;;  %v1152_v37 = vunpack.c.h.bf16 %v1421_v33 }
   0x8   :  { %v101_v24 = vsel %vm88_vm0, %v1115_v21, 0.0  ;;  %v104_v25 = vsel %vm88_vm0, %v1116_v22, 0.0  ;;  %v149_v29 = vsel %vm88_vm0, %v1147_v26, 0.0  ;;  %v152_v30 = vsel %vm88_vm0, %v1148_v27, 0.0 }
   0x9   :  { %93 = vadd.xlane.f32.xlu0 %v92_v9  ;;  %v107_v34 = vsel %vm88_vm0, %v1119_v31, 0.0  ;;  %v110_v35 = vsel %vm88_vm0, %v1120_v32, 0.0  ;;  %v155_v39 = vsel %vm88_vm0, %v1151_v36, 0.0  ;;  %v158_v40 = vsel %vm88_vm0, %v1152_v37, 0.0 }
   0xa   :  { %141 = vadd.xlane.f32.xlu1 %v140_v10  ;;  %v1123_v41 = vunpack.c.l.bf16 %v1434_v38  ;;  %v1124_v42 = vunpack.c.h.bf16 %v1434_v38  ;;  %v1155_v46 = vunpack.c.l.bf16 %v1447_v43  ;;  %v1156_v47 = vunpack.c.h.bf16 %v1447_v43 }
   0xb   :  { %v1127_v51 = vunpack.c.l.bf16 %v1460_v48  ;;  %v1128_v52 = vunpack.c.h.bf16 %v1460_v48  ;;  %v1159_v56 = vunpack.c.l.bf16 %v1473_v53  ;;  %v1160_v57 = vunpack.c.h.bf16 %v1473_v53 }
   0xc   :  { %v113_v44 = vsel %vm88_vm0, %v1123_v41, 0.0  ;;  %v116_v45 = vsel %vm88_vm0, %v1124_v42, 0.0  ;;  %v161_v49 = vsel %vm88_vm0, %v1155_v46, 0.0  ;;  %v164_v50 = vsel %vm88_vm0, %v1156_v47, 0.0 }
   0xd   :  { %96 = vadd.xlane.f32.xlu0 %v95_v14  ;;  %v119_v54 = vsel %vm88_vm0, %v1127_v51, 0.0  ;;  %v122_v55 = vsel %vm88_vm0, %v1128_v52, 0.0  ;;  %v167_v59 = vsel %vm88_vm0, %v1159_v56, 0.0  ;;  %v170_v60 = vsel %vm88_vm0, %v1160_v57, 0.0  ;;  %v1512_v14 = vld [vmem:[%s2037_s0 + $0x38] sm:$0xff]  }
   0xe   :  { %99 = vadd.xlane.f32.xlu1 %v98_v15  ;;  %v1131_v61 = vunpack.c.l.bf16 %v1486_v58  ;;  %v1132_v62 = vunpack.c.h.bf16 %v1486_v58  ;;  %v1163_v9 = vunpack.c.l.bf16 %v1499_v63  ;;  %v1164_v10 = vunpack.c.h.bf16 %v1499_v63 }
  0x10   :  { %v125_v7 = vsel %vm88_vm0, %v1131_v61, 0.0  ;;  %v128_v8 = vsel %vm88_vm0, %v1132_v62, 0.0  ;;  %v173_v15 = vsel %vm88_vm0, %v1163_v9, 0.0 }
  0x11   :  { %144 = vadd.xlane.f32.xlu0 %v143_v19  ;;  %v176_v19 = vsel %vm88_vm0, %v1164_v10, 0.0 }
  0x12   :  { %147 = vadd.xlane.f32.xlu1 %v146_v20  ;;  %v1135_v20 = vunpack.c.l.bf16 %v1512_v14 }
  0x15   :  { %102 = vadd.xlane.f32.xlu0 %v101_v24  ;;  %v1136_v24 = vunpack.c.h.bf16 %v1512_v14 }
  0x16   :  { %105 = vadd.xlane.f32.xlu1 %v104_v25  ;;  %v1525_v25 = vld [vmem:[%s2037_s0 + $0x78] sm:$0xff]  }
  0x19   :  { %150 = vadd.xlane.f32.xlu0 %v149_v29  ;;  %v131_v29 = vsel %vm88_vm0, %v1135_v20, 0.0 }
  0x1a   :  { %153 = vadd.xlane.f32.xlu1 %v152_v30  ;;  %v134_v30 = vsel %vm88_vm0, %v1136_v24, 0.0 }
  0x1d   :  { %108 = vadd.xlane.f32.xlu0 %v107_v34  ;;  %v1167_v34 = vunpack.c.l.bf16 %v1525_v25 }
  0x1e   :  { %111 = vadd.xlane.f32.xlu1 %v110_v35  ;;  %v1168_v35 = vunpack.c.h.bf16 %v1525_v25 }
  0x21   :  { %156 = vadd.xlane.f32.xlu0 %v155_v39  ;;  %v179_v39 = vsel %vm88_vm0, %v1167_v34, 0.0 }
  0x22   :  { %159 = vadd.xlane.f32.xlu1 %v158_v40  ;;  %v182_v40 = vsel %vm88_vm0, %v1168_v35, 0.0 }
  0x25   :  { %114 = vadd.xlane.f32.xlu0 %v113_v44 }
  0x26   :  { %117 = vadd.xlane.f32.xlu1 %v116_v45 }
  0x29   :  { %162 = vadd.xlane.f32.xlu0 %v161_v49 }
  0x2a   :  { %165 = vadd.xlane.f32.xlu1 %v164_v50 }
  0x2d   :  { %120 = vadd.xlane.f32.xlu0 %v119_v54 }
  0x2e   :  { %123 = vadd.xlane.f32.xlu1 %v122_v55 }
  0x31   :  { %168 = vadd.xlane.f32.xlu0 %v167_v59 }
  0x32   :  { %171 = vadd.xlane.f32.xlu1 %v170_v60 }
  0x35   :  { %126 = vadd.xlane.f32.xlu0 %v125_v7 }
  0x36   :  { %129 = vadd.xlane.f32.xlu1 %v128_v8 }
  0x39   :  { %174 = vadd.xlane.f32.xlu0 %v173_v15 }
  0x3a   :  { %177 = vadd.xlane.f32.xlu1 %v176_v19 }
  0x3d   :  { %132 = vadd.xlane.f32.xlu0 %v131_v29 }
  0x3e   :  { %135 = vadd.xlane.f32.xlu1 %v134_v30 }
  0x41   :  { %180 = vadd.xlane.f32.xlu0 %v179_v39 }
  0x42   :  { %183 = vadd.xlane.f32.xlu1 %v182_v40 }
  0x92   :  { %v91_v44 = vpop.xlane.xlu0 %90 }
  0x93   :  { %v139_v45 = vpop.xlane.xlu1 %138  ;;  %v186_v49 = vmul.f32 0.03125, %v91_v44 }
  0x94   :  { %v202_v50 = vmul.f32 0.03125, %v139_v45 }
  0x95   :  { %v1543_v54 = vsub.f32 %v1107_v2, %v186_v49 }
  0x96   :  { %v1547_v55 = vsub.f32 %v1139_v3, %v202_v50  ;;  %v94_v59 = vpop.xlane.xlu0 %93 }
  0x97   :  { %v142_v60 = vpop.xlane.xlu1 %141  ;;  %v187_v7 = vmul.f32 0.03125, %v94_v59  ;;  %v250_v15 = vmul.f32 %v1543_v54, %v1543_v54 }
  0x98   :  { %v203_v8 = vmul.f32 0.03125, %v142_v60  ;;  %v266_v19 = vmul.f32 %v1547_v55, %v1547_v55 }
  0x99   :  { %v1555_v29 = vsub.f32 %v1108_v4, %v187_v7  ;;  %v282_v3 = vsel %vm88_vm0, %v250_v15, 0.0 }
  0x9a   :  { %v1559_v2 = vsub.f32 %v1140_v5, %v203_v8  ;;  %283 = vadd.xlane.f32.xlu0 %v282_v3  ;;  %v97_v30 = vpop.xlane.xlu0 %96  ;;  %v330_v40 = vsel %vm88_vm0, %v266_v19, 0.0 }
  0x9b   :  { %v100_v39 = vpop.xlane.xlu1 %99  ;;  %v188_v44 = vmul.f32 0.03125, %v97_v30  ;;  %v251_v49 = vmul.f32 %v1555_v29, %v1555_v29 }
  0x9c   :  { %v189_v45 = vmul.f32 0.03125, %v100_v39  ;;  %v267_v0 = vmul.f32 %v1559_v2, %v1559_v2 }
  0x9d   :  { %v1569_v1 = vsub.f32 %v1111_v11, %v188_v44  ;;  %v285_v5 = vsel %vm88_vm0, %v251_v49, 0.0 }
  0x9e   :  { %v1573_v4 = vsub.f32 %v1112_v12, %v189_v45  ;;  %331 = vadd.xlane.f32.xlu0 %v330_v40  ;;  %286 = vadd.xlane.f32.xlu1 %v285_v5  ;;  %v145_v50 = vpop.xlane.xlu0 %144  ;;  %v333_v60 = vsel %vm88_vm0, %v267_v0, 0.0 }
  0x9f   :  { %v148_v59 = vpop.xlane.xlu1 %147  ;;  %v204_v7 = vmul.f32 0.03125, %v145_v50  ;;  %v252_v15 = vmul.f32 %v1569_v1, %v1569_v1 }
  0xa0   :  { %v205_v8 = vmul.f32 0.03125, %v148_v59  ;;  %v253_v11 = vmul.f32 %v1573_v4, %v1573_v4 }
  0xa1   :  { %v1583_v6 = vsub.f32 %v1143_v16, %v204_v7  ;;  %v288_v19 = vsel %vm88_vm0, %v252_v15, 0.0 }
  0xa2   :  { %v1587_v12 = vsub.f32 %v1144_v17, %v205_v8  ;;  %334 = vadd.xlane.f32.xlu1 %v333_v60  ;;  %289 = vadd.xlane.f32.xlu0 %v288_v19  ;;  %v103_v3 = vpop.xlane.xlu0 %102  ;;  %v291_v39 = vsel %vm88_vm0, %v253_v11, 0.0 }
  0xa3   :  { %v106_v30 = vpop.xlane.xlu1 %105  ;;  %v190_v40 = vmul.f32 0.03125, %v103_v3  ;;  %v268_v45 = vmul.f32 %v1583_v6, %v1583_v6 }
  0xa4   :  { %v191_v44 = vmul.f32 0.03125, %v106_v30  ;;  %v269_v16 = vmul.f32 %v1587_v12, %v1587_v12 }
  0xa5   :  { %v1597_v13 = vsub.f32 %v1115_v21, %v190_v40  ;;  %v336_v49 = vsel %vm88_vm0, %v268_v45, 0.0 }
  0xa6   :  { %v1601_v17 = vsub.f32 %v1116_v22, %v191_v44  ;;  %292 = vadd.xlane.f32.xlu1 %v291_v39  ;;  %337 = vadd.xlane.f32.xlu0 %v336_v49  ;;  %v151_v0 = vpop.xlane.xlu0 %150  ;;  %v339_v50 = vsel %vm88_vm0, %v269_v16, 0.0 }
  0xa7   :  { %v154_v5 = vpop.xlane.xlu1 %153  ;;  %v206_v59 = vmul.f32 0.03125, %v151_v0  ;;  %v254_v7 = vmul.f32 %v1597_v13, %v1597_v13 }
  0xa8   :  { %v207_v60 = vmul.f32 0.03125, %v154_v5  ;;  %v255_v21 = vmul.f32 %v1601_v17, %v1601_v17 }
  0xa9   :  { %v1611_v18 = vsub.f32 %v1147_v26, %v206_v59  ;;  %v294_v8 = vsel %vm88_vm0, %v254_v7, 0.0 }
  0xaa   :  { %v1615_v22 = vsub.f32 %v1148_v27, %v207_v60  ;;  %340 = vadd.xlane.f32.xlu1 %v339_v50  ;;  %295 = vadd.xlane.f32.xlu0 %v294_v8  ;;  %v109_v15 = vpop.xlane.xlu0 %108  ;;  %v297_v19 = vsel %vm88_vm0, %v255_v21, 0.0 }
  0xab   :  { %v112_v11 = vpop.xlane.xlu1 %111  ;;  %v192_v3 = vmul.f32 0.03125, %v109_v15  ;;  %v270_v39 = vmul.f32 %v1611_v18, %v1611_v18 }
  0xac   :  { %v193_v30 = vmul.f32 0.03125, %v112_v11  ;;  %v271_v26 = vmul.f32 %v1615_v22, %v1615_v22 }
  0xad   :  { %v1625_v23 = vsub.f32 %v1119_v31, %v192_v3  ;;  %v342_v40 = vsel %vm88_vm0, %v270_v39, 0.0 }
  0xae   :  { %v1629_v27 = vsub.f32 %v1120_v32, %v193_v30  ;;  %298 = vadd.xlane.f32.xlu1 %v297_v19  ;;  %343 = vadd.xlane.f32.xlu0 %v342_v40  ;;  %v157_v44 = vpop.xlane.xlu0 %156  ;;  %v345_v16 = vsel %vm88_vm0, %v271_v26, 0.0 }
  0xaf   :  { %v160_v45 = vpop.xlane.xlu1 %159  ;;  %v208_v49 = vmul.f32 0.03125, %v157_v44  ;;  %v256_v5 = vmul.f32 %v1625_v23, %v1625_v23 }
  0xb0   :  { %v209_v0 = vmul.f32 0.03125, %v160_v45  ;;  %v257_v31 = vmul.f32 %v1629_v27, %v1629_v27 }
  0xb1   :  { %v1639_v28 = vsub.f32 %v1151_v36, %v208_v49  ;;  %v300_v50 = vsel %vm88_vm0, %v256_v5, 0.0 }
  0xb2   :  { %v1643_v32 = vsub.f32 %v1152_v37, %v209_v0  ;;  %346 = vadd.xlane.f32.xlu1 %v345_v16  ;;  %301 = vadd.xlane.f32.xlu0 %v300_v50  ;;  %v115_v59 = vpop.xlane.xlu0 %114  ;;  %v303_v7 = vsel %vm88_vm0, %v257_v31, 0.0 }
  0xb3   :  { %v118_v60 = vpop.xlane.xlu1 %117  ;;  %v194_v21 = vmul.f32 0.03125, %v115_v59  ;;  %v272_v15 = vmul.f32 %v1639_v28, %v1639_v28 }
  0xb4   :  { %v195_v8 = vmul.f32 0.03125, %v118_v60  ;;  %v273_v36 = vmul.f32 %v1643_v32, %v1643_v32 }
  0xb5   :  { %v1653_v33 = vsub.f32 %v1123_v41, %v194_v21  ;;  %v348_v11 = vsel %vm88_vm0, %v272_v15, 0.0 }
  0xb6   :  { %v1657_v37 = vsub.f32 %v1124_v42, %v195_v8  ;;  %304 = vadd.xlane.f32.xlu1 %v303_v7  ;;  %349 = vadd.xlane.f32.xlu0 %v348_v11  ;;  %v163_v19 = vpop.xlane.xlu0 %162  ;;  %v351_v30 = vsel %vm88_vm0, %v273_v36, 0.0 }
  0xb7   :  { %v166_v3 = vpop.xlane.xlu1 %165  ;;  %v210_v39 = vmul.f32 0.03125, %v163_v19  ;;  %v258_v40 = vmul.f32 %v1653_v33, %v1653_v33 }
  0xb8   :  { %v211_v26 = vmul.f32 0.03125, %v166_v3  ;;  %v259_v41 = vmul.f32 %v1657_v37, %v1657_v37 }
  0xb9   :  { %v1667_v38 = vsub.f32 %v1155_v46, %v210_v39  ;;  %v306_v44 = vsel %vm88_vm0, %v258_v40, 0.0 }
  0xba   :  { %v1671_v42 = vsub.f32 %v1156_v47, %v211_v26  ;;  %352 = vadd.xlane.f32.xlu1 %v351_v30  ;;  %307 = vadd.xlane.f32.xlu0 %v306_v44  ;;  %v121_v45 = vpop.xlane.xlu0 %120  ;;  %v309_v49 = vsel %vm88_vm0, %v259_v41, 0.0 }
  0xbb   :  { %v124_v16 = vpop.xlane.xlu1 %123  ;;  %v196_v0 = vmul.f32 0.03125, %v121_v45  ;;  %v274_v31 = vmul.f32 %v1667_v38, %v1667_v38 }
  0xbc   :  { %v197_v5 = vmul.f32 0.03125, %v124_v16  ;;  %v275_v46 = vmul.f32 %v1671_v42, %v1671_v42 }
  0xbd   :  { %v1681_v43 = vsub.f32 %v1127_v51, %v196_v0  ;;  %v354_v50 = vsel %vm88_vm0, %v274_v31, 0.0 }
  0xbe   :  { %v1685_v47 = vsub.f32 %v1128_v52, %v197_v5  ;;  %310 = vadd.xlane.f32.xlu1 %v309_v49  ;;  %355 = vadd.xlane.f32.xlu0 %v354_v50  ;;  %v169_v59 = vpop.xlane.xlu0 %168  ;;  %v357_v7 = vsel %vm88_vm0, %v275_v46, 0.0 }
  0xbf   :  { %v172_v60 = vpop.xlane.xlu1 %171  ;;  %v212_v21 = vmul.f32 0.03125, %v169_v59  ;;  %v260_v15 = vmul.f32 %v1681_v43, %v1681_v43  ;;  %v1242_v59 = vld [vmem:[%s2038_s3] sm:$0xff]  }
  0xc0   :  { %v213_v8 = vmul.f32 0.03125, %v172_v60  ;;  %v261_v51 = vmul.f32 %v1685_v47, %v1685_v47  ;;  %1202 = vmatprep.subr.bf16.mxu0 %v1242_v59  ;;  %1238 = vmatprep.subr.bf16.mxu1 %v1242_v59 }
  0xc1   :  { %v1695_v48 = vsub.f32 %v1159_v56, %v212_v21  ;;  %v312_v36 = vsel %vm88_vm0, %v260_v15, 0.0  ;;  %1203 = vmatpush3.bf16.msra.mxu0 %v1242_v59  ;;  %1240 = vmatpush3.bf16.msra.mxu1 %v1242_v59 }
  0xc2   :  { %v1699_v52 = vsub.f32 %v1160_v57, %v213_v8  ;;  %358 = vadd.xlane.f32.xlu1 %v357_v7  ;;  %313 = vadd.xlane.f32.xlu0 %v312_v36  ;;  %v127_v11 = vpop.xlane.xlu0 %126  ;;  %v315_v3 = vsel %vm88_vm0, %v261_v51, 0.0 }
  0xc3   :  { %v130_v19 = vpop.xlane.xlu1 %129  ;;  %v198_v30 = vmul.f32 0.03125, %v127_v11  ;;  %v276_v26 = vmul.f32 %v1695_v48, %v1695_v48  ;;  %v1243_v11 = vld [vmem:[%s2038_s3 + $0x8] sm:$0xff]  }
  0xc4   :  { %v199_v39 = vmul.f32 0.03125, %v130_v19  ;;  %v277_v56 = vmul.f32 %v1699_v52, %v1699_v52  ;;  %1204 = vmatprep.subr.bf16.mxu0 %v1243_v11  ;;  %1239 = vmatprep.subr.bf16.mxu1 %v1243_v11 }
  0xc5   :  { %v1709_v53 = vsub.f32 %v1131_v61, %v198_v30  ;;  %v360_v40 = vsel %vm88_vm0, %v276_v26, 0.0  ;;  %1205 = vmatpush3.bf16.msra.mxu0 %v1243_v11  ;;  %1241 = vmatpush3.bf16.msra.mxu1 %v1243_v11 }
  0xc6   :  { %v1713_v57 = vsub.f32 %v1132_v62, %v199_v39  ;;  %316 = vadd.xlane.f32.xlu1 %v315_v3  ;;  %361 = vadd.xlane.f32.xlu0 %v360_v40  ;;  %v175_v41 = vpop.xlane.xlu0 %174  ;;  %v363_v45 = vsel %vm88_vm0, %v277_v56, 0.0 }
  0xc7   :  { %v178_v44 = vpop.xlane.xlu1 %177  ;;  %v214_v16 = vmul.f32 0.03125, %v175_v41  ;;  %v262_v0 = vmul.f32 %v1709_v53, %v1709_v53 }
  0xc8   :  { %v215_v49 = vmul.f32 0.03125, %v178_v44  ;;  %v263_v61 = vmul.f32 %v1713_v57, %v1713_v57 }
  0xc9   :  { %v1723_v58 = vsub.f32 %v1163_v9, %v214_v16  ;;  %v318_v5 = vsel %vm88_vm0, %v262_v0, 0.0 }
  0xca   :  { %v1727_v62 = vsub.f32 %v1164_v10, %v215_v49  ;;  %364 = vadd.xlane.f32.xlu1 %v363_v45  ;;  %319 = vadd.xlane.f32.xlu0 %v318_v5  ;;  %v133_v31 = vpop.xlane.xlu0 %132  ;;  %v321_v50 = vsel %vm88_vm0, %v263_v61, 0.0 }
  0xcb   :  { %v136_v46 = vpop.xlane.xlu1 %135  ;;  %v200_v60 = vmul.f32 0.03125, %v133_v31  ;;  %v278_v9 = vmul.f32 %v1723_v58, %v1723_v58 }
  0xcc   :  { %v201_v7 = vmul.f32 0.03125, %v136_v46  ;;  %v279_v63 = vmul.f32 %v1727_v62, %v1727_v62 }
  0xcd   :  { %v1740_v10 = vsub.f32 %v1135_v20, %v200_v60  ;;  %v366_v8 = vsel %vm88_vm0, %v278_v9, 0.0 }
  0xce   :  { %v1744_v21 = vsub.f32 %v1136_v24, %v201_v7  ;;  %322 = vadd.xlane.f32.xlu1 %v321_v50  ;;  %367 = vadd.xlane.f32.xlu0 %v366_v8  ;;  %v181_v15 = vpop.xlane.xlu0 %180  ;;  %v369_v36 = vsel %vm88_vm0, %v279_v63, 0.0 }
  0xcf   :  { %v184_v51 = vpop.xlane.xlu1 %183  ;;  %v216_v20 = vmul.f32 0.03125, %v181_v15  ;;  %v264_v14 = vmul.f32 %v1740_v10, %v1740_v10 }
  0xd0   :  { %v217_v19 = vmul.f32 0.03125, %v184_v51  ;;  %v265_v24 = vmul.f32 %v1744_v21, %v1744_v21 }
  0xd1   :  { %v1757_v3 = vsub.f32 %v1167_v34, %v216_v20  ;;  %v324_v39 = vsel %vm88_vm0, %v264_v14, 0.0 }
  0xd2   :  { %v1761_v30 = vsub.f32 %v1168_v35, %v217_v19  ;;  %370 = vadd.xlane.f32.xlu1 %v369_v36  ;;  %325 = vadd.xlane.f32.xlu0 %v324_v39  ;;  %v327_v26 = vsel %vm88_vm0, %v265_v24, 0.0  ;;  %v1775_v24 = vld [vmem:[%s2039_s1] ss:$0 sm:$0xff] }
  0xd3   :  { %v280_v56 = vmul.f32 %v1757_v3, %v1757_v3 }
  0xd4   :  { %v281_v40 = vmul.f32 %v1761_v30, %v1761_v30 }
  0xd5   :  { %v372_v34 = vsel %vm88_vm0, %v280_v56, 0.0 }
  0xd6   :  { %328 = vadd.xlane.f32.xlu1 %v327_v26  ;;  %373 = vadd.xlane.f32.xlu0 %v372_v34  ;;  %v375_v25 = vsel %vm88_vm0, %v281_v40, 0.0 }
  0xda   :  { %376 = vadd.xlane.f32.xlu1 %v375_v25 }
 0x127   :  { %v284_v35 = vpop.xlane.xlu0 %283 }
 0x128   :  { %v378_v41 = vmul.f32 0.03125, %v284_v35 }
 0x12a   :  { %v410_v44 = vadd.f32 1e-05, %v378_v41 }
 0x12b   :  { %v287_v45 = vpop.xlane.xlu1 %286  ;;  %v332_v16 = vpop.xlane.xlu0 %331 }
 0x12c   :  { %1244 = vrsqrt.f32 %v410_v44  ;;  %v379_v49 = vmul.f32 0.03125, %v287_v45  ;;  %v394_v0 = vmul.f32 0.03125, %v332_v16  ;;  %v1782_v45 = vld [vmem:[%s2040_s2] ss:$0 sm:$0xff] }
 0x12e   :  { %v411_v61 = vadd.f32 1e-05, %v379_v49  ;;  %v426_v5 = vadd.f32 1e-05, %v394_v0 }
 0x12f   :  { %v335_v31 = vpop.xlane.xlu1 %334  ;;  %v290_v46 = vpop.xlane.xlu0 %289 }
 0x130   :  { %1246 = vrsqrt.f32 %v411_v61  ;;  %v395_v50 = vmul.f32 0.03125, %v335_v31  ;;  %v380_v59 = vmul.f32 0.03125, %v290_v46 }
 0x131   :  { %1248 = vrsqrt.f32 %v426_v5 }
 0x132   :  { %v427_v60 = vadd.f32 1e-05, %v395_v50  ;;  %v412_v7 = vadd.f32 1e-05, %v380_v59 }
 0x133   :  { %v293_v9 = vpop.xlane.xlu1 %292  ;;  %v338_v63 = vpop.xlane.xlu0 %337 }
 0x134   :  { %1250 = vrsqrt.f32 %v427_v60  ;;  %v381_v8 = vmul.f32 0.03125, %v293_v9  ;;  %v396_v15 = vmul.f32 0.03125, %v338_v63 }
 0x135   :  { %1252 = vrsqrt.f32 %v412_v7 }
 0x136   :  { %v1245_v51 = vpop.eup %1244  ;;  %v413_v36 = vadd.f32 1e-05, %v381_v8  ;;  %v428_v11 = vadd.f32 1e-05, %v396_v15 }
 0x137   :  { %v474_v20 = vmul.f32 %v1245_v51, %v1543_v54  ;;  %v341_v19 = vpop.xlane.xlu1 %340  ;;  %v296_v14 = vpop.xlane.xlu0 %295 }
 0x138   :  { %1254 = vrsqrt.f32 %v413_v36  ;;  %v397_v39 = vmul.f32 0.03125, %v341_v19  ;;  %v382_v26 = vmul.f32 0.03125, %v296_v14 }
 0x139   :  { %1256 = vrsqrt.f32 %v428_v11  ;;  %v512_v35 = vmul.f32 %v1775_v24, %v474_v20 }
 0x13a   :  { %v1247_v56 = vpop.eup %1246  ;;  %v429_v40 = vadd.f32 1e-05, %v397_v39  ;;  %v414_v34 = vadd.f32 1e-05, %v382_v26 }
 0x13b   :  { %v1249_v25 = vpop.eup %1248  ;;  %v475_v41 = vmul.f32 %v1247_v56, %v1555_v29  ;;  %v299_v54 = vpop.xlane.xlu1 %298  ;;  %v550_v29 = vadd.f32 %v1782_v45, %v512_v35 }
 0x13c   :  { %v344_v44 = vpop.xlane.xlu0 %343  ;;  %v490_v16 = vmul.f32 %v1249_v25, %v1547_v55  ;;  %1258 = vrsqrt.f32 %v429_v40  ;;  %v383_v49 = vmul.f32 0.03125, %v299_v54 }
 0x13d   :  { %v398_v0 = vmul.f32 0.03125, %v344_v44  ;;  %v513_v61 = vmul.f32 %v1775_v24, %v475_v41  ;;  %1260 = vrsqrt.f32 %v414_v34 }
 0x13e   :  { %v1251_v5 = vpop.eup %1250  ;;  %v415_v31 = vadd.f32 1e-05, %v383_v49  ;;  %v528_v60 = vmul.f32 %v1775_v24, %v490_v16 }
 0x13f   :  { %v430_v46 = vadd.f32 1e-05, %v398_v0  ;;  %v1253_v50 = vpop.eup %1252  ;;  %v551_v59 = vadd.f32 %v1782_v45, %v513_v61  ;;  %v491_v7 = vmul.f32 %v1251_v5, %v1559_v2  ;;  %v347_v9 = vpop.xlane.xlu1 %346 }
 0x140   :  { %v302_v55 = vpop.xlane.xlu0 %301  ;;  %v476_v63 = vmul.f32 %v1253_v50, %v1569_v1  ;;  %1262 = vrsqrt.f32 %v415_v31  ;;  %v399_v8 = vmul.f32 0.03125, %v347_v9  ;;  %v566_v2 = vadd.f32 %v1782_v45, %v528_v60 }
 0x141   :  { %v582_v15 = vpack.c.bf16 %v551_v59, %v550_v29  ;;  %v529_v51 = vmul.f32 %v1775_v24, %v491_v7  ;;  %1264 = vrsqrt.f32 %v430_v46  ;;  %v384_v36 = vmul.f32 0.03125, %v302_v55 }
 0x142   :  { %v1255_v11 = vpop.eup %1254  ;;  %v514_v20 = vmul.f32 %v1775_v24, %v476_v63  ;;  %v431_v19 = vadd.f32 1e-05, %v399_v8 }
 0x143   :  { %v1257_v14 = vpop.eup %1256  ;;  %598 = vst.msk [vmem:[#allocation2] sm:$0xff] %vm88_vm0, %v582_v15  ;;  %v567_v39 = vadd.f32 %v1782_v45, %v529_v51  ;;  %v477_v1 = vmul.f32 %v1255_v11, %v1573_v4  ;;  %v416_v26 = vadd.f32 1e-05, %v384_v36  ;;  %v305_v56 = vpop.xlane.xlu1 %304 }
 0x144   :  { %v350_v40 = vpop.xlane.xlu0 %349  ;;  %v492_v34 = vmul.f32 %v1257_v14, %v1583_v6  ;;  %1266 = vrsqrt.f32 %v431_v19  ;;  %v385_v25 = vmul.f32 0.03125, %v305_v56  ;;  %v552_v16 = vadd.f32 %v1782_v45, %v514_v20 }
 0x145   :  { %v590_v35 = vpack.c.bf16 %v567_v39, %v566_v2  ;;  %v515_v41 = vmul.f32 %v1775_v24, %v477_v1  ;;  %1268 = vrsqrt.f32 %v416_v26  ;;  %v400_v54 = vmul.f32 0.03125, %v350_v40 }
 0x146   :  { %v1259_v44 = vpop.eup %1258  ;;  %v417_v49 = vadd.f32 1e-05, %v385_v25  ;;  %v530_v61 = vmul.f32 %v1775_v24, %v492_v34 }
 0x147   :  { %v1261_v0 = vpop.eup %1260  ;;  %606 = vst.msk [vmem:[#allocation2 + $0x40] sm:$0xff] %vm88_vm0, %v590_v35  ;;  %v553_v4 = vadd.f32 %v1782_v45, %v515_v41  ;;  %v493_v6 = vmul.f32 %v1259_v44, %v1587_v12  ;;  %v432_v5 = vadd.f32 1e-05, %v400_v54  ;;  %v353_v31 = vpop.xlane.xlu1 %352 }
 0x148   :  { %v308_v46 = vpop.xlane.xlu0 %307  ;;  %v478_v50 = vmul.f32 %v1261_v0, %v1597_v13  ;;  %1270 = vrsqrt.f32 %v417_v49  ;;  %v401_v29 = vmul.f32 0.03125, %v353_v31  ;;  %v568_v12 = vadd.f32 %v1782_v45, %v530_v61 }
 0x149   :  { %v583_v59 = vpack.c.bf16 %v553_v4, %v552_v16  ;;  %v531_v60 = vmul.f32 %v1775_v24, %v493_v6  ;;  %1272 = vrsqrt.f32 %v432_v5  ;;  %v386_v7 = vmul.f32 0.03125, %v308_v46 }
 0x14a   :  { %v1263_v9 = vpop.eup %1262  ;;  %v516_v55 = vmul.f32 %v1775_v24, %v478_v50  ;;  %v433_v63 = vadd.f32 1e-05, %v401_v29  ;;  %v614_v8 = vld [vmem:[#allocation2] sm:$0xff] }
 0x14b   :  { %v1265_v15 = vpop.eup %1264  ;;  %599 = vst.msk [vmem:[#allocation2 + $0x8] sm:$0xff] %vm88_vm0, %v583_v59  ;;  %v569_v51 = vadd.f32 %v1782_v45, %v531_v60  ;;  %v479_v13 = vmul.f32 %v1263_v9, %v1601_v17  ;;  %v418_v36 = vadd.f32 1e-05, %v386_v7  ;;  %v311_v11 = vpop.xlane.xlu1 %310  ;;  %1206 = vmatprep.mubr.msk.bf16.mxu0 %vm88_vm0, %v614_v8 }
 0x14c   :  { %v356_v20 = vpop.xlane.xlu0 %355  ;;  %v494_v19 = vmul.f32 %v1265_v15, %v1611_v18  ;;  %1274 = vrsqrt.f32 %v433_v63  ;;  %v387_v14 = vmul.f32 0.03125, %v311_v11  ;;  %v554_v56 = vadd.f32 %v1782_v45, %v516_v55 }
 0x14d   :  { %v591_v2 = vpack.c.bf16 %v569_v51, %v568_v12  ;;  %v517_v39 = vmul.f32 %v1775_v24, %v479_v13  ;;  %1276 = vrsqrt.f32 %v418_v36  ;;  %v402_v1 = vmul.f32 0.03125, %v356_v20 }
 0x14e   :  { %v1267_v26 = vpop.eup %1266  ;;  %v419_v40 = vadd.f32 1e-05, %v387_v14  ;;  %v622_v34 = vld [vmem:[#allocation2 + $0x40] sm:$0xff]  ;;  %v532_v35 = vmul.f32 %v1775_v24, %v494_v19 }
 0x14f   :  { %v1269_v17 = vpop.eup %1268  ;;  %607 = vst.msk [vmem:[#allocation2 + $0x48] sm:$0xff] %vm88_vm0, %v591_v2  ;;  %v555_v25 = vadd.f32 %v1782_v45, %v517_v39  ;;  %v495_v18 = vmul.f32 %v1267_v26, %v1615_v22  ;;  %v434_v41 = vadd.f32 1e-05, %v402_v1  ;;  %v359_v54 = vpop.xlane.xlu1 %358  ;;  %1222 = vmatprep.mubr.msk.bf16.mxu1 %vm88_vm0, %v622_v34 }
 0x150   :  { %v314_v44 = vpop.xlane.xlu0 %313  ;;  %v480_v16 = vmul.f32 %v1269_v17, %v1625_v23  ;;  %1278 = vrsqrt.f32 %v419_v40  ;;  %v403_v49 = vmul.f32 0.03125, %v359_v54  ;;  %v570_v50 = vadd.f32 %v1782_v45, %v532_v35 }
 0x151   :  { %v584_v0 = vpack.c.bf16 %v555_v25, %v554_v56  ;;  %v533_v4 = vmul.f32 %v1775_v24, %v495_v18  ;;  %1280 = vrsqrt.f32 %v434_v41  ;;  %v388_v61 = vmul.f32 0.03125, %v314_v44 }
 0x152   :  { %v1271_v6 = vpop.eup %1270  ;;  %v518_v5 = vmul.f32 %v1775_v24, %v480_v16  ;;  %v435_v31 = vadd.f32 1e-05, %v403_v49  ;;  %v615_v46 = vld [vmem:[#allocation2 + $0x8] sm:$0xff] }
 0x153   :  { %v1273_v22 = vpop.eup %1272  ;;  %600 = vst.msk [vmem:[#allocation2 + $0x10] sm:$0xff] %vm88_vm0, %v584_v0  ;;  %v571_v29 = vadd.f32 %v1782_v45, %v533_v4  ;;  %v481_v23 = vmul.f32 %v1271_v6, %v1629_v27  ;;  %v420_v59 = vadd.f32 1e-05, %v388_v61  ;;  %v317_v60 = vpop.xlane.xlu1 %316  ;;  %1207 = vmatmul.mubr.msk.bf16.vlgmr.msra.gmra.mrb[0].mxu0 %vm88_vm0, %v615_v46 }
 0x154   :  { %v362_v7 = vpop.xlane.xlu0 %361  ;;  %v496_v9 = vmul.f32 %v1273_v22, %v1639_v28  ;;  %1282 = vrsqrt.f32 %v435_v31  ;;  %v389_v55 = vmul.f32 0.03125, %v317_v60  ;;  %v556_v51 = vadd.f32 %v1782_v45, %v518_v5 }
 0x155   :  { %v592_v63 = vpack.c.bf16 %v571_v29, %v570_v50  ;;  %v519_v8 = vmul.f32 %v1775_v24, %v481_v23  ;;  %1284 = vrsqrt.f32 %v420_v59  ;;  %v404_v15 = vmul.f32 0.03125, %v362_v7 }
 0x156   :  { %v1275_v12 = vpop.eup %1274  ;;  %v421_v13 = vadd.f32 1e-05, %v389_v55  ;;  %v623_v36 = vld [vmem:[#allocation2 + $0x48] sm:$0xff]  ;;  %v534_v20 = vmul.f32 %v1775_v24, %v496_v9 }
 0x157   :  { %v1277_v27 = vpop.eup %1276  ;;  %608 = vst.msk [vmem:[#allocation2 + $0x50] sm:$0xff] %vm88_vm0, %v592_v63  ;;  %v557_v11 = vadd.f32 %v1782_v45, %v519_v8  ;;  %v497_v28 = vmul.f32 %v1275_v12, %v1643_v32  ;;  %v436_v19 = vadd.f32 1e-05, %v404_v15  ;;  %v365_v14 = vpop.xlane.xlu1 %364  ;;  %1223 = vmatmul.mubr.msk.bf16.vlgmr.msra.gmra.mrb[0].mxu1 %vm88_vm0, %v623_v36 }
 0x158   :  { %v320_v2 = vpop.xlane.xlu0 %319  ;;  %v482_v39 = vmul.f32 %v1277_v27, %v1653_v33  ;;  %1286 = vrsqrt.f32 %v421_v13  ;;  %v405_v1 = vmul.f32 0.03125, %v365_v14  ;;  %v572_v18 = vadd.f32 %v1782_v45, %v534_v20 }
 0x159   :  { %v585_v26 = vpack.c.bf16 %v557_v11, %v556_v51  ;;  %v535_v56 = vmul.f32 %v1775_v24, %v497_v28  ;;  %1288 = vrsqrt.f32 %v436_v19  ;;  %v390_v40 = vmul.f32 0.03125, %v320_v2 }
 0x15a   :  { %v1279_v34 = vpop.eup %1278  ;;  %v520_v17 = vmul.f32 %v1775_v24, %v482_v39  ;;  %v437_v25 = vadd.f32 1e-05, %v405_v1  ;;  %v616_v35 = vld [vmem:[#allocation2 + $0x10] sm:$0xff] }
 0x15b   :  { %v1281_v32 = vpop.eup %1280  ;;  %601 = vst.msk [vmem:[#allocation2 + $0x18] sm:$0xff] %vm88_vm0, %v585_v26  ;;  %v573_v41 = vadd.f32 %v1782_v45, %v535_v56  ;;  %v483_v33 = vmul.f32 %v1279_v34, %v1657_v37  ;;  %v422_v54 = vadd.f32 1e-05, %v390_v40  ;;  %v323_v44 = vpop.xlane.xlu1 %322  ;;  %1210 = vmatprep.mubr.msk.bf16.mxu0 %vm88_vm0, %v616_v35 }
 0x15c   :  { %v368_v16 = vpop.xlane.xlu0 %367  ;;  %v498_v49 = vmul.f32 %v1281_v32, %v1667_v38  ;;  %1290 = vrsqrt.f32 %v437_v25  ;;  %v391_v0 = vmul.f32 0.03125, %v323_v44  ;;  %v558_v31 = vadd.f32 %v1782_v45, %v520_v17 }
 0x15d   :  { %v593_v4 = vpack.c.bf16 %v573_v41, %v572_v18  ;;  %v521_v61 = vmul.f32 %v1775_v24, %v483_v33  ;;  %1292 = vrsqrt.f32 %v422_v54  ;;  %v406_v6 = vmul.f32 0.03125, %v368_v16 }
 0x15e   :  { %v1283_v5 = vpop.eup %1282  ;;  %v423_v46 = vadd.f32 1e-05, %v391_v0  ;;  %v624_v22 = vld [vmem:[#allocation2 + $0x50] sm:$0xff]  ;;  %v536_v29 = vmul.f32 %v1775_v24, %v498_v49 }
 0x15f   :  { %v1285_v37 = vpop.eup %1284  ;;  %609 = vst.msk [vmem:[#allocation2 + $0x58] sm:$0xff] %vm88_vm0, %v593_v4  ;;  %v559_v50 = vadd.f32 %v1782_v45, %v521_v61  ;;  %v499_v38 = vmul.f32 %v1283_v5, %v1671_v42  ;;  %v438_v23 = vadd.f32 1e-05, %v406_v6  ;;  %v371_v59 = vpop.xlane.xlu1 %370  ;;  %1226 = vmatprep.mubr.msk.bf16.mxu1 %vm88_vm0, %v624_v22 }
 0x160   :  { %v326_v60 = vpop.xlane.xlu0 %325  ;;  %v484_v7 = vmul.f32 %v1285_v37, %v1681_v43  ;;  %1294 = vrsqrt.f32 %v423_v46  ;;  %v407_v9 = vmul.f32 0.03125, %v371_v59  ;;  %v574_v36 = vadd.f32 %v1782_v45, %v536_v29 }
 0x161   :  { %v586_v55 = vpack.c.bf16 %v559_v50, %v558_v31  ;;  %v537_v63 = vmul.f32 %v1775_v24, %v499_v38  ;;  %1296 = vrsqrt.f32 %v438_v23  ;;  %v392_v8 = vmul.f32 0.03125, %v326_v60 }
 0x162   :  { %v1287_v15 = vpop.eup %1286  ;;  %v522_v12 = vmul.f32 %v1775_v24, %v484_v7  ;;  %v439_v51 = vadd.f32 1e-05, %v407_v9  ;;  %v617_v13 = vld [vmem:[#allocation2 + $0x18] sm:$0xff] }
 0x163   :  { %v1289_v42 = vpop.eup %1288  ;;  %602 = vst.msk [vmem:[#allocation2 + $0x20] sm:$0xff] %vm88_vm0, %v586_v55  ;;  %v575_v27 = vadd.f32 %v1782_v45, %v537_v63  ;;  %v485_v43 = vmul.f32 %v1287_v15, %v1685_v47  ;;  %v424_v11 = vadd.f32 1e-05, %v392_v8  ;;  %v329_v20 = vpop.xlane.xlu1 %328  ;;  %1211 = vmatmul.mubr.msk.bf16.gmra.mrb[4].mxu0 %vm88_vm0, %v617_v13 }
 0x164   :  { %v374_v28 = vpop.xlane.xlu0 %373  ;;  %v500_v19 = vmul.f32 %v1289_v42, %v1695_v48  ;;  %1298 = vrsqrt.f32 %v439_v51  ;;  %v393_v14 = vmul.f32 0.03125, %v329_v20  ;;  %v560_v56 = vadd.f32 %v1782_v45, %v522_v12 }
 0x165   :  { %v594_v2 = vpack.c.bf16 %v575_v27, %v574_v36  ;;  %v523_v39 = vmul.f32 %v1775_v24, %v485_v43  ;;  %1300 = vrsqrt.f32 %v424_v11  ;;  %v408_v1 = vmul.f32 0.03125, %v374_v28 }
 0x166   :  { %v1291_v26 = vpop.eup %1290  ;;  %v425_v40 = vadd.f32 1e-05, %v393_v14  ;;  %v625_v34 = vld [vmem:[#allocation2 + $0x58] sm:$0xff]  ;;  %v538_v25 = vmul.f32 %v1775_v24, %v500_v19 }
 0x167   :  { %v1293_v47 = vpop.eup %1292  ;;  %610 = vst.msk [vmem:[#allocation2 + $0x60] sm:$0xff] %vm88_vm0, %v594_v2  ;;  %v561_v17 = vadd.f32 %v1782_v45, %v523_v39  ;;  %v501_v48 = vmul.f32 %v1291_v26, %v1699_v52  ;;  %v440_v35 = vadd.f32 1e-05, %v408_v1  ;;  %v377_v32 = vpop.xlane.xlu1 %376  ;;  %1227 = vmatmul.mubr.msk.bf16.gmra.mrb[4].mxu1 %vm88_vm0, %v625_v34 }
 0x168   :  { %v486_v18 = vmul.f32 %v1293_v47, %v1709_v53  ;;  %1302 = vrsqrt.f32 %v425_v40  ;;  %v409_v41 = vmul.f32 0.03125, %v377_v32  ;;  %v576_v52 = vadd.f32 %v1782_v45, %v538_v25 }
 0x169   :  { %v587_v33 = vpack.c.bf16 %v561_v17, %v560_v56  ;;  %v539_v54 = vmul.f32 %v1775_v24, %v501_v48  ;;  %1304 = vrsqrt.f32 %v440_v35 }
 0x16a   :  { %v1295_v44 = vpop.eup %1294  ;;  %v441_v16 = vadd.f32 1e-05, %v409_v41  ;;  %v618_v49 = vld [vmem:[#allocation2 + $0x20] sm:$0xff]  ;;  %v524_v61 = vmul.f32 %v1775_v24, %v486_v18 }
 0x16b   :  { %v1297_v0 = vpop.eup %1296  ;;  %603 = vst.msk [vmem:[#allocation2 + $0x28] sm:$0xff] %vm88_vm0, %v587_v33  ;;  %v577_v4 = vadd.f32 %v1782_v45, %v539_v54  ;;  %v487_v53 = vmul.f32 %v1295_v44, %v1713_v57  ;;  %1214 = vmatprep.mubr.msk.bf16.mxu0 %vm88_vm0, %v618_v49 }
 0x16c   :  { %v502_v6 = vmul.f32 %v1297_v0, %v1723_v58  ;;  %1306 = vrsqrt.f32 %v441_v16  ;;  %v562_v50 = vadd.f32 %v1782_v45, %v524_v61 }
 0x16d   :  { %v595_v5 = vpack.c.bf16 %v577_v4, %v576_v52  ;;  %v525_v31 = vmul.f32 %v1775_v24, %v487_v53 }
 0x16e   :  { %v1299_v46 = vpop.eup %1298  ;;  %v626_v22 = vld [vmem:[#allocation2 + $0x60] sm:$0xff]  ;;  %v540_v38 = vmul.f32 %v1775_v24, %v502_v6 }
 0x16f   :  { %v1301_v37 = vpop.eup %1300  ;;  %611 = vst.msk [vmem:[#allocation2 + $0x68] sm:$0xff] %vm88_vm0, %v595_v5  ;;  %v563_v29 = vadd.f32 %v1782_v45, %v525_v31  ;;  %v503_v57 = vmul.f32 %v1299_v46, %v1727_v62  ;;  %1230 = vmatprep.mubr.msk.bf16.mxu1 %vm88_vm0, %v626_v22 }
 0x170   :  { %v488_v58 = vmul.f32 %v1301_v37, %v1740_v10  ;;  %v578_v55 = vadd.f32 %v1782_v45, %v540_v38 }
 0x171   :  { %v588_v23 = vpack.c.bf16 %v563_v29, %v562_v50  ;;  %v541_v59 = vmul.f32 %v1775_v24, %v503_v57 }
 0x172   :  { %v1303_v60 = vpop.eup %1302  ;;  %v619_v7 = vld [vmem:[#allocation2 + $0x28] sm:$0xff]  ;;  %v526_v8 = vmul.f32 %v1775_v24, %v488_v58 }
 0x173   :  { %v1305_v9 = vpop.eup %1304  ;;  %604 = vst.msk [vmem:[#allocation2 + $0x30] sm:$0xff] %vm88_vm0, %v588_v23  ;;  %v579_v63 = vadd.f32 %v1782_v45, %v541_v59  ;;  %v489_v62 = vmul.f32 %v1303_v60, %v1744_v21  ;;  %1215 = vmatmul.mubr.msk.bf16.gmra.mrb[8].mxu0 %vm88_vm0, %v619_v7 }
 0x174   :  { %v504_v10 = vmul.f32 %v1305_v9, %v1757_v3  ;;  %v564_v42 = vadd.f32 %v1782_v45, %v526_v8 }
 0x175   :  { %v596_v15 = vpack.c.bf16 %v579_v63, %v578_v55  ;;  %v527_v12 = vmul.f32 %v1775_v24, %v489_v62 }
 0x176   :  { %v1307_v51 = vpop.eup %1306  ;;  %v627_v13 = vld [vmem:[#allocation2 + $0x68] sm:$0xff]  ;;  %v542_v27 = vmul.f32 %v1775_v24, %v504_v10 }
 0x177   :  { %612 = vst.msk [vmem:[#allocation2 + $0x70] sm:$0xff] %vm88_vm0, %v596_v15  ;;  %v565_v36 = vadd.f32 %v1782_v45, %v527_v12  ;;  %v505_v43 = vmul.f32 %v1307_v51, %v1761_v30  ;;  %1231 = vmatmul.mubr.msk.bf16.gmra.mrb[8].mxu1 %vm88_vm0, %v627_v13 }
 0x178   :  { %v580_v20 = vadd.f32 %v1782_v45, %v542_v27 }
 0x179   :  { %v589_v21 = vpack.c.bf16 %v565_v36, %v564_v42  ;;  %v543_v3 = vmul.f32 %v1775_v24, %v505_v43 }
 0x17a   :  { %v620_v11 = vld [vmem:[#allocation2 + $0x30] sm:$0xff] }
 0x17b   :  { %605 = vst.msk [vmem:[#allocation2 + $0x38] sm:$0xff] %vm88_vm0, %v589_v21  ;;  %v581_v28 = vadd.f32 %v1782_v45, %v543_v3  ;;  %1218 = vmatprep.mubr.msk.bf16.mxu0 %vm88_vm0, %v620_v11 }
 0x17d   :  { %v597_v19 = vpack.c.bf16 %v581_v28, %v580_v20 }
 0x17e   :  { %v628_v14 = vld [vmem:[#allocation2 + $0x70] sm:$0xff] }
 0x17f   :  { %613 = vst.msk [vmem:[#allocation2 + $0x78] sm:$0xff] %vm88_vm0, %v597_v19  ;;  %1234 = vmatprep.mubr.msk.bf16.mxu1 %vm88_vm0, %v628_v14 }
 0x182   :  { %v621_v30 = vld [vmem:[#allocation2 + $0x38] sm:$0xff] }
 0x183   :  { %1219 = vmatmul.mubr.msk.bf16.gmra.mrb[12].mxu0 %vm88_vm0, %v621_v30 }
 0x186   :  { %v629_v2 = vld [vmem:[#allocation2 + $0x78] sm:$0xff] }
 0x187   :  { %1235 = vmatmul.mubr.msk.bf16.gmra.mrb[12].mxu1 %vm88_vm0, %v629_v2 }
 0x226   :  { %v1208_v24 = vpop.f32.mrb[0].mxu0 }
 0x227   :  { %v1075_v39 = vpack.c.bf16 %v1208_v24, %v1208_v24  ;;  %v729_v1 = vpop.f32.mrb[1].mxu0 }
 0x228   :  { %v1073_v26 = vpack.c.bf16 %v729_v1, %v729_v1  ;;  %v1209_v45 = vpop.f32.mrb[2].mxu0 }
 0x229   :  { %987 = vst.msk [vmem:[%s2041_s4 + $0x8] sm:$0xf] %vm984_vm1, %v1075_v39  ;;  %v1076_v56 = vpack.c.bf16 %v1209_v45, %v1209_v45  ;;  %v732_v40 = vpop.f32.mrb[3].mxu0 }
 0x22a   :  { %985 = vst.msk [vmem:[%s2041_s4] sm:$0xf] %vm984_vm1, %v1073_v26  ;;  %v1074_v34 = vpack.c.bf16 %v732_v40, %v732_v40  ;;  %v1224_v47 = vpop.f32.mrb[0].mxu1 }
 0x22b   :  { %988 = vst.msk [vmem:[%s2041_s4 + $0xc] sm:$0xf] %vm984_vm1, %v1076_v56  ;;  %v1091_v17 = vpack.c.bf16 %v1224_v47, %v1224_v47  ;;  %v793_v25 = vpop.f32.mrb[1].mxu1 }
 0x22c   :  { %986 = vst.msk [vmem:[%s2041_s4 + $0x4] sm:$0xf] %vm984_vm1, %v1074_v34  ;;  %v1089_v48 = vpack.c.bf16 %v793_v25, %v793_v25  ;;  %v1225_v35 = vpop.f32.mrb[2].mxu1 }
 0x22d   :  { %1003 = vst.msk [vmem:[%s2041_s4 + $0x48] sm:$0xf] %vm984_vm1, %v1091_v17  ;;  %v1092_v32 = vpack.c.bf16 %v1225_v35, %v1225_v35  ;;  %v796_v18 = vpop.f32.mrb[3].mxu1 }
 0x22e   :  { %1001 = vst.msk [vmem:[%s2041_s4 + $0x40] sm:$0xf] %vm984_vm1, %v1089_v48  ;;  %v1090_v41 = vpack.c.bf16 %v796_v18, %v796_v18 }
 0x22f   :  { %1004 = vst.msk [vmem:[%s2041_s4 + $0x4c] sm:$0xf] %vm984_vm1, %v1092_v32 }
 0x230   :  { %1002 = vst.msk [vmem:[%s2041_s4 + $0x44] sm:$0xf] %vm984_vm1, %v1090_v41 }
 0x236   :  { %v1212_v33 = vpop.f32.mrb[4].mxu0 }
 0x237   :  { %v1079_v54 = vpack.c.bf16 %v1212_v33, %v1212_v33  ;;  %v745_v44 = vpop.f32.mrb[5].mxu0 }
 0x238   :  { %v1077_v16 = vpack.c.bf16 %v745_v44, %v745_v44  ;;  %v1213_v49 = vpop.f32.mrb[6].mxu0 }
 0x239   :  { %991 = vst.msk [vmem:[%s2041_s4 + $0x18] sm:$0xf] %vm984_vm1, %v1079_v54  ;;  %v1080_v0 = vpack.c.bf16 %v1213_v49, %v1213_v49  ;;  %v748_v52 = vpop.f32.mrb[7].mxu0 }
 0x23a   :  { %989 = vst.msk [vmem:[%s2041_s4 + $0x10] sm:$0xf] %vm984_vm1, %v1077_v16  ;;  %v1078_v4 = vpack.c.bf16 %v748_v52, %v748_v52  ;;  %v1228_v61 = vpop.f32.mrb[4].mxu1 }
 0x23b   :  { %992 = vst.msk [vmem:[%s2041_s4 + $0x1c] sm:$0xf] %vm984_vm1, %v1080_v0  ;;  %v1095_v53 = vpack.c.bf16 %v1228_v61, %v1228_v61  ;;  %v809_v6 = vpop.f32.mrb[5].mxu1 }
 0x23c   :  { %990 = vst.msk [vmem:[%s2041_s4 + $0x14] sm:$0xf] %vm984_vm1, %v1078_v4  ;;  %v1093_v5 = vpack.c.bf16 %v809_v6, %v809_v6  ;;  %v1229_v31 = vpop.f32.mrb[6].mxu1 }
 0x23d   :  { %1007 = vst.msk [vmem:[%s2041_s4 + $0x58] sm:$0xf] %vm984_vm1, %v1095_v53  ;;  %v1096_v46 = vpack.c.bf16 %v1229_v31, %v1229_v31  ;;  %v812_v22 = vpop.f32.mrb[7].mxu1 }
 0x23e   :  { %1005 = vst.msk [vmem:[%s2041_s4 + $0x50] sm:$0xf] %vm984_vm1, %v1093_v5  ;;  %v1094_v37 = vpack.c.bf16 %v812_v22, %v812_v22 }
 0x23f   :  { %1008 = vst.msk [vmem:[%s2041_s4 + $0x5c] sm:$0xf] %vm984_vm1, %v1096_v46 }
 0x240   :  { %1006 = vst.msk [vmem:[%s2041_s4 + $0x54] sm:$0xf] %vm984_vm1, %v1094_v37 }
 0x246   :  { %v1216_v50 = vpop.f32.mrb[8].mxu0 }
 0x247   :  { %v1083_v29 = vpack.c.bf16 %v1216_v50, %v1216_v50  ;;  %v761_v38 = vpop.f32.mrb[9].mxu0 }
 0x248   :  { %v1081_v57 = vpack.c.bf16 %v761_v38, %v761_v38  ;;  %v1217_v58 = vpop.f32.mrb[10].mxu0 }
 0x249   :  { %995 = vst.msk [vmem:[%s2041_s4 + $0x28] sm:$0xf] %vm984_vm1, %v1083_v29  ;;  %v1084_v23 = vpack.c.bf16 %v1217_v58, %v1217_v58  ;;  %v764_v59 = vpop.f32.mrb[11].mxu0 }
 0x24a   :  { %993 = vst.msk [vmem:[%s2041_s4 + $0x20] sm:$0xf] %vm984_vm1, %v1081_v57  ;;  %v1082_v60 = vpack.c.bf16 %v764_v59, %v764_v59  ;;  %v1232_v7 = vpop.f32.mrb[8].mxu1 }
 0x24b   :  { %996 = vst.msk [vmem:[%s2041_s4 + $0x2c] sm:$0xf] %vm984_vm1, %v1084_v23  ;;  %v1099_v9 = vpack.c.bf16 %v1232_v7, %v1232_v7  ;;  %v825_v55 = vpop.f32.mrb[9].mxu1 }
 0x24c   :  { %994 = vst.msk [vmem:[%s2041_s4 + $0x24] sm:$0xf] %vm984_vm1, %v1082_v60  ;;  %v1097_v63 = vpack.c.bf16 %v825_v55, %v825_v55  ;;  %v1233_v8 = vpop.f32.mrb[10].mxu1 }
 0x24d   :  { %1011 = vst.msk [vmem:[%s2041_s4 + $0x68] sm:$0xf] %vm984_vm1, %v1099_v9  ;;  %v1100_v62 = vpack.c.bf16 %v1233_v8, %v1233_v8  ;;  %v828_v10 = vpop.f32.mrb[11].mxu1 }
 0x24e   :  { %1009 = vst.msk [vmem:[%s2041_s4 + $0x60] sm:$0xf] %vm984_vm1, %v1097_v63  ;;  %v1098_v15 = vpack.c.bf16 %v828_v10, %v828_v10 }
 0x24f   :  { %1012 = vst.msk [vmem:[%s2041_s4 + $0x6c] sm:$0xf] %vm984_vm1, %v1100_v62 }
 0x250   :  { %1010 = vst.msk [vmem:[%s2041_s4 + $0x64] sm:$0xf] %vm984_vm1, %v1098_v15 }
 0x256   :  { %v1220_v12 = vpop.f32.mrb[12].mxu0 }
 0x257   :  { %v1087_v51 = vpack.c.bf16 %v1220_v12, %v1220_v12  ;;  %v777_v13 = vpop.f32.mrb[13].mxu0 }
 0x258   :  { %v1085_v42 = vpack.c.bf16 %v777_v13, %v777_v13  ;;  %v1221_v36 = vpop.f32.mrb[14].mxu0 }
 0x259   :  { %999 = vst.msk [vmem:[%s2041_s4 + $0x38] sm:$0xf] %vm984_vm1, %v1087_v51  ;;  %v1088_v27 = vpack.c.bf16 %v1221_v36, %v1221_v36  ;;  %v780_v43 = vpop.f32.mrb[15].mxu0 }
 0x25a   :  { %997 = vst.msk [vmem:[%s2041_s4 + $0x30] sm:$0xf] %vm984_vm1, %v1085_v42  ;;  %v1086_v21 = vpack.c.bf16 %v780_v43, %v780_v43  ;;  %v1236_v3 = vpop.f32.mrb[12].mxu1 }
 0x25b   :  { %1000 = vst.msk [vmem:[%s2041_s4 + $0x3c] sm:$0xf] %vm984_vm1, %v1088_v27  ;;  %v1103_v11 = vpack.c.bf16 %v1236_v3, %v1236_v3  ;;  %v841_v20 = vpop.f32.mrb[13].mxu1 }
 0x25c   :  { %998 = vst.msk [vmem:[%s2041_s4 + $0x34] sm:$0xf] %vm984_vm1, %v1086_v21  ;;  %v1101_v28 = vpack.c.bf16 %v841_v20, %v841_v20  ;;  %v1237_v19 = vpop.f32.mrb[14].mxu1 }
 0x25d   :  { %1015 = vst.msk [vmem:[%s2041_s4 + $0x78] sm:$0xf] %vm984_vm1, %v1103_v11  ;;  %v1104_v14 = vpack.c.bf16 %v1237_v19, %v1237_v19  ;;  %v844_v30 = vpop.f32.mrb[15].mxu1 }
 0x25e   :  { %1013 = vst.msk [vmem:[%s2041_s4 + $0x70] sm:$0xf] %vm984_vm1, %v1101_v28  ;;  %v1102_v2 = vpack.c.bf16 %v844_v30, %v844_v30 }
 0x25f   :  { %1016 = vst.msk [vmem:[%s2041_s4 + $0x7c] sm:$0xf] %vm984_vm1, %v1104_v14 }
 0x260   :  { %1014 = vst.msk [vmem:[%s2041_s4 + $0x74] sm:$0xf] %vm984_vm1, %v1102_v2 }

// kernel: _lambda_.17
= control target key start
LH: loop header
LB: loop body
LE: loop exit
PB: predicated region body
PF: predicated region fallthrough
CT: control target
= control target key end

     0   :  { %vm16_vm0 = vcmask 523264   ;;  %v888_v1 = vmov 0.0   ;;  %vm662_vm1 = vcmask 519168   ;;  %s1172_s1 = inlined_call_operand.vmem [shape: bf16[64,64], index: 1, kind: input, shape index: {}]   ;;  %s1173_s0 = inlined_call_operand.vmem [shape: bf16[256,64], index: 0, kind: input, shape index: {}]   ;;  %s1174_s2 = inlined_call_operand.vmem [shape: bf16[256,64], index: 2, kind: output, shape index: {}]  }
   0x1   :  { %v868_v0 = vld [vmem:[%s1172_s1] sm:$0xff]   ;;  %19 = vst.msk [vmem:[#allocation2 + $0x10] sm:$0xff] %vm16_vm0, %v888_v1  ;;  %17 = vst.msk [vmem:[#allocation2] sm:$0xff] %vm16_vm0, %v888_v1  ;;  %v869_v2 = vld [vmem:[%s1172_s1 + $0x8] sm:$0xff]  }
   0x2   :  { %18 = vst.msk [vmem:[#allocation2 + $0x8] sm:$0xff] %vm16_vm0, %v888_v1  ;;  %20 = vst.msk [vmem:[#allocation2 + $0x18] sm:$0xff] %vm16_vm0, %v888_v1  ;;  %819 = vmatprep.subr.bf16.mxu0 %v868_v0  ;;  %859 = vmatprep.subr.bf16.mxu1 %v868_v0  ;;  %v870_v3 = vld [vmem:[%s1172_s1 + $0x10] sm:$0xff]   ;;  %v872_v4 = vld [vmem:[%s1173_s0] sm:$0xff]  }
   0x3   :  { %21 = vst.msk [vmem:[#allocation2 + $0x20] sm:$0xff] %vm16_vm0, %v888_v1  ;;  %22 = vst.msk [vmem:[#allocation2 + $0x28] sm:$0xff] %vm16_vm0, %v888_v1  ;;  %820 = vmatpush3.bf16.msra.mxu0 %v868_v0  ;;  %863 = vmatpush3.bf16.msra.mxu1 %v868_v0  ;;  %v873_v5 = vld [vmem:[%s1173_s0 + $0x40] sm:$0xff]   ;;  %v871_v6 = vld [vmem:[%s1172_s1 + $0x18] sm:$0xff]  }
   0x4   :  { %23 = vst.msk [vmem:[#allocation2 + $0x30] sm:$0xff] %vm16_vm0, %v888_v1  ;;  %24 = vst.msk [vmem:[#allocation2 + $0x38] sm:$0xff] %vm16_vm0, %v888_v1  ;;  %821 = vmatprep.subr.bf16.mxu0 %v869_v2  ;;  %860 = vmatprep.subr.bf16.mxu1 %v869_v2  ;;  %v874_v7 = vld [vmem:[%s1173_s0 + $0x8] sm:$0xff]   ;;  %v876_v9 = vld [vmem:[%s1173_s0 + $0x10] sm:$0xff]  }
   0x5   :  { %25 = vst.msk [vmem:[#allocation2 + $0x40] sm:$0xff] %vm16_vm0, %v888_v1  ;;  %26 = vst.msk [vmem:[#allocation2 + $0x48] sm:$0xff] %vm16_vm0, %v888_v1  ;;  %827 = vmatprep.mubr.msk.bf16.mxu0 %vm16_vm0, %v872_v4  ;;  %843 = vmatprep.mubr.msk.bf16.mxu1 %vm16_vm0, %v873_v5  ;;  %v875_v8 = vld [vmem:[%s1173_s0 + $0x48] sm:$0xff]   ;;  %v877_v10 = vld [vmem:[%s1173_s0 + $0x50] sm:$0xff]  }
   0x6   :  { %27 = vst.msk [vmem:[#allocation2 + $0x50] sm:$0xff] %vm16_vm0, %v888_v1  ;;  %28 = vst.msk [vmem:[#allocation2 + $0x58] sm:$0xff] %vm16_vm0, %v888_v1  ;;  %v878_v11 = vld [vmem:[%s1173_s0 + $0x18] sm:$0xff]   ;;  %v880_v13 = vld [vmem:[%s1173_s0 + $0x20] sm:$0xff]  }
   0x7   :  { %29 = vst.msk [vmem:[#allocation2 + $0x60] sm:$0xff] %vm16_vm0, %v888_v1  ;;  %30 = vst.msk [vmem:[#allocation2 + $0x68] sm:$0xff] %vm16_vm0, %v888_v1  ;;  %822 = vmatpush3.bf16.msra.mxu0 %v869_v2  ;;  %864 = vmatpush3.bf16.msra.mxu1 %v869_v2  ;;  %v879_v12 = vld [vmem:[%s1173_s0 + $0x58] sm:$0xff]   ;;  %v881_v14 = vld [vmem:[%s1173_s0 + $0x60] sm:$0xff]  }
   0x8   :  { %31 = vst.msk [vmem:[#allocation2 + $0x70] sm:$0xff] %vm16_vm0, %v888_v1  ;;  %32 = vst.msk [vmem:[#allocation2 + $0x78] sm:$0xff] %vm16_vm0, %v888_v1  ;;  %823 = vmatprep.subr.bf16.mxu0 %v870_v3  ;;  %861 = vmatprep.subr.bf16.mxu1 %v870_v3  ;;  %v882_v15 = vld [vmem:[%s1173_s0 + $0x28] sm:$0xff]   ;;  %v884_v17 = vld [vmem:[%s1173_s0 + $0x30] sm:$0xff]  }
   0x9   :  { %33 = vst.msk [vmem:[#allocation2 + $0x80] sm:$0xff] %vm16_vm0, %v888_v1  ;;  %34 = vst.msk [vmem:[#allocation2 + $0x88] sm:$0xff] %vm16_vm0, %v888_v1  ;;  %v883_v16 = vld [vmem:[%s1173_s0 + $0x68] sm:$0xff]   ;;  %v885_v18 = vld [vmem:[%s1173_s0 + $0x70] sm:$0xff]  }
   0xa   :  { %35 = vst.msk [vmem:[#allocation2 + $0x90] sm:$0xff] %vm16_vm0, %v888_v1  ;;  %36 = vst.msk [vmem:[#allocation2 + $0x98] sm:$0xff] %vm16_vm0, %v888_v1  ;;  %v886_v19 = vld [vmem:[%s1173_s0 + $0x38] sm:$0xff]   ;;  %v51_v21 = vld [vmem:[#allocation2 + $0x10] sm:$0xff] }
   0xb   :  { %37 = vst.msk [vmem:[#allocation2 + $0xa0] sm:$0xff] %vm16_vm0, %v888_v1  ;;  %38 = vst.msk [vmem:[#allocation2 + $0xa8] sm:$0xff] %vm16_vm0, %v888_v1  ;;  %824 = vmatpush3.bf16.msra.mxu0 %v870_v3  ;;  %865 = vmatpush3.bf16.msra.mxu1 %v870_v3  ;;  %v887_v20 = vld [vmem:[%s1173_s0 + $0x78] sm:$0xff]   ;;  %v49_v23 = vld [vmem:[#allocation2] sm:$0xff] }
   0xc   :  { %39 = vst.msk [vmem:[#allocation2 + $0xb0] sm:$0xff] %vm16_vm0, %v888_v1  ;;  %40 = vst.msk [vmem:[#allocation2 + $0xb8] sm:$0xff] %vm16_vm0, %v888_v1  ;;  %825 = vmatprep.subr.bf16.mxu0 %v871_v6  ;;  %862 = vmatprep.subr.bf16.mxu1 %v871_v6  ;;  %v52_v27 = vld [vmem:[#allocation2 + $0x18] sm:$0xff]  ;;  %v50_v33 = vld [vmem:[#allocation2 + $0x8] sm:$0xff] }
   0xd   :  { %41 = vst.msk [vmem:[#allocation2 + $0xc0] sm:$0xff] %vm16_vm0, %v888_v1  ;;  %42 = vst.msk [vmem:[#allocation2 + $0xc8] sm:$0xff] %vm16_vm0, %v888_v1  ;;  %v55_v45 = vld [vmem:[#allocation2 + $0x30] sm:$0xff]  ;;  %v53_v47 = vld [vmem:[#allocation2 + $0x20] sm:$0xff] }
   0xe   :  { %43 = vst.msk [vmem:[#allocation2 + $0xd0] sm:$0xff] %vm16_vm0, %v888_v1  ;;  %44 = vst.msk [vmem:[#allocation2 + $0xd8] sm:$0xff] %vm16_vm0, %v888_v1  ;;  %v56_v51 = vld [vmem:[#allocation2 + $0x38] sm:$0xff]  ;;  %v54_v57 = vld [vmem:[#allocation2 + $0x28] sm:$0xff] }
   0xf   :  { %45 = vst.msk [vmem:[#allocation2 + $0xe0] sm:$0xff] %vm16_vm0, %v888_v1  ;;  %46 = vst.msk [vmem:[#allocation2 + $0xe8] sm:$0xff] %vm16_vm0, %v888_v1  ;;  %826 = vmatpush3.bf16.msra.mxu0 %v871_v6  ;;  %866 = vmatpush3.bf16.msra.mxu1 %v871_v6 }
  0x10   :  { %47 = vst.msk [vmem:[#allocation2 + $0xf0] sm:$0xff] %vm16_vm0, %v888_v1  ;;  %48 = vst.msk [vmem:[#allocation2 + $0xf8] sm:$0xff] %vm16_vm0, %v888_v1  ;;  %v65_v24 = vld [vmem:[#allocation2 + $0x80] sm:$0xff]  ;;  %v66_v34 = vld [vmem:[#allocation2 + $0x88] sm:$0xff] }
  0x11   :  { %v67_v22 = vld [vmem:[#allocation2 + $0x90] sm:$0xff]  ;;  %v68_v28 = vld [vmem:[#allocation2 + $0x98] sm:$0xff] }
  0x12   :  { %828 = vmatmul.mubr.msk.bf16.vlgmr.msra.gmra.mrb[0].mxu0 %vm16_vm0, %v874_v7  ;;  %844 = vmatmul.mubr.msk.bf16.vlgmr.msra.gmra.mrb[0].mxu1 %vm16_vm0, %v875_v8  ;;  %v69_v48 = vld [vmem:[#allocation2 + $0xa0] sm:$0xff]  ;;  %v70_v58 = vld [vmem:[#allocation2 + $0xa8] sm:$0xff] }
  0x13   :  { %831 = vmatprep.mubr.msk.bf16.mxu0 %vm16_vm0, %v876_v9  ;;  %847 = vmatprep.mubr.msk.bf16.mxu1 %vm16_vm0, %v877_v10  ;;  %v71_v46 = vld [vmem:[#allocation2 + $0xb0] sm:$0xff]  ;;  %v72_v52 = vld [vmem:[#allocation2 + $0xb8] sm:$0xff] }
  0x1a   :  { %832 = vmatmul.mubr.msk.bf16.gmra.mrb[4].mxu0 %vm16_vm0, %v878_v11  ;;  %848 = vmatmul.mubr.msk.bf16.gmra.mrb[4].mxu1 %vm16_vm0, %v879_v12 }
  0x1b   :  { %835 = vmatprep.mubr.msk.bf16.mxu0 %vm16_vm0, %v880_v13  ;;  %851 = vmatprep.mubr.msk.bf16.mxu1 %vm16_vm0, %v881_v14 }
  0x22   :  { %836 = vmatmul.mubr.msk.bf16.gmra.mrb[8].mxu0 %vm16_vm0, %v882_v15  ;;  %852 = vmatmul.mubr.msk.bf16.gmra.mrb[8].mxu1 %vm16_vm0, %v883_v16 }
  0x23   :  { %839 = vmatprep.mubr.msk.bf16.mxu0 %vm16_vm0, %v884_v17  ;;  %855 = vmatprep.mubr.msk.bf16.mxu1 %vm16_vm0, %v885_v18 }
  0x2a   :  { %840 = vmatmul.mubr.msk.bf16.gmra.mrb[12].mxu0 %vm16_vm0, %v886_v19  ;;  %856 = vmatmul.mubr.msk.bf16.gmra.mrb[12].mxu1 %vm16_vm0, %v887_v20 }
  0xe5   :  { %v829_v25 = vpop.f32.mrb[0].mxu0  ;;  %v845_v26 = vpop.f32.mrb[0].mxu1 }
  0xe6   :  { %v437_v29 = vadd.f32 %v829_v25, %v51_v21  ;;  %v453_v30 = vadd.f32 %v845_v26, %v67_v22  ;;  %v308_v31 = vpop.f32.mrb[1].mxu0  ;;  %v372_v32 = vpop.f32.mrb[1].mxu1  ;;  %v59_v21 = vld [vmem:[#allocation2 + $0x50] sm:$0xff] }
  0xe7   :  { %v435_v35 = vadd.f32 %v308_v31, %v49_v23  ;;  %v451_v36 = vadd.f32 %v372_v32, %v65_v24  ;;  %v830_v37 = vpop.f32.mrb[2].mxu0  ;;  %v846_v38 = vpop.f32.mrb[2].mxu1  ;;  %v75_v22 = vld [vmem:[#allocation2 + $0xd0] sm:$0xff]  ;;  %v57_v23 = vld [vmem:[#allocation2 + $0x40] sm:$0xff] }
  0xe8   :  { %469 = vst.msk [vmem:[#allocation2 + $0x10] sm:$0xff] %vm16_vm0, %v437_v29  ;;  %485 = vst.msk [vmem:[#allocation2 + $0x90] sm:$0xff] %vm16_vm0, %v453_v30  ;;  %v438_v39 = vadd.f32 %v830_v37, %v52_v27  ;;  %v454_v40 = vadd.f32 %v846_v38, %v68_v28  ;;  %v311_v41 = vpop.f32.mrb[3].mxu0  ;;  %v375_v42 = vpop.f32.mrb[3].mxu1  ;;  %v73_v24 = vld [vmem:[#allocation2 + $0xc0] sm:$0xff]  ;;  %v60_v27 = vld [vmem:[#allocation2 + $0x58] sm:$0xff] }
  0xe9   :  { %467 = vst.msk [vmem:[#allocation2] sm:$0xff] %vm16_vm0, %v435_v35  ;;  %483 = vst.msk [vmem:[#allocation2 + $0x80] sm:$0xff] %vm16_vm0, %v451_v36  ;;  %v436_v43 = vadd.f32 %v311_v41, %v50_v33  ;;  %v452_v44 = vadd.f32 %v375_v42, %v66_v34  ;;  %v76_v28 = vld [vmem:[#allocation2 + $0xd8] sm:$0xff]  ;;  %v58_v33 = vld [vmem:[#allocation2 + $0x48] sm:$0xff] }
  0xea   :  { %470 = vst.msk [vmem:[#allocation2 + $0x18] sm:$0xff] %vm16_vm0, %v438_v39  ;;  %486 = vst.msk [vmem:[#allocation2 + $0x98] sm:$0xff] %vm16_vm0, %v454_v40  ;;  %v74_v34 = vld [vmem:[#allocation2 + $0xc8] sm:$0xff] }
  0xeb   :  { %468 = vst.msk [vmem:[#allocation2 + $0x8] sm:$0xff] %vm16_vm0, %v436_v43  ;;  %484 = vst.msk [vmem:[#allocation2 + $0x88] sm:$0xff] %vm16_vm0, %v452_v44 }
  0xed   :  { %v833_v49 = vpop.f32.mrb[4].mxu0  ;;  %v849_v50 = vpop.f32.mrb[4].mxu1 }
  0xee   :  { %v441_v53 = vadd.f32 %v833_v49, %v55_v45  ;;  %v457_v54 = vadd.f32 %v849_v50, %v71_v46  ;;  %v324_v55 = vpop.f32.mrb[5].mxu0  ;;  %v388_v56 = vpop.f32.mrb[5].mxu1 }
  0xef   :  { %v504_v59 = vld [vmem:[#allocation2 + $0x10] sm:$0xff]  ;;  %v439_v61 = vadd.f32 %v324_v55, %v53_v47  ;;  %v455_v62 = vadd.f32 %v388_v56, %v69_v48  ;;  %v834_v63 = vpop.f32.mrb[6].mxu0  ;;  %v850_v0 = vpop.f32.mrb[6].mxu1 }
  0xf0   :  { %v520_v60 = vld [vmem:[#allocation2 + $0x90] sm:$0xff]  ;;  %v769_v1 = vpack.c.bf16 %v504_v59, %v504_v59  ;;  %v502_v3 = vld [vmem:[#allocation2] sm:$0xff]  ;;  %473 = vst.msk [vmem:[#allocation2 + $0x30] sm:$0xff] %vm16_vm0, %v441_v53  ;;  %489 = vst.msk [vmem:[#allocation2 + $0xb0] sm:$0xff] %vm16_vm0, %v457_v54  ;;  %v442_v5 = vadd.f32 %v834_v63, %v56_v51  ;;  %v458_v6 = vadd.f32 %v850_v0, %v72_v52  ;;  %v327_v7 = vpop.f32.mrb[7].mxu0  ;;  %v391_v8 = vpop.f32.mrb[7].mxu1 }
  0xf1   :  { %v785_v2 = vpack.c.bf16 %v520_v60, %v520_v60  ;;  %v518_v4 = vld [vmem:[#allocation2 + $0x80] sm:$0xff]  ;;  %v767_v9 = vpack.c.bf16 %v502_v3, %v502_v3  ;;  %v505_v11 = vld [vmem:[#allocation2 + $0x18] sm:$0xff]  ;;  %471 = vst.msk [vmem:[#allocation2 + $0x20] sm:$0xff] %vm16_vm0, %v439_v61  ;;  %487 = vst.msk [vmem:[#allocation2 + $0xa0] sm:$0xff] %vm16_vm0, %v455_v62  ;;  %v440_v13 = vadd.f32 %v327_v7, %v54_v57 }
  0xf2   :  { %v783_v10 = vpack.c.bf16 %v518_v4, %v518_v4  ;;  %v521_v12 = vld [vmem:[#allocation2 + $0x98] sm:$0xff]  ;;  %v456_v14 = vadd.f32 %v391_v8, %v70_v58  ;;  %665 = vst.msk [vmem:[%s1174_s2 + $0x8] sm:$0xf] %vm662_vm1, %v769_v1  ;;  %v770_v15 = vpack.c.bf16 %v505_v11, %v505_v11  ;;  %v503_v17 = vld [vmem:[#allocation2 + $0x8] sm:$0xff]  ;;  %v63_v61 = vld [vmem:[#allocation2 + $0x70] sm:$0xff] }
  0xf3   :  { %681 = vst.msk [vmem:[%s1174_s2 + $0x48] sm:$0xf] %vm662_vm1, %v785_v2  ;;  %v786_v16 = vpack.c.bf16 %v521_v12, %v521_v12  ;;  %v519_v18 = vld [vmem:[#allocation2 + $0x88] sm:$0xff]  ;;  %663 = vst.msk [vmem:[%s1174_s2] sm:$0xf] %vm662_vm1, %v767_v9  ;;  %v768_v19 = vpack.c.bf16 %v503_v17, %v503_v17  ;;  %v79_v62 = vld [vmem:[#allocation2 + $0xf0] sm:$0xff] }
  0xf4   :  { %474 = vst.msk [vmem:[#allocation2 + $0x38] sm:$0xff] %vm16_vm0, %v442_v5  ;;  %490 = vst.msk [vmem:[#allocation2 + $0xb8] sm:$0xff] %vm16_vm0, %v458_v6  ;;  %v784_v20 = vpack.c.bf16 %v519_v18, %v519_v18  ;;  %v61_v63 = vld [vmem:[#allocation2 + $0x60] sm:$0xff]  ;;  %v64_v3 = vld [vmem:[#allocation2 + $0x78] sm:$0xff] }
  0xf5   :  { %679 = vst.msk [vmem:[%s1174_s2 + $0x40] sm:$0xf] %vm662_vm1, %v783_v10  ;;  %666 = vst.msk [vmem:[%s1174_s2 + $0xc] sm:$0xf] %vm662_vm1, %v770_v15  ;;  %v837_v25 = vpop.f32.mrb[8].mxu0  ;;  %v853_v26 = vpop.f32.mrb[8].mxu1 }
  0xf6   :  { %472 = vst.msk [vmem:[#allocation2 + $0x28] sm:$0xff] %vm16_vm0, %v440_v13  ;;  %488 = vst.msk [vmem:[#allocation2 + $0xa8] sm:$0xff] %vm16_vm0, %v456_v14  ;;  %v445_v29 = vadd.f32 %v837_v25, %v59_v21  ;;  %v461_v30 = vadd.f32 %v853_v26, %v75_v22  ;;  %v340_v31 = vpop.f32.mrb[9].mxu0  ;;  %v404_v32 = vpop.f32.mrb[9].mxu1  ;;  %v77_v0 = vld [vmem:[#allocation2 + $0xe0] sm:$0xff]  ;;  %v80_v4 = vld [vmem:[#allocation2 + $0xf8] sm:$0xff] }
  0xf7   :  { %682 = vst.msk [vmem:[%s1174_s2 + $0x4c] sm:$0xf] %vm662_vm1, %v786_v16  ;;  %664 = vst.msk [vmem:[%s1174_s2 + $0x4] sm:$0xf] %vm662_vm1, %v768_v19  ;;  %v508_v35 = vld [vmem:[#allocation2 + $0x30] sm:$0xff]  ;;  %v443_v37 = vadd.f32 %v340_v31, %v57_v23  ;;  %v459_v38 = vadd.f32 %v404_v32, %v73_v24  ;;  %v838_v39 = vpop.f32.mrb[10].mxu0 }
  0xf8   :  { %680 = vst.msk [vmem:[%s1174_s2 + $0x44] sm:$0xf] %vm662_vm1, %v784_v20  ;;  %v524_v36 = vld [vmem:[#allocation2 + $0xb0] sm:$0xff]  ;;  %v854_v40 = vpop.f32.mrb[10].mxu1  ;;  %v773_v41 = vpack.c.bf16 %v508_v35, %v508_v35  ;;  %v506_v43 = vld [vmem:[#allocation2 + $0x20] sm:$0xff]  ;;  %v446_v45 = vadd.f32 %v838_v39, %v60_v27  ;;  %v343_v47 = vpop.f32.mrb[11].mxu0 }
  0xf9   :  { %v789_v42 = vpack.c.bf16 %v524_v36, %v524_v36  ;;  %v522_v44 = vld [vmem:[#allocation2 + $0xa0] sm:$0xff]  ;;  %477 = vst.msk [vmem:[#allocation2 + $0x50] sm:$0xff] %vm16_vm0, %v445_v29  ;;  %493 = vst.msk [vmem:[#allocation2 + $0xd0] sm:$0xff] %vm16_vm0, %v461_v30  ;;  %v462_v46 = vadd.f32 %v854_v40, %v76_v28  ;;  %v407_v48 = vpop.f32.mrb[11].mxu1  ;;  %v771_v49 = vpack.c.bf16 %v506_v43, %v506_v43  ;;  %v62_v9 = vld [vmem:[#allocation2 + $0x68] sm:$0xff] }
  0xfa   :  { %v787_v50 = vpack.c.bf16 %v522_v44, %v522_v44  ;;  %475 = vst.msk [vmem:[#allocation2 + $0x40] sm:$0xff] %vm16_vm0, %v443_v37  ;;  %491 = vst.msk [vmem:[#allocation2 + $0xc0] sm:$0xff] %vm16_vm0, %v459_v38  ;;  %v444_v53 = vadd.f32 %v343_v47, %v58_v33  ;;  %v460_v54 = vadd.f32 %v407_v48, %v74_v34  ;;  %v78_v10 = vld [vmem:[#allocation2 + $0xe8] sm:$0xff] }
  0xfb   :  { %v509_v51 = vld [vmem:[#allocation2 + $0x38] sm:$0xff]  ;;  %669 = vst.msk [vmem:[%s1174_s2 + $0x18] sm:$0xf] %vm662_vm1, %v773_v41  ;;  %685 = vst.msk [vmem:[%s1174_s2 + $0x58] sm:$0xf] %vm662_vm1, %v789_v42 }
  0xfc   :  { %v525_v52 = vld [vmem:[#allocation2 + $0xb8] sm:$0xff]  ;;  %v774_v55 = vpack.c.bf16 %v509_v51, %v509_v51  ;;  %478 = vst.msk [vmem:[#allocation2 + $0x58] sm:$0xff] %vm16_vm0, %v446_v45  ;;  %494 = vst.msk [vmem:[#allocation2 + $0xd8] sm:$0xff] %vm16_vm0, %v462_v46 }
  0xfd   :  { %v790_v56 = vpack.c.bf16 %v525_v52, %v525_v52  ;;  %v507_v57 = vld [vmem:[#allocation2 + $0x28] sm:$0xff]  ;;  %667 = vst.msk [vmem:[%s1174_s2 + $0x10] sm:$0xf] %vm662_vm1, %v771_v49  ;;  %683 = vst.msk [vmem:[%s1174_s2 + $0x50] sm:$0xf] %vm662_vm1, %v787_v50  ;;  %v841_v1 = vpop.f32.mrb[12].mxu0 }
  0xfe   :  { %v523_v58 = vld [vmem:[#allocation2 + $0xa8] sm:$0xff]  ;;  %v772_v59 = vpack.c.bf16 %v507_v57, %v507_v57  ;;  %476 = vst.msk [vmem:[#allocation2 + $0x48] sm:$0xff] %vm16_vm0, %v444_v53  ;;  %492 = vst.msk [vmem:[#allocation2 + $0xc8] sm:$0xff] %vm16_vm0, %v460_v54  ;;  %v857_v2 = vpop.f32.mrb[12].mxu1  ;;  %v449_v5 = vadd.f32 %v841_v1, %v63_v61  ;;  %v356_v7 = vpop.f32.mrb[13].mxu0 }
  0xff   :  { %v788_v60 = vpack.c.bf16 %v523_v58, %v523_v58  ;;  %670 = vst.msk [vmem:[%s1174_s2 + $0x1c] sm:$0xf] %vm662_vm1, %v774_v55  ;;  %686 = vst.msk [vmem:[%s1174_s2 + $0x5c] sm:$0xf] %vm662_vm1, %v790_v56  ;;  %v465_v6 = vadd.f32 %v857_v2, %v79_v62  ;;  %v420_v8 = vpop.f32.mrb[13].mxu1  ;;  %v447_v13 = vadd.f32 %v356_v7, %v61_v63  ;;  %v842_v15 = vpop.f32.mrb[14].mxu0 }
 0x100   :  { %668 = vst.msk [vmem:[%s1174_s2 + $0x14] sm:$0xf] %vm662_vm1, %v772_v59  ;;  %v512_v11 = vld [vmem:[#allocation2 + $0x50] sm:$0xff]  ;;  %v463_v14 = vadd.f32 %v420_v8, %v77_v0  ;;  %v858_v16 = vpop.f32.mrb[14].mxu1  ;;  %v450_v21 = vadd.f32 %v842_v15, %v64_v3  ;;  %v359_v23 = vpop.f32.mrb[15].mxu0 }
 0x101   :  { %684 = vst.msk [vmem:[%s1174_s2 + $0x54] sm:$0xf] %vm662_vm1, %v788_v60  ;;  %v528_v12 = vld [vmem:[#allocation2 + $0xd0] sm:$0xff]  ;;  %v777_v17 = vpack.c.bf16 %v512_v11, %v512_v11  ;;  %v510_v19 = vld [vmem:[#allocation2 + $0x40] sm:$0xff]  ;;  %v466_v22 = vadd.f32 %v858_v16, %v80_v4  ;;  %v423_v24 = vpop.f32.mrb[15].mxu1  ;;  %v448_v29 = vadd.f32 %v359_v23, %v62_v9 }
 0x102   :  { %v793_v18 = vpack.c.bf16 %v528_v12, %v528_v12  ;;  %v526_v20 = vld [vmem:[#allocation2 + $0xc0] sm:$0xff]  ;;  %481 = vst.msk [vmem:[#allocation2 + $0x70] sm:$0xff] %vm16_vm0, %v449_v5  ;;  %497 = vst.msk [vmem:[#allocation2 + $0xf0] sm:$0xff] %vm16_vm0, %v465_v6  ;;  %v775_v25 = vpack.c.bf16 %v510_v19, %v510_v19  ;;  %v464_v30 = vadd.f32 %v423_v24, %v78_v10 }
 0x103   :  { %v791_v26 = vpack.c.bf16 %v526_v20, %v526_v20  ;;  %v513_v27 = vld [vmem:[#allocation2 + $0x58] sm:$0xff]  ;;  %479 = vst.msk [vmem:[#allocation2 + $0x60] sm:$0xff] %vm16_vm0, %v447_v13  ;;  %495 = vst.msk [vmem:[#allocation2 + $0xe0] sm:$0xff] %vm16_vm0, %v463_v14 }
 0x104   :  { %v529_v28 = vld [vmem:[#allocation2 + $0xd8] sm:$0xff]  ;;  %673 = vst.msk [vmem:[%s1174_s2 + $0x28] sm:$0xf] %vm662_vm1, %v777_v17  ;;  %689 = vst.msk [vmem:[%s1174_s2 + $0x68] sm:$0xf] %vm662_vm1, %v793_v18  ;;  %v778_v31 = vpack.c.bf16 %v513_v27, %v513_v27 }
 0x105   :  { %v794_v32 = vpack.c.bf16 %v529_v28, %v529_v28  ;;  %v511_v33 = vld [vmem:[#allocation2 + $0x48] sm:$0xff]  ;;  %482 = vst.msk [vmem:[#allocation2 + $0x78] sm:$0xff] %vm16_vm0, %v450_v21  ;;  %498 = vst.msk [vmem:[#allocation2 + $0xf8] sm:$0xff] %vm16_vm0, %v466_v22 }
 0x106   :  { %v527_v34 = vld [vmem:[#allocation2 + $0xc8] sm:$0xff]  ;;  %671 = vst.msk [vmem:[%s1174_s2 + $0x20] sm:$0xf] %vm662_vm1, %v775_v25  ;;  %687 = vst.msk [vmem:[%s1174_s2 + $0x60] sm:$0xf] %vm662_vm1, %v791_v26  ;;  %v776_v35 = vpack.c.bf16 %v511_v33, %v511_v33 }
 0x107   :  { %v792_v36 = vpack.c.bf16 %v527_v34, %v527_v34  ;;  %480 = vst.msk [vmem:[#allocation2 + $0x68] sm:$0xff] %vm16_vm0, %v448_v29  ;;  %496 = vst.msk [vmem:[#allocation2 + $0xe8] sm:$0xff] %vm16_vm0, %v464_v30 }
 0x108   :  { %674 = vst.msk [vmem:[%s1174_s2 + $0x2c] sm:$0xf] %vm662_vm1, %v778_v31  ;;  %690 = vst.msk [vmem:[%s1174_s2 + $0x6c] sm:$0xf] %vm662_vm1, %v794_v32 }
 0x109   :  { %672 = vst.msk [vmem:[%s1174_s2 + $0x24] sm:$0xf] %vm662_vm1, %v776_v35  ;;  %688 = vst.msk [vmem:[%s1174_s2 + $0x64] sm:$0xf] %vm662_vm1, %v792_v36  ;;  %v516_v37 = vld [vmem:[#allocation2 + $0x70] sm:$0xff] }
 0x10a   :  { %v532_v38 = vld [vmem:[#allocation2 + $0xf0] sm:$0xff]  ;;  %v781_v39 = vpack.c.bf16 %v516_v37, %v516_v37  ;;  %v514_v41 = vld [vmem:[#allocation2 + $0x60] sm:$0xff] }
 0x10b   :  { %v797_v40 = vpack.c.bf16 %v532_v38, %v532_v38  ;;  %v530_v42 = vld [vmem:[#allocation2 + $0xe0] sm:$0xff]  ;;  %v779_v43 = vpack.c.bf16 %v514_v41, %v514_v41 }
 0x10c   :  { %v795_v44 = vpack.c.bf16 %v530_v42, %v530_v42  ;;  %v517_v45 = vld [vmem:[#allocation2 + $0x78] sm:$0xff]  ;;  %677 = vst.msk [vmem:[%s1174_s2 + $0x38] sm:$0xf] %vm662_vm1, %v781_v39 }
 0x10d   :  { %v533_v46 = vld [vmem:[#allocation2 + $0xf8] sm:$0xff]  ;;  %693 = vst.msk [vmem:[%s1174_s2 + $0x78] sm:$0xf] %vm662_vm1, %v797_v40  ;;  %v782_v47 = vpack.c.bf16 %v517_v45, %v517_v45  ;;  %675 = vst.msk [vmem:[%s1174_s2 + $0x30] sm:$0xf] %vm662_vm1, %v779_v43 }
 0x10e   :  { %v798_v48 = vpack.c.bf16 %v533_v46, %v533_v46  ;;  %v515_v49 = vld [vmem:[#allocation2 + $0x68] sm:$0xff]  ;;  %691 = vst.msk [vmem:[%s1174_s2 + $0x70] sm:$0xf] %vm662_vm1, %v795_v44 }
 0x10f   :  { %v531_v50 = vld [vmem:[#allocation2 + $0xe8] sm:$0xff]  ;;  %v780_v51 = vpack.c.bf16 %v515_v49, %v515_v49  ;;  %678 = vst.msk [vmem:[%s1174_s2 + $0x3c] sm:$0xf] %vm662_vm1, %v782_v47 }
 0x110   :  { %v796_v52 = vpack.c.bf16 %v531_v50, %v531_v50  ;;  %694 = vst.msk [vmem:[%s1174_s2 + $0x7c] sm:$0xf] %vm662_vm1, %v798_v48 }
 0x111   :  { %676 = vst.msk [vmem:[%s1174_s2 + $0x34] sm:$0xf] %vm662_vm1, %v780_v51 }
 0x112   :  { %692 = vst.msk [vmem:[%s1174_s2 + $0x74] sm:$0xf] %vm662_vm1, %v796_v52 }

// kernel: _lambda_.14
= control target key start
LH: loop header
LB: loop body
LE: loop exit
PB: predicated region body
PF: predicated region fallthrough
CT: control target
= control target key end

     0   :  { %vm143_vm0 = vcmask 130048   ;;  %v10523_v0 = vmov 0.0   ;;  %vm8410_vm1 = vmmov 0   ;;  %vm3088_vm2 = vcmask 64512   ;;  %s10519_s1 = inlined_call_operand.vmem [shape: bf16[64,8,16], index: 1, kind: input, shape index: {}]   ;;  %s10520_s0 = inlined_call_operand.vmem [shape: bf16[64,8,16], index: 0, kind: input, shape index: {}]   ;;  %s10521_s2 = inlined_call_operand.vmem [shape: bf16[64,8,16], index: 2, kind: input, shape index: {}]   ;;  %s10522_s3 = inlined_call_operand.vmem [shape: bf16[64,8,16], index: 3, kind: output, shape index: {}]  }
   0x1   :  { %7383 = vmatprep.subr.bf16.mxu0 %v10523_v0  ;;  %7389 = vmatprep.subr.bf16.mxu1 %v10523_v0  ;;  %v79_v1 = vld [vmem:[%s10519_s1] sm:$0xf]  ;;  %v80_v2 = vld [vmem:[%s10519_s1 + $0x4] sm:$0xf]  ;;  %v81_v5 = vld [vmem:[%s10519_s1 + $0x8] sm:$0xf] }
   0x2   :  { %v148_v3 = vsel %vm143_vm0, %v79_v1, 0  ;;  %v194_v4 = vsel %vm143_vm0, %v80_v2, 0  ;;  %7385 = vmatprep.mubr.msk.bf16.mxu0 %vm8410_vm1, %v10523_v0  ;;  %7391 = vmatprep.mubr.msk.bf16.mxu1 %vm8410_vm1, %v10523_v0  ;;  %v82_v6 = vld [vmem:[%s10519_s1 + $0xc] sm:$0xf]  ;;  %v15_v7 = vld [vmem:[%s10520_s0] sm:$0xf] }
   0x3   :  { %7384 = vmatpush3.bf16.xpose.msra.mxu0 %v148_v3  ;;  %7390 = vmatpush3.bf16.xpose.msra.mxu1 %v194_v4  ;;  %v16_v8 = vld [vmem:[%s10520_s0 + $0x4] sm:$0xf]  ;;  %v240_v9 = vsel %vm143_vm0, %v81_v5, 0  ;;  %v286_v10 = vsel %vm143_vm0, %v82_v6, 0  ;;  %v83_v11 = vld [vmem:[%s10519_s1 + $0x10] sm:$0xf] }
   0x4   :  { %7395 = vmatprep.subr.bf16.mxu0 %v10523_v0  ;;  %7401 = vmatprep.subr.bf16.mxu1 %v10523_v0  ;;  %v84_v12 = vld [vmem:[%s10519_s1 + $0x14] sm:$0xf]  ;;  %v17_v13 = vld [vmem:[%s10520_s0 + $0x8] sm:$0xf]  ;;  %v18_v14 = vld [vmem:[%s10520_s0 + $0xc] sm:$0xf] }
   0x5   :  { %v332_v15 = vsel %vm143_vm0, %v83_v11, 0  ;;  %v378_v16 = vsel %vm143_vm0, %v84_v12, 0  ;;  %v85_v17 = vld [vmem:[%s10519_s1 + $0x18] sm:$0xf]  ;;  %v86_v18 = vld [vmem:[%s10519_s1 + $0x1c] sm:$0xf] }
   0x6   :  { %v19_v19 = vld [vmem:[%s10520_s0 + $0x10] sm:$0xf]  ;;  %v20_v20 = vld [vmem:[%s10520_s0 + $0x14] sm:$0xf]  ;;  %v424_v21 = vsel %vm143_vm0, %v85_v17, 0  ;;  %v470_v22 = vsel %vm143_vm0, %v86_v18, 0 }
   0x7   :  { %v87_v23 = vld [vmem:[%s10519_s1 + $0x20] sm:$0xf]  ;;  %v88_v24 = vld [vmem:[%s10519_s1 + $0x24] sm:$0xf]  ;;  %v21_v25 = vld [vmem:[%s10520_s0 + $0x18] sm:$0xf] }
   0x8   :  { %v22_v26 = vld [vmem:[%s10520_s0 + $0x1c] sm:$0xf]  ;;  %v516_v27 = vsel %vm143_vm0, %v87_v23, 0  ;;  %v562_v28 = vsel %vm143_vm0, %v88_v24, 0  ;;  %v89_v29 = vld [vmem:[%s10519_s1 + $0x28] sm:$0xf] }
   0x9   :  { %v90_v30 = vld [vmem:[%s10519_s1 + $0x2c] sm:$0xf]  ;;  %v23_v31 = vld [vmem:[%s10520_s0 + $0x20] sm:$0xf]  ;;  %v24_v32 = vld [vmem:[%s10520_s0 + $0x24] sm:$0xf] }
   0xa   :  { %7386 = vmatmul.mubr.msk.bf16.vlgmr.msra.gmra.mrb[0].mxu0 %vm143_vm0, %v15_v7  ;;  %7392 = vmatmul.mubr.msk.bf16.vlgmr.msra.gmra.mrb[0].mxu1 %vm143_vm0, %v16_v8  ;;  %v608_v33 = vsel %vm143_vm0, %v89_v29, 0  ;;  %v654_v34 = vsel %vm143_vm0, %v90_v30, 0  ;;  %v91_v35 = vld [vmem:[%s10519_s1 + $0x30] sm:$0xf]  ;;  %v92_v36 = vld [vmem:[%s10519_s1 + $0x34] sm:$0xf] }
   0xb   :  { %7396 = vmatpush3.bf16.xpose.msra.mxu0 %v240_v9  ;;  %7402 = vmatpush3.bf16.xpose.msra.mxu1 %v286_v10  ;;  %v25_v37 = vld [vmem:[%s10520_s0 + $0x28] sm:$0xf]  ;;  %v26_v38 = vld [vmem:[%s10520_s0 + $0x2c] sm:$0xf]  ;;  %v700_v39 = vsel %vm143_vm0, %v91_v35, 0  ;;  %v746_v40 = vsel %vm143_vm0, %v92_v36, 0 }
   0xc   :  { %7397 = vmatprep.mubr.msk.bf16.mxu0 %vm8410_vm1, %v10523_v0  ;;  %7403 = vmatprep.mubr.msk.bf16.mxu1 %vm8410_vm1, %v10523_v0  ;;  %v93_v41 = vld [vmem:[%s10519_s1 + $0x38] sm:$0xf]  ;;  %v94_v42 = vld [vmem:[%s10519_s1 + $0x3c] sm:$0xf]  ;;  %v27_v43 = vld [vmem:[%s10520_s0 + $0x30] sm:$0xf] }
   0xd   :  { %7407 = vmatprep.subr.bf16.mxu0 %v10523_v0  ;;  %7413 = vmatprep.subr.bf16.mxu1 %v10523_v0  ;;  %v28_v44 = vld [vmem:[%s10520_s0 + $0x34] sm:$0xf]  ;;  %v792_v45 = vsel %vm143_vm0, %v93_v41, 0  ;;  %v838_v46 = vsel %vm143_vm0, %v94_v42, 0  ;;  %v95_v47 = vld [vmem:[%s10519_s1 + $0x40] sm:$0xf] }
   0xe   :  { %v96_v48 = vld [vmem:[%s10519_s1 + $0x44] sm:$0xf]  ;;  %v29_v49 = vld [vmem:[%s10520_s0 + $0x38] sm:$0xf]  ;;  %v30_v50 = vld [vmem:[%s10520_s0 + $0x3c] sm:$0xf] }
   0xf   :  { %v884_v51 = vsel %vm143_vm0, %v95_v47, 0  ;;  %v930_v52 = vsel %vm143_vm0, %v96_v48, 0  ;;  %v97_v53 = vld [vmem:[%s10519_s1 + $0x48] sm:$0xf]  ;;  %v98_v54 = vld [vmem:[%s10519_s1 + $0x4c] sm:$0xf] }
  0x10   :  { %v31_v55 = vld [vmem:[%s10520_s0 + $0x40] sm:$0xf]  ;;  %v32_v56 = vld [vmem:[%s10520_s0 + $0x44] sm:$0xf]  ;;  %v976_v57 = vsel %vm143_vm0, %v97_v53, 0  ;;  %v1022_v58 = vsel %vm143_vm0, %v98_v54, 0 }
  0x11   :  { %v99_v59 = vld [vmem:[%s10519_s1 + $0x50] sm:$0xf]  ;;  %v100_v60 = vld [vmem:[%s10519_s1 + $0x54] sm:$0xf]  ;;  %v33_v61 = vld [vmem:[%s10520_s0 + $0x48] sm:$0xf] }
  0x12   :  { %7398 = vmatmul.mubr.msk.bf16.vlgmr.msra.gmra.mrb[4].mxu0 %vm143_vm0, %v17_v13  ;;  %7404 = vmatmul.mubr.msk.bf16.vlgmr.msra.gmra.mrb[4].mxu1 %vm143_vm0, %v18_v14  ;;  %v34_v62 = vld [vmem:[%s10520_s0 + $0x4c] sm:$0xf]  ;;  %v1068_v63 = vsel %vm143_vm0, %v99_v59, 0  ;;  %v1114_v1 = vsel %vm143_vm0, %v100_v60, 0  ;;  %v101_v2 = vld [vmem:[%s10519_s1 + $0x58] sm:$0xf] }
  0x13   :  { %7408 = vmatpush3.bf16.xpose.msra.mxu0 %v332_v15  ;;  %7414 = vmatpush3.bf16.xpose.msra.mxu1 %v378_v16  ;;  %v102_v3 = vld [vmem:[%s10519_s1 + $0x5c] sm:$0xf]  ;;  %v35_v4 = vld [vmem:[%s10520_s0 + $0x50] sm:$0xf]  ;;  %v36_v5 = vld [vmem:[%s10520_s0 + $0x54] sm:$0xf] }
  0x14   :  { %7409 = vmatprep.mubr.msk.bf16.mxu0 %vm8410_vm1, %v10523_v0  ;;  %7415 = vmatprep.mubr.msk.bf16.mxu1 %vm8410_vm1, %v10523_v0  ;;  %v1160_v6 = vsel %vm143_vm0, %v101_v2, 0  ;;  %v1206_v7 = vsel %vm143_vm0, %v102_v3, 0  ;;  %v103_v8 = vld [vmem:[%s10519_s1 + $0x60] sm:$0xf]  ;;  %v104_v9 = vld [vmem:[%s10519_s1 + $0x64] sm:$0xf] }
  0x15   :  { %7419 = vmatprep.subr.bf16.mxu0 %v10523_v0  ;;  %7425 = vmatprep.subr.bf16.mxu1 %v10523_v0  ;;  %v37_v10 = vld [vmem:[%s10520_s0 + $0x58] sm:$0xf]  ;;  %v38_v11 = vld [vmem:[%s10520_s0 + $0x5c] sm:$0xf]  ;;  %v1252_v12 = vsel %vm143_vm0, %v103_v8, 0  ;;  %v1298_v13 = vsel %vm143_vm0, %v104_v9, 0 }
  0x16   :  { %v105_v14 = vld [vmem:[%s10519_s1 + $0x68] sm:$0xf]  ;;  %v106_v15 = vld [vmem:[%s10519_s1 + $0x6c] sm:$0xf]  ;;  %v39_v16 = vld [vmem:[%s10520_s0 + $0x60] sm:$0xf] }
  0x17   :  { %v40_v17 = vld [vmem:[%s10520_s0 + $0x64] sm:$0xf]  ;;  %v1344_v18 = vsel %vm143_vm0, %v105_v14, 0  ;;  %v42_v23 = vld [vmem:[%s10520_s0 + $0x6c] sm:$0xf]  ;;  %vm3796_vm3 = vcmask 1043456  }
  0x18   :  { %v44_v29 = vld [vmem:[%s10520_s0 + $0x74] sm:$0xf]  ;;  %v46_v35 = vld [vmem:[%s10520_s0 + $0x7c] sm:$0xf]  ;;  %v48_v41 = vld [vmem:[%s10520_s0 + $0x84] sm:$0xf] }
  0x19   :  { %v50_v47 = vld [vmem:[%s10520_s0 + $0x8c] sm:$0xf]  ;;  %v52_v53 = vld [vmem:[%s10520_s0 + $0x94] sm:$0xf]  ;;  %v54_v59 = vld [vmem:[%s10520_s0 + $0x9c] sm:$0xf] }
  0x1a   :  { %7410 = vmatmul.mubr.msk.bf16.vlgmr.msra.gmra.mrb[8].mxu0 %vm143_vm0, %v19_v19  ;;  %7416 = vmatmul.mubr.msk.bf16.vlgmr.msra.gmra.mrb[8].mxu1 %vm143_vm0, %v20_v20  ;;  %v1390_v19 = vsel %vm143_vm0, %v106_v15, 0  ;;  %v107_v20 = vld [vmem:[%s10519_s1 + $0x70] sm:$0xf]  ;;  %v56_v2 = vld [vmem:[%s10520_s0 + $0xa4] sm:$0xf]  ;;  %vm6930_vm4 = vcmask 125952  }
  0x1b   :  { %7420 = vmatpush3.bf16.xpose.msra.mxu0 %v424_v21  ;;  %7426 = vmatpush3.bf16.xpose.msra.mxu1 %v470_v22  ;;  %v108_v21 = vld [vmem:[%s10519_s1 + $0x74] sm:$0xf]  ;;  %v41_v22 = vld [vmem:[%s10520_s0 + $0x68] sm:$0xf]  ;;  %v1436_v24 = vsel %vm143_vm0, %v107_v20, 0 }
  0x1c   :  { %7421 = vmatprep.mubr.msk.bf16.mxu0 %vm8410_vm1, %v10523_v0  ;;  %7427 = vmatprep.mubr.msk.bf16.mxu1 %vm8410_vm1, %v10523_v0  ;;  %v58_v8 = vld [vmem:[%s10520_s0 + $0xac] sm:$0xf]  ;;  %v60_v14 = vld [vmem:[%s10520_s0 + $0xb4] sm:$0xf]  ;;  %v62_v20 = vld [vmem:[%s10520_s0 + $0xbc] sm:$0xf] }
  0x1d   :  { %7431 = vmatprep.subr.bf16.mxu0 %v10523_v0  ;;  %7437 = vmatprep.subr.bf16.mxu1 %v10523_v0 }
  0x22   :  { %7422 = vmatmul.mubr.msk.bf16.vlgmr.msra.gmra.mrb[12].mxu0 %vm143_vm0, %v21_v25  ;;  %7428 = vmatmul.mubr.msk.bf16.vlgmr.msra.gmra.mrb[12].mxu1 %vm143_vm0, %v22_v26  ;;  %v1482_v25 = vsel %vm143_vm0, %v108_v21, 0  ;;  %v109_v26 = vld [vmem:[%s10519_s1 + $0x78] sm:$0xf] }
  0x23   :  { %7432 = vmatpush3.bf16.xpose.msra.mxu0 %v516_v27  ;;  %7438 = vmatpush3.bf16.xpose.msra.mxu1 %v562_v28  ;;  %v110_v27 = vld [vmem:[%s10519_s1 + $0x7c] sm:$0xf]  ;;  %v43_v28 = vld [vmem:[%s10520_s0 + $0x70] sm:$0xf]  ;;  %v1528_v30 = vsel %vm143_vm0, %v109_v26, 0 }
  0x24   :  { %7433 = vmatprep.mubr.msk.bf16.mxu0 %vm8410_vm1, %v10523_v0  ;;  %7439 = vmatprep.mubr.msk.bf16.mxu1 %vm8410_vm1, %v10523_v0  ;;  %v64_v26 = vld [vmem:[%s10520_s0 + $0xc4] sm:$0xf] }
  0x25   :  { %7443 = vmatprep.subr.bf16.mxu0 %v10523_v0  ;;  %7449 = vmatprep.subr.bf16.mxu1 %v10523_v0 }
  0x2a   :  { %7434 = vmatmul.mubr.msk.bf16.vlgmr.msra.gmra.mrb[16].mxu0 %vm143_vm0, %v23_v31  ;;  %7440 = vmatmul.mubr.msk.bf16.vlgmr.msra.gmra.mrb[16].mxu1 %vm143_vm0, %v24_v32  ;;  %v1574_v31 = vsel %vm143_vm0, %v110_v27, 0  ;;  %v111_v32 = vld [vmem:[%s10519_s1 + $0x80] sm:$0xf] }
  0x2b   :  { %7444 = vmatpush3.bf16.xpose.msra.mxu0 %v608_v33  ;;  %7450 = vmatpush3.bf16.xpose.msra.mxu1 %v654_v34  ;;  %v112_v33 = vld [vmem:[%s10519_s1 + $0x84] sm:$0xf]  ;;  %v45_v34 = vld [vmem:[%s10520_s0 + $0x78] sm:$0xf]  ;;  %v1620_v36 = vsel %vm143_vm0, %v111_v32, 0 }
  0x2c   :  { %7445 = vmatprep.mubr.msk.bf16.mxu0 %vm8410_vm1, %v10523_v0  ;;  %7451 = vmatprep.mubr.msk.bf16.mxu1 %vm8410_vm1, %v10523_v0  ;;  %v66_v32 = vld [vmem:[%s10520_s0 + $0xcc] sm:$0xf] }
  0x2d   :  { %7455 = vmatprep.subr.bf16.mxu0 %v10523_v0  ;;  %7461 = vmatprep.subr.bf16.mxu1 %v10523_v0 }
  0x32   :  { %7446 = vmatmul.mubr.msk.bf16.vlgmr.msra.gmra.mrb[20].mxu0 %vm143_vm0, %v25_v37  ;;  %7452 = vmatmul.mubr.msk.bf16.vlgmr.msra.gmra.mrb[20].mxu1 %vm143_vm0, %v26_v38  ;;  %v1666_v37 = vsel %vm143_vm0, %v112_v33, 0  ;;  %v113_v38 = vld [vmem:[%s10519_s1 + $0x88] sm:$0xf] }
  0x33   :  { %7456 = vmatpush3.bf16.xpose.msra.mxu0 %v700_v39  ;;  %7462 = vmatpush3.bf16.xpose.msra.mxu1 %v746_v40  ;;  %v114_v39 = vld [vmem:[%s10519_s1 + $0x8c] sm:$0xf]  ;;  %v47_v40 = vld [vmem:[%s10520_s0 + $0x80] sm:$0xf]  ;;  %v1712_v42 = vsel %vm143_vm0, %v113_v38, 0 }
  0x34   :  { %7457 = vmatprep.mubr.msk.bf16.mxu0 %vm8410_vm1, %v10523_v0  ;;  %7463 = vmatprep.mubr.msk.bf16.mxu1 %vm8410_vm1, %v10523_v0  ;;  %v68_v38 = vld [vmem:[%s10520_s0 + $0xd4] sm:$0xf] }
  0x35   :  { %7467 = vmatprep.subr.bf16.mxu0 %v10523_v0  ;;  %7473 = vmatprep.subr.bf16.mxu1 %v10523_v0 }
  0x3a   :  { %7458 = vmatmul.mubr.msk.bf16.vlgmr.msra.gmra.mrb[24].mxu0 %vm143_vm0, %v27_v43  ;;  %7464 = vmatmul.mubr.msk.bf16.vlgmr.msra.gmra.mrb[24].mxu1 %vm143_vm0, %v28_v44  ;;  %v1758_v43 = vsel %vm143_vm0, %v114_v39, 0  ;;  %v115_v44 = vld [vmem:[%s10519_s1 + $0x90] sm:$0xf] }
  0x3b   :  { %7468 = vmatpush3.bf16.xpose.msra.mxu0 %v792_v45  ;;  %7474 = vmatpush3.bf16.xpose.msra.mxu1 %v838_v46  ;;  %v116_v45 = vld [vmem:[%s10519_s1 + $0x94] sm:$0xf]  ;;  %v49_v46 = vld [vmem:[%s10520_s0 + $0x88] sm:$0xf]  ;;  %v1804_v48 = vsel %vm143_vm0, %v115_v44, 0 }
  0x3c   :  { %7469 = vmatprep.mubr.msk.bf16.mxu0 %vm8410_vm1, %v10523_v0  ;;  %7475 = vmatprep.mubr.msk.bf16.mxu1 %vm8410_vm1, %v10523_v0  ;;  %v136_v44 = vld [vmem:[%s10519_s1 + $0xe4] sm:$0xf] }
  0x3d   :  { %7479 = vmatprep.subr.bf16.mxu0 %v10523_v0  ;;  %7485 = vmatprep.subr.bf16.mxu1 %v10523_v0 }
  0x42   :  { %7470 = vmatmul.mubr.msk.bf16.vlgmr.msra.gmra.mrb[28].mxu0 %vm143_vm0, %v29_v49  ;;  %7476 = vmatmul.mubr.msk.bf16.vlgmr.msra.gmra.mrb[28].mxu1 %vm143_vm0, %v30_v50  ;;  %v1850_v49 = vsel %vm143_vm0, %v116_v45, 0  ;;  %v117_v50 = vld [vmem:[%s10519_s1 + $0x98] sm:$0xf] }
  0x43   :  { %7480 = vmatpush3.bf16.xpose.msra.mxu0 %v884_v51  ;;  %7486 = vmatpush3.bf16.xpose.msra.mxu1 %v930_v52  ;;  %v118_v51 = vld [vmem:[%s10519_s1 + $0x9c] sm:$0xf]  ;;  %v51_v52 = vld [vmem:[%s10520_s0 + $0x90] sm:$0xf]  ;;  %v1896_v54 = vsel %vm143_vm0, %v117_v50, 0 }
  0x44   :  { %7481 = vmatprep.mubr.msk.bf16.mxu0 %vm8410_vm1, %v10523_v0  ;;  %7487 = vmatprep.mubr.msk.bf16.mxu1 %vm8410_vm1, %v10523_v0  ;;  %v69_v50 = vld [vmem:[%s10520_s0 + $0xd8] sm:$0xf] }
  0x45   :  { %7491 = vmatprep.subr.bf16.mxu0 %v10523_v0  ;;  %7497 = vmatprep.subr.bf16.mxu1 %v10523_v0 }
  0x4a   :  { %7482 = vmatmul.mubr.msk.bf16.vlgmr.msra.gmra.mrb[32].mxu0 %vm143_vm0, %v31_v55  ;;  %7488 = vmatmul.mubr.msk.bf16.vlgmr.msra.gmra.mrb[32].mxu1 %vm143_vm0, %v32_v56  ;;  %v1942_v55 = vsel %vm143_vm0, %v118_v51, 0  ;;  %v119_v56 = vld [vmem:[%s10519_s1 + $0xa0] sm:$0xf]  ;;  %v70_v51 = vld [vmem:[%s10520_s0 + $0xdc] sm:$0xf] }
  0x4b   :  { %7492 = vmatpush3.bf16.xpose.msra.mxu0 %v976_v57  ;;  %7498 = vmatpush3.bf16.xpose.msra.mxu1 %v1022_v58  ;;  %v120_v57 = vld [vmem:[%s10519_s1 + $0xa4] sm:$0xf]  ;;  %v53_v58 = vld [vmem:[%s10520_s0 + $0x98] sm:$0xf]  ;;  %v1988_v60 = vsel %vm143_vm0, %v119_v56, 0 }
  0x4c   :  { %7493 = vmatprep.mubr.msk.bf16.mxu0 %vm8410_vm1, %v10523_v0  ;;  %7499 = vmatprep.mubr.msk.bf16.mxu1 %vm8410_vm1, %v10523_v0 }
  0x4d   :  { %7503 = vmatprep.subr.bf16.mxu0 %v10523_v0  ;;  %7509 = vmatprep.subr.bf16.mxu1 %v10523_v0 }
  0x52   :  { %7494 = vmatmul.mubr.msk.bf16.vlgmr.msra.gmra.mrb[36].mxu0 %vm143_vm0, %v33_v61  ;;  %7500 = vmatmul.mubr.msk.bf16.vlgmr.msra.gmra.mrb[36].mxu1 %vm143_vm0, %v34_v62  ;;  %v2034_v61 = vsel %vm143_vm0, %v120_v57, 0  ;;  %v121_v62 = vld [vmem:[%s10519_s1 + $0xa8] sm:$0xf] }
  0x53   :  { %7504 = vmatpush3.bf16.xpose.msra.mxu0 %v1068_v63  ;;  %7510 = vmatpush3.bf16.xpose.msra.mxu1 %v1114_v1  ;;  %v122_v63 = vld [vmem:[%s10519_s1 + $0xac] sm:$0xf]  ;;  %v55_v1 = vld [vmem:[%s10520_s0 + $0xa0] sm:$0xf]  ;;  %v2080_v3 = vsel %vm143_vm0, %v121_v62, 0 }
  0x54   :  { %7505 = vmatprep.mubr.msk.bf16.mxu0 %vm8410_vm1, %v10523_v0  ;;  %7511 = vmatprep.mubr.msk.bf16.mxu1 %vm8410_vm1, %v10523_v0 }
  0x55   :  { %7515 = vmatprep.subr.bf16.mxu0 %v10523_v0  ;;  %7521 = vmatprep.subr.bf16.mxu1 %v10523_v0 }
  0x5a   :  { %7506 = vmatmul.mubr.msk.bf16.vlgmr.msra.gmra.mrb[40].mxu0 %vm143_vm0, %v35_v4  ;;  %7512 = vmatmul.mubr.msk.bf16.vlgmr.msra.gmra.mrb[40].mxu1 %vm143_vm0, %v36_v5  ;;  %v2126_v4 = vsel %vm143_vm0, %v122_v63, 0  ;;  %v123_v5 = vld [vmem:[%s10519_s1 + $0xb0] sm:$0xf] }
  0x5b   :  { %7516 = vmatpush3.bf16.xpose.msra.mxu0 %v1160_v6  ;;  %7522 = vmatpush3.bf16.xpose.msra.mxu1 %v1206_v7  ;;  %v124_v6 = vld [vmem:[%s10519_s1 + $0xb4] sm:$0xf]  ;;  %v57_v7 = vld [vmem:[%s10520_s0 + $0xa8] sm:$0xf]  ;;  %v2172_v9 = vsel %vm143_vm0, %v123_v5, 0 }
  0x5c   :  { %7517 = vmatprep.mubr.msk.bf16.mxu0 %vm8410_vm1, %v10523_v0  ;;  %7523 = vmatprep.mubr.msk.bf16.mxu1 %vm8410_vm1, %v10523_v0 }
  0x5d   :  { %7527 = vmatprep.subr.bf16.mxu0 %v10523_v0  ;;  %7533 = vmatprep.subr.bf16.mxu1 %v10523_v0 }
  0x62   :  { %7518 = vmatmul.mubr.msk.bf16.vlgmr.msra.gmra.mrb[44].mxu0 %vm143_vm0, %v37_v10  ;;  %7524 = vmatmul.mubr.msk.bf16.vlgmr.msra.gmra.mrb[44].mxu1 %vm143_vm0, %v38_v11  ;;  %v2218_v10 = vsel %vm143_vm0, %v124_v6, 0  ;;  %v125_v11 = vld [vmem:[%s10519_s1 + $0xb8] sm:$0xf] }
  0x63   :  { %7528 = vmatpush3.bf16.xpose.msra.mxu0 %v1252_v12  ;;  %7534 = vmatpush3.bf16.xpose.msra.mxu1 %v1298_v13  ;;  %v126_v12 = vld [vmem:[%s10519_s1 + $0xbc] sm:$0xf]  ;;  %v59_v13 = vld [vmem:[%s10520_s0 + $0xb0] sm:$0xf]  ;;  %v2264_v15 = vsel %vm143_vm0, %v125_v11, 0 }
  0x64   :  { %7529 = vmatprep.mubr.msk.bf16.mxu0 %vm8410_vm1, %v10523_v0  ;;  %7535 = vmatprep.mubr.msk.bf16.mxu1 %vm8410_vm1, %v10523_v0 }
  0x65   :  { %7539 = vmatprep.subr.bf16.mxu0 %v10523_v0  ;;  %7545 = vmatprep.subr.bf16.mxu1 %v10523_v0 }
  0x6a   :  { %7530 = vmatmul.mubr.msk.bf16.vlgmr.msra.gmra.mrb[48].mxu0 %vm143_vm0, %v39_v16  ;;  %7536 = vmatmul.mubr.msk.bf16.vlgmr.msra.gmra.mrb[48].mxu1 %vm143_vm0, %v40_v17  ;;  %v2310_v16 = vsel %vm143_vm0, %v126_v12, 0  ;;  %v127_v17 = vld [vmem:[%s10519_s1 + $0xc0] sm:$0xf]  ;;  %v139_v12 = vld [vmem:[%s10519_s1 + $0xf0] sm:$0xf] }
  0x6b   :  { %7540 = vmatpush3.bf16.xpose.msra.mxu0 %v1344_v18  ;;  %7546 = vmatpush3.bf16.xpose.msra.mxu1 %v1390_v19  ;;  %v128_v18 = vld [vmem:[%s10519_s1 + $0xc4] sm:$0xf]  ;;  %v61_v19 = vld [vmem:[%s10520_s0 + $0xb8] sm:$0xf]  ;;  %v2356_v21 = vsel %vm143_vm0, %v127_v17, 0 }
  0x6c   :  { %7541 = vmatprep.mubr.msk.bf16.mxu0 %vm8410_vm1, %v10523_v0  ;;  %7547 = vmatprep.mubr.msk.bf16.mxu1 %vm8410_vm1, %v10523_v0 }
  0x6d   :  { %7551 = vmatprep.subr.bf16.mxu0 %v10523_v0  ;;  %7557 = vmatprep.subr.bf16.mxu1 %v10523_v0 }
  0x72   :  { %7542 = vmatmul.mubr.msk.bf16.vlgmr.msra.gmra.mrb[52].mxu0 %vm143_vm0, %v41_v22  ;;  %7548 = vmatmul.mubr.msk.bf16.vlgmr.msra.gmra.mrb[52].mxu1 %vm143_vm0, %v42_v23  ;;  %v2402_v22 = vsel %vm143_vm0, %v128_v18, 0  ;;  %v129_v23 = vld [vmem:[%s10519_s1 + $0xc8] sm:$0xf] }
  0x73   :  { %7552 = vmatpush3.bf16.xpose.msra.mxu0 %v1436_v24  ;;  %7558 = vmatpush3.bf16.xpose.msra.mxu1 %v1482_v25  ;;  %v130_v24 = vld [vmem:[%s10519_s1 + $0xcc] sm:$0xf]  ;;  %v63_v25 = vld [vmem:[%s10520_s0 + $0xc0] sm:$0xf]  ;;  %v2448_v27 = vsel %vm143_vm0, %v129_v23, 0 }
  0x74   :  { %7553 = vmatprep.mubr.msk.bf16.mxu0 %vm8410_vm1, %v10523_v0  ;;  %7559 = vmatprep.mubr.msk.bf16.mxu1 %vm8410_vm1, %v10523_v0 }
  0x75   :  { %7563 = vmatprep.subr.bf16.mxu0 %v10523_v0  ;;  %7569 = vmatprep.subr.bf16.mxu1 %v10523_v0 }
  0x7a   :  { %7554 = vmatmul.mubr.msk.bf16.vlgmr.msra.gmra.mrb[56].mxu0 %vm143_vm0, %v43_v28  ;;  %7560 = vmatmul.mubr.msk.bf16.vlgmr.msra.gmra.mrb[56].mxu1 %vm143_vm0, %v44_v29  ;;  %v2494_v28 = vsel %vm143_vm0, %v130_v24, 0  ;;  %v131_v29 = vld [vmem:[%s10519_s1 + $0xd0] sm:$0xf]  ;;  %v2908_v24 = vsel %vm143_vm0, %v139_v12, 0 }
  0x7b   :  { %7564 = vmatpush3.bf16.xpose.msra.mxu0 %v1528_v30  ;;  %7570 = vmatpush3.bf16.xpose.msra.mxu1 %v1574_v31  ;;  %v132_v30 = vld [vmem:[%s10519_s1 + $0xd4] sm:$0xf]  ;;  %v65_v31 = vld [vmem:[%s10520_s0 + $0xc8] sm:$0xf]  ;;  %v2540_v33 = vsel %vm143_vm0, %v131_v29, 0 }
  0x7c   :  { %7565 = vmatprep.mubr.msk.bf16.mxu0 %vm8410_vm1, %v10523_v0  ;;  %7571 = vmatprep.mubr.msk.bf16.mxu1 %vm8410_vm1, %v10523_v0  ;;  %v142_v29 = vld [vmem:[%s10519_s1 + $0xfc] sm:$0xf] }
  0x7d   :  { %7575 = vmatprep.subr.bf16.mxu0 %v10523_v0  ;;  %7581 = vmatprep.subr.bf16.mxu1 %v10523_v0 }
  0x82   :  { %7566 = vmatmul.mubr.msk.bf16.vlgmr.msra.gmra.mrb[60].mxu0 %vm143_vm0, %v45_v34  ;;  %7572 = vmatmul.mubr.msk.bf16.vlgmr.msra.gmra.mrb[60].mxu1 %vm143_vm0, %v46_v35  ;;  %v2586_v34 = vsel %vm143_vm0, %v132_v30, 0  ;;  %v133_v35 = vld [vmem:[%s10519_s1 + $0xd8] sm:$0xf] }
  0x83   :  { %7576 = vmatpush3.bf16.xpose.msra.mxu0 %v1620_v36  ;;  %7582 = vmatpush3.bf16.xpose.msra.mxu1 %v1666_v37  ;;  %v134_v36 = vld [vmem:[%s10519_s1 + $0xdc] sm:$0xf]  ;;  %v67_v37 = vld [vmem:[%s10520_s0 + $0xd0] sm:$0xf]  ;;  %v2632_v39 = vsel %vm143_vm0, %v133_v35, 0 }
  0x84   :  { %7577 = vmatprep.mubr.msk.bf16.mxu0 %vm8410_vm1, %v10523_v0  ;;  %7583 = vmatprep.mubr.msk.bf16.mxu1 %vm8410_vm1, %v10523_v0 }
  0x85   :  { %7587 = vmatprep.subr.bf16.mxu0 %v10523_v0  ;;  %7593 = vmatprep.subr.bf16.mxu1 %v10523_v0 }
  0x8a   :  { %7578 = vmatmul.mubr.msk.bf16.vlgmr.msra.gmra.mrb[64].mxu0 %vm143_vm0, %v47_v40  ;;  %7584 = vmatmul.mubr.msk.bf16.vlgmr.msra.gmra.mrb[64].mxu1 %vm143_vm0, %v48_v41  ;;  %v2678_v40 = vsel %vm143_vm0, %v134_v36, 0  ;;  %v75_v36 = vld [vmem:[%s10520_s0 + $0xf0] sm:$0xf] }
  0x8b   :  { %7588 = vmatpush3.bf16.xpose.msra.mxu0 %v1712_v42  ;;  %7594 = vmatpush3.bf16.xpose.msra.mxu1 %v1758_v43  ;;  %v135_v43 = vld [vmem:[%s10519_s1 + $0xe0] sm:$0xf] }
  0x8c   :  { %7589 = vmatprep.mubr.msk.bf16.mxu0 %vm8410_vm1, %v10523_v0  ;;  %7595 = vmatprep.mubr.msk.bf16.mxu1 %vm8410_vm1, %v10523_v0 }
  0x8d   :  { %7599 = vmatprep.subr.bf16.mxu0 %v10523_v0  ;;  %7605 = vmatprep.subr.bf16.mxu1 %v10523_v0 }
  0x92   :  { %7590 = vmatmul.mubr.msk.bf16.vlgmr.msra.gmra.mrb[68].mxu0 %vm143_vm0, %v49_v46  ;;  %7596 = vmatmul.mubr.msk.bf16.vlgmr.msra.gmra.mrb[68].mxu1 %vm143_vm0, %v50_v47 }
  0x93   :  { %7600 = vmatpush3.bf16.xpose.msra.mxu0 %v1804_v48  ;;  %7606 = vmatpush3.bf16.xpose.msra.mxu1 %v1850_v49 }
  0x94   :  { %7601 = vmatprep.mubr.msk.bf16.mxu0 %vm8410_vm1, %v10523_v0  ;;  %7607 = vmatprep.mubr.msk.bf16.mxu1 %vm8410_vm1, %v10523_v0 }
  0x95   :  { %7611 = vmatprep.subr.bf16.mxu0 %v10523_v0  ;;  %7617 = vmatprep.subr.bf16.mxu1 %v10523_v0 }
  0x9a   :  { %7602 = vmatmul.mubr.msk.bf16.vlgmr.msra.gmra.mrb[72].mxu0 %vm143_vm0, %v51_v52  ;;  %7608 = vmatmul.mubr.msk.bf16.vlgmr.msra.gmra.mrb[72].mxu1 %vm143_vm0, %v52_v53 }
  0x9b   :  { %7612 = vmatpush3.bf16.xpose.msra.mxu0 %v1896_v54  ;;  %7618 = vmatpush3.bf16.xpose.msra.mxu1 %v1942_v55  ;;  %v2724_v54 = vsel %vm143_vm0, %v135_v43, 0  ;;  %v2770_v55 = vsel %vm143_vm0, %v136_v44, 0  ;;  %v3046_v43 = vsel %vm143_vm0, %v142_v29, 0 }
  0x9c   :  { %7613 = vmatprep.mubr.msk.bf16.mxu0 %vm8410_vm1, %v10523_v0  ;;  %7619 = vmatprep.mubr.msk.bf16.mxu1 %vm8410_vm1, %v10523_v0 }
  0x9d   :  { %7623 = vmatprep.subr.bf16.mxu0 %v10523_v0  ;;  %7629 = vmatprep.subr.bf16.mxu1 %v10523_v0 }
  0xa2   :  { %7614 = vmatmul.mubr.msk.bf16.vlgmr.msra.gmra.mrb[76].mxu0 %vm143_vm0, %v53_v58  ;;  %7620 = vmatmul.mubr.msk.bf16.vlgmr.msra.gmra.mrb[76].mxu1 %vm143_vm0, %v54_v59  ;;  %v137_v59 = vld [vmem:[%s10519_s1 + $0xe8] sm:$0xf] }
  0xa3   :  { %7624 = vmatpush3.bf16.xpose.msra.mxu0 %v1988_v60  ;;  %7630 = vmatpush3.bf16.xpose.msra.mxu1 %v2034_v61  ;;  %v138_v60 = vld [vmem:[%s10519_s1 + $0xec] sm:$0xf] }
  0xa4   :  { %7625 = vmatprep.mubr.msk.bf16.mxu0 %vm8410_vm1, %v10523_v0  ;;  %7631 = vmatprep.mubr.msk.bf16.mxu1 %vm8410_vm1, %v10523_v0 }
  0xa5   :  { %7635 = vmatprep.subr.bf16.mxu0 %v10523_v0  ;;  %7641 = vmatprep.subr.bf16.mxu1 %v10523_v0 }
  0xaa   :  { %7626 = vmatmul.mubr.msk.bf16.vlgmr.msra.gmra.mrb[80].mxu0 %vm143_vm0, %v55_v1  ;;  %7632 = vmatmul.mubr.msk.bf16.vlgmr.msra.gmra.mrb[80].mxu1 %vm143_vm0, %v56_v2 }
  0xab   :  { %7636 = vmatpush3.bf16.xpose.msra.mxu0 %v2080_v3  ;;  %7642 = vmatpush3.bf16.xpose.msra.mxu1 %v2126_v4  ;;  %v71_v3 = vld [vmem:[%s10520_s0 + $0xe0] sm:$0xf]  ;;  %v72_v4 = vld [vmem:[%s10520_s0 + $0xe4] sm:$0xf] }
  0xac   :  { %7637 = vmatprep.mubr.msk.bf16.mxu0 %vm8410_vm1, %v10523_v0  ;;  %7643 = vmatprep.mubr.msk.bf16.mxu1 %vm8410_vm1, %v10523_v0 }
  0xad   :  { %7647 = vmatprep.subr.bf16.mxu0 %v10523_v0  ;;  %7653 = vmatprep.subr.bf16.mxu1 %v10523_v0 }
  0xb2   :  { %7638 = vmatmul.mubr.msk.bf16.vlgmr.msra.gmra.mrb[84].mxu0 %vm143_vm0, %v57_v7  ;;  %7644 = vmatmul.mubr.msk.bf16.vlgmr.msra.gmra.mrb[84].mxu1 %vm143_vm0, %v58_v8  ;;  %v2816_v7 = vsel %vm143_vm0, %v137_v59, 0  ;;  %v2862_v8 = vsel %vm143_vm0, %v138_v60, 0 }
  0xb3   :  { %7648 = vmatpush3.bf16.xpose.msra.mxu0 %v2172_v9  ;;  %7654 = vmatpush3.bf16.xpose.msra.mxu1 %v2218_v10 }
  0xb4   :  { %7649 = vmatprep.mubr.msk.bf16.mxu0 %vm8410_vm1, %v10523_v0  ;;  %7655 = vmatprep.mubr.msk.bf16.mxu1 %vm8410_vm1, %v10523_v0 }
  0xb5   :  { %7659 = vmatprep.subr.bf16.mxu0 %v10523_v0  ;;  %7665 = vmatprep.subr.bf16.mxu1 %v10523_v0 }
  0xba   :  { %7650 = vmatmul.mubr.msk.bf16.vlgmr.msra.gmra.mrb[88].mxu0 %vm143_vm0, %v59_v13  ;;  %7656 = vmatmul.mubr.msk.bf16.vlgmr.msra.gmra.mrb[88].mxu1 %vm143_vm0, %v60_v14  ;;  %v140_v13 = vld [vmem:[%s10519_s1 + $0xf4] sm:$0xf] }
  0xbb   :  { %7660 = vmatpush3.bf16.xpose.msra.mxu0 %v2264_v15  ;;  %7666 = vmatpush3.bf16.xpose.msra.mxu1 %v2310_v16 }
  0xbc   :  { %7661 = vmatprep.mubr.msk.bf16.mxu0 %vm8410_vm1, %v10523_v0  ;;  %7667 = vmatprep.mubr.msk.bf16.mxu1 %vm8410_vm1, %v10523_v0 }
  0xbd   :  { %7671 = vmatprep.subr.bf16.mxu0 %v10523_v0  ;;  %7677 = vmatprep.subr.bf16.mxu1 %v10523_v0 }
  0xc2   :  { %7662 = vmatmul.mubr.msk.bf16.vlgmr.msra.gmra.mrb[92].mxu0 %vm143_vm0, %v61_v19  ;;  %7668 = vmatmul.mubr.msk.bf16.vlgmr.msra.gmra.mrb[92].mxu1 %vm143_vm0, %v62_v20  ;;  %v73_v20 = vld [vmem:[%s10520_s0 + $0xe8] sm:$0xf] }
  0xc3   :  { %7672 = vmatpush3.bf16.xpose.msra.mxu0 %v2356_v21  ;;  %7678 = vmatpush3.bf16.xpose.msra.mxu1 %v2402_v22  ;;  %v74_v21 = vld [vmem:[%s10520_s0 + $0xec] sm:$0xf] }
  0xc4   :  { %7673 = vmatprep.mubr.msk.bf16.mxu0 %vm8410_vm1, %v10523_v0  ;;  %7679 = vmatprep.mubr.msk.bf16.mxu1 %vm8410_vm1, %v10523_v0 }
  0xc5   :  { %7683 = vmatprep.subr.bf16.mxu0 %v10523_v0  ;;  %7689 = vmatprep.subr.bf16.mxu1 %v10523_v0 }
  0xca   :  { %7674 = vmatmul.mubr.msk.bf16.vlgmr.msra.gmra.mrb[96].mxu0 %vm143_vm0, %v63_v25  ;;  %7680 = vmatmul.mubr.msk.bf16.vlgmr.msra.gmra.mrb[96].mxu1 %vm143_vm0, %v64_v26  ;;  %v2954_v25 = vsel %vm143_vm0, %v140_v13, 0 }
  0xcb   :  { %7684 = vmatpush3.bf16.xpose.msra.mxu0 %v2448_v27  ;;  %7690 = vmatpush3.bf16.xpose.msra.mxu1 %v2494_v28  ;;  %v141_v28 = vld [vmem:[%s10519_s1 + $0xf8] sm:$0xf] }
  0xcc   :  { %7685 = vmatprep.mubr.msk.bf16.mxu0 %vm8410_vm1, %v10523_v0  ;;  %7691 = vmatprep.mubr.msk.bf16.mxu1 %vm8410_vm1, %v10523_v0 }
  0xcd   :  { %7695 = vmatprep.subr.bf16.mxu0 %v10523_v0  ;;  %7701 = vmatprep.subr.bf16.mxu1 %v10523_v0 }
  0xd2   :  { %7686 = vmatmul.mubr.msk.bf16.vlgmr.msra.gmra.mrb[100].mxu0 %vm143_vm0, %v65_v31  ;;  %7692 = vmatmul.mubr.msk.bf16.vlgmr.msra.gmra.mrb[100].mxu1 %vm143_vm0, %v66_v32 }
  0xd3   :  { %7696 = vmatpush3.bf16.xpose.msra.mxu0 %v2540_v33  ;;  %7702 = vmatpush3.bf16.xpose.msra.mxu1 %v2586_v34 }
  0xd4   :  { %7697 = vmatprep.mubr.msk.bf16.mxu0 %vm8410_vm1, %v10523_v0  ;;  %7703 = vmatprep.mubr.msk.bf16.mxu1 %vm8410_vm1, %v10523_v0 }
  0xd5   :  { %7707 = vmatprep.subr.bf16.mxu0 %v10523_v0  ;;  %7713 = vmatprep.subr.bf16.mxu1 %v10523_v0 }
  0xda   :  { %7698 = vmatmul.mubr.msk.bf16.vlgmr.msra.gmra.mrb[104].mxu0 %vm143_vm0, %v67_v37  ;;  %7704 = vmatmul.mubr.msk.bf16.vlgmr.msra.gmra.mrb[104].mxu1 %vm143_vm0, %v68_v38  ;;  %v76_v37 = vld [vmem:[%s10520_s0 + $0xf4] sm:$0xf] }
  0xdb   :  { %7708 = vmatpush3.bf16.xpose.msra.mxu0 %v2632_v39  ;;  %7714 = vmatpush3.bf16.xpose.msra.mxu1 %v2678_v40  ;;  %v3000_v40 = vsel %vm143_vm0, %v141_v28, 0 }
  0xdc   :  { %7709 = vmatprep.mubr.msk.bf16.mxu0 %vm8410_vm1, %v10523_v0  ;;  %7715 = vmatprep.mubr.msk.bf16.mxu1 %vm8410_vm1, %v10523_v0 }
  0xdd   :  { %v9039_v41 = vpop.f32.mrb[0].mxu0  ;;  %v9041_v42 = vpop.f32.mrb[0].mxu1  ;;  %7719 = vmatprep.subr.bf16.mxu0 %v10523_v0  ;;  %7725 = vmatprep.subr.bf16.mxu1 %v10523_v0 }
  0xde   :  { %v7387_v45 = vpop.f32.mrb[1].mxu0  ;;  %v3089_v46 = vsel %vm3088_vm2, %v9039_v41, -inf  ;;  %v7393_v47 = vpop.f32.mrb[1].mxu1  ;;  %v3092_v56 = vsel %vm3088_vm2, %v9041_v42, -inf }
  0xdf   :  { %3090 = vmax.xlane.f32.xlu0 %v3089_v46  ;;  %v187_v48 = vpop.f32.mrb[2].mxu0  ;;  %v233_v49 = vpop.f32.mrb[2].mxu1  ;;  %v3729_v46 = vld [vmem:[%s10521_s2] sm:$0xf] }
  0xe0   :  { %v7388_v52 = vpop.f32.mrb[3].mxu0  ;;  %v7394_v53 = vpop.f32.mrb[3].mxu1  ;;  %v3798_v60 = vsel %vm3796_vm3, %v3729_v46, 0 }
  0xe2   :  { %7710 = vmatmul.mubr.msk.bf16.vlgmr.msra.gmra.mrb[108].mxu0 %vm143_vm0, %v69_v50  ;;  %7716 = vmatmul.mubr.msk.bf16.vlgmr.msra.gmra.mrb[108].mxu1 %vm143_vm0, %v70_v51  ;;  %v3730_v51 = vld [vmem:[%s10521_s2 + $0x4] sm:$0xf] }
  0xe3   :  { %7720 = vmatpush3.bf16.xpose.msra.mxu0 %v2724_v54  ;;  %7726 = vmatpush3.bf16.xpose.msra.mxu1 %v2770_v55  ;;  %v77_v54 = vld [vmem:[%s10520_s0 + $0xf8] sm:$0xf]  ;;  %v78_v55 = vld [vmem:[%s10520_s0 + $0xfc] sm:$0xf] }
  0xe4   :  { %3093 = vmax.xlane.f32.xlu0 %v3092_v56  ;;  %7721 = vmatprep.mubr.msk.bf16.mxu0 %vm8410_vm1, %v10523_v0 }
  0xe5   :  { %v9067_v57 = vpop.f32.mrb[4].mxu0  ;;  %v9069_v58 = vpop.f32.mrb[4].mxu1  ;;  %7727 = vmatprep.mubr.msk.bf16.mxu1 %vm8410_vm1, %v10523_v0  ;;  %7731 = vmatprep.subr.bf16.mxu0 %v10523_v0 }
  0xe6   :  { %v7399_v61 = vpop.f32.mrb[5].mxu0  ;;  %v3095_v62 = vsel %vm3088_vm2, %v9067_v57, -inf  ;;  %v7405_v63 = vpop.f32.mrb[5].mxu1  ;;  %7737 = vmatprep.subr.bf16.mxu1 %v10523_v0  ;;  %v3098_v9 = vsel %vm3088_vm2, %v9069_v58, -inf }
  0xe7   :  { %3096 = vmax.xlane.f32.xlu1 %v3095_v62  ;;  %v279_v1 = vpop.f32.mrb[6].mxu0  ;;  %v325_v2 = vpop.f32.mrb[6].mxu1  ;;  %v3844_v61 = vsel %vm3796_vm3, %v3730_v51, 0 }
  0xe8   :  { %v7400_v5 = vpop.f32.mrb[7].mxu0  ;;  %v7406_v6 = vpop.f32.mrb[7].mxu1 }
  0xea   :  { %7722 = vmatmul.mubr.msk.bf16.vlgmr.msra.gmra.mrb[112].mxu0 %vm143_vm0, %v71_v3  ;;  %7728 = vmatmul.mubr.msk.bf16.vlgmr.msra.gmra.mrb[112].mxu1 %vm143_vm0, %v72_v4 }
  0xeb   :  { %7732 = vmatpush3.bf16.xpose.msra.mxu0 %v2816_v7  ;;  %7738 = vmatpush3.bf16.xpose.msra.mxu1 %v2862_v8 }
  0xec   :  { %3099 = vmax.xlane.f32.xlu1 %v3098_v9  ;;  %7733 = vmatprep.mubr.msk.bf16.mxu0 %vm8410_vm1, %v10523_v0 }
  0xed   :  { %v9097_v10 = vpop.f32.mrb[8].mxu0  ;;  %v9099_v11 = vpop.f32.mrb[8].mxu1  ;;  %7739 = vmatprep.mubr.msk.bf16.mxu1 %vm8410_vm1, %v10523_v0  ;;  %7743 = vmatprep.subr.bf16.mxu0 %v10523_v0 }
  0xee   :  { %v3104_v14 = vsel %vm3088_vm2, %v9099_v11, -inf  ;;  %v3101_v15 = vsel %vm3088_vm2, %v9097_v10, -inf  ;;  %v7411_v16 = vpop.f32.mrb[9].mxu0  ;;  %v7417_v17 = vpop.f32.mrb[9].mxu1  ;;  %7749 = vmatprep.subr.bf16.mxu1 %v10523_v0 }
  0xef   :  { %3102 = vmax.xlane.f32.xlu0 %v3101_v15  ;;  %v371_v18 = vpop.f32.mrb[10].mxu0  ;;  %v417_v19 = vpop.f32.mrb[10].mxu1 }
  0xf0   :  { %3105 = vmax.xlane.f32.xlu1 %v3104_v14  ;;  %v7412_v22 = vpop.f32.mrb[11].mxu0  ;;  %v7418_v23 = vpop.f32.mrb[11].mxu1 }
  0xf2   :  { %7734 = vmatmul.mubr.msk.bf16.vlgmr.msra.gmra.mrb[116].mxu0 %vm143_vm0, %v73_v20  ;;  %7740 = vmatmul.mubr.msk.bf16.vlgmr.msra.gmra.mrb[116].mxu1 %vm143_vm0, %v74_v21 }
  0xf3   :  { %7744 = vmatpush3.bf16.xpose.msra.mxu0 %v2908_v24  ;;  %7750 = vmatpush3.bf16.xpose.msra.mxu1 %v2954_v25 }
  0xf4   :  { %7745 = vmatprep.mubr.msk.bf16.mxu0 %vm8410_vm1, %v10523_v0  ;;  %7751 = vmatprep.mubr.msk.bf16.mxu1 %vm8410_vm1, %v10523_v0 }
  0xf5   :  { %v9129_v26 = vpop.f32.mrb[12].mxu0  ;;  %v9131_v27 = vpop.f32.mrb[12].mxu1  ;;  %7755 = vmatprep.subr.bf16.mxu0 %v10523_v0  ;;  %7761 = vmatprep.subr.bf16.mxu1 %v10523_v0 }
  0xf6   :  { %v3110_v30 = vsel %vm3088_vm2, %v9131_v27, -inf  ;;  %v3107_v31 = vsel %vm3088_vm2, %v9129_v26, -inf  ;;  %v7423_v32 = vpop.f32.mrb[13].mxu0  ;;  %v7429_v33 = vpop.f32.mrb[13].mxu1 }
  0xf7   :  { %3111 = vmax.xlane.f32.xlu1 %v3110_v30  ;;  %3108 = vmax.xlane.f32.xlu0 %v3107_v31  ;;  %v463_v34 = vpop.f32.mrb[14].mxu0  ;;  %v509_v35 = vpop.f32.mrb[14].mxu1 }
  0xf8   :  { %v7424_v38 = vpop.f32.mrb[15].mxu0  ;;  %v7430_v39 = vpop.f32.mrb[15].mxu1 }
  0xfa   :  { %7746 = vmatmul.mubr.msk.bf16.vlgmr.msra.gmra.mrb[120].mxu0 %vm143_vm0, %v75_v36  ;;  %7752 = vmatmul.mubr.msk.bf16.vlgmr.msra.gmra.mrb[120].mxu1 %vm143_vm0, %v76_v37 }
  0xfb   :  { %7756 = vmatpush3.bf16.xpose.msra.mxu0 %v3000_v40  ;;  %7762 = vmatpush3.bf16.xpose.msra.mxu1 %v3046_v43 }
  0xfc   :  { %7757 = vmatprep.mubr.msk.bf16.mxu0 %vm8410_vm1, %v10523_v0  ;;  %7763 = vmatprep.mubr.msk.bf16.mxu1 %vm8410_vm1, %v10523_v0 }
  0xfd   :  { %v9159_v44 = vpop.f32.mrb[16].mxu0  ;;  %v9161_v45 = vpop.f32.mrb[16].mxu1  ;;  %7767 = vmatprep.subr.bf16.mxu0 %v10523_v0  ;;  %7773 = vmatprep.subr.bf16.mxu1 %v10523_v0 }
  0xfe   :  { %v3116_v47 = vsel %vm3088_vm2, %v9161_v45, -inf  ;;  %v3113_v48 = vsel %vm3088_vm2, %v9159_v44, -inf  ;;  %v7435_v49 = vpop.f32.mrb[17].mxu0  ;;  %v7441_v50 = vpop.f32.mrb[17].mxu1 }
  0xff   :  { %3117 = vmax.xlane.f32.xlu1 %v3116_v47  ;;  %3114 = vmax.xlane.f32.xlu0 %v3113_v48  ;;  %v555_v52 = vpop.f32.mrb[18].mxu0  ;;  %v601_v53 = vpop.f32.mrb[18].mxu1 }
 0x100   :  { %v7436_v56 = vpop.f32.mrb[19].mxu0  ;;  %v7442_v59 = vpop.f32.mrb[19].mxu1 }
 0x102   :  { %7758 = vmatmul.mubr.msk.bf16.vlgmr.msra.gmra.mrb[124].mxu0 %vm143_vm0, %v77_v54  ;;  %7764 = vmatmul.mubr.msk.bf16.vlgmr.msra.gmra.mrb[124].mxu1 %vm143_vm0, %v78_v55 }
 0x103   :  { %7768 = vmatpush3.bf16.msra.mxu0 %v3798_v60  ;;  %7774 = vmatpush3.bf16.msra.mxu1 %v3844_v61 }
 0x104   :  { %7769 = vmatprep.mubr.msk.bf16.mxu0 %vm8410_vm1, %v10523_v0  ;;  %7775 = vmatprep.mubr.msk.bf16.mxu1 %vm8410_vm1, %v10523_v0 }
 0x105   :  { %v9189_v62 = vpop.f32.mrb[20].mxu0  ;;  %v9191_v63 = vpop.f32.mrb[20].mxu1  ;;  %7779 = vmatprep.subr.bf16.mxu0 %v10523_v0  ;;  %7785 = vmatprep.subr.bf16.mxu1 %v10523_v0 }
 0x106   :  { %v3122_v1 = vsel %vm3088_vm2, %v9191_v63, -inf  ;;  %v3119_v2 = vsel %vm3088_vm2, %v9189_v62, -inf  ;;  %v7447_v3 = vpop.f32.mrb[21].mxu0  ;;  %v7453_v4 = vpop.f32.mrb[21].mxu1 }
 0x107   :  { %3123 = vmax.xlane.f32.xlu1 %v3122_v1  ;;  %3120 = vmax.xlane.f32.xlu0 %v3119_v2  ;;  %v647_v5 = vpop.f32.mrb[22].mxu0  ;;  %v693_v6 = vpop.f32.mrb[22].mxu1 }
 0x108   :  { %v7448_v7 = vpop.f32.mrb[23].mxu0  ;;  %v7454_v8 = vpop.f32.mrb[23].mxu1 }
 0x10d   :  { %v9199_v9 = vpop.f32.mrb[24].mxu0  ;;  %v9201_v12 = vpop.f32.mrb[24].mxu1 }
 0x10e   :  { %v3128_v13 = vsel %vm3088_vm2, %v9201_v12, -inf  ;;  %v3125_v14 = vsel %vm3088_vm2, %v9199_v9, -inf  ;;  %v7459_v15 = vpop.f32.mrb[25].mxu0  ;;  %v7465_v16 = vpop.f32.mrb[25].mxu1 }
 0x10f   :  { %3129 = vmax.xlane.f32.xlu1 %v3128_v13  ;;  %3126 = vmax.xlane.f32.xlu0 %v3125_v14  ;;  %v739_v17 = vpop.f32.mrb[26].mxu0  ;;  %v785_v18 = vpop.f32.mrb[26].mxu1 }
 0x110   :  { %v7460_v19 = vpop.f32.mrb[27].mxu0  ;;  %v7466_v20 = vpop.f32.mrb[27].mxu1 }
 0x115   :  { %v9207_v21 = vpop.f32.mrb[28].mxu0  ;;  %v9209_v22 = vpop.f32.mrb[28].mxu1 }
 0x116   :  { %v3134_v23 = vsel %vm3088_vm2, %v9209_v22, -inf  ;;  %v3131_v24 = vsel %vm3088_vm2, %v9207_v21, -inf  ;;  %v7471_v25 = vpop.f32.mrb[29].mxu0  ;;  %v7477_v28 = vpop.f32.mrb[29].mxu1 }
 0x117   :  { %3135 = vmax.xlane.f32.xlu1 %v3134_v23  ;;  %3132 = vmax.xlane.f32.xlu0 %v3131_v24  ;;  %v831_v29 = vpop.f32.mrb[30].mxu0  ;;  %v877_v30 = vpop.f32.mrb[30].mxu1 }
 0x118   :  { %v7472_v31 = vpop.f32.mrb[31].mxu0  ;;  %v7478_v32 = vpop.f32.mrb[31].mxu1 }
 0x11d   :  { %v9215_v33 = vpop.f32.mrb[32].mxu0  ;;  %v9217_v34 = vpop.f32.mrb[32].mxu1 }
 0x11e   :  { %v3140_v35 = vsel %vm3088_vm2, %v9217_v34, -inf  ;;  %v3137_v36 = vsel %vm3088_vm2, %v9215_v33, -inf  ;;  %v7483_v37 = vpop.f32.mrb[33].mxu0  ;;  %v7489_v38 = vpop.f32.mrb[33].mxu1 }
 0x11f   :  { %3141 = vmax.xlane.f32.xlu1 %v3140_v35  ;;  %3138 = vmax.xlane.f32.xlu0 %v3137_v36  ;;  %v923_v39 = vpop.f32.mrb[34].mxu0  ;;  %v969_v40 = vpop.f32.mrb[34].mxu1 }
 0x120   :  { %v7484_v43 = vpop.f32.mrb[35].mxu0  ;;  %v7490_v46 = vpop.f32.mrb[35].mxu1 }
 0x125   :  { %v9223_v47 = vpop.f32.mrb[36].mxu0  ;;  %v9225_v48 = vpop.f32.mrb[36].mxu1 }
 0x126   :  { %v3146_v49 = vsel %vm3088_vm2, %v9225_v48, -inf  ;;  %v3143_v50 = vsel %vm3088_vm2, %v9223_v47, -inf  ;;  %v7495_v51 = vpop.f32.mrb[37].mxu0  ;;  %v7501_v52 = vpop.f32.mrb[37].mxu1 }
 0x127   :  { %3147 = vmax.xlane.f32.xlu1 %v3146_v49  ;;  %3144 = vmax.xlane.f32.xlu0 %v3143_v50  ;;  %v1015_v53 = vpop.f32.mrb[38].mxu0  ;;  %v1061_v54 = vpop.f32.mrb[38].mxu1 }
 0x128   :  { %v7496_v55 = vpop.f32.mrb[39].mxu0  ;;  %v7502_v56 = vpop.f32.mrb[39].mxu1 }
 0x12d   :  { %v9231_v59 = vpop.f32.mrb[40].mxu0  ;;  %v9233_v60 = vpop.f32.mrb[40].mxu1 }
 0x12e   :  { %v3152_v61 = vsel %vm3088_vm2, %v9233_v60, -inf  ;;  %v3149_v1 = vsel %vm3088_vm2, %v9231_v59, -inf  ;;  %v7507_v2 = vpop.f32.mrb[41].mxu0  ;;  %v7513_v3 = vpop.f32.mrb[41].mxu1 }
 0x12f   :  { %3153 = vmax.xlane.f32.xlu1 %v3152_v61  ;;  %3150 = vmax.xlane.f32.xlu0 %v3149_v1  ;;  %v1107_v4 = vpop.f32.mrb[42].mxu0  ;;  %v1153_v5 = vpop.f32.mrb[42].mxu1 }
 0x130   :  { %v7508_v6 = vpop.f32.mrb[43].mxu0  ;;  %v7514_v7 = vpop.f32.mrb[43].mxu1 }
 0x135   :  { %v9239_v8 = vpop.f32.mrb[44].mxu0  ;;  %v9241_v13 = vpop.f32.mrb[44].mxu1 }
 0x136   :  { %v3158_v14 = vsel %vm3088_vm2, %v9241_v13, -inf  ;;  %v3155_v15 = vsel %vm3088_vm2, %v9239_v8, -inf  ;;  %v7519_v16 = vpop.f32.mrb[45].mxu0  ;;  %v7525_v17 = vpop.f32.mrb[45].mxu1 }
 0x137   :  { %3159 = vmax.xlane.f32.xlu1 %v3158_v14  ;;  %3156 = vmax.xlane.f32.xlu0 %v3155_v15  ;;  %v1199_v18 = vpop.f32.mrb[46].mxu0  ;;  %v1245_v19 = vpop.f32.mrb[46].mxu1 }
 0x138   :  { %v7520_v20 = vpop.f32.mrb[47].mxu0  ;;  %v7526_v23 = vpop.f32.mrb[47].mxu1 }
 0x13d   :  { %v9247_v24 = vpop.f32.mrb[48].mxu0  ;;  %v9249_v25 = vpop.f32.mrb[48].mxu1 }
 0x13e   :  { %v3164_v28 = vsel %vm3088_vm2, %v9249_v25, -inf  ;;  %v3161_v29 = vsel %vm3088_vm2, %v9247_v24, -inf  ;;  %v7531_v30 = vpop.f32.mrb[49].mxu0  ;;  %v7537_v31 = vpop.f32.mrb[49].mxu1 }
 0x13f   :  { %3165 = vmax.xlane.f32.xlu1 %v3164_v28  ;;  %3162 = vmax.xlane.f32.xlu0 %v3161_v29  ;;  %v1291_v32 = vpop.f32.mrb[50].mxu0  ;;  %v1337_v35 = vpop.f32.mrb[50].mxu1 }
 0x140   :  { %v7532_v36 = vpop.f32.mrb[51].mxu0  ;;  %v7538_v37 = vpop.f32.mrb[51].mxu1 }
 0x145   :  { %v9255_v38 = vpop.f32.mrb[52].mxu0  ;;  %v9257_v39 = vpop.f32.mrb[52].mxu1 }
 0x146   :  { %v3170_v40 = vsel %vm3088_vm2, %v9257_v39, -inf  ;;  %v3167_v43 = vsel %vm3088_vm2, %v9255_v38, -inf  ;;  %v7543_v46 = vpop.f32.mrb[53].mxu0  ;;  %v7549_v49 = vpop.f32.mrb[53].mxu1 }
 0x147   :  { %3171 = vmax.xlane.f32.xlu1 %v3170_v40  ;;  %3168 = vmax.xlane.f32.xlu0 %v3167_v43  ;;  %v1383_v50 = vpop.f32.mrb[54].mxu0  ;;  %v1429_v51 = vpop.f32.mrb[54].mxu1 }
 0x148   :  { %v7544_v52 = vpop.f32.mrb[55].mxu0  ;;  %v7550_v53 = vpop.f32.mrb[55].mxu1 }
 0x14d   :  { %v9263_v54 = vpop.f32.mrb[56].mxu0  ;;  %v9265_v55 = vpop.f32.mrb[56].mxu1 }
 0x14e   :  { %v3176_v56 = vsel %vm3088_vm2, %v9265_v55, -inf  ;;  %v3173_v61 = vsel %vm3088_vm2, %v9263_v54, -inf  ;;  %v7555_v1 = vpop.f32.mrb[57].mxu0  ;;  %v7561_v2 = vpop.f32.mrb[57].mxu1 }
 0x14f   :  { %3177 = vmax.xlane.f32.xlu1 %v3176_v56  ;;  %3174 = vmax.xlane.f32.xlu0 %v3173_v61  ;;  %v1475_v3 = vpop.f32.mrb[58].mxu0  ;;  %v1521_v4 = vpop.f32.mrb[58].mxu1 }
 0x150   :  { %v7556_v5 = vpop.f32.mrb[59].mxu0  ;;  %v7562_v6 = vpop.f32.mrb[59].mxu1 }
 0x155   :  { %v9271_v7 = vpop.f32.mrb[60].mxu0  ;;  %v9273_v14 = vpop.f32.mrb[60].mxu1 }
 0x156   :  { %v3182_v15 = vsel %vm3088_vm2, %v9273_v14, -inf  ;;  %v3179_v16 = vsel %vm3088_vm2, %v9271_v7, -inf  ;;  %v7567_v17 = vpop.f32.mrb[61].mxu0  ;;  %v7573_v18 = vpop.f32.mrb[61].mxu1 }
 0x157   :  { %3183 = vmax.xlane.f32.xlu1 %v3182_v15  ;;  %3180 = vmax.xlane.f32.xlu0 %v3179_v16  ;;  %v1567_v19 = vpop.f32.mrb[62].mxu0  ;;  %v1613_v20 = vpop.f32.mrb[62].mxu1 }
 0x158   :  { %v7568_v23 = vpop.f32.mrb[63].mxu0  ;;  %v7574_v28 = vpop.f32.mrb[63].mxu1 }
 0x15d   :  { %v9279_v29 = vpop.f32.mrb[64].mxu0  ;;  %v9281_v30 = vpop.f32.mrb[64].mxu1 }
 0x15e   :  { %v3188_v31 = vsel %vm3088_vm2, %v9281_v30, -inf  ;;  %v3185_v32 = vsel %vm3088_vm2, %v9279_v29, -inf  ;;  %v7579_v35 = vpop.f32.mrb[65].mxu0  ;;  %v7585_v36 = vpop.f32.mrb[65].mxu1 }
 0x15f   :  { %3189 = vmax.xlane.f32.xlu1 %v3188_v31  ;;  %3186 = vmax.xlane.f32.xlu0 %v3185_v32  ;;  %v1659_v37 = vpop.f32.mrb[66].mxu0  ;;  %v1705_v40 = vpop.f32.mrb[66].mxu1 }
 0x160   :  { %v7580_v43 = vpop.f32.mrb[67].mxu0  ;;  %v7586_v46 = vpop.f32.mrb[67].mxu1 }
 0x165   :  { %v9287_v49 = vpop.f32.mrb[68].mxu0  ;;  %v9289_v50 = vpop.f32.mrb[68].mxu1 }
 0x166   :  { %v3194_v51 = vsel %vm3088_vm2, %v9289_v50, -inf  ;;  %v3191_v52 = vsel %vm3088_vm2, %v9287_v49, -inf  ;;  %v7591_v53 = vpop.f32.mrb[69].mxu0  ;;  %v7597_v56 = vpop.f32.mrb[69].mxu1 }
 0x167   :  { %3195 = vmax.xlane.f32.xlu1 %v3194_v51  ;;  %3192 = vmax.xlane.f32.xlu0 %v3191_v52  ;;  %v1751_v61 = vpop.f32.mrb[70].mxu0  ;;  %v1797_v1 = vpop.f32.mrb[70].mxu1 }
 0x168   :  { %v7592_v2 = vpop.f32.mrb[71].mxu0  ;;  %v7598_v3 = vpop.f32.mrb[71].mxu1 }
 0x16c   :  { %v3091_v4 = vpop.xlane.xlu0 %3090 }
 0x16d   :  { %v3281_v5 = vsub.f32 %v9039_v41, %v3091_v4  ;;  %v9296_v6 = vpop.f32.mrb[72].mxu0  ;;  %v9298_v15 = vpop.f32.mrb[72].mxu1  ;;  %v3731_v4 = vld [vmem:[%s10521_s2 + $0x8] sm:$0xf] }
 0x16e   :  { %v3200_v16 = vsel %vm3088_vm2, %v9298_v15, -inf  ;;  %v3197_v17 = vsel %vm3088_vm2, %v9296_v6, -inf  ;;  %v7609_v18 = vpop.f32.mrb[73].mxu1  ;;  %v7603_v19 = vpop.f32.mrb[73].mxu0 }
 0x16f   :  { %v3345_v20 = vmul.f32 1.442695, %v3281_v5  ;;  %3201 = vmax.xlane.f32.xlu1 %v3200_v16  ;;  %3198 = vmax.xlane.f32.xlu0 %v3197_v17  ;;  %v1843_v23 = vpop.f32.mrb[74].mxu0  ;;  %v1889_v28 = vpop.f32.mrb[74].mxu1 }
 0x170   :  { %v7604_v31 = vpop.f32.mrb[75].mxu0  ;;  %v7610_v32 = vpop.f32.mrb[75].mxu1 }
 0x171   :  { %8153 = vpow2.f32 %v3345_v20  ;;  %v3094_v41 = vpop.xlane.xlu0 %3093  ;;  %v3890_v20 = vsel %vm3796_vm3, %v3731_v4, 0 }
 0x172   :  { %v3282_v35 = vsub.f32 %v9041_v42, %v3094_v41 }
 0x174   :  { %v3347_v36 = vmul.f32 1.442695, %v3282_v35  ;;  %v3097_v37 = vpop.xlane.xlu1 %3096 }
 0x175   :  { %v3283_v40 = vsub.f32 %v9067_v57, %v3097_v37  ;;  %v9306_v43 = vpop.f32.mrb[76].mxu0  ;;  %v9308_v46 = vpop.f32.mrb[76].mxu1 }
 0x176   :  { %8155 = vpow2.f32 %v3347_v36  ;;  %v3206_v51 = vsel %vm3088_vm2, %v9308_v46, -inf  ;;  %v3203_v52 = vsel %vm3088_vm2, %v9306_v43, -inf  ;;  %v7621_v53 = vpop.f32.mrb[77].mxu1  ;;  %v7615_v56 = vpop.f32.mrb[77].mxu0  ;;  %v3732_v36 = vld [vmem:[%s10521_s2 + $0xc] sm:$0xf] }
 0x177   :  { %v3349_v61 = vmul.f32 1.442695, %v3283_v40  ;;  %3207 = vmax.xlane.f32.xlu1 %v3206_v51  ;;  %3204 = vmax.xlane.f32.xlu0 %v3203_v52  ;;  %v1935_v42 = vpop.f32.mrb[78].mxu0  ;;  %v1981_v1 = vpop.f32.mrb[78].mxu1 }
 0x178   :  { %v7616_v2 = vpop.f32.mrb[79].mxu0  ;;  %v7622_v57 = vpop.f32.mrb[79].mxu1  ;;  %v3936_v1 = vsel %vm3796_vm3, %v3732_v36, 0 }
 0x179   :  { %8157 = vpow2.f32 %v3349_v61  ;;  %v3100_v3 = vpop.xlane.xlu1 %3099  ;;  %v3733_v2 = vld [vmem:[%s10521_s2 + $0x10] sm:$0xf] }
 0x17a   :  { %v3284_v5 = vsub.f32 %v9069_v58, %v3100_v3 }
 0x17b   :  { %v9318_v16 = vpop.eup %8153 }
 0x17c   :  { %v3351_v17 = vmul.f32 1.442695, %v3284_v5  ;;  %v3103_v18 = vpop.xlane.xlu0 %3102  ;;  %v3665_v19 = vpack.c.bf16 %v9318_v16, %v9318_v16 }
 0x17d   :  { %v3106_v23 = vpop.xlane.xlu1 %3105  ;;  %v3285_v28 = vsub.f32 %v9097_v10, %v3103_v18  ;;  %v9324_v31 = vpop.f32.mrb[80].mxu0 }
 0x17e   :  { %8159 = vpow2.f32 %v3351_v17  ;;  %v3286_v32 = vsub.f32 %v9099_v11, %v3106_v23  ;;  %v9327_v41 = vpop.f32.mrb[80].mxu1  ;;  %7770 = vmatmul.mubr.msk.bf16.vlgmr.msra.gmra.mrb[128].mxu0 %vm3088_vm2, %v3665_v19  ;;  %v3209_v58 = vsel %vm3088_vm2, %v9324_v31, -inf  ;;  %v7627_v35 = vpop.f32.mrb[81].mxu0  ;;  %v3982_v23 = vsel %vm3796_vm3, %v3733_v2, 0 }
 0x17f   :  { %v3353_v37 = vmul.f32 1.442695, %v3285_v28  ;;  %v3212_v10 = vsel %vm3088_vm2, %v9327_v41, -inf  ;;  %3210 = vmax.xlane.f32.xlu0 %v3209_v58  ;;  %v7633_v40 = vpop.f32.mrb[81].mxu1  ;;  %v2027_v51 = vpop.f32.mrb[82].mxu0  ;;  %7780 = vmatpush3.bf16.msra.mxu0 %v3890_v20 }
 0x180   :  { %v9337_v11 = vpop.eup %8155  ;;  %v3355_v52 = vmul.f32 1.442695, %v3286_v32  ;;  %3213 = vmax.xlane.f32.xlu1 %v3212_v10  ;;  %v2073_v53 = vpop.f32.mrb[82].mxu1  ;;  %7781 = vmatprep.mubr.msk.bf16.mxu0 %vm8410_vm1, %v10523_v0 }
 0x181   :  { %v7628_v56 = vpop.f32.mrb[83].mxu0  ;;  %8161 = vpow2.f32 %v3353_v37  ;;  %v7634_v61 = vpop.f32.mrb[83].mxu1  ;;  %v3666_v42 = vpack.c.bf16 %v9337_v11, %v9337_v11  ;;  %7791 = vmatprep.subr.bf16.mxu0 %v10523_v0 }
 0x182   :  { %8163 = vpow2.f32 %v3355_v52  ;;  %v3735_v61 = vld [vmem:[%s10521_s2 + $0x18] sm:$0xf] }
 0x183   :  { %v9348_v57 = vpop.eup %8157  ;;  %7776 = vmatmul.mubr.msk.bf16.vlgmr.msra.gmra.mrb[128].mxu1 %vm3088_vm2, %v3666_v42 }
 0x184   :  { %7786 = vmatpush3.bf16.msra.mxu1 %v3936_v1  ;;  %v3112_v3 = vpop.xlane.xlu1 %3111  ;;  %v3109_v4 = vpop.xlane.xlu0 %3108  ;;  %v3667_v5 = vpack.c.bf16 %v9348_v57, %v9348_v57  ;;  %7787 = vmatprep.mubr.msk.bf16.mxu1 %vm8410_vm1, %v10523_v0 }
 0x185   :  { %v3288_v17 = vsub.f32 %v9131_v27, %v3112_v3  ;;  %v3287_v18 = vsub.f32 %v9129_v26, %v3109_v4  ;;  %v9357_v19 = vpop.f32.mrb[84].mxu0  ;;  %v9359_v20 = vpop.f32.mrb[84].mxu1  ;;  %7797 = vmatprep.subr.bf16.mxu1 %v10523_v0  ;;  %v3734_v26 = vld [vmem:[%s10521_s2 + $0x14] sm:$0xf] }
 0x186   :  { %7782 = vmatmul.mubr.msk.bf16.vlgmr.msra.gmra.mrb[132].mxu0 %vm3088_vm2, %v3667_v5  ;;  %v3218_v28 = vsel %vm3088_vm2, %v9359_v20, -inf  ;;  %v3215_v32 = vsel %vm3088_vm2, %v9357_v19, -inf  ;;  %v7639_v58 = vpop.f32.mrb[85].mxu0  ;;  %v7645_v27 = vpop.f32.mrb[85].mxu1  ;;  %v4028_v56 = vsel %vm3796_vm3, %v3734_v26, 0 }
 0x187   :  { %v3357_v35 = vmul.f32 1.442695, %v3287_v18  ;;  %3219 = vmax.xlane.f32.xlu1 %v3218_v28  ;;  %3216 = vmax.xlane.f32.xlu0 %v3215_v32  ;;  %v2119_v36 = vpop.f32.mrb[86].mxu0  ;;  %v2165_v37 = vpop.f32.mrb[86].mxu1  ;;  %v3359_v40 = vmul.f32 1.442695, %v3288_v17 }
 0x188   :  { %v9371_v10 = vpop.eup %8159  ;;  %v7640_v51 = vpop.f32.mrb[87].mxu0  ;;  %7792 = vmatpush3.bf16.msra.mxu0 %v3982_v23  ;;  %7793 = vmatprep.mubr.msk.bf16.mxu0 %vm8410_vm1, %v10523_v0  ;;  %v4074_v23 = vsel %vm3796_vm3, %v3735_v61, 0  ;;  %v3736_v27 = vld [vmem:[%s10521_s2 + $0x1c] sm:$0xf] }
 0x189   :  { %v7646_v52 = vpop.f32.mrb[87].mxu1  ;;  %v3668_v53 = vpack.c.bf16 %v9371_v10, %v9371_v10  ;;  %7803 = vmatprep.subr.bf16.mxu0 %v10523_v0  ;;  %8165 = vpow2.f32 %v3357_v35 }
 0x18a   :  { %8167 = vpow2.f32 %v3359_v40 }
 0x18b   :  { %v9382_v42 = vpop.eup %8161  ;;  %7788 = vmatmul.mubr.msk.bf16.vlgmr.msra.gmra.mrb[132].mxu1 %vm3088_vm2, %v3668_v53  ;;  %v4120_v53 = vsel %vm3796_vm3, %v3736_v27, 0 }
 0x18c   :  { %7798 = vmatpush3.bf16.msra.mxu1 %v4028_v56  ;;  %v3118_v1 = vpop.xlane.xlu1 %3117  ;;  %v3115_v2 = vpop.xlane.xlu0 %3114  ;;  %v3669_v3 = vpack.c.bf16 %v9382_v42, %v9382_v42  ;;  %7799 = vmatprep.mubr.msk.bf16.mxu1 %vm8410_vm1, %v10523_v0  ;;  %v3737_v56 = vld [vmem:[%s10521_s2 + $0x20] sm:$0xf] }
 0x18d   :  { %v3290_v4 = vsub.f32 %v9161_v45, %v3118_v1  ;;  %v3289_v5 = vsub.f32 %v9159_v44, %v3115_v2  ;;  %v9391_v17 = vpop.f32.mrb[88].mxu0  ;;  %v9393_v18 = vpop.f32.mrb[88].mxu1  ;;  %7809 = vmatprep.subr.bf16.mxu1 %v10523_v0 }
 0x18e   :  { %v9397_v28 = vpop.eup %8163  ;;  %7794 = vmatmul.mubr.msk.bf16.vlgmr.msra.gmra.mrb[136].mxu0 %vm3088_vm2, %v3669_v3  ;;  %v3224_v32 = vsel %vm3088_vm2, %v9393_v18, -inf  ;;  %v3221_v45 = vsel %vm3088_vm2, %v9391_v17, -inf  ;;  %v7651_v58 = vpop.f32.mrb[89].mxu0 }
 0x18f   :  { %v7657_v44 = vpop.f32.mrb[89].mxu1  ;;  %v3361_v26 = vmul.f32 1.442695, %v3289_v5  ;;  %3225 = vmax.xlane.f32.xlu1 %v3224_v32  ;;  %3222 = vmax.xlane.f32.xlu0 %v3221_v45  ;;  %v2211_v35 = vpop.f32.mrb[90].mxu0  ;;  %v3363_v37 = vmul.f32 1.442695, %v3290_v4  ;;  %v3670_v52 = vpack.c.bf16 %v9397_v28, %v9397_v28 }
 0x190   :  { %v2257_v36 = vpop.f32.mrb[90].mxu1  ;;  %v7652_v40 = vpop.f32.mrb[91].mxu0  ;;  %7804 = vmatpush3.bf16.msra.mxu0 %v4074_v23  ;;  %7805 = vmatprep.mubr.msk.bf16.mxu0 %vm8410_vm1, %v10523_v0  ;;  %v4166_v45 = vsel %vm3796_vm3, %v3737_v56, 0 }
 0x191   :  { %v7658_v51 = vpop.f32.mrb[91].mxu1  ;;  %7815 = vmatprep.subr.bf16.mxu0 %v10523_v0  ;;  %8169 = vpow2.f32 %v3361_v26  ;;  %v3738_v26 = vld [vmem:[%s10521_s2 + $0x24] sm:$0xf] }
 0x192   :  { %8171 = vpow2.f32 %v3363_v37  ;;  %v4212_v56 = vsel %vm3796_vm3, %v3738_v26, 0 }
 0x193   :  { %7800 = vmatmul.mubr.msk.bf16.vlgmr.msra.gmra.mrb[136].mxu1 %vm3088_vm2, %v3670_v52  ;;  %v9417_v61 = vpop.eup %8165 }
 0x194   :  { %7810 = vmatpush3.bf16.msra.mxu1 %v4120_v53  ;;  %v3124_v1 = vpop.xlane.xlu1 %3123  ;;  %v3121_v2 = vpop.xlane.xlu0 %3120  ;;  %7811 = vmatprep.mubr.msk.bf16.mxu1 %vm8410_vm1, %v10523_v0  ;;  %v3671_v32 = vpack.c.bf16 %v9417_v61, %v9417_v61 }
 0x195   :  { %v3292_v3 = vsub.f32 %v9191_v63, %v3124_v1  ;;  %v3291_v4 = vsub.f32 %v9189_v62, %v3121_v2  ;;  %v9423_v5 = vpop.f32.mrb[92].mxu0  ;;  %v9425_v23 = vpop.f32.mrb[92].mxu1  ;;  %7821 = vmatprep.subr.bf16.mxu1 %v10523_v0  ;;  %v3739_v1 = vld [vmem:[%s10521_s2 + $0x28] sm:$0xf] }
 0x196   :  { %v9431_v58 = vpop.eup %8167  ;;  %v3230_v44 = vsel %vm3088_vm2, %v9425_v23, -inf  ;;  %v3227_v63 = vsel %vm3088_vm2, %v9423_v5, -inf  ;;  %v7663_v62 = vpop.f32.mrb[93].mxu0  ;;  %7806 = vmatmul.mubr.msk.bf16.vlgmr.msra.gmra.mrb[140].mxu0 %vm3088_vm2, %v3671_v32 }
 0x197   :  { %v7669_v27 = vpop.f32.mrb[93].mxu1  ;;  %v3365_v35 = vmul.f32 1.442695, %v3291_v4  ;;  %3231 = vmax.xlane.f32.xlu1 %v3230_v44  ;;  %v2303_v36 = vpop.f32.mrb[94].mxu0  ;;  %v3367_v40 = vmul.f32 1.442695, %v3292_v3  ;;  %3228 = vmax.xlane.f32.xlu0 %v3227_v63  ;;  %v3672_v53 = vpack.c.bf16 %v9431_v58, %v9431_v58 }
 0x198   :  { %v2349_v37 = vpop.f32.mrb[94].mxu1  ;;  %v7664_v51 = vpop.f32.mrb[95].mxu0  ;;  %7816 = vmatpush3.bf16.msra.mxu0 %v4166_v45  ;;  %7817 = vmatprep.mubr.msk.bf16.mxu0 %vm8410_vm1, %v10523_v0  ;;  %v4258_v27 = vsel %vm3796_vm3, %v3739_v1, 0 }
 0x199   :  { %v7670_v52 = vpop.f32.mrb[95].mxu1  ;;  %7827 = vmatprep.subr.bf16.mxu0 %v10523_v0  ;;  %8173 = vpow2.f32 %v3365_v35  ;;  %v3740_v37 = vld [vmem:[%s10521_s2 + $0x2c] sm:$0xf] }
 0x19a   :  { %8175 = vpow2.f32 %v3367_v40 }
 0x19b   :  { %7812 = vmatmul.mubr.msk.bf16.vlgmr.msra.gmra.mrb[140].mxu1 %vm3088_vm2, %v3672_v53  ;;  %v9451_v2 = vpop.eup %8169 }
 0x19c   :  { %7822 = vmatpush3.bf16.msra.mxu1 %v4212_v56  ;;  %v3130_v3 = vpop.xlane.xlu1 %3129  ;;  %v3127_v4 = vpop.xlane.xlu0 %3126  ;;  %7823 = vmatprep.mubr.msk.bf16.mxu1 %vm8410_vm1, %v10523_v0  ;;  %v3673_v62 = vpack.c.bf16 %v9451_v2, %v9451_v2 }
 0x19d   :  { %v3294_v32 = vsub.f32 %v9201_v12, %v3130_v3  ;;  %v3293_v45 = vsub.f32 %v9199_v9, %v3127_v4  ;;  %v9457_v44 = vpop.f32.mrb[96].mxu0  ;;  %v9459_v63 = vpop.f32.mrb[96].mxu1  ;;  %7833 = vmatprep.subr.bf16.mxu1 %v10523_v0  ;;  %v4304_v4 = vsel %vm3796_vm3, %v3740_v37, 0 }
 0x19e   :  { %v9465_v26 = vpop.eup %8171  ;;  %v3236_v35 = vsel %vm3088_vm2, %v9459_v63, -inf  ;;  %v3233_v12 = vsel %vm3088_vm2, %v9457_v44, -inf  ;;  %v7675_v9 = vpop.f32.mrb[97].mxu0  ;;  %7818 = vmatmul.mubr.msk.bf16.vlgmr.msra.gmra.mrb[144].mxu0 %vm3088_vm2, %v3673_v62 }
 0x19f   :  { %v7681_v36 = vpop.f32.mrb[97].mxu1  ;;  %v3369_v40 = vmul.f32 1.442695, %v3293_v45  ;;  %3237 = vmax.xlane.f32.xlu1 %v3236_v35  ;;  %v2395_v51 = vpop.f32.mrb[98].mxu0  ;;  %v3371_v53 = vmul.f32 1.442695, %v3294_v32  ;;  %3234 = vmax.xlane.f32.xlu0 %v3233_v12  ;;  %v3674_v3 = vpack.c.bf16 %v9465_v26, %v9465_v26 }
 0x1a0   :  { %v2441_v52 = vpop.f32.mrb[98].mxu1  ;;  %v7676_v56 = vpop.f32.mrb[99].mxu0  ;;  %7828 = vmatpush3.bf16.msra.mxu0 %v4258_v27  ;;  %7829 = vmatprep.mubr.msk.bf16.mxu0 %vm8410_vm1, %v10523_v0  ;;  %v3741_v45 = vld [vmem:[%s10521_s2 + $0x30] sm:$0xf] }
 0x1a1   :  { %v7682_v1 = vpop.f32.mrb[99].mxu1  ;;  %7839 = vmatprep.subr.bf16.mxu0 %v10523_v0  ;;  %8177 = vpow2.f32 %v3369_v40  ;;  %v4350_v40 = vsel %vm3796_vm3, %v3741_v45, 0  ;;  %v3742_v56 = vld [vmem:[%s10521_s2 + $0x34] sm:$0xf] }
 0x1a2   :  { %8179 = vpow2.f32 %v3371_v53 }
 0x1a3   :  { %7824 = vmatmul.mubr.msk.bf16.vlgmr.msra.gmra.mrb[144].mxu1 %vm3088_vm2, %v3674_v3  ;;  %v9485_v32 = vpop.eup %8173 }
 0x1a4   :  { %7834 = vmatpush3.bf16.msra.mxu1 %v4304_v4  ;;  %v3136_v62 = vpop.xlane.xlu1 %3135  ;;  %v3133_v27 = vpop.xlane.xlu0 %3132  ;;  %7835 = vmatprep.mubr.msk.bf16.mxu1 %vm8410_vm1, %v10523_v0  ;;  %v3675_v37 = vpack.c.bf16 %v9485_v32, %v9485_v32 }
 0x1a5   :  { %v3296_v35 = vsub.f32 %v9209_v22, %v3136_v62  ;;  %v3295_v12 = vsub.f32 %v9207_v21, %v3133_v27  ;;  %v9491_v9 = vpop.f32.mrb[100].mxu0  ;;  %v9493_v36 = vpop.f32.mrb[100].mxu1  ;;  %7845 = vmatprep.subr.bf16.mxu1 %v10523_v0 }
 0x1a6   :  { %10538 = vst [vmem:[#allocation2_spill] sm:$0xff] %v9491_v9  ;;  %10539 = vst [vmem:[#allocation3_spill] sm:$0xff] %v9493_v36  ;;  %v9499_v51 = vpop.eup %8175  ;;  %v3242_v52 = vsel %vm3088_vm2, %v9493_v36, -inf  ;;  %v3239_v22 = vsel %vm3088_vm2, %v9491_v9, -inf  ;;  %v7687_v21 = vpop.f32.mrb[101].mxu0  ;;  %7830 = vmatmul.mubr.msk.bf16.vlgmr.msra.gmra.mrb[148].mxu0 %vm3088_vm2, %v3675_v37 }
 0x1a7   :  { %v7693_v53 = vpop.f32.mrb[101].mxu1  ;;  %v3373_v1 = vmul.f32 1.442695, %v3295_v12  ;;  %3243 = vmax.xlane.f32.xlu1 %v3242_v52  ;;  %v2487_v3 = vpop.f32.mrb[102].mxu0  ;;  %v3375_v45 = vmul.f32 1.442695, %v3296_v35  ;;  %3240 = vmax.xlane.f32.xlu0 %v3239_v22  ;;  %v3676_v0 = vpack.c.bf16 %v9499_v51, %v9499_v51 }
 0x1a8   :  { %v2533_v4 = vpop.f32.mrb[102].mxu1  ;;  %v7688_v62 = vpop.f32.mrb[103].mxu0  ;;  %7840 = vmatpush3.bf16.msra.mxu0 %v4350_v40  ;;  %v4396_v21 = vsel %vm3796_vm3, %v3742_v56, 0  ;;  %v10540_v53 = vmov 0.0   ;;  %v3743_v12 = vld [vmem:[%s10521_s2 + $0x38] sm:$0xf] }
 0x1a9   :  { %v7694_v27 = vpop.f32.mrb[103].mxu1  ;;  %7841 = vmatprep.mubr.msk.bf16.mxu0 %vm8410_vm1, %v10540_v53  ;;  %7851 = vmatprep.subr.bf16.mxu0 %v10540_v53  ;;  %8181 = vpow2.f32 %v3373_v1  ;;  %v4442_v3 = vsel %vm3796_vm3, %v3743_v12, 0 }
 0x1aa   :  { %8183 = vpow2.f32 %v3375_v45  ;;  %v3744_v27 = vld [vmem:[%s10521_s2 + $0x3c] sm:$0xf] }
 0x1ab   :  { %7836 = vmatmul.mubr.msk.bf16.vlgmr.msra.gmra.mrb[148].mxu1 %vm3088_vm2, %v3676_v0  ;;  %v9519_v35 = vpop.eup %8177 }
 0x1ac   :  { %7846 = vmatpush3.bf16.msra.mxu1 %v4396_v21  ;;  %v3142_v37 = vpop.xlane.xlu1 %3141  ;;  %v3139_v40 = vpop.xlane.xlu0 %3138  ;;  %7847 = vmatprep.mubr.msk.bf16.mxu1 %vm8410_vm1, %v10540_v53  ;;  %v3677_v0 = vpack.c.bf16 %v9519_v35, %v9519_v35 }
 0x1ad   :  { %v3298_v52 = vsub.f32 %v9217_v34, %v3142_v37  ;;  %v3297_v22 = vsub.f32 %v9215_v33, %v3139_v40  ;;  %v9525_v56 = vpop.f32.mrb[104].mxu0  ;;  %v9527_v1 = vpop.f32.mrb[104].mxu1  ;;  %7857 = vmatprep.subr.bf16.mxu1 %v10540_v53 }
 0x1ae   :  { %10541 = vst [vmem:[#allocation4_spill] sm:$0xff] %v9525_v56  ;;  %10542 = vst [vmem:[#allocation5_spill] sm:$0xff] %v9527_v1  ;;  %v9533_v4 = vpop.eup %8179  ;;  %v3248_v45 = vsel %vm3088_vm2, %v9527_v1, -inf  ;;  %v3245_v34 = vsel %vm3088_vm2, %v9525_v56, -inf  ;;  %v7699_v33 = vpop.f32.mrb[105].mxu0  ;;  %7842 = vmatmul.mubr.msk.bf16.vlgmr.msra.gmra.mrb[152].mxu0 %vm3088_vm2, %v3677_v0 }
 0x1af   :  { %v7705_v62 = vpop.f32.mrb[105].mxu1  ;;  %v3377_v21 = vmul.f32 1.442695, %v3297_v22  ;;  %3249 = vmax.xlane.f32.xlu1 %v3248_v45  ;;  %v2579_v37 = vpop.f32.mrb[106].mxu0  ;;  %v3379_v40 = vmul.f32 1.442695, %v3298_v52  ;;  %3246 = vmax.xlane.f32.xlu0 %v3245_v34  ;;  %v3678_v56 = vpack.c.bf16 %v9533_v4, %v9533_v4 }
 0x1b0   :  { %v2625_v12 = vpop.f32.mrb[106].mxu1  ;;  %v7700_v9 = vpop.f32.mrb[107].mxu0  ;;  %7852 = vmatpush3.bf16.msra.mxu0 %v4442_v3  ;;  %v4488_v33 = vsel %vm3796_vm3, %v3744_v27, 0  ;;  %7853 = vmatprep.mubr.msk.bf16.mxu0 %vm8410_vm1, %v10540_v53  ;;  %v3745_v22 = vld [vmem:[%s10521_s2 + $0x40] sm:$0xf] }
 0x1b1   :  { %v7706_v36 = vpop.f32.mrb[107].mxu1  ;;  %7863 = vmatprep.subr.bf16.mxu0 %v10540_v53  ;;  %8185 = vpow2.f32 %v3377_v21  ;;  %v4534_v62 = vsel %vm3796_vm3, %v3745_v22, 0  ;;  %v3746_v12 = vld [vmem:[%s10521_s2 + $0x44] sm:$0xf] }
 0x1b2   :  { %8187 = vpow2.f32 %v3379_v40 }
 0x1b3   :  { %7848 = vmatmul.mubr.msk.bf16.vlgmr.msra.gmra.mrb[152].mxu1 %vm3088_vm2, %v3678_v56  ;;  %v9553_v9 = vpop.eup %8181 }
 0x1b4   :  { %7858 = vmatpush3.bf16.msra.mxu1 %v4488_v33  ;;  %v3148_v36 = vpop.xlane.xlu1 %3147  ;;  %v3145_v52 = vpop.xlane.xlu0 %3144  ;;  %7859 = vmatprep.mubr.msk.bf16.mxu1 %vm8410_vm1, %v10540_v53  ;;  %v3679_v56 = vpack.c.bf16 %v9553_v9, %v9553_v9 }
 0x1b5   :  { %v3300_v0 = vsub.f32 %v9225_v48, %v3148_v36  ;;  %v3299_v3 = vsub.f32 %v9223_v47, %v3145_v52  ;;  %v9559_v45 = vpop.f32.mrb[108].mxu0  ;;  %v9561_v34 = vpop.f32.mrb[108].mxu1  ;;  %7869 = vmatprep.subr.bf16.mxu1 %v10540_v53 }
 0x1b6   :  { %10543 = vst [vmem:[#allocation6_spill] sm:$0xff] %v9559_v45  ;;  %10544 = vst [vmem:[#allocation7_spill] sm:$0xff] %v9561_v34  ;;  %v9567_v27 = vpop.eup %8183  ;;  %v3254_v21 = vsel %vm3088_vm2, %v9561_v34, -inf  ;;  %v3251_v48 = vsel %vm3088_vm2, %v9559_v45, -inf  ;;  %v7711_v47 = vpop.f32.mrb[109].mxu0  ;;  %7854 = vmatmul.mubr.msk.bf16.vlgmr.msra.gmra.mrb[156].mxu0 %vm3088_vm2, %v3679_v56 }
 0x1b7   :  { %v7717_v37 = vpop.f32.mrb[109].mxu1  ;;  %v3381_v40 = vmul.f32 1.442695, %v3299_v3  ;;  %3255 = vmax.xlane.f32.xlu1 %v3254_v21  ;;  %v2671_v33 = vpop.f32.mrb[110].mxu0  ;;  %v3383_v36 = vmul.f32 1.442695, %v3300_v0  ;;  %3252 = vmax.xlane.f32.xlu0 %v3251_v48  ;;  %v3680_v45 = vpack.c.bf16 %v9567_v27, %v9567_v27 }
 0x1b8   :  { %v2717_v22 = vpop.f32.mrb[110].mxu1  ;;  %v7712_v52 = vpop.f32.mrb[111].mxu0  ;;  %7864 = vmatpush3.bf16.msra.mxu0 %v4534_v62  ;;  %v4580_v47 = vsel %vm3796_vm3, %v3746_v12, 0  ;;  %7865 = vmatprep.mubr.msk.bf16.mxu0 %vm8410_vm1, %v10540_v53  ;;  %v3747_v3 = vld [vmem:[%s10521_s2 + $0x48] sm:$0xf] }
 0x1b9   :  { %v7718_v1 = vpop.f32.mrb[111].mxu1  ;;  %7875 = vmatprep.subr.bf16.mxu0 %v10540_v53  ;;  %8189 = vpow2.f32 %v3381_v40  ;;  %v4626_v12 = vsel %vm3796_vm3, %v3747_v3, 0 }
 0x1ba   :  { %8191 = vpow2.f32 %v3383_v36  ;;  %v3748_v36 = vld [vmem:[%s10521_s2 + $0x4c] sm:$0xf] }
 0x1bb   :  { %7860 = vmatmul.mubr.msk.bf16.vlgmr.msra.gmra.mrb[156].mxu1 %vm3088_vm2, %v3680_v45  ;;  %v9587_v0 = vpop.eup %8185 }
 0x1bc   :  { %7870 = vmatpush3.bf16.msra.mxu1 %v4580_v47  ;;  %v3154_v1 = vpop.xlane.xlu1 %3153  ;;  %v3151_v56 = vpop.xlane.xlu0 %3150  ;;  %7871 = vmatprep.mubr.msk.bf16.mxu1 %vm8410_vm1, %v10540_v53  ;;  %v3681_v45 = vpack.c.bf16 %v9587_v0, %v9587_v0 }
 0x1bd   :  { %v3302_v62 = vsub.f32 %v9233_v60, %v3154_v1  ;;  %v3301_v21 = vsub.f32 %v9231_v59, %v3151_v56  ;;  %v9593_v48 = vpop.f32.mrb[112].mxu0  ;;  %v9595_v37 = vpop.f32.mrb[112].mxu1  ;;  %7881 = vmatprep.subr.bf16.mxu1 %v10540_v53 }
 0x1be   :  { %10545 = vst [vmem:[#allocation8_spill] sm:$0xff] %v9593_v48  ;;  %10546 = vst [vmem:[#allocation9_spill] sm:$0xff] %v9595_v37  ;;  %v9601_v40 = vpop.eup %8187  ;;  %v3260_v33 = vsel %vm3088_vm2, %v9595_v37, -inf  ;;  %v3257_v60 = vsel %vm3088_vm2, %v9593_v48, -inf  ;;  %v7723_v59 = vpop.f32.mrb[113].mxu0  ;;  %7866 = vmatmul.mubr.msk.bf16.vlgmr.msra.gmra.mrb[160].mxu0 %vm3088_vm2, %v3681_v45 }
 0x1bf   :  { %v7729_v22 = vpop.f32.mrb[113].mxu1  ;;  %v3385_v52 = vmul.f32 1.442695, %v3301_v21  ;;  %3261 = vmax.xlane.f32.xlu1 %v3260_v33  ;;  %v2763_v47 = vpop.f32.mrb[114].mxu0  ;;  %v3387_v1 = vmul.f32 1.442695, %v3302_v62  ;;  %3258 = vmax.xlane.f32.xlu0 %v3257_v60  ;;  %v3682_v48 = vpack.c.bf16 %v9601_v40, %v9601_v40 }
 0x1c0   :  { %v2809_v3 = vpop.f32.mrb[114].mxu1  ;;  %v7724_v56 = vpop.f32.mrb[115].mxu0  ;;  %7876 = vmatpush3.bf16.msra.mxu0 %v4626_v12  ;;  %v4672_v59 = vsel %vm3796_vm3, %v3748_v36, 0  ;;  %7877 = vmatprep.mubr.msk.bf16.mxu0 %vm8410_vm1, %v10540_v53  ;;  %v3749_v21 = vld [vmem:[%s10521_s2 + $0x50] sm:$0xf] }
 0x1c1   :  { %v7730_v34 = vpop.f32.mrb[115].mxu1  ;;  %7887 = vmatprep.subr.bf16.mxu0 %v10540_v53  ;;  %8193 = vpow2.f32 %v3385_v52  ;;  %v4718_v36 = vsel %vm3796_vm3, %v3749_v21, 0 }
 0x1c2   :  { %8195 = vpow2.f32 %v3387_v1  ;;  %v3750_v1 = vld [vmem:[%s10521_s2 + $0x54] sm:$0xf] }
 0x1c3   :  { %7872 = vmatmul.mubr.msk.bf16.vlgmr.msra.gmra.mrb[160].mxu1 %vm3088_vm2, %v3682_v48  ;;  %v9621_v62 = vpop.eup %8189 }
 0x1c4   :  { %7882 = vmatpush3.bf16.msra.mxu1 %v4672_v59  ;;  %v3160_v34 = vpop.xlane.xlu1 %3159  ;;  %v3157_v45 = vpop.xlane.xlu0 %3156  ;;  %7883 = vmatprep.mubr.msk.bf16.mxu1 %vm8410_vm1, %v10540_v53  ;;  %v3683_v48 = vpack.c.bf16 %v9621_v62, %v9621_v62 }
 0x1c5   :  { %v3304_v12 = vsub.f32 %v9241_v13, %v3160_v34  ;;  %v3303_v33 = vsub.f32 %v9239_v8, %v3157_v45  ;;  %v9627_v60 = vpop.f32.mrb[116].mxu0  ;;  %v9629_v22 = vpop.f32.mrb[116].mxu1  ;;  %7893 = vmatprep.subr.bf16.mxu1 %v10540_v53 }
 0x1c6   :  { %10547 = vst [vmem:[#allocation10_spill] sm:$0xff] %v9627_v60  ;;  %10548 = vst [vmem:[#allocation11_spill] sm:$0xff] %v9629_v22  ;;  %v9635_v52 = vpop.eup %8191  ;;  %v3266_v47 = vsel %vm3088_vm2, %v9629_v22, -inf  ;;  %v3263_v13 = vsel %vm3088_vm2, %v9627_v60, -inf  ;;  %v7735_v8 = vpop.f32.mrb[117].mxu0  ;;  %7878 = vmatmul.mubr.msk.bf16.vlgmr.msra.gmra.mrb[164].mxu0 %vm3088_vm2, %v3683_v48 }
 0x1c7   :  { %v7741_v3 = vpop.f32.mrb[117].mxu1  ;;  %v3389_v56 = vmul.f32 1.442695, %v3303_v33  ;;  %3267 = vmax.xlane.f32.xlu1 %v3266_v47  ;;  %v2855_v59 = vpop.f32.mrb[118].mxu0  ;;  %v3391_v34 = vmul.f32 1.442695, %v3304_v12  ;;  %3264 = vmax.xlane.f32.xlu0 %v3263_v13  ;;  %v3684_v60 = vpack.c.bf16 %v9635_v52, %v9635_v52 }
 0x1c8   :  { %v2901_v21 = vpop.f32.mrb[118].mxu1  ;;  %v7736_v45 = vpop.f32.mrb[119].mxu0  ;;  %7888 = vmatpush3.bf16.msra.mxu0 %v4718_v36  ;;  %v4764_v8 = vsel %vm3796_vm3, %v3750_v1, 0  ;;  %7889 = vmatprep.mubr.msk.bf16.mxu0 %vm8410_vm1, %v10540_v53  ;;  %v3751_v33 = vld [vmem:[%s10521_s2 + $0x58] sm:$0xf] }
 0x1c9   :  { %v7742_v37 = vpop.f32.mrb[119].mxu1  ;;  %7899 = vmatprep.subr.bf16.mxu0 %v10540_v53  ;;  %8197 = vpow2.f32 %v3389_v56  ;;  %v4810_v1 = vsel %vm3796_vm3, %v3751_v33, 0 }
 0x1ca   :  { %8199 = vpow2.f32 %v3391_v34  ;;  %v3752_v34 = vld [vmem:[%s10521_s2 + $0x5c] sm:$0xf] }
 0x1cb   :  { %7884 = vmatmul.mubr.msk.bf16.vlgmr.msra.gmra.mrb[164].mxu1 %vm3088_vm2, %v3684_v60  ;;  %v9655_v12 = vpop.eup %8193 }
 0x1cc   :  { %7894 = vmatpush3.bf16.msra.mxu1 %v4764_v8  ;;  %v3166_v37 = vpop.xlane.xlu1 %3165  ;;  %v3163_v48 = vpop.xlane.xlu0 %3162  ;;  %7895 = vmatprep.mubr.msk.bf16.mxu1 %vm8410_vm1, %v10540_v53  ;;  %v3685_v60 = vpack.c.bf16 %v9655_v12, %v9655_v12 }
 0x1cd   :  { %v3306_v36 = vsub.f32 %v9249_v25, %v3166_v37  ;;  %v3305_v47 = vsub.f32 %v9247_v24, %v3163_v48  ;;  %v9661_v13 = vpop.f32.mrb[120].mxu0  ;;  %v9663_v3 = vpop.f32.mrb[120].mxu1  ;;  %7905 = vmatprep.subr.bf16.mxu1 %v10540_v53 }
 0x1ce   :  { %10549 = vst [vmem:[#allocation12_spill] sm:$0xff] %v9661_v13  ;;  %10550 = vst [vmem:[#allocation13_spill] sm:$0xff] %v9663_v3  ;;  %v9669_v56 = vpop.eup %8195  ;;  %v3272_v59 = vsel %vm3088_vm2, %v9663_v3, -inf  ;;  %v3269_v25 = vsel %vm3088_vm2, %v9661_v13, -inf  ;;  %v7747_v24 = vpop.f32.mrb[121].mxu0  ;;  %7890 = vmatmul.mubr.msk.bf16.vlgmr.msra.gmra.mrb[168].mxu0 %vm3088_vm2, %v3685_v60 }
 0x1cf   :  { %v7753_v21 = vpop.f32.mrb[121].mxu1  ;;  %v3393_v45 = vmul.f32 1.442695, %v3305_v47  ;;  %3273 = vmax.xlane.f32.xlu1 %v3272_v59  ;;  %v2947_v8 = vpop.f32.mrb[122].mxu0  ;;  %v3395_v37 = vmul.f32 1.442695, %v3306_v36  ;;  %3270 = vmax.xlane.f32.xlu0 %v3269_v25  ;;  %v3686_v13 = vpack.c.bf16 %v9669_v56, %v9669_v56 }
 0x1d0   :  { %v2993_v33 = vpop.f32.mrb[122].mxu1  ;;  %v7748_v48 = vpop.f32.mrb[123].mxu0  ;;  %7900 = vmatpush3.bf16.msra.mxu0 %v4810_v1  ;;  %v4856_v24 = vsel %vm3796_vm3, %v3752_v34, 0  ;;  %7901 = vmatprep.mubr.msk.bf16.mxu0 %vm8410_vm1, %v10540_v53  ;;  %v3753_v47 = vld [vmem:[%s10521_s2 + $0x60] sm:$0xf] }
 0x1d1   :  { %v7754_v22 = vpop.f32.mrb[123].mxu1  ;;  %7911 = vmatprep.subr.bf16.mxu0 %v10540_v53  ;;  %8201 = vpow2.f32 %v3393_v45  ;;  %v4902_v34 = vsel %vm3796_vm3, %v3753_v47, 0 }
 0x1d2   :  { %8203 = vpow2.f32 %v3395_v37  ;;  %v3754_v37 = vld [vmem:[%s10521_s2 + $0x64] sm:$0xf] }
 0x1d3   :  { %7896 = vmatmul.mubr.msk.bf16.vlgmr.msra.gmra.mrb[168].mxu1 %vm3088_vm2, %v3686_v13  ;;  %v9689_v36 = vpop.eup %8197 }
 0x1d4   :  { %7906 = vmatpush3.bf16.msra.mxu1 %v4856_v24  ;;  %v3172_v22 = vpop.xlane.xlu1 %3171  ;;  %v3169_v60 = vpop.xlane.xlu0 %3168  ;;  %7907 = vmatprep.mubr.msk.bf16.mxu1 %vm8410_vm1, %v10540_v53  ;;  %v3687_v13 = vpack.c.bf16 %v9689_v36, %v9689_v36 }
 0x1d5   :  { %v3308_v1 = vsub.f32 %v9257_v39, %v3172_v22  ;;  %v3307_v59 = vsub.f32 %v9255_v38, %v3169_v60  ;;  %v9695_v25 = vpop.f32.mrb[124].mxu0  ;;  %v9697_v21 = vpop.f32.mrb[124].mxu1  ;;  %7917 = vmatprep.subr.bf16.mxu1 %v10540_v53 }
 0x1d6   :  { %10551 = vst [vmem:[#allocation14_spill] sm:$0xff] %v9695_v25  ;;  %v9703_v45 = vpop.eup %8199  ;;  %v3278_v8 = vsel %vm3088_vm2, %v9697_v21, -inf  ;;  %v3275_v39 = vsel %vm3088_vm2, %v9695_v25, -inf  ;;  %v7759_v38 = vpop.f32.mrb[125].mxu0  ;;  %7902 = vmatmul.mubr.msk.bf16.vlgmr.msra.gmra.mrb[172].mxu0 %vm3088_vm2, %v3687_v13 }
 0x1d7   :  { %v7765_v33 = vpop.f32.mrb[125].mxu1  ;;  %v3397_v48 = vmul.f32 1.442695, %v3307_v59  ;;  %3279 = vmax.xlane.f32.xlu1 %v3278_v8  ;;  %v3039_v24 = vpop.f32.mrb[126].mxu0  ;;  %v3399_v22 = vmul.f32 1.442695, %v3308_v1  ;;  %3276 = vmax.xlane.f32.xlu0 %v3275_v39  ;;  %v3688_v25 = vpack.c.bf16 %v9703_v45, %v9703_v45 }
 0x1d8   :  { %v3085_v47 = vpop.f32.mrb[126].mxu1  ;;  %v7760_v60 = vpop.f32.mrb[127].mxu0  ;;  %7912 = vmatpush3.bf16.msra.mxu0 %v4902_v34  ;;  %v4948_v38 = vsel %vm3796_vm3, %v3754_v37, 0  ;;  %7913 = vmatprep.mubr.msk.bf16.mxu0 %vm8410_vm1, %v10540_v53  ;;  %v3476_v59 = vsel %vm3088_vm2, %v9337_v11, 0.0  ;;  %v3755_v1 = vld [vmem:[%s10521_s2 + $0x68] sm:$0xf] }
 0x1d9   :  { %v7766_v3 = vpop.f32.mrb[127].mxu1  ;;  %7923 = vmatprep.subr.bf16.mxu0 %v10540_v53  ;;  %8205 = vpow2.f32 %v3397_v48  ;;  %v3482_v37 = vsel %vm3088_vm2, %v9371_v10, 0.0  ;;  %v3479_v48 = vsel %vm3088_vm2, %v9348_v57, 0.0  ;;  %v3488_v10 = vsel %vm3088_vm2, %v9397_v28, 0.0  ;;  %v3757_v57 = vld [vmem:[%s10521_s2 + $0x70] sm:$0xf] }
 0x1da   :  { %v3473_v3 = vsel %vm3088_vm2, %v9318_v16, 0.0  ;;  %8207 = vpow2.f32 %v3399_v22  ;;  %v4994_v16 = vsel %vm3796_vm3, %v3755_v1, 0  ;;  %v3485_v60 = vsel %vm3088_vm2, %v9382_v42, 0.0 }
 0x1db   :  { %7908 = vmatmul.mubr.msk.bf16.vlgmr.msra.gmra.mrb[172].mxu1 %vm3088_vm2, %v3688_v25  ;;  %3477 = vadd.xlane.f32.xlu1 %v3476_v59  ;;  %v9727_v13 = vpop.eup %8201  ;;  %v5086_v42 = vsel %vm3796_vm3, %v3757_v57, 0  ;;  %v3506_v57 = vsel %vm3088_vm2, %v9499_v51, 0.0  ;;  %v3512_v51 = vsel %vm3088_vm2, %v9533_v4, 0.0 }
 0x1dc   :  { %7918 = vmatpush3.bf16.msra.mxu1 %v4948_v38  ;;  %3474 = vadd.xlane.f32.xlu0 %v3473_v3  ;;  %v3178_v34 = vpop.xlane.xlu1 %3177  ;;  %v3175_v8 = vpop.xlane.xlu0 %3174  ;;  %v3689_v33 = vpack.c.bf16 %v9727_v13, %v9727_v13 }
 0x1dd   :  { %v3310_v39 = vsub.f32 %v9265_v55, %v3178_v34  ;;  %v3309_v11 = vsub.f32 %v9263_v54, %v3175_v8  ;;  %7919 = vmatprep.mubr.msk.bf16.mxu1 %vm8410_vm1, %v10540_v53  ;;  %7929 = vmatprep.subr.bf16.mxu1 %v10540_v53  ;;  %v9737_v25 = vpop.eup %8203  ;;  %v3756_v55 = vld [vmem:[%s10521_s2 + $0x6c] sm:$0xf] }
 0x1de   :  { %7914 = vmatmul.mubr.msk.bf16.vlgmr.msra.gmra.mrb[176].mxu0 %vm3088_vm2, %v3689_v33  ;;  %v3690_v47 = vpack.c.bf16 %v9737_v25, %v9737_v25  ;;  %v5040_v22 = vsel %vm3796_vm3, %v3756_v55, 0  ;;  %v3497_v55 = vsel %vm3088_vm2, %v9451_v2, 0.0 }
 0x1df   :  { %v3401_v54 = vmul.f32 1.442695, %v3309_v11  ;;  %3483 = vadd.xlane.f32.xlu1 %v3482_v37  ;;  %v3403_v24 = vmul.f32 1.442695, %v3310_v39  ;;  %7924 = vmatpush3.bf16.msra.mxu0 %v4994_v16  ;;  %v3494_v39 = vsel %vm3088_vm2, %v9431_v58, 0.0  ;;  %v3491_v11 = vsel %vm3088_vm2, %v9417_v61, 0.0 }
 0x1e0   :  { %3480 = vadd.xlane.f32.xlu0 %v3479_v48  ;;  %7925 = vmatprep.mubr.msk.bf16.mxu0 %vm8410_vm1, %v10540_v53  ;;  %v3500_v58 = vsel %vm3088_vm2, %v9465_v26, 0.0  ;;  %v3759_v61 = vld [vmem:[%s10521_s2 + $0x78] sm:$0xf] }
 0x1e1   :  { %7935 = vmatprep.subr.bf16.mxu0 %v10540_v53  ;;  %8209 = vpow2.f32 %v3401_v54  ;;  %v5178_v2 = vsel %vm3796_vm3, %v3759_v61, 0 }
 0x1e2   :  { %8211 = vpow2.f32 %v3403_v24 }
 0x1e3   :  { %7920 = vmatmul.mubr.msk.bf16.vlgmr.msra.gmra.mrb[176].mxu1 %vm3088_vm2, %v3690_v47  ;;  %3489 = vadd.xlane.f32.xlu1 %v3488_v10  ;;  %v9761_v38 = vpop.eup %8205 }
 0x1e4   :  { %7930 = vmatpush3.bf16.msra.mxu1 %v5040_v22  ;;  %3486 = vadd.xlane.f32.xlu0 %v3485_v60  ;;  %v3184_v59 = vpop.xlane.xlu1 %3183  ;;  %v3181_v1 = vpop.xlane.xlu0 %3180  ;;  %v3691_v34 = vpack.c.bf16 %v9761_v38, %v9761_v38  ;;  %v3503_v60 = vsel %vm3088_vm2, %v9485_v32, 0.0  ;;  %v3761_v32 = vld [vmem:[%s10521_s2 + $0x80] sm:$0xf] }
 0x1e5   :  { %v3312_v3 = vsub.f32 %v9273_v14, %v3184_v59  ;;  %v3311_v28 = vsub.f32 %v9271_v7, %v3181_v1  ;;  %7931 = vmatprep.mubr.msk.bf16.mxu1 %vm8410_vm1, %v10540_v53  ;;  %7941 = vmatprep.subr.bf16.mxu1 %v10540_v53  ;;  %v9771_v8 = vpop.eup %8207  ;;  %v3758_v14 = vld [vmem:[%s10521_s2 + $0x74] sm:$0xf] }
 0x1e6   :  { %7926 = vmatmul.mubr.msk.bf16.vlgmr.msra.gmra.mrb[180].mxu0 %vm3088_vm2, %v3691_v34  ;;  %v3692_v16 = vpack.c.bf16 %v9771_v8, %v9771_v8  ;;  %v5132_v37 = vsel %vm3796_vm3, %v3758_v14, 0 }
 0x1e7   :  { %v3405_v7 = vmul.f32 1.442695, %v3311_v28  ;;  %3495 = vadd.xlane.f32.xlu1 %v3494_v39  ;;  %v3407_v33 = vmul.f32 1.442695, %v3312_v3  ;;  %7936 = vmatpush3.bf16.msra.mxu0 %v5086_v42  ;;  %v3509_v28 = vsel %vm3088_vm2, %v9519_v35, 0.0  ;;  %v5270_v35 = vsel %vm3796_vm3, %v3761_v32, 0 }
 0x1e8   :  { %3492 = vadd.xlane.f32.xlu0 %v3491_v11  ;;  %7937 = vmatprep.mubr.msk.bf16.mxu0 %vm8410_vm1, %v10540_v53 }
 0x1e9   :  { %7947 = vmatprep.subr.bf16.mxu0 %v10540_v53  ;;  %8213 = vpow2.f32 %v3405_v7 }
 0x1ea   :  { %8215 = vpow2.f32 %v3407_v33  ;;  %v3518_v33 = vsel %vm3088_vm2, %v9567_v27, 0.0  ;;  %v3524_v27 = vsel %vm3088_vm2, %v9601_v40, 0.0 }
 0x1eb   :  { %7932 = vmatmul.mubr.msk.bf16.vlgmr.msra.gmra.mrb[180].mxu1 %vm3088_vm2, %v3692_v16  ;;  %3501 = vadd.xlane.f32.xlu1 %v3500_v58  ;;  %v9795_v54 = vpop.eup %8209  ;;  %v3515_v16 = vsel %vm3088_vm2, %v9553_v9, 0.0  ;;  %v3763_v9 = vld [vmem:[%s10521_s2 + $0x88] sm:$0xf] }
 0x1ec   :  { %7942 = vmatpush3.bf16.msra.mxu1 %v5132_v37  ;;  %3498 = vadd.xlane.f32.xlu0 %v3497_v55  ;;  %v3190_v48 = vpop.xlane.xlu1 %3189  ;;  %v3187_v24 = vpop.xlane.xlu0 %3186  ;;  %v3693_v22 = vpack.c.bf16 %v9795_v54, %v9795_v54  ;;  %v3521_v55 = vsel %vm3088_vm2, %v9587_v0, 0.0  ;;  %v5362_v0 = vsel %vm3796_vm3, %v3763_v9, 0  ;;  %v3554_v9 = vsel %vm3088_vm2, %v9771_v8, 0.0 }
 0x1ed   :  { %v3314_v47 = vsub.f32 %v9281_v30, %v3190_v48  ;;  %v3313_v26 = vsub.f32 %v9279_v29, %v3187_v24  ;;  %7943 = vmatprep.mubr.msk.bf16.mxu1 %vm8410_vm1, %v10540_v53  ;;  %7953 = vmatprep.subr.bf16.mxu1 %v10540_v53  ;;  %v9805_v10 = vpop.eup %8211  ;;  %v3760_v30 = vld [vmem:[%s10521_s2 + $0x7c] sm:$0xf] }
 0x1ee   :  { %7938 = vmatmul.mubr.msk.bf16.vlgmr.msra.gmra.mrb[184].mxu0 %vm3088_vm2, %v3693_v22  ;;  %v3694_v1 = vpack.c.bf16 %v9805_v10, %v9805_v10  ;;  %v5224_v3 = vsel %vm3796_vm3, %v3760_v30, 0  ;;  %v3527_v30 = vsel %vm3088_vm2, %v9621_v62, 0.0  ;;  %v3765_v62 = vld [vmem:[%s10521_s2 + $0x90] sm:$0xf] }
 0x1ef   :  { %v3409_v29 = vmul.f32 1.442695, %v3313_v26  ;;  %3507 = vadd.xlane.f32.xlu1 %v3506_v57  ;;  %v3411_v59 = vmul.f32 1.442695, %v3314_v47  ;;  %7948 = vmatpush3.bf16.msra.mxu0 %v5178_v2  ;;  %v3530_v57 = vsel %vm3088_vm2, %v9635_v52, 0.0  ;;  %v3536_v52 = vsel %vm3088_vm2, %v9669_v56, 0.0 }
 0x1f0   :  { %3504 = vadd.xlane.f32.xlu0 %v3503_v60  ;;  %7949 = vmatprep.mubr.msk.bf16.mxu0 %vm8410_vm1, %v10540_v53 }
 0x1f1   :  { %7959 = vmatprep.subr.bf16.mxu0 %v10540_v53  ;;  %8217 = vpow2.f32 %v3409_v29 }
 0x1f2   :  { %8219 = vpow2.f32 %v3411_v59 }
 0x1f3   :  { %7944 = vmatmul.mubr.msk.bf16.vlgmr.msra.gmra.mrb[184].mxu1 %vm3088_vm2, %v3694_v1  ;;  %3513 = vadd.xlane.f32.xlu1 %v3512_v51  ;;  %v9829_v34 = vpop.eup %8213  ;;  %v3533_v1 = vsel %vm3088_vm2, %v9655_v12, 0.0  ;;  %v5454_v12 = vsel %vm3796_vm3, %v3765_v62, 0 }
 0x1f4   :  { %7954 = vmatpush3.bf16.msra.mxu1 %v5224_v3  ;;  %3510 = vadd.xlane.f32.xlu0 %v3509_v28  ;;  %v3196_v42 = vpop.xlane.xlu1 %3195  ;;  %v3193_v39 = vpop.xlane.xlu0 %3192  ;;  %v3695_v7 = vpack.c.bf16 %v9829_v34, %v9829_v34 }
 0x1f5   :  { %v3316_v14 = vsub.f32 %v9289_v50, %v3196_v42  ;;  %v3315_v4 = vsub.f32 %v9287_v49, %v3193_v39  ;;  %7955 = vmatprep.mubr.msk.bf16.mxu1 %vm8410_vm1, %v10540_v53  ;;  %7965 = vmatprep.subr.bf16.mxu1 %v10540_v53  ;;  %v9839_v11 = vpop.eup %8215  ;;  %v3762_v50 = vld [vmem:[%s10521_s2 + $0x84] sm:$0xf] }
 0x1f6   :  { %7950 = vmatmul.mubr.msk.bf16.vlgmr.msra.gmra.mrb[188].mxu0 %vm3088_vm2, %v3695_v7  ;;  %v3696_v58 = vpack.c.bf16 %v9839_v11, %v9839_v11  ;;  %v5316_v61 = vsel %vm3796_vm3, %v3762_v50, 0  ;;  %v3545_v50 = vsel %vm3088_vm2, %v9727_v13, 0.0 }
 0x1f7   :  { %v3413_v49 = vmul.f32 1.442695, %v3315_v4  ;;  %3519 = vadd.xlane.f32.xlu1 %v3518_v33  ;;  %v3415_v37 = vmul.f32 1.442695, %v3316_v14  ;;  %7960 = vmatpush3.bf16.msra.mxu0 %v5270_v35  ;;  %v3542_v14 = vsel %vm3088_vm2, %v9703_v45, 0.0  ;;  %v3539_v4 = vsel %vm3088_vm2, %v9689_v36, 0.0 }
 0x1f8   :  { %3516 = vadd.xlane.f32.xlu0 %v3515_v16  ;;  %7961 = vmatprep.mubr.msk.bf16.mxu0 %vm8410_vm1, %v10540_v53  ;;  %v3548_v45 = vsel %vm3088_vm2, %v9737_v25, 0.0  ;;  %v3767_v36 = vld [vmem:[%s10521_s2 + $0x98] sm:$0xf] }
 0x1f9   :  { %7971 = vmatprep.subr.bf16.mxu0 %v10540_v53  ;;  %8221 = vpow2.f32 %v3413_v49 }
 0x1fa   :  { %8223 = vpow2.f32 %v3415_v37 }
 0x1fb   :  { %7956 = vmatmul.mubr.msk.bf16.vlgmr.msra.gmra.mrb[188].mxu1 %vm3088_vm2, %v3696_v58  ;;  %3525 = vadd.xlane.f32.xlu1 %v3524_v27  ;;  %v9863_v48 = vpop.eup %8217 }
 0x1fc   :  { %7966 = vmatpush3.bf16.msra.mxu1 %v5316_v61  ;;  %3522 = vadd.xlane.f32.xlu0 %v3521_v55  ;;  %v3202_v24 = vpop.xlane.xlu1 %3201  ;;  %v3199_v47 = vpop.xlane.xlu0 %3198  ;;  %v3697_v22 = vpack.c.bf16 %v9863_v48, %v9863_v48  ;;  %v5546_v61 = vsel %vm3796_vm3, %v3767_v36, 0 }
 0x1fd   :  { %v3318_v26 = vsub.f32 %v9298_v15, %v3202_v24  ;;  %v3317_v40 = vsub.f32 %v9296_v6, %v3199_v47  ;;  %7967 = vmatprep.mubr.msk.bf16.mxu1 %vm8410_vm1, %v10540_v53  ;;  %7977 = vmatprep.subr.bf16.mxu1 %v10540_v53  ;;  %v9873_v2 = vpop.eup %8219  ;;  %v3764_v15 = vld [vmem:[%s10521_s2 + $0x8c] sm:$0xf]  ;;  %v3551_v24 = vsel %vm3088_vm2, %v9761_v38, 0.0  ;;  %v3769_v38 = vld [vmem:[%s10521_s2 + $0xa0] sm:$0xf] }
 0x1fe   :  { %7962 = vmatmul.mubr.msk.bf16.vlgmr.msra.gmra.mrb[192].mxu0 %vm3088_vm2, %v3697_v22  ;;  %v3698_v60 = vpack.c.bf16 %v9873_v2, %v9873_v2  ;;  %v5408_v59 = vsel %vm3796_vm3, %v3764_v15, 0 }
 0x1ff   :  { %v3417_v6 = vmul.f32 1.442695, %v3317_v40  ;;  %3531 = vadd.xlane.f32.xlu1 %v3530_v57  ;;  %v3419_v29 = vmul.f32 1.442695, %v3318_v26  ;;  %7972 = vmatpush3.bf16.msra.mxu0 %v5362_v0  ;;  %v3560_v26 = vsel %vm3088_vm2, %v9805_v10, 0.0  ;;  %v3557_v40 = vsel %vm3088_vm2, %v9795_v54, 0.0 }
 0x200   :  { %3528 = vadd.xlane.f32.xlu0 %v3527_v30  ;;  %7973 = vmatprep.mubr.msk.bf16.mxu0 %vm8410_vm1, %v10540_v53  ;;  %v5638_v54 = vsel %vm3796_vm3, %v3769_v38, 0 }
 0x201   :  { %7983 = vmatprep.subr.bf16.mxu0 %v10540_v53  ;;  %8225 = vpow2.f32 %v3417_v6 }
 0x202   :  { %8227 = vpow2.f32 %v3419_v29  ;;  %v3566_v29 = vsel %vm3088_vm2, %v9839_v11, 0.0  ;;  %v3572_v11 = vsel %vm3088_vm2, %v9873_v2, 0.0 }
 0x203   :  { %7968 = vmatmul.mubr.msk.bf16.vlgmr.msra.gmra.mrb[192].mxu1 %vm3088_vm2, %v3698_v60  ;;  %3537 = vadd.xlane.f32.xlu1 %v3536_v52  ;;  %v9897_v3 = vpop.eup %8221  ;;  %v3563_v60 = vsel %vm3088_vm2, %v9829_v34, 0.0  ;;  %v3771_v34 = vld [vmem:[%s10521_s2 + $0xa8] sm:$0xf] }
 0x204   :  { %7978 = vmatpush3.bf16.msra.mxu1 %v5408_v59  ;;  %3534 = vadd.xlane.f32.xlu0 %v3533_v1  ;;  %v3208_v51 = vpop.xlane.xlu1 %3207  ;;  %v3205_v32 = vpop.xlane.xlu0 %3204  ;;  %v3699_v42 = vpack.c.bf16 %v9897_v3, %v9897_v3 }
 0x205   :  { %v3320_v28 = vsub.f32 %v9308_v46, %v3208_v51  ;;  %v3319_v56 = vsub.f32 %v9306_v43, %v3205_v32  ;;  %7979 = vmatprep.mubr.msk.bf16.mxu1 %vm8410_vm1, %v10540_v53  ;;  %7989 = vmatprep.subr.bf16.mxu1 %v10540_v53  ;;  %v9907_v39 = vpop.eup %8223  ;;  %v3766_v46 = vld [vmem:[%s10521_s2 + $0x94] sm:$0xf]  ;;  %v3569_v51 = vsel %vm3088_vm2, %v9863_v48, 0.0 }
 0x206   :  { %7974 = vmatmul.mubr.msk.bf16.vlgmr.msra.gmra.mrb[196].mxu0 %vm3088_vm2, %v3699_v42  ;;  %v3700_v35 = vpack.c.bf16 %v9907_v39, %v9907_v39  ;;  %v5500_v33 = vsel %vm3796_vm3, %v3766_v46, 0  ;;  %v3772_v46 = vld [vmem:[%s10521_s2 + $0xac] sm:$0xf] }
 0x207   :  { %v3421_v43 = vmul.f32 1.442695, %v3319_v56  ;;  %3543 = vadd.xlane.f32.xlu1 %v3542_v14  ;;  %v3423_v7 = vmul.f32 1.442695, %v3320_v28  ;;  %7984 = vmatpush3.bf16.msra.mxu0 %v5454_v12  ;;  %v5730_v12 = vsel %vm3796_vm3, %v3771_v34, 0  ;;  %v3578_v14 = vsel %vm3088_vm2, %v9907_v39, 0.0 }
 0x208   :  { %3540 = vadd.xlane.f32.xlu0 %v3539_v4  ;;  %7985 = vmatprep.mubr.msk.bf16.mxu0 %vm8410_vm1, %v10540_v53 }
 0x209   :  { %7995 = vmatprep.subr.bf16.mxu0 %v10540_v53  ;;  %8229 = vpow2.f32 %v3421_v43 }
 0x20a   :  { %8231 = vpow2.f32 %v3423_v7  ;;  %v5776_v7 = vsel %vm3796_vm3, %v3772_v46, 0  ;;  %v3779_v46 = vld [vmem:[%s10521_s2 + $0xc8] sm:$0xf] }
 0x20b   :  { %7980 = vmatmul.mubr.msk.bf16.vlgmr.msra.gmra.mrb[196].mxu1 %vm3088_vm2, %v3700_v35  ;;  %3549 = vadd.xlane.f32.xlu1 %v3548_v45  ;;  %v9931_v49 = vpop.eup %8225  ;;  %v3773_v35 = vld [vmem:[%s10521_s2 + $0xb0] sm:$0xf] }
 0x20c   :  { %7990 = vmatpush3.bf16.msra.mxu1 %v5500_v33  ;;  %3546 = vadd.xlane.f32.xlu0 %v3545_v50  ;;  %v3211_v16 = vpop.xlane.xlu0 %3210  ;;  %v3701_v25 = vpack.c.bf16 %v9931_v49, %v9931_v49  ;;  %v9940_v13 = vpop.eup %8227 }
 0x20d   :  { %v3214_v37 = vpop.xlane.xlu1 %3213  ;;  %v3321_v58 = vsub.f32 %v9324_v31, %v3211_v16  ;;  %7991 = vmatprep.mubr.msk.bf16.mxu1 %vm8410_vm1, %v10540_v53  ;;  %8001 = vmatprep.subr.bf16.mxu1 %v10540_v53  ;;  %v3768_v31 = vld [vmem:[%s10521_s2 + $0x9c] sm:$0xf]  ;;  %v3584_v39 = vsel %vm3088_vm2, %v9940_v13, 0.0 }
 0x20e   :  { %v3322_v27 = vsub.f32 %v9327_v41, %v3214_v37  ;;  %7986 = vmatmul.mubr.msk.bf16.vlgmr.msra.gmra.mrb[200].mxu0 %vm3088_vm2, %v3701_v25  ;;  %v3702_v41 = vpack.c.bf16 %v9940_v13, %v9940_v13  ;;  %v5592_v8 = vsel %vm3796_vm3, %v3768_v31, 0  ;;  %v5822_v37 = vsel %vm3796_vm3, %v3773_v35, 0 }
 0x20f   :  { %v3425_v55 = vmul.f32 1.442695, %v3321_v58  ;;  %3555 = vadd.xlane.f32.xlu1 %v3554_v9  ;;  %7996 = vmatpush3.bf16.msra.mxu0 %v5546_v61  ;;  %v3774_v61 = vld [vmem:[%s10521_s2 + $0xb4] sm:$0xf] }
 0x210   :  { %v3427_v47 = vmul.f32 1.442695, %v3322_v27  ;;  %3552 = vadd.xlane.f32.xlu0 %v3551_v24  ;;  %7997 = vmatprep.mubr.msk.bf16.mxu0 %vm8410_vm1, %v10540_v53 }
 0x211   :  { %8233 = vpow2.f32 %v3425_v55  ;;  %8007 = vmatprep.subr.bf16.mxu0 %v10540_v53  ;;  %v3775_v55 = vld [vmem:[%s10521_s2 + $0xb8] sm:$0xf] }
 0x212   :  { %8235 = vpow2.f32 %v3427_v47 }
 0x213   :  { %7992 = vmatmul.mubr.msk.bf16.vlgmr.msra.gmra.mrb[200].mxu1 %vm3088_vm2, %v3702_v41  ;;  %3561 = vadd.xlane.f32.xlu1 %v3560_v26  ;;  %v9965_v22 = vpop.eup %8229 }
 0x214   :  { %8002 = vmatpush3.bf16.msra.mxu1 %v5592_v8  ;;  %3558 = vadd.xlane.f32.xlu0 %v3557_v40  ;;  %v3220_v0 = vpop.xlane.xlu1 %3219  ;;  %v3217_v57 = vpop.xlane.xlu0 %3216  ;;  %v3703_v6 = vpack.c.bf16 %v9965_v22, %v9965_v22  ;;  %v3587_v13 = vsel %vm3088_vm2, %v9965_v22, 0.0  ;;  %v5914_v40 = vsel %vm3796_vm3, %v3775_v55, 0 }
 0x215   :  { %v3324_v15 = vsub.f32 %v9359_v20, %v3220_v0  ;;  %v3323_v10 = vsub.f32 %v9357_v19, %v3217_v57  ;;  %8003 = vmatprep.mubr.msk.bf16.mxu1 %vm8410_vm1, %v10540_v53  ;;  %8013 = vmatprep.subr.bf16.mxu1 %v10540_v53  ;;  %v9975_v30 = vpop.eup %8231  ;;  %v3770_v20 = vld [vmem:[%s10521_s2 + $0xa4] sm:$0xf] }
 0x216   :  { %7998 = vmatmul.mubr.msk.bf16.vlgmr.msra.gmra.mrb[204].mxu0 %vm3088_vm2, %v3703_v6  ;;  %v3704_v52 = vpack.c.bf16 %v9975_v30, %v9975_v30  ;;  %v5684_v62 = vsel %vm3796_vm3, %v3770_v20, 0 }
 0x217   :  { %v3429_v19 = vmul.f32 1.442695, %v3323_v10  ;;  %3567 = vadd.xlane.f32.xlu1 %v3566_v29  ;;  %v3431_v59 = vmul.f32 1.442695, %v3324_v15  ;;  %8008 = vmatpush3.bf16.msra.mxu0 %v5638_v54  ;;  %v3776_v15 = vld [vmem:[%s10521_s2 + $0xbc] sm:$0xf] }
 0x218   :  { %3564 = vadd.xlane.f32.xlu0 %v3563_v60  ;;  %8009 = vmatprep.mubr.msk.bf16.mxu0 %vm8410_vm1, %v10540_v53  ;;  %v3777_v29 = vld [vmem:[%s10521_s2 + $0xc0] sm:$0xf] }
 0x219   :  { %8019 = vmatprep.subr.bf16.mxu0 %v10540_v53  ;;  %8237 = vpow2.f32 %v3429_v19 }
 0x21a   :  { %8239 = vpow2.f32 %v3431_v59 }
 0x21b   :  { %v9996_v1 = vpop.eup %8233  ;;  %8004 = vmatmul.mubr.msk.bf16.vlgmr.msra.gmra.mrb[204].mxu1 %vm3088_vm2, %v3704_v52  ;;  %3573 = vadd.xlane.f32.xlu1 %v3572_v11  ;;  %v10552_v52 = vld [vmem:[#allocation3_spill] sm:$0xff] }
 0x21c   :  { %8014 = vmatpush3.bf16.msra.mxu1 %v5684_v62  ;;  %3570 = vadd.xlane.f32.xlu0 %v3569_v51  ;;  %v3226_v32 = vpop.xlane.xlu1 %3225  ;;  %v3223_v28 = vpop.xlane.xlu0 %3222  ;;  %v3705_v2 = vpack.c.bf16 %v9996_v1, %v9996_v1  ;;  %v3593_v24 = vsel %vm3088_vm2, %v9996_v1, 0.0  ;;  %v6006_v1 = vsel %vm3796_vm3, %v3777_v29, 0  ;;  %v10553_v51 = vld [vmem:[#allocation2_spill] sm:$0xff] }
 0x21d   :  { %v3326_v56 = vsub.f32 %v9393_v18, %v3226_v32  ;;  %v3325_v42 = vsub.f32 %v9391_v17, %v3223_v28  ;;  %8015 = vmatprep.mubr.msk.bf16.mxu1 %vm8410_vm1, %v10540_v53  ;;  %8025 = vmatprep.subr.bf16.mxu1 %v10540_v53  ;;  %v8236_v48 = vpop.eup %8235  ;;  %v3575_v17 = vsel %vm3088_vm2, %v9897_v3, 0.0  ;;  %v3581_v3 = vsel %vm3088_vm2, %v9931_v49, 0.0 }
 0x21e   :  { %8010 = vmatmul.mubr.msk.bf16.vlgmr.msra.gmra.mrb[208].mxu0 %vm3088_vm2, %v3705_v2  ;;  %v3706_v4 = vpack.c.bf16 %v8236_v48, %v8236_v48  ;;  %v3590_v49 = vsel %vm3088_vm2, %v9975_v30, 0.0  ;;  %v3596_v31 = vsel %vm3088_vm2, %v8236_v48, 0.0  ;;  %v5960_v30 = vsel %vm3796_vm3, %v3776_v15, 0  ;;  %v3778_v2 = vld [vmem:[%s10521_s2 + $0xc4] sm:$0xf] }
 0x21f   :  { %v3433_v43 = vmul.f32 1.442695, %v3325_v42  ;;  %3579 = vadd.xlane.f32.xlu1 %v3578_v14  ;;  %v3435_v18 = vmul.f32 1.442695, %v3326_v56  ;;  %8020 = vmatpush3.bf16.msra.mxu0 %v5730_v12  ;;  %v6052_v14 = vsel %vm3796_vm3, %v3778_v2, 0 }
 0x220   :  { %3576 = vadd.xlane.f32.xlu0 %v3575_v17  ;;  %8021 = vmatprep.mubr.msk.bf16.mxu0 %vm8410_vm1, %v10540_v53  ;;  %v3783_v15 = vld [vmem:[%s10521_s2 + $0xd8] sm:$0xf]  ;;  %v3785_v2 = vld [vmem:[%s10521_s2 + $0xe0] sm:$0xf] }
 0x221   :  { %8031 = vmatprep.subr.bf16.mxu0 %v10540_v53  ;;  %8241 = vpow2.f32 %v3433_v43 }
 0x222   :  { %8243 = vpow2.f32 %v3435_v18 }
 0x223   :  { %8016 = vmatmul.mubr.msk.bf16.vlgmr.msra.gmra.mrb[208].mxu1 %vm3088_vm2, %v3706_v4  ;;  %3585 = vadd.xlane.f32.xlu1 %v3584_v39  ;;  %v8238_v33 = vpop.eup %8237 }
 0x224   :  { %8026 = vmatpush3.bf16.msra.mxu1 %v5776_v7  ;;  %3582 = vadd.xlane.f32.xlu0 %v3581_v3  ;;  %v3232_v45 = vpop.xlane.xlu1 %3231  ;;  %v3229_v50 = vpop.xlane.xlu0 %3228  ;;  %v3707_v16 = vpack.c.bf16 %v8238_v33, %v8238_v33  ;;  %v10554_v7 = vld [vmem:[#allocation5_spill] sm:$0xff] }
 0x225   :  { %v3328_v36 = vsub.f32 %v9425_v23, %v3232_v45  ;;  %8027 = vmatprep.mubr.msk.bf16.mxu1 %vm8410_vm1, %v10540_v53  ;;  %8037 = vmatprep.subr.bf16.mxu1 %v10540_v53  ;;  %v8240_v58 = vpop.eup %8239  ;;  %v3327_v25 = vsub.f32 %v9423_v5, %v3229_v50  ;;  %v5868_v5 = vsel %vm3796_vm3, %v3774_v61, 0  ;;  %v6098_v45 = vsel %vm3796_vm3, %v3779_v46, 0  ;;  %v3781_v61 = vld [vmem:[%s10521_s2 + $0xd0] sm:$0xf] }
 0x226   :  { %8022 = vmatmul.mubr.msk.bf16.vlgmr.msra.gmra.mrb[212].mxu0 %vm3088_vm2, %v3707_v16  ;;  %v3708_v9 = vpack.c.bf16 %v8240_v58, %v8240_v58  ;;  %v3602_v57 = vsel %vm3088_vm2, %v8240_v58, 0.0  ;;  %v3780_v16 = vld [vmem:[%s10521_s2 + $0xcc] sm:$0xf] }
 0x227   :  { %v3439_v23 = vmul.f32 1.442695, %v3328_v36  ;;  %3591 = vadd.xlane.f32.xlu1 %v3590_v49  ;;  %v3437_v27 = vmul.f32 1.442695, %v3327_v25  ;;  %8032 = vmatpush3.bf16.msra.mxu0 %v5822_v37  ;;  %v10555_v36 = vld [vmem:[#allocation4_spill] sm:$0xff]  ;;  %v6144_v49 = vsel %vm3796_vm3, %v3780_v16, 0 }
 0x228   :  { %3588 = vadd.xlane.f32.xlu0 %v3587_v13  ;;  %8033 = vmatprep.mubr.msk.bf16.mxu0 %vm8410_vm1, %v10540_v53 }
 0x229   :  { %8245 = vpow2.f32 %v3439_v23  ;;  %8043 = vmatprep.subr.bf16.mxu0 %v10540_v53 }
 0x22a   :  { %8247 = vpow2.f32 %v3437_v27 }
 0x22b   :  { %8028 = vmatmul.mubr.msk.bf16.vlgmr.msra.gmra.mrb[212].mxu1 %vm3088_vm2, %v3708_v9  ;;  %3597 = vadd.xlane.f32.xlu1 %v3596_v31  ;;  %v8242_v47 = vpop.eup %8241 }
 0x22c   :  { %8038 = vmatpush3.bf16.msra.mxu1 %v5868_v5  ;;  %3594 = vadd.xlane.f32.xlu0 %v3593_v24  ;;  %v3238_v41 = vpop.xlane.xlu1 %3237  ;;  %v3235_v26 = vpop.xlane.xlu0 %3234  ;;  %v3709_v38 = vpack.c.bf16 %v8242_v47, %v8242_v47  ;;  %v3605_v19 = vsel %vm3088_vm2, %v8242_v47, 0.0  ;;  %v10556_v5 = vld [vmem:[#allocation7_spill] sm:$0xff] }
 0x22d   :  { %v3330_v8 = vsub.f32 %v9459_v63, %v3238_v41  ;;  %8039 = vmatprep.mubr.msk.bf16.mxu1 %vm8410_vm1, %v10540_v53  ;;  %8049 = vmatprep.subr.bf16.mxu1 %v10540_v53  ;;  %v8244_v22 = vpop.eup %8243  ;;  %v3329_v0 = vsub.f32 %v9457_v44, %v3235_v26  ;;  %v3599_v63 = vsel %vm3088_vm2, %v8238_v33, 0.0  ;;  %v6190_v41 = vsel %vm3796_vm3, %v3781_v61, 0 }
 0x22e   :  { %8034 = vmatmul.mubr.msk.bf16.vlgmr.msra.gmra.mrb[216].mxu0 %vm3088_vm2, %v3709_v38  ;;  %v3710_v54 = vpack.c.bf16 %v8244_v22, %v8244_v22  ;;  %v3608_v44 = vsel %vm3088_vm2, %v8244_v22, 0.0  ;;  %v3782_v38 = vld [vmem:[%s10521_s2 + $0xd4] sm:$0xf] }
 0x22f   :  { %v3443_v10 = vmul.f32 1.442695, %v3330_v8  ;;  %3603 = vadd.xlane.f32.xlu1 %v3602_v57  ;;  %v3441_v6 = vmul.f32 1.442695, %v3329_v0  ;;  %8044 = vmatpush3.bf16.msra.mxu0 %v5914_v40  ;;  %v10557_v8 = vld [vmem:[#allocation6_spill] sm:$0xff]  ;;  %v6236_v57 = vsel %vm3796_vm3, %v3782_v38, 0 }
 0x230   :  { %3600 = vadd.xlane.f32.xlu0 %v3599_v63  ;;  %8045 = vmatprep.mubr.msk.bf16.mxu0 %vm8410_vm1, %v10540_v53 }
 0x231   :  { %8249 = vpow2.f32 %v3443_v10  ;;  %8055 = vmatprep.subr.bf16.mxu0 %v10540_v53 }
 0x232   :  { %8251 = vpow2.f32 %v3441_v6 }
 0x233   :  { %v8246_v20 = vpop.eup %8245  ;;  %8040 = vmatmul.mubr.msk.bf16.vlgmr.msra.gmra.mrb[216].mxu1 %vm3088_vm2, %v3710_v54  ;;  %3609 = vadd.xlane.f32.xlu1 %v3608_v44 }
 0x234   :  { %v8248_v60 = vpop.eup %8247  ;;  %8050 = vmatpush3.bf16.msra.mxu1 %v5960_v30  ;;  %3606 = vadd.xlane.f32.xlu0 %v3605_v19  ;;  %v3244_v59 = vpop.xlane.xlu1 %3243  ;;  %v3614_v28 = vsel %vm3088_vm2, %v8246_v20, 0.0  ;;  %v3712_v48 = vpack.c.bf16 %v8246_v20, %v8246_v20  ;;  %v10558_v30 = vld [vmem:[#allocation9_spill] sm:$0xff] }
 0x235   :  { %v3332_v62 = vsub.f32 %v10552_v52, %v3244_v59  ;;  %v3241_v11 = vpop.xlane.xlu0 %3240  ;;  %v3711_v34 = vpack.c.bf16 %v8248_v60, %v8248_v60  ;;  %8051 = vmatprep.mubr.msk.bf16.mxu1 %vm8410_vm1, %v10540_v53  ;;  %8061 = vmatprep.subr.bf16.mxu1 %v10540_v53  ;;  %v3611_v42 = vsel %vm3088_vm2, %v8248_v60, 0.0  ;;  %v6282_v60 = vsel %vm3796_vm3, %v3783_v15, 0  ;;  %v10559_v59 = vld [vmem:[#allocation8_spill] sm:$0xff]  ;;  %v3788_v15 = vld [vmem:[%s10521_s2 + $0xec] sm:$0xf] }
 0x236   :  { %v3331_v32 = vsub.f32 %v10553_v51, %v3241_v11 }
 0x237   :  { %v3447_v56 = vmul.f32 1.442695, %v3332_v62  ;;  %8046 = vmatmul.mubr.msk.bf16.vlgmr.msra.gmra.mrb[220].mxu0 %vm3088_vm2, %v3711_v34  ;;  %3615 = vadd.xlane.f32.xlu1 %v3614_v28  ;;  %v3784_v62 = vld [vmem:[%s10521_s2 + $0xdc] sm:$0xf] }
 0x238   :  { %v3445_v12 = vmul.f32 1.442695, %v3331_v32  ;;  %3612 = vadd.xlane.f32.xlu0 %v3611_v42  ;;  %8056 = vmatpush3.bf16.msra.mxu0 %v6006_v1  ;;  %v6328_v32 = vsel %vm3796_vm3, %v3784_v62, 0 }
 0x239   :  { %8253 = vpow2.f32 %v3447_v56  ;;  %8057 = vmatprep.mubr.msk.bf16.mxu0 %vm8410_vm1, %v10540_v53  ;;  %8067 = vmatprep.subr.bf16.mxu0 %v10540_v53 }
 0x23a   :  { %8255 = vpow2.f32 %v3445_v12 }
 0x23b   :  { %v8250_v43 = vpop.eup %8249  ;;  %8052 = vmatmul.mubr.msk.bf16.vlgmr.msra.gmra.mrb[220].mxu1 %vm3088_vm2, %v3712_v48 }
 0x23c   :  { %v8252_v17 = vpop.eup %8251  ;;  %8062 = vmatpush3.bf16.msra.mxu1 %v6052_v14  ;;  %v3250_v18 = vpop.xlane.xlu1 %3249  ;;  %v3620_v4 = vsel %vm3088_vm2, %v8250_v43, 0.0  ;;  %8063 = vmatprep.mubr.msk.bf16.mxu1 %vm8410_vm1, %v10540_v53  ;;  %v3714_v25 = vpack.c.bf16 %v8250_v43, %v8250_v43  ;;  %v10560_v43 = vld [vmem:[#allocation11_spill] sm:$0xff] }
 0x23d   :  { %v3334_v39 = vsub.f32 %v10554_v7, %v3250_v18  ;;  %v3247_v35 = vpop.xlane.xlu0 %3246  ;;  %3621 = vadd.xlane.f32.xlu1 %v3620_v4  ;;  %v3617_v3 = vsel %vm3088_vm2, %v8252_v17, 0.0  ;;  %v3713_v33 = vpack.c.bf16 %v8252_v17, %v8252_v17  ;;  %8073 = vmatprep.subr.bf16.mxu1 %v10540_v53 }
 0x23e   :  { %v3333_v50 = vsub.f32 %v10555_v36, %v3247_v35  ;;  %3618 = vadd.xlane.f32.xlu0 %v3617_v3  ;;  %v10561_v35 = vld [vmem:[#allocation10_spill] sm:$0xff] }
 0x23f   :  { %v3451_v37 = vmul.f32 1.442695, %v3334_v39  ;;  %8058 = vmatmul.mubr.msk.bf16.vlgmr.msra.gmra.mrb[224].mxu0 %vm3088_vm2, %v3713_v33  ;;  %v6374_v39 = vsel %vm3796_vm3, %v3785_v2, 0 }
 0x240   :  { %v3449_v58 = vmul.f32 1.442695, %v3333_v50  ;;  %8068 = vmatpush3.bf16.msra.mxu0 %v6098_v45  ;;  %8069 = vmatprep.mubr.msk.bf16.mxu0 %vm8410_vm1, %v10540_v53  ;;  %v3786_v45 = vld [vmem:[%s10521_s2 + $0xe4] sm:$0xf] }
 0x241   :  { %8257 = vpow2.f32 %v3451_v37  ;;  %8079 = vmatprep.subr.bf16.mxu0 %v10540_v53  ;;  %v6420_v61 = vsel %vm3796_vm3, %v3786_v45, 0 }
 0x242   :  { %8259 = vpow2.f32 %v3449_v58 }
 0x243   :  { %v8254_v23 = vpop.eup %8253  ;;  %8064 = vmatmul.mubr.msk.bf16.vlgmr.msra.gmra.mrb[224].mxu1 %vm3088_vm2, %v3714_v25 }
 0x244   :  { %v8256_v13 = vpop.eup %8255  ;;  %8074 = vmatpush3.bf16.msra.mxu1 %v6144_v49  ;;  %v3256_v27 = vpop.xlane.xlu1 %3255  ;;  %v3626_v9 = vsel %vm3088_vm2, %v8254_v23, 0.0  ;;  %8075 = vmatprep.mubr.msk.bf16.mxu1 %vm8410_vm1, %v10540_v53  ;;  %v3716_v0 = vpack.c.bf16 %v8254_v23, %v8254_v23 }
 0x245   :  { %v3336_v31 = vsub.f32 %v10556_v5, %v3256_v27  ;;  %v3253_v55 = vpop.xlane.xlu0 %3252  ;;  %3627 = vadd.xlane.f32.xlu1 %v3626_v9  ;;  %v3623_v24 = vsel %vm3088_vm2, %v8256_v13, 0.0  ;;  %v3715_v47 = vpack.c.bf16 %v8256_v13, %v8256_v13  ;;  %8085 = vmatprep.subr.bf16.mxu1 %v10540_v53  ;;  %v3787_v13 = vld [vmem:[%s10521_s2 + $0xe8] sm:$0xf] }
 0x246   :  { %v3335_v26 = vsub.f32 %v10557_v8, %v3253_v55  ;;  %3624 = vadd.xlane.f32.xlu0 %v3623_v24 }
 0x247   :  { %v3455_v40 = vmul.f32 1.442695, %v3336_v31  ;;  %8070 = vmatmul.mubr.msk.bf16.vlgmr.msra.gmra.mrb[228].mxu0 %vm3088_vm2, %v3715_v47  ;;  %v10562_v47 = vld [vmem:[#allocation13_spill] sm:$0xff] }
 0x248   :  { %v3453_v22 = vmul.f32 1.442695, %v3335_v26  ;;  %8080 = vmatpush3.bf16.msra.mxu0 %v6190_v41  ;;  %8081 = vmatprep.mubr.msk.bf16.mxu0 %vm8410_vm1, %v10540_v53 }
 0x249   :  { %8261 = vpow2.f32 %v3455_v40  ;;  %8091 = vmatprep.subr.bf16.mxu0 %v10540_v53  ;;  %v6466_v40 = vsel %vm3796_vm3, %v3787_v13, 0 }
 0x24a   :  { %8263 = vpow2.f32 %v3453_v22  ;;  %v10563_v22 = vld [vmem:[#allocation12_spill] sm:$0xff] }
 0x24b   :  { %v8258_v10 = vpop.eup %8257  ;;  %8076 = vmatmul.mubr.msk.bf16.vlgmr.msra.gmra.mrb[228].mxu1 %vm3088_vm2, %v3716_v0 }
 0x24c   :  { %v8260_v63 = vpop.eup %8259  ;;  %8086 = vmatpush3.bf16.msra.mxu1 %v6236_v57  ;;  %v3262_v6 = vpop.xlane.xlu1 %3261  ;;  %v3632_v54 = vsel %vm3088_vm2, %v8258_v10, 0.0  ;;  %8087 = vmatprep.mubr.msk.bf16.mxu1 %vm8410_vm1, %v10540_v53  ;;  %v3718_v51 = vpack.c.bf16 %v8258_v10, %v8258_v10 }
 0x24d   :  { %v3338_v44 = vsub.f32 %v10558_v30, %v3262_v6  ;;  %v3259_v29 = vpop.xlane.xlu0 %3258  ;;  %3633 = vadd.xlane.f32.xlu1 %v3632_v54  ;;  %v3629_v20 = vsel %vm3088_vm2, %v8260_v63, 0.0  ;;  %v3717_v19 = vpack.c.bf16 %v8260_v63, %v8260_v63  ;;  %8097 = vmatprep.subr.bf16.mxu1 %v10540_v53 }
 0x24e   :  { %v3337_v52 = vsub.f32 %v10559_v59, %v3259_v29  ;;  %3630 = vadd.xlane.f32.xlu0 %v3629_v20  ;;  %v6512_v20 = vsel %vm3796_vm3, %v3788_v15, 0 }
 0x24f   :  { %v3459_v11 = vmul.f32 1.442695, %v3338_v44  ;;  %8082 = vmatmul.mubr.msk.bf16.vlgmr.msra.gmra.mrb[232].mxu0 %vm3088_vm2, %v3717_v19 }
 0x250   :  { %v3457_v34 = vmul.f32 1.442695, %v3337_v52  ;;  %8092 = vmatpush3.bf16.msra.mxu0 %v6282_v60  ;;  %8093 = vmatprep.mubr.msk.bf16.mxu0 %vm8410_vm1, %v10540_v53  ;;  %v3789_v60 = vld [vmem:[%s10521_s2 + $0xf0] sm:$0xf] }
 0x251   :  { %8265 = vpow2.f32 %v3459_v11  ;;  %v10150_v1 = vpop.f32.mrb[128].mxu0  ;;  %8103 = vmatprep.subr.bf16.mxu0 %v10540_v53 }
 0x252   :  { %8267 = vpow2.f32 %v3457_v34  ;;  %v7771_v28 = vpop.f32.mrb[129].mxu0 }
 0x253   :  { %v8262_v56 = vpop.eup %8261  ;;  %8088 = vmatmul.mubr.msk.bf16.vlgmr.msra.gmra.mrb[232].mxu1 %vm3088_vm2, %v3718_v51  ;;  %v3837_v42 = vpop.f32.mrb[130].mxu0 }
 0x254   :  { %v8264_v12 = vpop.eup %8263  ;;  %8098 = vmatpush3.bf16.msra.mxu1 %v6328_v32  ;;  %v3268_v48 = vpop.xlane.xlu1 %3267  ;;  %v3638_v46 = vsel %vm3088_vm2, %v8262_v56, 0.0  ;;  %8099 = vmatprep.mubr.msk.bf16.mxu1 %vm8410_vm1, %v10540_v53  ;;  %v3720_v49 = vpack.c.bf16 %v8262_v56, %v8262_v56  ;;  %v6558_v42 = vsel %vm3796_vm3, %v3789_v60, 0 }
 0x255   :  { %v7772_v14 = vpop.f32.mrb[131].mxu0  ;;  %v3340_v17 = vsub.f32 %v10560_v43, %v3268_v48  ;;  %v3265_v18 = vpop.xlane.xlu0 %3264  ;;  %3639 = vadd.xlane.f32.xlu1 %v3638_v46  ;;  %v3635_v4 = vsel %vm3088_vm2, %v8264_v12, 0.0  ;;  %v3719_v7 = vpack.c.bf16 %v8264_v12, %v8264_v12  ;;  %8109 = vmatprep.subr.bf16.mxu1 %v10540_v53  ;;  %v10564_v12 = vld [vmem:[#allocation14_spill] sm:$0xff]  ;;  %v3790_v46 = vld [vmem:[%s10521_s2 + $0xf4] sm:$0xf] }
 0x256   :  { %v3339_v3 = vsub.f32 %v10561_v35, %v3265_v18  ;;  %v10166_v33 = vpop.f32.mrb[128].mxu1  ;;  %3636 = vadd.xlane.f32.xlu0 %v3635_v4 }
 0x257   :  { %v3463_v36 = vmul.f32 1.442695, %v3340_v17  ;;  %v7777_v50 = vpop.f32.mrb[129].mxu1  ;;  %8094 = vmatmul.mubr.msk.bf16.vlgmr.msra.gmra.mrb[236].mxu0 %vm3088_vm2, %v3719_v7 }
 0x258   :  { %v3461_v16 = vmul.f32 1.442695, %v3339_v3  ;;  %v3883_v37 = vpop.f32.mrb[130].mxu1  ;;  %8104 = vmatpush3.bf16.msra.mxu0 %v6374_v39  ;;  %8105 = vmatprep.mubr.msk.bf16.mxu0 %vm8410_vm1, %v10540_v53  ;;  %v6604_v3 = vsel %vm3796_vm3, %v3790_v46, 0 }
 0x259   :  { %8269 = vpow2.f32 %v3463_v36  ;;  %v7778_v58 = vpop.f32.mrb[131].mxu1  ;;  %v10174_v25 = vpop.f32.mrb[132].mxu0  ;;  %8115 = vmatprep.subr.bf16.mxu0 %v10540_v53  ;;  %v3791_v36 = vld [vmem:[%s10521_s2 + $0xf8] sm:$0xf] }
 0x25a   :  { %8271 = vpow2.f32 %v3461_v16  ;;  %v7783_v23 = vpop.f32.mrb[133].mxu0 }
 0x25b   :  { %v8266_v27 = vpop.eup %8265  ;;  %8100 = vmatmul.mubr.msk.bf16.vlgmr.msra.gmra.mrb[236].mxu1 %vm3088_vm2, %v3720_v49  ;;  %v3929_v9 = vpop.f32.mrb[134].mxu0 }
 0x25c   :  { %v8268_v5 = vpop.eup %8267  ;;  %8110 = vmatpush3.bf16.msra.mxu1 %v6420_v61  ;;  %v3274_v31 = vpop.xlane.xlu1 %3273  ;;  %v3644_v24 = vsel %vm3088_vm2, %v8266_v27, 0.0  ;;  %8111 = vmatprep.mubr.msk.bf16.mxu1 %vm8410_vm1, %v10540_v53  ;;  %v3722_v29 = vpack.c.bf16 %v8266_v27, %v8266_v27 }
 0x25d   :  { %v7784_v55 = vpop.f32.mrb[135].mxu0  ;;  %v3342_v41 = vsub.f32 %v10562_v47, %v3274_v31  ;;  %v3271_v8 = vpop.xlane.xlu0 %3270  ;;  %3645 = vadd.xlane.f32.xlu1 %v3644_v24  ;;  %v3641_v26 = vsel %vm3088_vm2, %v8268_v5, 0.0  ;;  %v3721_v38 = vpack.c.bf16 %v8268_v5, %v8268_v5  ;;  %8121 = vmatprep.subr.bf16.mxu1 %v10540_v53  ;;  %v6650_v5 = vsel %vm3796_vm3, %v3791_v36, 0 }
 0x25e   :  { %v3341_v0 = vsub.f32 %v10563_v22, %v3271_v8  ;;  %v10190_v57 = vpop.f32.mrb[132].mxu1  ;;  %3642 = vadd.xlane.f32.xlu0 %v3641_v26  ;;  %v3792_v55 = vld [vmem:[%s10521_s2 + $0xfc] sm:$0xf] }
 0x25f   :  { %v3467_v10 = vmul.f32 1.442695, %v3342_v41  ;;  %v7789_v63 = vpop.f32.mrb[133].mxu1  ;;  %8106 = vmatmul.mubr.msk.bf16.vlgmr.msra.gmra.mrb[240].mxu0 %vm3088_vm2, %v3721_v38 }
 0x260   :  { %v3465_v6 = vmul.f32 1.442695, %v3341_v0  ;;  %v3975_v54 = vpop.f32.mrb[134].mxu1  ;;  %8116 = vmatpush3.bf16.msra.mxu0 %v6466_v40  ;;  %8117 = vmatprep.mubr.msk.bf16.mxu0 %vm8410_vm1, %v10540_v53  ;;  %v6696_v40 = vsel %vm3796_vm3, %v3792_v55, 0 }
 0x261   :  { %8273 = vpow2.f32 %v3467_v10  ;;  %v7790_v30 = vpop.f32.mrb[135].mxu1  ;;  %v10198_v44 = vpop.f32.mrb[136].mxu0  ;;  %8127 = vmatprep.subr.bf16.mxu0 %v10540_v53 }
 0x262   :  { %8275 = vpow2.f32 %v3465_v6  ;;  %v7795_v19 = vpop.f32.mrb[137].mxu0 }
 0x263   :  { %v8270_v59 = vpop.eup %8269  ;;  %8112 = vmatmul.mubr.msk.bf16.vlgmr.msra.gmra.mrb[240].mxu1 %vm3088_vm2, %v3722_v29  ;;  %v4021_v52 = vpop.f32.mrb[138].mxu0 }
 0x264   :  { %v8272_v62 = vpop.eup %8271  ;;  %8122 = vmatpush3.bf16.msra.mxu1 %v6512_v20  ;;  %v3280_v11 = vpop.xlane.xlu1 %3279  ;;  %v3650_v51 = vsel %vm3088_vm2, %v8270_v59, 0.0  ;;  %8123 = vmatprep.mubr.msk.bf16.mxu1 %vm8410_vm1, %v10540_v53  ;;  %v3724_v35 = vpack.c.bf16 %v8270_v59, %v8270_v59 }
 0x265   :  { %v7796_v34 = vpop.f32.mrb[139].mxu0  ;;  %v3344_v32 = vsub.f32 %v9697_v21, %v3280_v11  ;;  %v3277_v28 = vpop.xlane.xlu0 %3276  ;;  %3651 = vadd.xlane.f32.xlu1 %v3650_v51  ;;  %v3647_v2 = vsel %vm3088_vm2, %v8272_v62, 0.0  ;;  %v3723_v56 = vpack.c.bf16 %v8272_v62, %v8272_v62  ;;  %8133 = vmatprep.subr.bf16.mxu1 %v10540_v53 }
 0x266   :  { %v3343_v48 = vsub.f32 %v10564_v12, %v3277_v28  ;;  %v10214_v14 = vpop.f32.mrb[136].mxu1  ;;  %3648 = vadd.xlane.f32.xlu0 %v3647_v2 }
 0x267   :  { %v3471_v43 = vmul.f32 1.442695, %v3344_v32  ;;  %v7801_v21 = vpop.f32.mrb[137].mxu1  ;;  %8118 = vmatmul.mubr.msk.bf16.vlgmr.msra.gmra.mrb[244].mxu0 %vm3088_vm2, %v3723_v56 }
 0x268   :  { %v3469_v17 = vmul.f32 1.442695, %v3343_v48  ;;  %v4067_v18 = vpop.f32.mrb[138].mxu1  ;;  %v3478_v4 = vpop.xlane.xlu1 %3477  ;;  %8128 = vmatpush3.bf16.msra.mxu0 %v6558_v42  ;;  %8129 = vmatprep.mubr.msk.bf16.mxu0 %vm8410_vm1, %v10540_v53 }
 0x269   :  { %8277 = vpow2.f32 %v3471_v43  ;;  %v7802_v7 = vpop.f32.mrb[139].mxu1  ;;  %v3475_v39 = vpop.xlane.xlu0 %3474  ;;  %8139 = vmatprep.subr.bf16.mxu0 %v10540_v53 }
 0x26a   :  { %8279 = vpow2.f32 %v3469_v17  ;;  %v10224_v45 = vpop.f32.mrb[140].mxu0 }
 0x26b   :  { %v8274_v50 = vpop.eup %8273  ;;  %8281 = vrcp.f32 %v3478_v4  ;;  %v7807_v16 = vpop.f32.mrb[141].mxu0  ;;  %8124 = vmatmul.mubr.msk.bf16.vlgmr.msra.gmra.mrb[244].mxu1 %vm3088_vm2, %v3724_v35 }
 0x26c   :  { %v8276_v37 = vpop.eup %8275  ;;  %8283 = vrcp.f32 %v3475_v39  ;;  %v4113_v58 = vpop.f32.mrb[142].mxu0  ;;  %8134 = vmatpush3.bf16.msra.mxu1 %v6604_v3  ;;  %v3656_v61 = vsel %vm3088_vm2, %v8274_v50, 0.0  ;;  %8135 = vmatprep.mubr.msk.bf16.mxu1 %vm8410_vm1, %v10540_v53  ;;  %v3726_v38 = vpack.c.bf16 %v8274_v50, %v8274_v50 }
 0x26d   :  { %v3484_v49 = vpop.xlane.xlu1 %3483  ;;  %v3481_v23 = vpop.xlane.xlu0 %3480  ;;  %3657 = vadd.xlane.f32.xlu1 %v3656_v61  ;;  %v3653_v27 = vsel %vm3088_vm2, %v8276_v37, 0.0  ;;  %v3725_v9 = vpack.c.bf16 %v8276_v37, %v8276_v37  ;;  %8145 = vmatprep.subr.bf16.mxu1 %v10540_v53 }
 0x26e   :  { %8285 = vrcp.f32 %v3484_v49  ;;  %v7808_v13 = vpop.f32.mrb[143].mxu0  ;;  %v10236_v31 = vpop.f32.mrb[140].mxu1  ;;  %3654 = vadd.xlane.f32.xlu0 %v3653_v27 }
 0x26f   :  { %8287 = vrcp.f32 %v3481_v23  ;;  %v7813_v24 = vpop.f32.mrb[141].mxu1  ;;  %8130 = vmatmul.mubr.msk.bf16.vlgmr.msra.gmra.mrb[248].mxu0 %vm3088_vm2, %v3725_v9 }
 0x270   :  { %v4159_v47 = vpop.f32.mrb[142].mxu1  ;;  %8140 = vmatpush3.bf16.msra.mxu0 %v6650_v5  ;;  %8141 = vmatprep.mubr.msk.bf16.mxu0 %vm8410_vm1, %v10540_v53 }
 0x271   :  { %v3490_v41 = vpop.xlane.xlu1 %3489  ;;  %v7814_v8 = vpop.f32.mrb[143].mxu1 }
 0x272   :  { %8289 = vrcp.f32 %v3490_v41  ;;  %v3487_v26 = vpop.xlane.xlu0 %3486  ;;  %v10245_v22 = vpop.f32.mrb[144].mxu0 }
 0x273   :  { %8291 = vrcp.f32 %v3487_v26  ;;  %v8278_v0 = vpop.eup %8277  ;;  %v7819_v15 = vpop.f32.mrb[145].mxu0  ;;  %8136 = vmatmul.mubr.msk.bf16.vlgmr.msra.gmra.mrb[248].mxu1 %vm3088_vm2, %v3726_v38 }
 0x274   :  { %v8280_v10 = vpop.eup %8279  ;;  %v4205_v63 = vpop.f32.mrb[146].mxu0  ;;  %8146 = vmatpush3.bf16.msra.mxu1 %v6696_v40  ;;  %v3662_v54 = vsel %vm3088_vm2, %v8278_v0, 0.0  ;;  %8147 = vmatprep.mubr.msk.bf16.mxu1 %vm8410_vm1, %v10540_v53  ;;  %v3728_v46 = vpack.c.bf16 %v8278_v0, %v8278_v0 }
 0x275   :  { %v3496_v6 = vpop.xlane.xlu1 %3495  ;;  %v8282_v30 = vpop.eup %8281  ;;  %3663 = vadd.xlane.f32.xlu1 %v3662_v54  ;;  %v3659_v19 = vsel %vm3088_vm2, %v8280_v10, 0.0  ;;  %v3727_v60 = vpack.c.bf16 %v8280_v10, %v8280_v10 }
 0x276   :  { %8293 = vrcp.f32 %v3496_v6  ;;  %v3493_v29 = vpop.xlane.xlu0 %3492  ;;  %v7820_v20 = vpop.f32.mrb[147].mxu0  ;;  %v6803_v52 = vmul.f32 %v8282_v30, %v10166_v33  ;;  %3660 = vadd.xlane.f32.xlu0 %v3659_v19 }
 0x277   :  { %v8284_v59 = vpop.eup %8283  ;;  %8295 = vrcp.f32 %v3493_v29  ;;  %v4248_v62 = vpop.f32.mrb[144].mxu1  ;;  %8142 = vmatmul.mubr.msk.bf16.vlgmr.msra.gmra.mrb[252].mxu0 %vm3088_vm2, %v3727_v60 }
 0x278   :  { %v8286_v11 = vpop.eup %8285  ;;  %v6802_v34 = vmul.f32 %v8284_v59, %v10150_v1  ;;  %v7825_v51 = vpop.f32.mrb[145].mxu1  ;;  %v6867_v32 = vpack.c.bf16 %v6803_v52, %v6803_v52 }
 0x279   :  { %v8288_v53 = vpop.eup %8287  ;;  %v6805_v28 = vmul.f32 %v8286_v11, %v10190_v57  ;;  %v4251_v2 = vpop.f32.mrb[146].mxu1 }
 0x27a   :  { %v3502_v56 = vpop.xlane.xlu1 %3501  ;;  %v6866_v42 = vpack.c.bf16 %v6802_v34, %v6802_v34  ;;  %v6804_v12 = vmul.f32 %v8288_v53, %v10174_v25  ;;  %v7826_v33 = vpop.f32.mrb[147].mxu1  ;;  %6932 = vst.msk [vmem:[%s10522_s3 + $0x4] sm:$0xf] %vm6930_vm4, %v6867_v32 }
 0x27b   :  { %8297 = vrcp.f32 %v3502_v56  ;;  %v3499_v48 = vpop.xlane.xlu0 %3498  ;;  %v6869_v1 = vpack.c.bf16 %v6805_v28, %v6805_v28  ;;  %v4294_v43 = vpop.f32.mrb[148].mxu0  ;;  %8148 = vmatmul.mubr.msk.bf16.vlgmr.msra.gmra.mrb[252].mxu1 %vm3088_vm2, %v3728_v46 }
 0x27c   :  { %8299 = vrcp.f32 %v3499_v48  ;;  %v8290_v21 = vpop.eup %8289  ;;  %6931 = vst.msk [vmem:[%s10522_s3] sm:$0xf] %vm6930_vm4, %v6866_v42  ;;  %v6868_v57 = vpack.c.bf16 %v6804_v12, %v6804_v12  ;;  %v7831_v25 = vpop.f32.mrb[149].mxu0 }
 0x27d   :  { %v8292_v17 = vpop.eup %8291  ;;  %6934 = vst.msk [vmem:[%s10522_s3 + $0xc] sm:$0xf] %vm6930_vm4, %v6869_v1  ;;  %v6807_v18 = vmul.f32 %v8290_v21, %v10214_v14  ;;  %v4297_v4 = vpop.f32.mrb[150].mxu0 }
 0x27e   :  { %v3508_v7 = vpop.xlane.xlu1 %3507  ;;  %6933 = vst.msk [vmem:[%s10522_s3 + $0x8] sm:$0xf] %vm6930_vm4, %v6868_v57  ;;  %v6806_v39 = vmul.f32 %v8292_v17, %v10198_v44  ;;  %v7832_v3 = vpop.f32.mrb[151].mxu0 }
 0x27f   :  { %8301 = vrcp.f32 %v3508_v7  ;;  %v3505_v35 = vpop.xlane.xlu0 %3504  ;;  %v6871_v36 = vpack.c.bf16 %v6807_v18, %v6807_v18  ;;  %v4340_v50 = vpop.f32.mrb[148].mxu1 }
 0x280   :  { %8303 = vrcp.f32 %v3505_v35  ;;  %v8294_v16 = vpop.eup %8293  ;;  %v6870_v37 = vpack.c.bf16 %v6806_v39, %v6806_v39  ;;  %v7837_v58 = vpop.f32.mrb[149].mxu1 }
 0x281   :  { %v8296_v49 = vpop.eup %8295  ;;  %6936 = vst.msk [vmem:[%s10522_s3 + $0x14] sm:$0xf] %vm6930_vm4, %v6871_v36  ;;  %v6809_v14 = vmul.f32 %v8294_v16, %v10236_v31  ;;  %v4343_v61 = vpop.f32.mrb[150].mxu1 }
 0x282   :  { %v3514_v23 = vpop.xlane.xlu1 %3513  ;;  %6935 = vst.msk [vmem:[%s10522_s3 + $0x10] sm:$0xf] %vm6930_vm4, %v6870_v37  ;;  %v6808_v44 = vmul.f32 %v8296_v49, %v10224_v45  ;;  %v7838_v13 = vpop.f32.mrb[151].mxu1 }
 0x283   :  { %8305 = vrcp.f32 %v3514_v23  ;;  %v3511_v27 = vpop.xlane.xlu0 %3510  ;;  %v6873_v9 = vpack.c.bf16 %v6809_v14, %v6809_v14  ;;  %v4386_v5 = vpop.f32.mrb[152].mxu0 }
 0x284   :  { %8307 = vrcp.f32 %v3511_v27  ;;  %v6872_v24 = vpack.c.bf16 %v6808_v44, %v6808_v44  ;;  %v7843_v47 = vpop.f32.mrb[153].mxu0 }
 0x285   :  { %v8298_v55 = vpop.eup %8297  ;;  %6938 = vst.msk [vmem:[%s10522_s3 + $0x1c] sm:$0xf] %vm6930_vm4, %v6873_v9  ;;  %v4389_v8 = vpop.f32.mrb[154].mxu0 }
 0x286   :  { %v8300_v41 = vpop.eup %8299  ;;  %v6811_v31 = vmul.f32 %v8298_v55, %v4248_v62  ;;  %v3520_v26 = vpop.xlane.xlu1 %3519  ;;  %6937 = vst.msk [vmem:[%s10522_s3 + $0x18] sm:$0xf] %vm6930_vm4, %v6872_v24 }
 0x287   :  { %v6810_v45 = vmul.f32 %v8300_v41, %v10245_v22  ;;  %8309 = vrcp.f32 %v3520_v26  ;;  %v3517_v38 = vpop.xlane.xlu0 %3516  ;;  %v7844_v40 = vpop.f32.mrb[155].mxu0 }
 0x288   :  { %v6875_v0 = vpack.c.bf16 %v6811_v31, %v6811_v31  ;;  %8311 = vrcp.f32 %v3517_v38  ;;  %v4432_v15 = vpop.f32.mrb[152].mxu1 }
 0x289   :  { %v8302_v10 = vpop.eup %8301  ;;  %v6874_v63 = vpack.c.bf16 %v6810_v45, %v6810_v45  ;;  %v7849_v6 = vpop.f32.mrb[153].mxu1 }
 0x28a   :  { %v8304_v54 = vpop.eup %8303  ;;  %6940 = vst.msk [vmem:[%s10522_s3 + $0x24] sm:$0xf] %vm6930_vm4, %v6875_v0  ;;  %v6813_v30 = vmul.f32 %v8302_v10, %v4340_v50  ;;  %v4435_v29 = vpop.f32.mrb[154].mxu1 }
 0x28b   :  { %v3526_v20 = vpop.xlane.xlu1 %3525  ;;  %6939 = vst.msk [vmem:[%s10522_s3 + $0x20] sm:$0xf] %vm6930_vm4, %v6874_v63  ;;  %v6812_v22 = vmul.f32 %v8304_v54, %v4294_v43  ;;  %v7850_v19 = vpop.f32.mrb[155].mxu1 }
 0x28c   :  { %v3523_v60 = vpop.xlane.xlu0 %3522  ;;  %v6877_v59 = vpack.c.bf16 %v6813_v30, %v6813_v30  ;;  %v4478_v52 = vpop.f32.mrb[156].mxu0 }
 0x28d   :  { %8313 = vrcp.f32 %v3523_v60  ;;  %v8306_v62 = vpop.eup %8305  ;;  %v6876_v11 = vpack.c.bf16 %v6812_v22, %v6812_v22  ;;  %v7855_v34 = vpop.f32.mrb[157].mxu0 }
 0x28e   :  { %v8308_v51 = vpop.eup %8307  ;;  %6942 = vst.msk [vmem:[%s10522_s3 + $0x2c] sm:$0xf] %vm6930_vm4, %v6877_v59  ;;  %v6815_v53 = vmul.f32 %v8306_v62, %v4432_v15  ;;  %8315 = vrcp.f32 %v3526_v20  ;;  %v4481_v32 = vpop.f32.mrb[158].mxu0 }
 0x28f   :  { %6941 = vst.msk [vmem:[%s10522_s3 + $0x28] sm:$0xf] %vm6930_vm4, %v6876_v11  ;;  %v6814_v28 = vmul.f32 %v8308_v51, %v4386_v5  ;;  %v7856_v56 = vpop.f32.mrb[159].mxu0  ;;  %v4524_v12 = vpop.f32.mrb[156].mxu1 }
 0x290   :  { %v3529_v2 = vpop.xlane.xlu0 %3528  ;;  %v6879_v42 = vpack.c.bf16 %v6815_v53, %v6815_v53  ;;  %v7861_v46 = vpop.f32.mrb[157].mxu1 }
 0x291   :  { %v8310_v33 = vpop.eup %8309  ;;  %v6878_v48 = vpack.c.bf16 %v6814_v28, %v6814_v28  ;;  %8317 = vrcp.f32 %v3529_v2  ;;  %v4527_v21 = vpop.f32.mrb[158].mxu1 }
 0x292   :  { %v8312_v1 = vpop.eup %8311  ;;  %6944 = vst.msk [vmem:[%s10522_s3 + $0x34] sm:$0xf] %vm6930_vm4, %v6879_v42  ;;  %v6817_v43 = vmul.f32 %v8310_v33, %v4524_v12  ;;  %v3532_v25 = vpop.xlane.xlu1 %3531 }
 0x293   :  { %6943 = vst.msk [vmem:[%s10522_s3 + $0x30] sm:$0xf] %vm6930_vm4, %v6878_v48  ;;  %v6816_v57 = vmul.f32 %v8312_v1, %v4478_v52  ;;  %v7862_v17 = vpop.f32.mrb[159].mxu1  ;;  %v4570_v4 = vpop.f32.mrb[160].mxu0  ;;  %8319 = vrcp.f32 %v3532_v25 }
 0x294   :  { %v6881_v18 = vpack.c.bf16 %v6817_v43, %v6817_v43  ;;  %v7867_v39 = vpop.f32.mrb[161].mxu0  ;;  %v3535_v36 = vpop.xlane.xlu0 %3534 }
 0x295   :  { %v6880_v7 = vpack.c.bf16 %v6816_v57, %v6816_v57  ;;  %v4573_v3 = vpop.f32.mrb[162].mxu0  ;;  %8321 = vrcp.f32 %v3535_v36 }
 0x296   :  { %6946 = vst.msk [vmem:[%s10522_s3 + $0x3c] sm:$0xf] %vm6930_vm4, %v6881_v18  ;;  %v7868_v16 = vpop.f32.mrb[163].mxu0  ;;  %v4616_v58 = vpop.f32.mrb[160].mxu1 }
 0x297   :  { %v8314_v35 = vpop.eup %8313  ;;  %6945 = vst.msk [vmem:[%s10522_s3 + $0x38] sm:$0xf] %vm6930_vm4, %v6880_v7  ;;  %v7873_v61 = vpop.f32.mrb[161].mxu1 }
 0x298   :  { %v6818_v50 = vmul.f32 %v8314_v35, %v4570_v4  ;;  %v8316_v37 = vpop.eup %8315  ;;  %v4619_v23 = vpop.f32.mrb[162].mxu1 }
 0x299   :  { %v6819_v14 = vmul.f32 %v8316_v37, %v4616_v58  ;;  %v3538_v44 = vpop.xlane.xlu1 %3537  ;;  %v7874_v27 = vpop.f32.mrb[163].mxu1 }
 0x29a   :  { %v6882_v49 = vpack.c.bf16 %v6818_v50, %v6818_v50  ;;  %v4662_v5 = vpop.f32.mrb[164].mxu0  ;;  %8323 = vrcp.f32 %v3538_v44  ;;  %v3541_v41 = vpop.xlane.xlu0 %3540 }
 0x29b   :  { %v6883_v13 = vpack.c.bf16 %v6819_v14, %v6819_v14  ;;  %v8318_v9 = vpop.eup %8317  ;;  %v7879_v24 = vpop.f32.mrb[165].mxu0  ;;  %8325 = vrcp.f32 %v3541_v41 }
 0x29c   :  { %6947 = vst.msk [vmem:[%s10522_s3 + $0x40] sm:$0xf] %vm6930_vm4, %v6882_v49  ;;  %v6820_v55 = vmul.f32 %v8318_v9, %v4662_v5  ;;  %v4665_v47 = vpop.f32.mrb[166].mxu0 }
 0x29d   :  { %6948 = vst.msk [vmem:[%s10522_s3 + $0x44] sm:$0xf] %vm6930_vm4, %v6883_v13  ;;  %v7880_v8 = vpop.f32.mrb[167].mxu0  ;;  %v8320_v26 = vpop.eup %8319 }
 0x29e   :  { %v6884_v31 = vpack.c.bf16 %v6820_v55, %v6820_v55  ;;  %v4708_v45 = vpop.f32.mrb[164].mxu1  ;;  %v3544_v15 = vpop.xlane.xlu1 %3543 }
 0x29f   :  { %v6821_v38 = vmul.f32 %v8320_v26, %v4708_v45  ;;  %v7885_v40 = vpop.f32.mrb[165].mxu1  ;;  %v8322_v6 = vpop.eup %8321  ;;  %8327 = vrcp.f32 %v3544_v15 }
 0x2a0   :  { %6949 = vst.msk [vmem:[%s10522_s3 + $0x48] sm:$0xf] %vm6930_vm4, %v6884_v31  ;;  %v4711_v0 = vpop.f32.mrb[166].mxu1  ;;  %v3547_v22 = vpop.xlane.xlu0 %3546 }
 0x2a1   :  { %v6885_v10 = vpack.c.bf16 %v6821_v38, %v6821_v38  ;;  %v7886_v63 = vpop.f32.mrb[167].mxu1  ;;  %v4754_v54 = vpop.f32.mrb[168].mxu0  ;;  %8329 = vrcp.f32 %v3547_v22 }
 0x2a2   :  { %v6822_v30 = vmul.f32 %v8322_v6, %v4754_v54  ;;  %v7891_v29 = vpop.f32.mrb[169].mxu0  ;;  %v3550_v51 = vpop.xlane.xlu1 %3549 }
 0x2a3   :  { %6950 = vst.msk [vmem:[%s10522_s3 + $0x4c] sm:$0xf] %vm6930_vm4, %v6885_v10  ;;  %v4757_v20 = vpop.f32.mrb[170].mxu0  ;;  %8331 = vrcp.f32 %v3550_v51 }
 0x2a4   :  { %v6886_v19 = vpack.c.bf16 %v6822_v30, %v6822_v30  ;;  %v7892_v60 = vpop.f32.mrb[171].mxu0  ;;  %v8324_v59 = vpop.eup %8323 }
 0x2a5   :  { %v8326_v28 = vpop.eup %8325  ;;  %v3553_v33 = vpop.xlane.xlu0 %3552 }
 0x2a6   :  { %v4800_v52 = vpop.f32.mrb[168].mxu1  ;;  %6951 = vst.msk [vmem:[%s10522_s3 + $0x50] sm:$0xf] %vm6930_vm4, %v6886_v19  ;;  %8333 = vrcp.f32 %v3553_v33  ;;  %v3556_v17 = vpop.xlane.xlu1 %3555 }
 0x2a7   :  { %v6823_v62 = vmul.f32 %v8324_v59, %v4800_v52  ;;  %v7897_v11 = vpop.f32.mrb[169].mxu1  ;;  %8335 = vrcp.f32 %v3556_v17 }
 0x2a8   :  { %v4803_v34 = vpop.f32.mrb[170].mxu1 }
 0x2a9   :  { %v6887_v53 = vpack.c.bf16 %v6823_v62, %v6823_v62  ;;  %v7898_v32 = vpop.f32.mrb[171].mxu1  ;;  %v4846_v2 = vpop.f32.mrb[172].mxu0 }
 0x2aa   :  { %v6824_v56 = vmul.f32 %v8326_v28, %v4846_v2  ;;  %v7903_v42 = vpop.f32.mrb[173].mxu0  ;;  %v8328_v1 = vpop.eup %8327 }
 0x2ab   :  { %6952 = vst.msk [vmem:[%s10522_s3 + $0x54] sm:$0xf] %vm6930_vm4, %v6887_v53  ;;  %v4849_v12 = vpop.f32.mrb[174].mxu0  ;;  %v8330_v7 = vpop.eup %8329 }
 0x2ac   :  { %v6888_v48 = vpack.c.bf16 %v6824_v56, %v6824_v56  ;;  %v7904_v46 = vpop.f32.mrb[175].mxu0  ;;  %v3559_v50 = vpop.xlane.xlu0 %3558 }
 0x2ad   :  { %v8332_v58 = vpop.eup %8331  ;;  %8337 = vrcp.f32 %v3559_v50  ;;  %v3562_v44 = vpop.xlane.xlu1 %3561 }
 0x2ae   :  { %v4892_v43 = vpop.f32.mrb[172].mxu1  ;;  %6953 = vst.msk [vmem:[%s10522_s3 + $0x58] sm:$0xf] %vm6930_vm4, %v6888_v48  ;;  %8339 = vrcp.f32 %v3562_v44 }
 0x2af   :  { %v6825_v21 = vmul.f32 %v8328_v1, %v4892_v43  ;;  %v7909_v57 = vpop.f32.mrb[173].mxu1 }
 0x2b0   :  { %v4895_v25 = vpop.f32.mrb[174].mxu1  ;;  %v8334_v9 = vpop.eup %8333 }
 0x2b1   :  { %v6889_v18 = vpack.c.bf16 %v6825_v21, %v6825_v21  ;;  %v7910_v4 = vpop.f32.mrb[175].mxu1  ;;  %v4938_v39 = vpop.f32.mrb[176].mxu0 }
 0x2b2   :  { %v6826_v35 = vmul.f32 %v8330_v7, %v4938_v39  ;;  %v7915_v3 = vpop.f32.mrb[177].mxu0  ;;  %v3565_v41 = vpop.xlane.xlu0 %3564 }
 0x2b3   :  { %6954 = vst.msk [vmem:[%s10522_s3 + $0x5c] sm:$0xf] %vm6930_vm4, %v6889_v18  ;;  %v4941_v36 = vpop.f32.mrb[178].mxu0  ;;  %v8336_v26 = vpop.eup %8335  ;;  %8341 = vrcp.f32 %v3565_v41 }
 0x2b4   :  { %v6890_v16 = vpack.c.bf16 %v6826_v35, %v6826_v35  ;;  %v7916_v37 = vpop.f32.mrb[179].mxu0  ;;  %v3568_v15 = vpop.xlane.xlu1 %3567 }
 0x2b5   :  { %8343 = vrcp.f32 %v3568_v15 }
 0x2b6   :  { %v4984_v49 = vpop.f32.mrb[176].mxu1  ;;  %6955 = vst.msk [vmem:[%s10522_s3 + $0x60] sm:$0xf] %vm6930_vm4, %v6890_v16  ;;  %v3571_v22 = vpop.xlane.xlu0 %3570 }
 0x2b7   :  { %v6827_v14 = vmul.f32 %v8332_v58, %v4984_v49  ;;  %v7921_v61 = vpop.f32.mrb[177].mxu1  ;;  %v8338_v6 = vpop.eup %8337  ;;  %8345 = vrcp.f32 %v3571_v22 }
 0x2b8   :  { %v4987_v23 = vpop.f32.mrb[178].mxu1  ;;  %v8340_v59 = vpop.eup %8339 }
 0x2b9   :  { %v6891_v13 = vpack.c.bf16 %v6827_v14, %v6827_v14  ;;  %v7922_v27 = vpop.f32.mrb[179].mxu1  ;;  %v5030_v5 = vpop.f32.mrb[180].mxu0 }
 0x2ba   :  { %v6828_v55 = vmul.f32 %v8334_v9, %v5030_v5  ;;  %v7927_v24 = vpop.f32.mrb[181].mxu0  ;;  %v3574_v51 = vpop.xlane.xlu1 %3573 }
 0x2bb   :  { %6956 = vst.msk [vmem:[%s10522_s3 + $0x64] sm:$0xf] %vm6930_vm4, %v6891_v13  ;;  %v5033_v47 = vpop.f32.mrb[182].mxu0  ;;  %8347 = vrcp.f32 %v3574_v51  ;;  %v3577_v33 = vpop.xlane.xlu0 %3576 }
 0x2bc   :  { %v6892_v31 = vpack.c.bf16 %v6828_v55, %v6828_v55  ;;  %v7928_v8 = vpop.f32.mrb[183].mxu0  ;;  %8349 = vrcp.f32 %v3577_v33 }
 0x2bd   :  { %v8342_v28 = vpop.eup %8341 }
 0x2be   :  { %v5076_v45 = vpop.f32.mrb[180].mxu1  ;;  %6957 = vst.msk [vmem:[%s10522_s3 + $0x68] sm:$0xf] %vm6930_vm4, %v6892_v31  ;;  %v3580_v17 = vpop.xlane.xlu1 %3579 }
 0x2bf   :  { %v6829_v38 = vmul.f32 %v8336_v26, %v5076_v45  ;;  %v7933_v40 = vpop.f32.mrb[181].mxu1  ;;  %v8344_v1 = vpop.eup %8343  ;;  %8351 = vrcp.f32 %v3580_v17 }
 0x2c0   :  { %v5079_v0 = vpop.f32.mrb[182].mxu1  ;;  %v3583_v50 = vpop.xlane.xlu0 %3582 }
 0x2c1   :  { %v6893_v10 = vpack.c.bf16 %v6829_v38, %v6829_v38  ;;  %v7934_v63 = vpop.f32.mrb[183].mxu1  ;;  %v5122_v54 = vpop.f32.mrb[184].mxu0  ;;  %8353 = vrcp.f32 %v3583_v50 }
 0x2c2   :  { %v6830_v30 = vmul.f32 %v8338_v6, %v5122_v54  ;;  %v7939_v29 = vpop.f32.mrb[185].mxu0  ;;  %v8346_v7 = vpop.eup %8345 }
 0x2c3   :  { %6958 = vst.msk [vmem:[%s10522_s3 + $0x6c] sm:$0xf] %vm6930_vm4, %v6893_v10  ;;  %v5125_v20 = vpop.f32.mrb[186].mxu0  ;;  %v3586_v44 = vpop.xlane.xlu1 %3585 }
 0x2c4   :  { %v6894_v19 = vpack.c.bf16 %v6830_v30, %v6830_v30  ;;  %v7940_v60 = vpop.f32.mrb[187].mxu0  ;;  %8355 = vrcp.f32 %v3586_v44  ;;  %v3589_v41 = vpop.xlane.xlu0 %3588 }
 0x2c5   :  { %v8348_v58 = vpop.eup %8347  ;;  %8357 = vrcp.f32 %v3589_v41 }
 0x2c6   :  { %v5168_v52 = vpop.f32.mrb[184].mxu1  ;;  %6959 = vst.msk [vmem:[%s10522_s3 + $0x70] sm:$0xf] %vm6930_vm4, %v6894_v19  ;;  %v8350_v9 = vpop.eup %8349 }
 0x2c7   :  { %v6831_v62 = vmul.f32 %v8340_v59, %v5168_v52  ;;  %v7945_v11 = vpop.f32.mrb[185].mxu1  ;;  %v3592_v15 = vpop.xlane.xlu1 %3591 }
 0x2c8   :  { %v5171_v34 = vpop.f32.mrb[186].mxu1  ;;  %8359 = vrcp.f32 %v3592_v15  ;;  %v3595_v22 = vpop.xlane.xlu0 %3594 }
 0x2c9   :  { %v6895_v53 = vpack.c.bf16 %v6831_v62, %v6831_v62  ;;  %v7946_v32 = vpop.f32.mrb[187].mxu1  ;;  %v5214_v2 = vpop.f32.mrb[188].mxu0  ;;  %8361 = vrcp.f32 %v3595_v22 }
 0x2ca   :  { %v6832_v56 = vmul.f32 %v8342_v28, %v5214_v2  ;;  %v7951_v42 = vpop.f32.mrb[189].mxu0  ;;  %v8352_v26 = vpop.eup %8351 }
 0x2cb   :  { %6960 = vst.msk [vmem:[%s10522_s3 + $0x74] sm:$0xf] %vm6930_vm4, %v6895_v53  ;;  %v5217_v12 = vpop.f32.mrb[190].mxu0  ;;  %v8354_v6 = vpop.eup %8353 }
 0x2cc   :  { %v6896_v48 = vpack.c.bf16 %v6832_v56, %v6832_v56  ;;  %v7952_v46 = vpop.f32.mrb[191].mxu0  ;;  %v3598_v51 = vpop.xlane.xlu1 %3597 }
 0x2cd   :  { %8363 = vrcp.f32 %v3598_v51  ;;  %v3601_v33 = vpop.xlane.xlu0 %3600 }
 0x2ce   :  { %v5260_v43 = vpop.f32.mrb[188].mxu1  ;;  %6961 = vst.msk [vmem:[%s10522_s3 + $0x78] sm:$0xf] %vm6930_vm4, %v6896_v48  ;;  %v8356_v59 = vpop.eup %8355  ;;  %8365 = vrcp.f32 %v3601_v33 }
 0x2cf   :  { %v6833_v21 = vmul.f32 %v8344_v1, %v5260_v43  ;;  %v7957_v57 = vpop.f32.mrb[189].mxu1  ;;  %v8358_v28 = vpop.eup %8357 }
 0x2d0   :  { %v5263_v25 = vpop.f32.mrb[190].mxu1  ;;  %v3604_v17 = vpop.xlane.xlu1 %3603 }
 0x2d1   :  { %v6897_v18 = vpack.c.bf16 %v6833_v21, %v6833_v21  ;;  %v7958_v4 = vpop.f32.mrb[191].mxu1  ;;  %v5306_v39 = vpop.f32.mrb[192].mxu0  ;;  %8367 = vrcp.f32 %v3604_v17 }
 0x2d2   :  { %v6834_v35 = vmul.f32 %v8346_v7, %v5306_v39  ;;  %v7963_v3 = vpop.f32.mrb[193].mxu0  ;;  %v8360_v1 = vpop.eup %8359 }
 0x2d3   :  { %6962 = vst.msk [vmem:[%s10522_s3 + $0x7c] sm:$0xf] %vm6930_vm4, %v6897_v18  ;;  %v5309_v36 = vpop.f32.mrb[194].mxu0  ;;  %v8362_v7 = vpop.eup %8361 }
 0x2d4   :  { %v6898_v16 = vpack.c.bf16 %v6834_v35, %v6834_v35  ;;  %v7964_v37 = vpop.f32.mrb[195].mxu0  ;;  %v3607_v50 = vpop.xlane.xlu0 %3606 }
 0x2d5   :  { %8369 = vrcp.f32 %v3607_v50  ;;  %v3610_v44 = vpop.xlane.xlu1 %3609 }
 0x2d6   :  { %v5352_v49 = vpop.f32.mrb[192].mxu1  ;;  %6963 = vst.msk [vmem:[%s10522_s3 + $0x80] sm:$0xf] %vm6930_vm4, %v6898_v16  ;;  %8371 = vrcp.f32 %v3610_v44 }
 0x2d7   :  { %v6835_v14 = vmul.f32 %v8348_v58, %v5352_v49  ;;  %v7969_v61 = vpop.f32.mrb[193].mxu1  ;;  %v8364_v58 = vpop.eup %8363 }
 0x2d8   :  { %v5355_v23 = vpop.f32.mrb[194].mxu1  ;;  %v3613_v41 = vpop.xlane.xlu0 %3612 }
 0x2d9   :  { %v6899_v13 = vpack.c.bf16 %v6835_v14, %v6835_v14  ;;  %v7970_v27 = vpop.f32.mrb[195].mxu1  ;;  %v5398_v5 = vpop.f32.mrb[196].mxu0  ;;  %8373 = vrcp.f32 %v3613_v41 }
 0x2da   :  { %v6836_v55 = vmul.f32 %v8350_v9, %v5398_v5  ;;  %v7975_v24 = vpop.f32.mrb[197].mxu0  ;;  %v8366_v9 = vpop.eup %8365 }
 0x2db   :  { %6964 = vst.msk [vmem:[%s10522_s3 + $0x84] sm:$0xf] %vm6930_vm4, %v6899_v13  ;;  %v5401_v47 = vpop.f32.mrb[198].mxu0  ;;  %v3616_v15 = vpop.xlane.xlu1 %3615 }
 0x2dc   :  { %v6900_v31 = vpack.c.bf16 %v6836_v55, %v6836_v55  ;;  %v7976_v8 = vpop.f32.mrb[199].mxu0  ;;  %8375 = vrcp.f32 %v3616_v15  ;;  %v3619_v22 = vpop.xlane.xlu0 %3618 }
 0x2dd   :  { %8377 = vrcp.f32 %v3619_v22 }
 0x2de   :  { %v5444_v45 = vpop.f32.mrb[196].mxu1  ;;  %6965 = vst.msk [vmem:[%s10522_s3 + $0x88] sm:$0xf] %vm6930_vm4, %v6900_v31 }
 0x2df   :  { %v6837_v38 = vmul.f32 %v8352_v26, %v5444_v45  ;;  %v7981_v40 = vpop.f32.mrb[197].mxu1  ;;  %v8368_v26 = vpop.eup %8367 }
 0x2e0   :  { %v5447_v0 = vpop.f32.mrb[198].mxu1  ;;  %v3622_v51 = vpop.xlane.xlu1 %3621 }
 0x2e1   :  { %v6901_v10 = vpack.c.bf16 %v6837_v38, %v6837_v38  ;;  %v7982_v63 = vpop.f32.mrb[199].mxu1  ;;  %v5490_v54 = vpop.f32.mrb[200].mxu0  ;;  %8379 = vrcp.f32 %v3622_v51 }
 0x2e2   :  { %v6838_v30 = vmul.f32 %v8354_v6, %v5490_v54  ;;  %v7987_v29 = vpop.f32.mrb[201].mxu0  ;;  %v8370_v6 = vpop.eup %8369 }
 0x2e3   :  { %6966 = vst.msk [vmem:[%s10522_s3 + $0x8c] sm:$0xf] %vm6930_vm4, %v6901_v10  ;;  %v5493_v20 = vpop.f32.mrb[202].mxu0  ;;  %v3625_v33 = vpop.xlane.xlu0 %3624 }
 0x2e4   :  { %v6902_v19 = vpack.c.bf16 %v6838_v30, %v6838_v30  ;;  %v7988_v60 = vpop.f32.mrb[203].mxu0  ;;  %8381 = vrcp.f32 %v3625_v33  ;;  %v3628_v17 = vpop.xlane.xlu1 %3627 }
 0x2e5   :  { %8383 = vrcp.f32 %v3628_v17 }
 0x2e6   :  { %v5536_v52 = vpop.f32.mrb[200].mxu1  ;;  %6967 = vst.msk [vmem:[%s10522_s3 + $0x90] sm:$0xf] %vm6930_vm4, %v6902_v19 }
 0x2e7   :  { %v6839_v62 = vmul.f32 %v8356_v59, %v5536_v52  ;;  %v7993_v11 = vpop.f32.mrb[201].mxu1  ;;  %v8372_v59 = vpop.eup %8371 }
 0x2e8   :  { %v5539_v34 = vpop.f32.mrb[202].mxu1  ;;  %v3631_v50 = vpop.xlane.xlu0 %3630 }
 0x2e9   :  { %v6903_v53 = vpack.c.bf16 %v6839_v62, %v6839_v62  ;;  %v7994_v32 = vpop.f32.mrb[203].mxu1  ;;  %v5582_v2 = vpop.f32.mrb[204].mxu0  ;;  %8385 = vrcp.f32 %v3631_v50 }
 0x2ea   :  { %v6840_v56 = vmul.f32 %v8358_v28, %v5582_v2  ;;  %v7999_v42 = vpop.f32.mrb[205].mxu0  ;;  %v8374_v28 = vpop.eup %8373 }
 0x2eb   :  { %6968 = vst.msk [vmem:[%s10522_s3 + $0x94] sm:$0xf] %vm6930_vm4, %v6903_v53  ;;  %v5585_v12 = vpop.f32.mrb[206].mxu0  ;;  %v3634_v44 = vpop.xlane.xlu1 %3633 }
 0x2ec   :  { %v6904_v48 = vpack.c.bf16 %v6840_v56, %v6840_v56  ;;  %v8000_v46 = vpop.f32.mrb[207].mxu0  ;;  %8387 = vrcp.f32 %v3634_v44  ;;  %v3637_v41 = vpop.xlane.xlu0 %3636 }
 0x2ed   :  { %8389 = vrcp.f32 %v3637_v41 }
 0x2ee   :  { %v5628_v43 = vpop.f32.mrb[204].mxu1  ;;  %6969 = vst.msk [vmem:[%s10522_s3 + $0x98] sm:$0xf] %vm6930_vm4, %v6904_v48 }
 0x2ef   :  { %v6841_v21 = vmul.f32 %v8360_v1, %v5628_v43  ;;  %v8005_v57 = vpop.f32.mrb[205].mxu1  ;;  %v8376_v1 = vpop.eup %8375 }
 0x2f0   :  { %v5631_v25 = vpop.f32.mrb[206].mxu1  ;;  %v3640_v15 = vpop.xlane.xlu1 %3639 }
 0x2f1   :  { %v6905_v18 = vpack.c.bf16 %v6841_v21, %v6841_v21  ;;  %v8006_v4 = vpop.f32.mrb[207].mxu1  ;;  %v5674_v39 = vpop.f32.mrb[208].mxu0  ;;  %8391 = vrcp.f32 %v3640_v15 }
 0x2f2   :  { %v6842_v35 = vmul.f32 %v8362_v7, %v5674_v39  ;;  %v8011_v3 = vpop.f32.mrb[209].mxu0  ;;  %v8378_v7 = vpop.eup %8377 }
 0x2f3   :  { %6970 = vst.msk [vmem:[%s10522_s3 + $0x9c] sm:$0xf] %vm6930_vm4, %v6905_v18  ;;  %v5677_v36 = vpop.f32.mrb[210].mxu0  ;;  %v3643_v22 = vpop.xlane.xlu0 %3642 }
 0x2f4   :  { %v6906_v16 = vpack.c.bf16 %v6842_v35, %v6842_v35  ;;  %v8012_v37 = vpop.f32.mrb[211].mxu0  ;;  %8393 = vrcp.f32 %v3643_v22  ;;  %v3646_v51 = vpop.xlane.xlu1 %3645 }
 0x2f5   :  { %8395 = vrcp.f32 %v3646_v51 }
 0x2f6   :  { %v5720_v49 = vpop.f32.mrb[208].mxu1  ;;  %6971 = vst.msk [vmem:[%s10522_s3 + $0xa0] sm:$0xf] %vm6930_vm4, %v6906_v16 }
 0x2f7   :  { %v6843_v14 = vmul.f32 %v8364_v58, %v5720_v49  ;;  %v8017_v61 = vpop.f32.mrb[209].mxu1  ;;  %v8380_v58 = vpop.eup %8379 }
 0x2f8   :  { %v5723_v23 = vpop.f32.mrb[210].mxu1  ;;  %v3649_v33 = vpop.xlane.xlu0 %3648 }
 0x2f9   :  { %v6907_v13 = vpack.c.bf16 %v6843_v14, %v6843_v14  ;;  %v8018_v27 = vpop.f32.mrb[211].mxu1  ;;  %v5766_v5 = vpop.f32.mrb[212].mxu0  ;;  %8397 = vrcp.f32 %v3649_v33 }
 0x2fa   :  { %v6844_v55 = vmul.f32 %v8366_v9, %v5766_v5  ;;  %v8023_v24 = vpop.f32.mrb[213].mxu0  ;;  %v8382_v9 = vpop.eup %8381 }
 0x2fb   :  { %6972 = vst.msk [vmem:[%s10522_s3 + $0xa4] sm:$0xf] %vm6930_vm4, %v6907_v13  ;;  %v5769_v47 = vpop.f32.mrb[214].mxu0  ;;  %v3652_v17 = vpop.xlane.xlu1 %3651 }
 0x2fc   :  { %v6908_v31 = vpack.c.bf16 %v6844_v55, %v6844_v55  ;;  %v8024_v8 = vpop.f32.mrb[215].mxu0  ;;  %8399 = vrcp.f32 %v3652_v17  ;;  %v3655_v50 = vpop.xlane.xlu0 %3654 }
 0x2fd   :  { %8401 = vrcp.f32 %v3655_v50 }
 0x2fe   :  { %v5812_v45 = vpop.f32.mrb[212].mxu1  ;;  %6973 = vst.msk [vmem:[%s10522_s3 + $0xa8] sm:$0xf] %vm6930_vm4, %v6908_v31 }
 0x2ff   :  { %v6845_v38 = vmul.f32 %v8368_v26, %v5812_v45  ;;  %v8029_v40 = vpop.f32.mrb[213].mxu1  ;;  %v8384_v26 = vpop.eup %8383 }
 0x300   :  { %v5815_v0 = vpop.f32.mrb[214].mxu1  ;;  %v3658_v44 = vpop.xlane.xlu1 %3657 }
 0x301   :  { %v6909_v10 = vpack.c.bf16 %v6845_v38, %v6845_v38  ;;  %v8030_v63 = vpop.f32.mrb[215].mxu1  ;;  %v5858_v54 = vpop.f32.mrb[216].mxu0  ;;  %8403 = vrcp.f32 %v3658_v44 }
 0x302   :  { %v6846_v30 = vmul.f32 %v8370_v6, %v5858_v54  ;;  %v8035_v29 = vpop.f32.mrb[217].mxu0  ;;  %v8386_v6 = vpop.eup %8385 }
 0x303   :  { %6974 = vst.msk [vmem:[%s10522_s3 + $0xac] sm:$0xf] %vm6930_vm4, %v6909_v10  ;;  %v5861_v20 = vpop.f32.mrb[218].mxu0  ;;  %v3661_v41 = vpop.xlane.xlu0 %3660 }
 0x304   :  { %v6910_v19 = vpack.c.bf16 %v6846_v30, %v6846_v30  ;;  %v8036_v60 = vpop.f32.mrb[219].mxu0  ;;  %8405 = vrcp.f32 %v3661_v41  ;;  %v3664_v15 = vpop.xlane.xlu1 %3663 }
 0x305   :  { %8407 = vrcp.f32 %v3664_v15 }
 0x306   :  { %v5904_v52 = vpop.f32.mrb[216].mxu1  ;;  %6975 = vst.msk [vmem:[%s10522_s3 + $0xb0] sm:$0xf] %vm6930_vm4, %v6910_v19 }
 0x307   :  { %v6847_v62 = vmul.f32 %v8372_v59, %v5904_v52  ;;  %v8041_v11 = vpop.f32.mrb[217].mxu1  ;;  %v8388_v59 = vpop.eup %8387 }
 0x308   :  { %v5907_v34 = vpop.f32.mrb[218].mxu1 }
 0x309   :  { %v6911_v53 = vpack.c.bf16 %v6847_v62, %v6847_v62  ;;  %v8042_v32 = vpop.f32.mrb[219].mxu1 }
 0x30a   :  { %v5950_v2 = vpop.f32.mrb[220].mxu0 }
 0x30b   :  { %6976 = vst.msk [vmem:[%s10522_s3 + $0xb4] sm:$0xf] %vm6930_vm4, %v6911_v53  ;;  %v6848_v56 = vmul.f32 %v8374_v28, %v5950_v2  ;;  %v8047_v42 = vpop.f32.mrb[221].mxu0  ;;  %v8390_v28 = vpop.eup %8389 }
 0x30c   :  { %v5953_v12 = vpop.f32.mrb[222].mxu0 }
 0x30d   :  { %v6912_v48 = vpack.c.bf16 %v6848_v56, %v6848_v56  ;;  %v8048_v46 = vpop.f32.mrb[223].mxu0 }
 0x30e   :  { %v5996_v43 = vpop.f32.mrb[220].mxu1 }
 0x30f   :  { %6977 = vst.msk [vmem:[%s10522_s3 + $0xb8] sm:$0xf] %vm6930_vm4, %v6912_v48  ;;  %v6849_v21 = vmul.f32 %v8376_v1, %v5996_v43  ;;  %v8053_v57 = vpop.f32.mrb[221].mxu1  ;;  %v8392_v1 = vpop.eup %8391 }
 0x310   :  { %v5999_v25 = vpop.f32.mrb[222].mxu1 }
 0x311   :  { %v6913_v18 = vpack.c.bf16 %v6849_v21, %v6849_v21  ;;  %v8054_v4 = vpop.f32.mrb[223].mxu1 }
 0x312   :  { %v6042_v39 = vpop.f32.mrb[224].mxu0 }
 0x313   :  { %6978 = vst.msk [vmem:[%s10522_s3 + $0xbc] sm:$0xf] %vm6930_vm4, %v6913_v18  ;;  %v6850_v35 = vmul.f32 %v8378_v7, %v6042_v39  ;;  %v8059_v3 = vpop.f32.mrb[225].mxu0  ;;  %v8394_v7 = vpop.eup %8393 }
 0x314   :  { %v6045_v36 = vpop.f32.mrb[226].mxu0 }
 0x315   :  { %v6914_v16 = vpack.c.bf16 %v6850_v35, %v6850_v35  ;;  %v8060_v37 = vpop.f32.mrb[227].mxu0 }
 0x316   :  { %v6088_v49 = vpop.f32.mrb[224].mxu1 }
 0x317   :  { %6979 = vst.msk [vmem:[%s10522_s3 + $0xc0] sm:$0xf] %vm6930_vm4, %v6914_v16  ;;  %v6851_v14 = vmul.f32 %v8380_v58, %v6088_v49  ;;  %v8065_v61 = vpop.f32.mrb[225].mxu1  ;;  %v8396_v58 = vpop.eup %8395 }
 0x318   :  { %v6091_v23 = vpop.f32.mrb[226].mxu1 }
 0x319   :  { %v6915_v13 = vpack.c.bf16 %v6851_v14, %v6851_v14  ;;  %v8066_v27 = vpop.f32.mrb[227].mxu1 }
 0x31a   :  { %v6134_v5 = vpop.f32.mrb[228].mxu0 }
 0x31b   :  { %6980 = vst.msk [vmem:[%s10522_s3 + $0xc4] sm:$0xf] %vm6930_vm4, %v6915_v13  ;;  %v6852_v55 = vmul.f32 %v8382_v9, %v6134_v5  ;;  %v8071_v24 = vpop.f32.mrb[229].mxu0  ;;  %v8398_v9 = vpop.eup %8397 }
 0x31c   :  { %v6137_v47 = vpop.f32.mrb[230].mxu0 }
 0x31d   :  { %v6916_v31 = vpack.c.bf16 %v6852_v55, %v6852_v55  ;;  %v8072_v8 = vpop.f32.mrb[231].mxu0 }
 0x31e   :  { %v6180_v45 = vpop.f32.mrb[228].mxu1 }
 0x31f   :  { %6981 = vst.msk [vmem:[%s10522_s3 + $0xc8] sm:$0xf] %vm6930_vm4, %v6916_v31  ;;  %v6853_v38 = vmul.f32 %v8384_v26, %v6180_v45  ;;  %v8077_v40 = vpop.f32.mrb[229].mxu1  ;;  %v8400_v26 = vpop.eup %8399 }
 0x320   :  { %v6183_v0 = vpop.f32.mrb[230].mxu1 }
 0x321   :  { %v6917_v10 = vpack.c.bf16 %v6853_v38, %v6853_v38  ;;  %v8078_v63 = vpop.f32.mrb[231].mxu1 }
 0x322   :  { %v6226_v54 = vpop.f32.mrb[232].mxu0 }
 0x323   :  { %6982 = vst.msk [vmem:[%s10522_s3 + $0xcc] sm:$0xf] %vm6930_vm4, %v6917_v10  ;;  %v6854_v30 = vmul.f32 %v8386_v6, %v6226_v54  ;;  %v8083_v29 = vpop.f32.mrb[233].mxu0  ;;  %v8402_v6 = vpop.eup %8401 }
 0x324   :  { %v6229_v20 = vpop.f32.mrb[234].mxu0 }
 0x325   :  { %v6918_v19 = vpack.c.bf16 %v6854_v30, %v6854_v30  ;;  %v8084_v60 = vpop.f32.mrb[235].mxu0 }
 0x326   :  { %v6272_v52 = vpop.f32.mrb[232].mxu1  ;;  %v8404_v60 = vpop.eup %8403 }
 0x327   :  { %6983 = vst.msk [vmem:[%s10522_s3 + $0xd0] sm:$0xf] %vm6930_vm4, %v6918_v19  ;;  %v6855_v62 = vmul.f32 %v8388_v59, %v6272_v52  ;;  %v8089_v11 = vpop.f32.mrb[233].mxu1 }
 0x328   :  { %v6275_v34 = vpop.f32.mrb[234].mxu1 }
 0x329   :  { %v6919_v53 = vpack.c.bf16 %v6855_v62, %v6855_v62  ;;  %v8090_v32 = vpop.f32.mrb[235].mxu1 }
 0x32a   :  { %v6318_v2 = vpop.f32.mrb[236].mxu0 }
 0x32b   :  { %6984 = vst.msk [vmem:[%s10522_s3 + $0xd4] sm:$0xf] %vm6930_vm4, %v6919_v53  ;;  %v6856_v56 = vmul.f32 %v8390_v28, %v6318_v2  ;;  %v8095_v42 = vpop.f32.mrb[237].mxu0  ;;  %v8406_v53 = vpop.eup %8405 }
 0x32c   :  { %v6321_v12 = vpop.f32.mrb[238].mxu0  ;;  %v8408_v33 = vpop.eup %8407 }
 0x32d   :  { %v6920_v48 = vpack.c.bf16 %v6856_v56, %v6856_v56  ;;  %v8096_v46 = vpop.f32.mrb[239].mxu0 }
 0x32e   :  { %v6364_v43 = vpop.f32.mrb[236].mxu1 }
 0x32f   :  { %6985 = vst.msk [vmem:[%s10522_s3 + $0xd8] sm:$0xf] %vm6930_vm4, %v6920_v48  ;;  %v6857_v21 = vmul.f32 %v8392_v1, %v6364_v43  ;;  %v8101_v57 = vpop.f32.mrb[237].mxu1 }
 0x330   :  { %v6367_v25 = vpop.f32.mrb[238].mxu1 }
 0x331   :  { %v6921_v18 = vpack.c.bf16 %v6857_v21, %v6857_v21  ;;  %v8102_v4 = vpop.f32.mrb[239].mxu1 }
 0x332   :  { %v6410_v39 = vpop.f32.mrb[240].mxu0 }
 0x333   :  { %6986 = vst.msk [vmem:[%s10522_s3 + $0xdc] sm:$0xf] %vm6930_vm4, %v6921_v18  ;;  %v6858_v35 = vmul.f32 %v8394_v7, %v6410_v39  ;;  %v8107_v3 = vpop.f32.mrb[241].mxu0 }
 0x334   :  { %v6413_v36 = vpop.f32.mrb[242].mxu0 }
 0x335   :  { %v6922_v16 = vpack.c.bf16 %v6858_v35, %v6858_v35  ;;  %v8108_v37 = vpop.f32.mrb[243].mxu0 }
 0x336   :  { %v6456_v49 = vpop.f32.mrb[240].mxu1 }
 0x337   :  { %6987 = vst.msk [vmem:[%s10522_s3 + $0xe0] sm:$0xf] %vm6930_vm4, %v6922_v16  ;;  %v6859_v14 = vmul.f32 %v8396_v58, %v6456_v49  ;;  %v8113_v61 = vpop.f32.mrb[241].mxu1 }
 0x338   :  { %v6459_v23 = vpop.f32.mrb[242].mxu1 }
 0x339   :  { %v6923_v13 = vpack.c.bf16 %v6859_v14, %v6859_v14  ;;  %v8114_v27 = vpop.f32.mrb[243].mxu1 }
 0x33a   :  { %v6502_v5 = vpop.f32.mrb[244].mxu0 }
 0x33b   :  { %6988 = vst.msk [vmem:[%s10522_s3 + $0xe4] sm:$0xf] %vm6930_vm4, %v6923_v13  ;;  %v6860_v55 = vmul.f32 %v8398_v9, %v6502_v5  ;;  %v8119_v24 = vpop.f32.mrb[245].mxu0 }
 0x33c   :  { %v6505_v47 = vpop.f32.mrb[246].mxu0 }
 0x33d   :  { %v6924_v31 = vpack.c.bf16 %v6860_v55, %v6860_v55  ;;  %v8120_v8 = vpop.f32.mrb[247].mxu0 }
 0x33e   :  { %v6548_v45 = vpop.f32.mrb[244].mxu1 }
 0x33f   :  { %6989 = vst.msk [vmem:[%s10522_s3 + $0xe8] sm:$0xf] %vm6930_vm4, %v6924_v31  ;;  %v6861_v38 = vmul.f32 %v8400_v26, %v6548_v45  ;;  %v8125_v40 = vpop.f32.mrb[245].mxu1 }
 0x340   :  { %v6551_v0 = vpop.f32.mrb[246].mxu1 }
 0x341   :  { %v6925_v10 = vpack.c.bf16 %v6861_v38, %v6861_v38  ;;  %v8126_v63 = vpop.f32.mrb[247].mxu1 }
 0x342   :  { %v6594_v54 = vpop.f32.mrb[248].mxu0 }
 0x343   :  { %6990 = vst.msk [vmem:[%s10522_s3 + $0xec] sm:$0xf] %vm6930_vm4, %v6925_v10  ;;  %v6862_v30 = vmul.f32 %v8402_v6, %v6594_v54  ;;  %v8131_v29 = vpop.f32.mrb[249].mxu0 }
 0x344   :  { %v6597_v20 = vpop.f32.mrb[250].mxu0 }
 0x345   :  { %v6926_v22 = vpack.c.bf16 %v6862_v30, %v6862_v30  ;;  %v8132_v19 = vpop.f32.mrb[251].mxu0 }
 0x346   :  { %v6640_v59 = vpop.f32.mrb[248].mxu1 }
 0x347   :  { %6991 = vst.msk [vmem:[%s10522_s3 + $0xf0] sm:$0xf] %vm6930_vm4, %v6926_v22  ;;  %v6863_v52 = vmul.f32 %v8404_v60, %v6640_v59  ;;  %v8137_v62 = vpop.f32.mrb[249].mxu1 }
 0x348   :  { %v6643_v11 = vpop.f32.mrb[250].mxu1 }
 0x349   :  { %v6927_v34 = vpack.c.bf16 %v6863_v52, %v6863_v52  ;;  %v8138_v51 = vpop.f32.mrb[251].mxu1 }
 0x34a   :  { %v6686_v32 = vpop.f32.mrb[252].mxu0 }
 0x34b   :  { %6992 = vst.msk [vmem:[%s10522_s3 + $0xf4] sm:$0xf] %vm6930_vm4, %v6927_v34  ;;  %v6864_v28 = vmul.f32 %v8406_v53, %v6686_v32  ;;  %v8143_v2 = vpop.f32.mrb[253].mxu0 }
 0x34c   :  { %v6689_v56 = vpop.f32.mrb[254].mxu0 }
 0x34d   :  { %v6928_v42 = vpack.c.bf16 %v6864_v28, %v6864_v28  ;;  %v8144_v12 = vpop.f32.mrb[255].mxu0 }
 0x34e   :  { %v6732_v48 = vpop.f32.mrb[252].mxu1 }
 0x34f   :  { %6993 = vst.msk [vmem:[%s10522_s3 + $0xf8] sm:$0xf] %vm6930_vm4, %v6928_v42  ;;  %v6865_v46 = vmul.f32 %v8408_v33, %v6732_v48  ;;  %v8149_v1 = vpop.f32.mrb[253].mxu1 }
 0x350   :  { %v6735_v43 = vpop.f32.mrb[254].mxu1 }
 0x351   :  { %v6929_v21 = vpack.c.bf16 %v6865_v46, %v6865_v46  ;;  %v8150_v57 = vpop.f32.mrb[255].mxu1 }
 0x353   :  { %6994 = vst.msk [vmem:[%s10522_s3 + $0xfc] sm:$0xf] %vm6930_vm4, %v6929_v21 }

</bundles_post_ra>
